<compile_context>
chip_gen: v6e
topology: v6e:2x2x1
jax: 0.10.0
libtpu: 0.0.40
codegen_flags: <defaults>
</compile_context>

<pallas_src>
import functools

import numpy as np
import jax
import jax.numpy as jnp
from jax.experimental import pallas as pl
from jax.experimental.pallas import tpu as pltpu

EPS = 1e-5  # PyTorch BatchNorm1d default eps
K = 5       # conv kernel size (both conv layers)


def _round_up(a, m):
    return (a + m - 1) // m * m


# -----------------------------------------------------------------------------
# Pallas kernel factory: whole batched forward pass for one block of B samples.
# Everything is position-major: activations are (positions*B, channels) slabs
# (or (positions, B, channels) values), B a multiple of 8.
# -----------------------------------------------------------------------------
def _make_cnn_kernel(B, L0, P2):
    L1 = L0 - (K - 1)        # conv1 output length
    P1 = L1 // 2             # pool1 output length
    L2 = P1 - (K - 1)        # conv2 output length

    def kernel(x_ref,                          # (L0, B, Cin)
               w1_ref, t1_ref,                 # (K, Cin, C1), (1, C1)
               w2_ref, t2_ref,                 # (K, C1, C2),  (1, C2)
               wf1_ref, t3_ref,                # (P2, C2, H1), (1, H1)
               wf2_ref, t4_ref,                # (H1, H2),     (1, H2)
               wf3_ref, bf3_ref,               # (H2, NCp),    (1, NCp)
               out_ref):                       # (B, NCp)
        Cin = x_ref.shape[2]
        C1 = t1_ref.shape[1]
        C2 = t2_ref.shape[1]

        x = x_ref[...]                                            # (L0, B, Cin)

        # ---- Conv1d(Cin->C1, k=5) + folded BN + ReLU (per-tap accumulation) ---
        # Output row l*B + b reads input rows (l+k)*B + b: tap shift = an
        # aligned slice along the position axis.
        acc1 = jnp.dot(x[0:L1].reshape(L1 * B, Cin), w1_ref[0],
                       preferred_element_type=jnp.float32)
        for k in range(1, K):
            acc1 = acc1 + jnp.dot(x[k:k + L1].reshape(L1 * B, Cin), w1_ref[k],
                                  preferred_element_type=jnp.float32)
        h1 = jnp.maximum(acc1 + t1_ref[...], 0.0)                 # (L1*B, C1)

        # ---- MaxPool1d(2,2): layout-free reshape + aligned sublane halves -----
        r1 = h1[:2 * P1 * B].reshape(P1, 2 * B, C1)
        p1 = jnp.maximum(r1[:, :B, :], r1[:, B:, :])              # (P1, B, C1)

        # ---- Conv1d(C1->C2, k=5) + folded BN + ReLU ----------------------------
        acc2 = jnp.dot(p1[0:L2].reshape(L2 * B, C1), w2_ref[0],
                       preferred_element_type=jnp.float32)
        for k in range(1, K):
            acc2 = acc2 + jnp.dot(p1[k:k + L2].reshape(L2 * B, C1), w2_ref[k],
                                  preferred_element_type=jnp.float32)
        h2 = jnp.maximum(acc2 + t2_ref[...], 0.0)                 # (L2*B, C2)

        # ---- MaxPool1d(2,2) fused with the flatten -----------------------------
        r2 = h2[:2 * P2 * B].reshape(P2, 2 * B, C2)
        p2 = jnp.maximum(r2[:, :B, :], r2[:, B:, :])              # (P2, B, C2)

        # ---- Linear(P2*C2 -> H1) + folded BN + ReLU ----------------------------
        # Torch flatten index c*P2 + p is already baked into wf1's (P2, C2, H1)
        # ordering, so this is a per-position accumulation over contiguous
        # (B, C2) pieces.
        y1 = jnp.dot(p2[0], wf1_ref[0], preferred_element_type=jnp.float32)
        for p in range(1, P2):
            y1 = y1 + jnp.dot(p2[p], wf1_ref[p],
                              preferred_element_type=jnp.float32)
        z1 = jnp.maximum(y1 + t3_ref[...], 0.0)                   # (B, H1)

        # ---- Linear(H1 -> H2) + folded BN + ReLU -------------------------------
        z2 = jnp.maximum(
            jnp.dot(z1, wf2_ref[...], preferred_element_type=jnp.float32)
            + t4_ref[...], 0.0)                                   # (B, H2)

        # ---- Linear(H2 -> num_classes), lane-padded to NCp for a dense store --
        out_ref[...] = (jnp.dot(z2, wf3_ref[...],
                                preferred_element_type=jnp.float32)
                        + bf3_ref[...]).astype(out_ref.dtype)

    return kernel


# -----------------------------------------------------------------------------
# Parameter init (PyTorch layouts) and conversion to kernel layouts.
# -----------------------------------------------------------------------------
def init_torch_params(key, num_classes, seq_length):
    L1 = seq_length - 4
    P1 = L1 // 2
    L2 = P1 - 4
    P2 = L2 // 2
    flat = 16 * P2  # == CNN._get_conv_output(seq_length)

    ks = jax.random.split(key, 18)

    def nrm(k, shape, scale=0.1):
        return scale * jax.random.normal(k, shape, dtype=jnp.float32)

    return dict(
        conv1_w=nrm(ks[0], (6, 3, 5)),   conv1_b=nrm(ks[1], (6,)),
        bn1_g=1.0 + nrm(ks[2], (6,)),    bn1_b=nrm(ks[3], (6,)),
        conv2_w=nrm(ks[4], (16, 6, 5)),  conv2_b=nrm(ks[5], (16,)),
        bn2_g=1.0 + nrm(ks[6], (16,)),   bn2_b=nrm(ks[7], (16,)),
        fc1_w=nrm(ks[8], (120, flat)),   fc1_b=nrm(ks[9], (120,)),
        bn3_g=1.0 + nrm(ks[10], (120,)), bn3_b=nrm(ks[11], (120,)),
        fc2_w=nrm(ks[12], (84, 120)),    fc2_b=nrm(ks[13], (84,)),
        bn4_g=1.0 + nrm(ks[14], (84,)),  bn4_b=nrm(ks[15], (84,)),
        fc3_w=nrm(ks[16], (num_classes, 84)),
        fc3_b=nrm(ks[17], (num_classes,)),
    )


def _bn_fold(gamma, beta, bias, mean=0.0, var=1.0):
    """Fold (x + bias) -> BatchNorm(eval) into per-channel (scale, shift)."""
    s = gamma / jnp.sqrt(var + EPS)
    t = s * (bias - mean) + beta
    return s, t[None, :]


def prepare_kernel_params(p, P2, num_classes):
    """Fold BN into weights/shifts and reorder everything for the kernel.

    Called once per model (hoisted out of the per-call path).
    """
    C2 = p["conv2_w"].shape[0]
    H1 = p["fc1_w"].shape[0]
    NC_pad = _round_up(max(num_classes, 1), 128)

    s1, t1 = _bn_fold(p["bn1_g"], p["bn1_b"], p["conv1_b"])
    w1 = jnp.transpose(p["conv1_w"], (2, 1, 0)) * s1[None, None, :]  # (K, 3, 6)

    s2, t2 = _bn_fold(p["bn2_g"], p["bn2_b"], p["conv2_b"])
    w2 = jnp.transpose(p["conv2_w"], (2, 1, 0)) * s2[None, None, :]  # (K, 6, 16)

    # fc1: torch flatten index is c*P2 + p; kernel accumulates per position p
    # over (C2 -> H1) blocks, so reorder to (P2, C2, H1).
    s3, t3 = _bn_fold(p["bn3_g"], p["bn3_b"], p["fc1_b"])
    wf1 = (p["fc1_w"].T.reshape(C2, P2, H1).transpose(1, 0, 2)
           * s3[None, None, :])                                      # (P2, 16, 120)

    s4, t4 = _bn_fold(p["bn4_g"], p["bn4_b"], p["fc2_b"])
    wf2 = p["fc2_w"].T * s4[None, :]                                 # (120, 84)

    # fc3: zero-pad the class dim to a full 128-lane tile so the kernel's
    # output store is unmasked and the HBM writeback is lane-dense.
    wf3 = jnp.zeros((p["fc3_w"].shape[1], NC_pad), jnp.float32)
    wf3 = wf3.at[:, :num_classes].set(p["fc3_w"].T)                  # (84, NCp)
    bf3 = jnp.zeros((1, NC_pad), jnp.float32)
    bf3 = bf3.at[:, :num_classes].set(p["fc3_b"][None, :])           # (1, NCp)

    return (w1, t1, w2, t2, wf1, t3, wf2, t4, wf3, bf3)


# -----------------------------------------------------------------------------
# Wrapper: one jitted callable per geometry (compiled once, lru-cached).
# -----------------------------------------------------------------------------
@functools.lru_cache(maxsize=None)
def _build_forward(N, Cin, L0, num_classes, block_b):
    L1 = L0 - (K - 1)
    P1 = L1 // 2
    L2 = P1 - (K - 1)
    P2 = L2 // 2
    assert P2 >= 1, "sequence too short for this CNN"
    NC_pad = _round_up(max(num_classes, 1), 128)

    # Block-size selection: big blocks amortize the per-grid-step overhead
    # (footprint is only a few MiB even at B=1024), but make sure the grid
    # has >= 2 steps when the batch allows it so dimension_semantics=
    # ("parallel",) can shard across both v7x TensorCores.
    N8 = _round_up(N, 8)
    B = min(_round_up(max(int(block_b), 8), 8), N8)
    if N8 >= 16 and N8 // B < 2:
        B = _round_up((N8 + 1) // 2, 8)
    N_pad = _round_up(N8, B)
    grid = (N_pad // B,)

    kernel = _make_cnn_kernel(B, L0, P2)

    def _const_spec(shape):
        zeros = (0,) * len(shape)
        return pl.BlockSpec(shape, lambda n, _z=zeros: _z)

    def forward(x_ncl, kparams):
        # NCL -> position-major (L, N_pad, Cin); the transpose/pad are fused
        # into the same jit as the pallas_call.
        x = jnp.transpose(x_ncl, (2, 0, 1)).astype(jnp.float32)   # (L0, N, Cin)
        x = jnp.pad(x, ((0, 0), (0, N_pad - N), (0, 0)))

        in_specs = [pl.BlockSpec((L0, B, Cin), lambda n: (0, n, 0))]
        in_specs += [_const_spec(a.shape) for a in kparams]

        out = pl.pallas_call(
            kernel,
            out_shape=jax.ShapeDtypeStruct((N_pad, NC_pad), jnp.float32),
            grid_spec=pltpu.PrefetchScalarGridSpec(
                num_scalar_prefetch=0,
                grid=grid,
                in_specs=in_specs,
                out_specs=pl.BlockSpec((B, NC_pad), lambda n: (n, 0)),
            ),
            compiler_params=pltpu.CompilerParams(
                dimension_semantics=("parallel",)),
        )(x, *kparams)
        return out[:N, :num_classes]

    return jax.jit(forward)


def cnn_forward(x_ncl, kparams, num_classes, block_b=256):
    N, Cin, L0 = x_ncl.shape
    fwd = _build_forward(int(N), int(Cin), int(L0), int(num_classes),
                         int(block_b))
    return fwd(x_ncl, kparams)


# -----------------------------------------------------------------------------
# Plain-JAX reference mirroring the PyTorch module (NCL layout, eval-mode BN).
# -----------------------------------------------------------------------------
def torch_like_reference(x_ncl, p):
    def conv1d(x, w, b):
        Co, Ci, k = w.shape
        Lo = x.shape[-1] - k + 1
        out = jnp.zeros((x.shape[0], Co, Lo), jnp.float32)
        for kk in range(k):
            out = out + jnp.einsum('oc,ncl->nol', w[:, :, kk], x[:, :, kk:kk + Lo])
        return out + b[None, :, None]

    def bn_eval(x, g, b):
        if x.ndim == 3:
            return x / jnp.sqrt(1.0 + EPS) * g[None, :, None] + b[None, :, None]
        return x / jnp.sqrt(1.0 + EPS) * g[None, :] + b[None, :]

    def pool(x):
        N, C, L = x.shape
        return x[:, :, :(L // 2) * 2].reshape(N, C, L // 2, 2).max(axis=-1)

    h = jax.nn.relu(bn_eval(conv1d(x_ncl, p["conv1_w"], p["conv1_b"]),
                            p["bn1_g"], p["bn1_b"]))
    h = pool(h)
    h = jax.nn.relu(bn_eval(conv1d(h, p["conv2_w"], p["conv2_b"]),
                            p["bn2_g"], p["bn2_b"]))
    h = pool(h)
    h = h.reshape(h.shape[0], -1)                           # torch.flatten(x, 1)
    h = jax.nn.relu(bn_eval(h @ p["fc1_w"].T + p["fc1_b"], p["bn3_g"], p["bn3_b"]))
    h = jax.nn.relu(bn_eval(h @ p["fc2_w"].T + p["fc2_b"], p["bn4_g"], p["bn4_b"]))
    return h @ p["fc3_w"].T + p["fc3_b"]


if __name__ == "__main__":
    num_classes = 4
    seq_length = 64      # -> conv stack output 16 x 13, linear_input_size = 208
    batch = 20

    key = jax.random.PRNGKey(0)
    kx, kp = jax.random.split(key)
    x = jax.random.normal(kx, (batch, 3, seq_length), dtype=jnp.float32)  # NCL

    torch_params = init_torch_params(kp, num_classes, seq_length)
    P2 = ((seq_length - 4) // 2 - 4) // 2
    kparams = prepare_kernel_params(torch_params, P2, num_classes)

    ref = np.asarray(torch_like_reference(x, torch_params))

    # Default block sizing: batch 20 -> two blocks of 16 (grid=2, both v7x TCs).
    out = jax.block_until_ready(cnn_forward(x, kparams, num_classes))
    np.testing.assert_allclose(np.asarray(out), ref, rtol=2e-4, atol=2e-4)

    # Small-block run: exercises grid=3, constant weight specs, batch padding.
    out_blocked = jax.block_until_ready(
        cnn_forward(x, kparams, num_classes, block_b=8))
    np.testing.assert_allclose(np.asarray(out_blocked), ref, rtol=2e-4, atol=2e-4)

    print("KERNEL_OK")
</pallas_src>

<mosaic_0001>
module attributes {stable_mosaic.version = 11 : i64} {
  func.func @kernel(%arg0: i32, %arg1: memref<64x16x3xf32, #tpu.memory_space<vmem>>, %arg2: memref<5x3x6xf32, #tpu.memory_space<vmem>>, %arg3: memref<1x6xf32, #tpu.memory_space<vmem>>, %arg4: memref<5x6x16xf32, #tpu.memory_space<vmem>>, %arg5: memref<1x16xf32, #tpu.memory_space<vmem>>, %arg6: memref<13x16x120xf32, #tpu.memory_space<vmem>>, %arg7: memref<1x120xf32, #tpu.memory_space<vmem>>, %arg8: memref<120x84xf32, #tpu.memory_space<vmem>>, %arg9: memref<1x84xf32, #tpu.memory_space<vmem>>, %arg10: memref<84x128xf32, #tpu.memory_space<vmem>>, %arg11: memref<1x128xf32, #tpu.memory_space<vmem>>, %arg12: memref<16x128xf32, #tpu.memory_space<vmem>>) attributes {dimension_semantics = [#tpu.dimension_semantics<parallel>], iteration_bounds = array<i64: 2>, scalar_prefetch = 0 : i64, scratch_operands = 0 : i64, tpu.core_type = #tpu.core_type<tc>, window_params = [{transform_indices = @transform_0, window_bounds = array<i64: 64, 16, 3>}, {pipeline_mode = #tpu.pipeline_mode<synchronous>, transform_indices = @transform_1, window_bounds = array<i64: 5, 3, 6>}, {pipeline_mode = #tpu.pipeline_mode<synchronous>, transform_indices = @transform_2, window_bounds = array<i64: 1, 6>}, {pipeline_mode = #tpu.pipeline_mode<synchronous>, transform_indices = @transform_3, window_bounds = array<i64: 5, 6, 16>}, {pipeline_mode = #tpu.pipeline_mode<synchronous>, transform_indices = @transform_4, window_bounds = array<i64: 1, 16>}, {pipeline_mode = #tpu.pipeline_mode<synchronous>, transform_indices = @transform_5, window_bounds = array<i64: 13, 16, 120>}, {pipeline_mode = #tpu.pipeline_mode<synchronous>, transform_indices = @transform_6, window_bounds = array<i64: 1, 120>}, {pipeline_mode = #tpu.pipeline_mode<synchronous>, transform_indices = @transform_7, window_bounds = array<i64: 120, 84>}, {pipeline_mode = #tpu.pipeline_mode<synchronous>, transform_indices = @transform_8, window_bounds = array<i64: 1, 84>}, {pipeline_mode = #tpu.pipeline_mode<synchronous>, transform_indices = @transform_9, window_bounds = array<i64: 84, 128>}, {pipeline_mode = #tpu.pipeline_mode<synchronous>, transform_indices = @transform_10, window_bounds = array<i64: 1, 128>}, {transform_indices = @transform_11, window_bounds = array<i64: 16, 128>}]} {
    %c0 = arith.constant 0 : index
    %c0_0 = arith.constant 0 : index
    %c0_1 = arith.constant 0 : index
    %0 = vector.load %arg1[%c0, %c0_0, %c0_1] : memref<64x16x3xf32, #tpu.memory_space<vmem>>, vector<64x16x3xf32>
    %1 = vector.extract_strided_slice %0 {offsets = [0, 0, 0], sizes = [60, 16, 3], strides = [1, 1, 1]} : vector<64x16x3xf32> to vector<60x16x3xf32>
    %2 = vector.shape_cast %1 : vector<60x16x3xf32> to vector<960x3xf32>
    %c0_2 = arith.constant 0 : index
    %c0_3 = arith.constant 0 : index
    %c0_4 = arith.constant 0 : index
    %3 = vector.load %arg2[%c0_2, %c0_3, %c0_4] : memref<5x3x6xf32, #tpu.memory_space<vmem>>, vector<1x3x6xf32>
    %4 = vector.shape_cast %3 : vector<1x3x6xf32> to vector<3x6xf32>
    %cst = arith.constant dense<0.000000e+00> : vector<960x6xf32>
    %5 = tpu.matmul %2, %4, %cst {dimension_numbers = #tpu.dot_dimension_numbers<[1], [0], [0], [1], [0, 0, 1, 1], [], []>} : vector<960x3xf32>, vector<3x6xf32>, vector<960x6xf32> -> vector<960x6xf32>
    %6 = vector.extract_strided_slice %0 {offsets = [1, 0, 0], sizes = [60, 16, 3], strides = [1, 1, 1]} : vector<64x16x3xf32> to vector<60x16x3xf32>
    %7 = vector.shape_cast %6 : vector<60x16x3xf32> to vector<960x3xf32>
    %c1 = arith.constant 1 : index
    %c0_5 = arith.constant 0 : index
    %c0_6 = arith.constant 0 : index
    %8 = vector.load %arg2[%c1, %c0_5, %c0_6] : memref<5x3x6xf32, #tpu.memory_space<vmem>>, vector<1x3x6xf32>
    %9 = vector.shape_cast %8 : vector<1x3x6xf32> to vector<3x6xf32>
    %cst_7 = arith.constant dense<0.000000e+00> : vector<960x6xf32>
    %10 = tpu.matmul %7, %9, %cst_7 {dimension_numbers = #tpu.dot_dimension_numbers<[1], [0], [0], [1], [0, 0, 1, 1], [], []>} : vector<960x3xf32>, vector<3x6xf32>, vector<960x6xf32> -> vector<960x6xf32>
    %11 = arith.addf %5, %10 : vector<960x6xf32>
    %12 = vector.extract_strided_slice %0 {offsets = [2, 0, 0], sizes = [60, 16, 3], strides = [1, 1, 1]} : vector<64x16x3xf32> to vector<60x16x3xf32>
    %13 = vector.shape_cast %12 : vector<60x16x3xf32> to vector<960x3xf32>
    %c2 = arith.constant 2 : index
    %c0_8 = arith.constant 0 : index
    %c0_9 = arith.constant 0 : index
    %14 = vector.load %arg2[%c2, %c0_8, %c0_9] : memref<5x3x6xf32, #tpu.memory_space<vmem>>, vector<1x3x6xf32>
    %15 = vector.shape_cast %14 : vector<1x3x6xf32> to vector<3x6xf32>
    %cst_10 = arith.constant dense<0.000000e+00> : vector<960x6xf32>
    %16 = tpu.matmul %13, %15, %cst_10 {dimension_numbers = #tpu.dot_dimension_numbers<[1], [0], [0], [1], [0, 0, 1, 1], [], []>} : vector<960x3xf32>, vector<3x6xf32>, vector<960x6xf32> -> vector<960x6xf32>
    %17 = arith.addf %11, %16 : vector<960x6xf32>
    %18 = vector.extract_strided_slice %0 {offsets = [3, 0, 0], sizes = [60, 16, 3], strides = [1, 1, 1]} : vector<64x16x3xf32> to vector<60x16x3xf32>
    %19 = vector.shape_cast %18 : vector<60x16x3xf32> to vector<960x3xf32>
    %c3 = arith.constant 3 : index
    %c0_11 = arith.constant 0 : index
    %c0_12 = arith.constant 0 : index
    %20 = vector.load %arg2[%c3, %c0_11, %c0_12] : memref<5x3x6xf32, #tpu.memory_space<vmem>>, vector<1x3x6xf32>
    %21 = vector.shape_cast %20 : vector<1x3x6xf32> to vector<3x6xf32>
    %cst_13 = arith.constant dense<0.000000e+00> : vector<960x6xf32>
    %22 = tpu.matmul %19, %21, %cst_13 {dimension_numbers = #tpu.dot_dimension_numbers<[1], [0], [0], [1], [0, 0, 1, 1], [], []>} : vector<960x3xf32>, vector<3x6xf32>, vector<960x6xf32> -> vector<960x6xf32>
    %23 = arith.addf %17, %22 : vector<960x6xf32>
    %24 = vector.extract_strided_slice %0 {offsets = [4, 0, 0], sizes = [60, 16, 3], strides = [1, 1, 1]} : vector<64x16x3xf32> to vector<60x16x3xf32>
    %25 = vector.shape_cast %24 : vector<60x16x3xf32> to vector<960x3xf32>
    %c4 = arith.constant 4 : index
    %c0_14 = arith.constant 0 : index
    %c0_15 = arith.constant 0 : index
    %26 = vector.load %arg2[%c4, %c0_14, %c0_15] : memref<5x3x6xf32, #tpu.memory_space<vmem>>, vector<1x3x6xf32>
    %27 = vector.shape_cast %26 : vector<1x3x6xf32> to vector<3x6xf32>
    %cst_16 = arith.constant dense<0.000000e+00> : vector<960x6xf32>
    %28 = tpu.matmul %25, %27, %cst_16 {dimension_numbers = #tpu.dot_dimension_numbers<[1], [0], [0], [1], [0, 0, 1, 1], [], []>} : vector<960x3xf32>, vector<3x6xf32>, vector<960x6xf32> -> vector<960x6xf32>
    %29 = arith.addf %23, %28 : vector<960x6xf32>
    %c0_17 = arith.constant 0 : index
    %c0_18 = arith.constant 0 : index
    %30 = vector.load %arg3[%c0_17, %c0_18] : memref<1x6xf32, #tpu.memory_space<vmem>>, vector<1x6xf32>
    %31 = vector.broadcast %30 : vector<1x6xf32> to vector<960x6xf32>
    %32 = arith.addf %29, %31 : vector<960x6xf32>
    %cst_19 = arith.constant 0.000000e+00 : f32
    %33 = vector.broadcast %cst_19 : f32 to vector<960x6xf32>
    %34 = arith.maximumf %32, %33 : vector<960x6xf32>
    %35 = vector.shape_cast %34 : vector<960x6xf32> to vector<30x32x6xf32>
    %36 = vector.extract_strided_slice %35 {offsets = [0, 0, 0], sizes = [30, 16, 6], strides = [1, 1, 1]} : vector<30x32x6xf32> to vector<30x16x6xf32>
    %37 = vector.extract_strided_slice %35 {offsets = [0, 16, 0], sizes = [30, 16, 6], strides = [1, 1, 1]} : vector<30x32x6xf32> to vector<30x16x6xf32>
    %38 = arith.maximumf %36, %37 : vector<30x16x6xf32>
    %39 = vector.extract_strided_slice %38 {offsets = [0, 0, 0], sizes = [26, 16, 6], strides = [1, 1, 1]} : vector<30x16x6xf32> to vector<26x16x6xf32>
    %40 = vector.shape_cast %39 : vector<26x16x6xf32> to vector<416x6xf32>
    %c0_20 = arith.constant 0 : index
    %c0_21 = arith.constant 0 : index
    %c0_22 = arith.constant 0 : index
    %41 = vector.load %arg4[%c0_20, %c0_21, %c0_22] : memref<5x6x16xf32, #tpu.memory_space<vmem>>, vector<1x6x16xf32>
    %42 = vector.shape_cast %41 : vector<1x6x16xf32> to vector<6x16xf32>
    %cst_23 = arith.constant dense<0.000000e+00> : vector<416x16xf32>
    %43 = tpu.matmul %40, %42, %cst_23 {dimension_numbers = #tpu.dot_dimension_numbers<[1], [0], [0], [1], [0, 0, 1, 1], [], []>} : vector<416x6xf32>, vector<6x16xf32>, vector<416x16xf32> -> vector<416x16xf32>
    %44 = vector.extract_strided_slice %38 {offsets = [1, 0, 0], sizes = [26, 16, 6], strides = [1, 1, 1]} : vector<30x16x6xf32> to vector<26x16x6xf32>
    %45 = vector.shape_cast %44 : vector<26x16x6xf32> to vector<416x6xf32>
    %c1_24 = arith.constant 1 : index
    %c0_25 = arith.constant 0 : index
    %c0_26 = arith.constant 0 : index
    %46 = vector.load %arg4[%c1_24, %c0_25, %c0_26] : memref<5x6x16xf32, #tpu.memory_space<vmem>>, vector<1x6x16xf32>
    %47 = vector.shape_cast %46 : vector<1x6x16xf32> to vector<6x16xf32>
    %cst_27 = arith.constant dense<0.000000e+00> : vector<416x16xf32>
    %48 = tpu.matmul %45, %47, %cst_27 {dimension_numbers = #tpu.dot_dimension_numbers<[1], [0], [0], [1], [0, 0, 1, 1], [], []>} : vector<416x6xf32>, vector<6x16xf32>, vector<416x16xf32> -> vector<416x16xf32>
    %49 = arith.addf %43, %48 : vector<416x16xf32>
    %50 = vector.extract_strided_slice %38 {offsets = [2, 0, 0], sizes = [26, 16, 6], strides = [1, 1, 1]} : vector<30x16x6xf32> to vector<26x16x6xf32>
    %51 = vector.shape_cast %50 : vector<26x16x6xf32> to vector<416x6xf32>
    %c2_28 = arith.constant 2 : index
    %c0_29 = arith.constant 0 : index
    %c0_30 = arith.constant 0 : index
    %52 = vector.load %arg4[%c2_28, %c0_29, %c0_30] : memref<5x6x16xf32, #tpu.memory_space<vmem>>, vector<1x6x16xf32>
    %53 = vector.shape_cast %52 : vector<1x6x16xf32> to vector<6x16xf32>
    %cst_31 = arith.constant dense<0.000000e+00> : vector<416x16xf32>
    %54 = tpu.matmul %51, %53, %cst_31 {dimension_numbers = #tpu.dot_dimension_numbers<[1], [0], [0], [1], [0, 0, 1, 1], [], []>} : vector<416x6xf32>, vector<6x16xf32>, vector<416x16xf32> -> vector<416x16xf32>
    %55 = arith.addf %49, %54 : vector<416x16xf32>
    %56 = vector.extract_strided_slice %38 {offsets = [3, 0, 0], sizes = [26, 16, 6], strides = [1, 1, 1]} : vector<30x16x6xf32> to vector<26x16x6xf32>
    %57 = vector.shape_cast %56 : vector<26x16x6xf32> to vector<416x6xf32>
    %c3_32 = arith.constant 3 : index
    %c0_33 = arith.constant 0 : index
    %c0_34 = arith.constant 0 : index
    %58 = vector.load %arg4[%c3_32, %c0_33, %c0_34] : memref<5x6x16xf32, #tpu.memory_space<vmem>>, vector<1x6x16xf32>
    %59 = vector.shape_cast %58 : vector<1x6x16xf32> to vector<6x16xf32>
    %cst_35 = arith.constant dense<0.000000e+00> : vector<416x16xf32>
    %60 = tpu.matmul %57, %59, %cst_35 {dimension_numbers = #tpu.dot_dimension_numbers<[1], [0], [0], [1], [0, 0, 1, 1], [], []>} : vector<416x6xf32>, vector<6x16xf32>, vector<416x16xf32> -> vector<416x16xf32>
    %61 = arith.addf %55, %60 : vector<416x16xf32>
    %62 = vector.extract_strided_slice %38 {offsets = [4, 0, 0], sizes = [26, 16, 6], strides = [1, 1, 1]} : vector<30x16x6xf32> to vector<26x16x6xf32>
    %63 = vector.shape_cast %62 : vector<26x16x6xf32> to vector<416x6xf32>
    %c4_36 = arith.constant 4 : index
    %c0_37 = arith.constant 0 : index
    %c0_38 = arith.constant 0 : index
    %64 = vector.load %arg4[%c4_36, %c0_37, %c0_38] : memref<5x6x16xf32, #tpu.memory_space<vmem>>, vector<1x6x16xf32>
    %65 = vector.shape_cast %64 : vector<1x6x16xf32> to vector<6x16xf32>
    %cst_39 = arith.constant dense<0.000000e+00> : vector<416x16xf32>
    %66 = tpu.matmul %63, %65, %cst_39 {dimension_numbers = #tpu.dot_dimension_numbers<[1], [0], [0], [1], [0, 0, 1, 1], [], []>} : vector<416x6xf32>, vector<6x16xf32>, vector<416x16xf32> -> vector<416x16xf32>
    %67 = arith.addf %61, %66 : vector<416x16xf32>
    %c0_40 = arith.constant 0 : index
    %c0_41 = arith.constant 0 : index
    %68 = vector.load %arg5[%c0_40, %c0_41] : memref<1x16xf32, #tpu.memory_space<vmem>>, vector<1x16xf32>
    %69 = vector.broadcast %68 : vector<1x16xf32> to vector<416x16xf32>
    %70 = arith.addf %67, %69 : vector<416x16xf32>
    %cst_42 = arith.constant 0.000000e+00 : f32
    %71 = vector.broadcast %cst_42 : f32 to vector<416x16xf32>
    %72 = arith.maximumf %70, %71 : vector<416x16xf32>
    %73 = vector.shape_cast %72 : vector<416x16xf32> to vector<13x32x16xf32>
    %74 = vector.extract_strided_slice %73 {offsets = [0, 0, 0], sizes = [13, 16, 16], strides = [1, 1, 1]} : vector<13x32x16xf32> to vector<13x16x16xf32>
    %75 = vector.extract_strided_slice %73 {offsets = [0, 16, 0], sizes = [13, 16, 16], strides = [1, 1, 1]} : vector<13x32x16xf32> to vector<13x16x16xf32>
    %76 = arith.maximumf %74, %75 : vector<13x16x16xf32>
    %77 = vector.extract_strided_slice %76 {offsets = [0, 0, 0], sizes = [1, 16, 16], strides = [1, 1, 1]} : vector<13x16x16xf32> to vector<1x16x16xf32>
    %78 = vector.shape_cast %77 : vector<1x16x16xf32> to vector<16x16xf32>
    %c0_43 = arith.constant 0 : index
    %c0_44 = arith.constant 0 : index
    %c0_45 = arith.constant 0 : index
    %79 = vector.load %arg6[%c0_43, %c0_44, %c0_45] : memref<13x16x120xf32, #tpu.memory_space<vmem>>, vector<1x16x120xf32>
    %80 = vector.shape_cast %79 : vector<1x16x120xf32> to vector<16x120xf32>
    %cst_46 = arith.constant dense<0.000000e+00> : vector<16x120xf32>
    %81 = tpu.matmul %78, %80, %cst_46 {dimension_numbers = #tpu.dot_dimension_numbers<[1], [0], [0], [1], [0, 0, 1, 1], [], []>} : vector<16x16xf32>, vector<16x120xf32>, vector<16x120xf32> -> vector<16x120xf32>
    %82 = vector.extract_strided_slice %76 {offsets = [1, 0, 0], sizes = [1, 16, 16], strides = [1, 1, 1]} : vector<13x16x16xf32> to vector<1x16x16xf32>
    %83 = vector.shape_cast %82 : vector<1x16x16xf32> to vector<16x16xf32>
    %c1_47 = arith.constant 1 : index
    %c0_48 = arith.constant 0 : index
    %c0_49 = arith.constant 0 : index
    %84 = vector.load %arg6[%c1_47, %c0_48, %c0_49] : memref<13x16x120xf32, #tpu.memory_space<vmem>>, vector<1x16x120xf32>
    %85 = vector.shape_cast %84 : vector<1x16x120xf32> to vector<16x120xf32>
    %cst_50 = arith.constant dense<0.000000e+00> : vector<16x120xf32>
    %86 = tpu.matmul %83, %85, %cst_50 {dimension_numbers = #tpu.dot_dimension_numbers<[1], [0], [0], [1], [0, 0, 1, 1], [], []>} : vector<16x16xf32>, vector<16x120xf32>, vector<16x120xf32> -> vector<16x120xf32>
    %87 = arith.addf %81, %86 : vector<16x120xf32>
    %88 = vector.extract_strided_slice %76 {offsets = [2, 0, 0], sizes = [1, 16, 16], strides = [1, 1, 1]} : vector<13x16x16xf32> to vector<1x16x16xf32>
    %89 = vector.shape_cast %88 : vector<1x16x16xf32> to vector<16x16xf32>
    %c2_51 = arith.constant 2 : index
    %c0_52 = arith.constant 0 : index
    %c0_53 = arith.constant 0 : index
    %90 = vector.load %arg6[%c2_51, %c0_52, %c0_53] : memref<13x16x120xf32, #tpu.memory_space<vmem>>, vector<1x16x120xf32>
    %91 = vector.shape_cast %90 : vector<1x16x120xf32> to vector<16x120xf32>
    %cst_54 = arith.constant dense<0.000000e+00> : vector<16x120xf32>
    %92 = tpu.matmul %89, %91, %cst_54 {dimension_numbers = #tpu.dot_dimension_numbers<[1], [0], [0], [1], [0, 0, 1, 1], [], []>} : vector<16x16xf32>, vector<16x120xf32>, vector<16x120xf32> -> vector<16x120xf32>
    %93 = arith.addf %87, %92 : vector<16x120xf32>
    %94 = vector.extract_strided_slice %76 {offsets = [3, 0, 0], sizes = [1, 16, 16], strides = [1, 1, 1]} : vector<13x16x16xf32> to vector<1x16x16xf32>
    %95 = vector.shape_cast %94 : vector<1x16x16xf32> to vector<16x16xf32>
    %c3_55 = arith.constant 3 : index
    %c0_56 = arith.constant 0 : index
    %c0_57 = arith.constant 0 : index
    %96 = vector.load %arg6[%c3_55, %c0_56, %c0_57] : memref<13x16x120xf32, #tpu.memory_space<vmem>>, vector<1x16x120xf32>
    %97 = vector.shape_cast %96 : vector<1x16x120xf32> to vector<16x120xf32>
    %cst_58 = arith.constant dense<0.000000e+00> : vector<16x120xf32>
    %98 = tpu.matmul %95, %97, %cst_58 {dimension_numbers = #tpu.dot_dimension_numbers<[1], [0], [0], [1], [0, 0, 1, 1], [], []>} : vector<16x16xf32>, vector<16x120xf32>, vector<16x120xf32> -> vector<16x120xf32>
    %99 = arith.addf %93, %98 : vector<16x120xf32>
    %100 = vector.extract_strided_slice %76 {offsets = [4, 0, 0], sizes = [1, 16, 16], strides = [1, 1, 1]} : vector<13x16x16xf32> to vector<1x16x16xf32>
    %101 = vector.shape_cast %100 : vector<1x16x16xf32> to vector<16x16xf32>
    %c4_59 = arith.constant 4 : index
    %c0_60 = arith.constant 0 : index
    %c0_61 = arith.constant 0 : index
    %102 = vector.load %arg6[%c4_59, %c0_60, %c0_61] : memref<13x16x120xf32, #tpu.memory_space<vmem>>, vector<1x16x120xf32>
    %103 = vector.shape_cast %102 : vector<1x16x120xf32> to vector<16x120xf32>
    %cst_62 = arith.constant dense<0.000000e+00> : vector<16x120xf32>
    %104 = tpu.matmul %101, %103, %cst_62 {dimension_numbers = #tpu.dot_dimension_numbers<[1], [0], [0], [1], [0, 0, 1, 1], [], []>} : vector<16x16xf32>, vector<16x120xf32>, vector<16x120xf32> -> vector<16x120xf32>
    %105 = arith.addf %99, %104 : vector<16x120xf32>
    %106 = vector.extract_strided_slice %76 {offsets = [5, 0, 0], sizes = [1, 16, 16], strides = [1, 1, 1]} : vector<13x16x16xf32> to vector<1x16x16xf32>
    %107 = vector.shape_cast %106 : vector<1x16x16xf32> to vector<16x16xf32>
    %c5 = arith.constant 5 : index
    %c0_63 = arith.constant 0 : index
    %c0_64 = arith.constant 0 : index
    %108 = vector.load %arg6[%c5, %c0_63, %c0_64] : memref<13x16x120xf32, #tpu.memory_space<vmem>>, vector<1x16x120xf32>
    %109 = vector.shape_cast %108 : vector<1x16x120xf32> to vector<16x120xf32>
    %cst_65 = arith.constant dense<0.000000e+00> : vector<16x120xf32>
    %110 = tpu.matmul %107, %109, %cst_65 {dimension_numbers = #tpu.dot_dimension_numbers<[1], [0], [0], [1], [0, 0, 1, 1], [], []>} : vector<16x16xf32>, vector<16x120xf32>, vector<16x120xf32> -> vector<16x120xf32>
    %111 = arith.addf %105, %110 : vector<16x120xf32>
    %112 = vector.extract_strided_slice %76 {offsets = [6, 0, 0], sizes = [1, 16, 16], strides = [1, 1, 1]} : vector<13x16x16xf32> to vector<1x16x16xf32>
    %113 = vector.shape_cast %112 : vector<1x16x16xf32> to vector<16x16xf32>
    %c6 = arith.constant 6 : index
    %c0_66 = arith.constant 0 : index
    %c0_67 = arith.constant 0 : index
    %114 = vector.load %arg6[%c6, %c0_66, %c0_67] : memref<13x16x120xf32, #tpu.memory_space<vmem>>, vector<1x16x120xf32>
    %115 = vector.shape_cast %114 : vector<1x16x120xf32> to vector<16x120xf32>
    %cst_68 = arith.constant dense<0.000000e+00> : vector<16x120xf32>
    %116 = tpu.matmul %113, %115, %cst_68 {dimension_numbers = #tpu.dot_dimension_numbers<[1], [0], [0], [1], [0, 0, 1, 1], [], []>} : vector<16x16xf32>, vector<16x120xf32>, vector<16x120xf32> -> vector<16x120xf32>
    %117 = arith.addf %111, %116 : vector<16x120xf32>
    %118 = vector.extract_strided_slice %76 {offsets = [7, 0, 0], sizes = [1, 16, 16], strides = [1, 1, 1]} : vector<13x16x16xf32> to vector<1x16x16xf32>
    %119 = vector.shape_cast %118 : vector<1x16x16xf32> to vector<16x16xf32>
    %c7 = arith.constant 7 : index
    %c0_69 = arith.constant 0 : index
    %c0_70 = arith.constant 0 : index
    %120 = vector.load %arg6[%c7, %c0_69, %c0_70] : memref<13x16x120xf32, #tpu.memory_space<vmem>>, vector<1x16x120xf32>
    %121 = vector.shape_cast %120 : vector<1x16x120xf32> to vector<16x120xf32>
    %cst_71 = arith.constant dense<0.000000e+00> : vector<16x120xf32>
    %122 = tpu.matmul %119, %121, %cst_71 {dimension_numbers = #tpu.dot_dimension_numbers<[1], [0], [0], [1], [0, 0, 1, 1], [], []>} : vector<16x16xf32>, vector<16x120xf32>, vector<16x120xf32> -> vector<16x120xf32>
    %123 = arith.addf %117, %122 : vector<16x120xf32>
    %124 = vector.extract_strided_slice %76 {offsets = [8, 0, 0], sizes = [1, 16, 16], strides = [1, 1, 1]} : vector<13x16x16xf32> to vector<1x16x16xf32>
    %125 = vector.shape_cast %124 : vector<1x16x16xf32> to vector<16x16xf32>
    %c8 = arith.constant 8 : index
    %c0_72 = arith.constant 0 : index
    %c0_73 = arith.constant 0 : index
    %126 = vector.load %arg6[%c8, %c0_72, %c0_73] : memref<13x16x120xf32, #tpu.memory_space<vmem>>, vector<1x16x120xf32>
    %127 = vector.shape_cast %126 : vector<1x16x120xf32> to vector<16x120xf32>
    %cst_74 = arith.constant dense<0.000000e+00> : vector<16x120xf32>
    %128 = tpu.matmul %125, %127, %cst_74 {dimension_numbers = #tpu.dot_dimension_numbers<[1], [0], [0], [1], [0, 0, 1, 1], [], []>} : vector<16x16xf32>, vector<16x120xf32>, vector<16x120xf32> -> vector<16x120xf32>
    %129 = arith.addf %123, %128 : vector<16x120xf32>
    %130 = vector.extract_strided_slice %76 {offsets = [9, 0, 0], sizes = [1, 16, 16], strides = [1, 1, 1]} : vector<13x16x16xf32> to vector<1x16x16xf32>
    %131 = vector.shape_cast %130 : vector<1x16x16xf32> to vector<16x16xf32>
    %c9 = arith.constant 9 : index
    %c0_75 = arith.constant 0 : index
    %c0_76 = arith.constant 0 : index
    %132 = vector.load %arg6[%c9, %c0_75, %c0_76] : memref<13x16x120xf32, #tpu.memory_space<vmem>>, vector<1x16x120xf32>
    %133 = vector.shape_cast %132 : vector<1x16x120xf32> to vector<16x120xf32>
    %cst_77 = arith.constant dense<0.000000e+00> : vector<16x120xf32>
    %134 = tpu.matmul %131, %133, %cst_77 {dimension_numbers = #tpu.dot_dimension_numbers<[1], [0], [0], [1], [0, 0, 1, 1], [], []>} : vector<16x16xf32>, vector<16x120xf32>, vector<16x120xf32> -> vector<16x120xf32>
    %135 = arith.addf %129, %134 : vector<16x120xf32>
    %136 = vector.extract_strided_slice %76 {offsets = [10, 0, 0], sizes = [1, 16, 16], strides = [1, 1, 1]} : vector<13x16x16xf32> to vector<1x16x16xf32>
    %137 = vector.shape_cast %136 : vector<1x16x16xf32> to vector<16x16xf32>
    %c10 = arith.constant 10 : index
    %c0_78 = arith.constant 0 : index
    %c0_79 = arith.constant 0 : index
    %138 = vector.load %arg6[%c10, %c0_78, %c0_79] : memref<13x16x120xf32, #tpu.memory_space<vmem>>, vector<1x16x120xf32>
    %139 = vector.shape_cast %138 : vector<1x16x120xf32> to vector<16x120xf32>
    %cst_80 = arith.constant dense<0.000000e+00> : vector<16x120xf32>
    %140 = tpu.matmul %137, %139, %cst_80 {dimension_numbers = #tpu.dot_dimension_numbers<[1], [0], [0], [1], [0, 0, 1, 1], [], []>} : vector<16x16xf32>, vector<16x120xf32>, vector<16x120xf32> -> vector<16x120xf32>
    %141 = arith.addf %135, %140 : vector<16x120xf32>
    %142 = vector.extract_strided_slice %76 {offsets = [11, 0, 0], sizes = [1, 16, 16], strides = [1, 1, 1]} : vector<13x16x16xf32> to vector<1x16x16xf32>
    %143 = vector.shape_cast %142 : vector<1x16x16xf32> to vector<16x16xf32>
    %c11 = arith.constant 11 : index
    %c0_81 = arith.constant 0 : index
    %c0_82 = arith.constant 0 : index
    %144 = vector.load %arg6[%c11, %c0_81, %c0_82] : memref<13x16x120xf32, #tpu.memory_space<vmem>>, vector<1x16x120xf32>
    %145 = vector.shape_cast %144 : vector<1x16x120xf32> to vector<16x120xf32>
    %cst_83 = arith.constant dense<0.000000e+00> : vector<16x120xf32>
    %146 = tpu.matmul %143, %145, %cst_83 {dimension_numbers = #tpu.dot_dimension_numbers<[1], [0], [0], [1], [0, 0, 1, 1], [], []>} : vector<16x16xf32>, vector<16x120xf32>, vector<16x120xf32> -> vector<16x120xf32>
    %147 = arith.addf %141, %146 : vector<16x120xf32>
    %148 = vector.extract_strided_slice %76 {offsets = [12, 0, 0], sizes = [1, 16, 16], strides = [1, 1, 1]} : vector<13x16x16xf32> to vector<1x16x16xf32>
    %149 = vector.shape_cast %148 : vector<1x16x16xf32> to vector<16x16xf32>
    %c12 = arith.constant 12 : index
    %c0_84 = arith.constant 0 : index
    %c0_85 = arith.constant 0 : index
    %150 = vector.load %arg6[%c12, %c0_84, %c0_85] : memref<13x16x120xf32, #tpu.memory_space<vmem>>, vector<1x16x120xf32>
    %151 = vector.shape_cast %150 : vector<1x16x120xf32> to vector<16x120xf32>
    %cst_86 = arith.constant dense<0.000000e+00> : vector<16x120xf32>
    %152 = tpu.matmul %149, %151, %cst_86 {dimension_numbers = #tpu.dot_dimension_numbers<[1], [0], [0], [1], [0, 0, 1, 1], [], []>} : vector<16x16xf32>, vector<16x120xf32>, vector<16x120xf32> -> vector<16x120xf32>
    %153 = arith.addf %147, %152 : vector<16x120xf32>
    %c0_87 = arith.constant 0 : index
    %c0_88 = arith.constant 0 : index
    %154 = vector.load %arg7[%c0_87, %c0_88] : memref<1x120xf32, #tpu.memory_space<vmem>>, vector<1x120xf32>
    %155 = vector.broadcast %154 : vector<1x120xf32> to vector<16x120xf32>
    %156 = arith.addf %153, %155 : vector<16x120xf32>
    %cst_89 = arith.constant 0.000000e+00 : f32
    %157 = vector.broadcast %cst_89 : f32 to vector<16x120xf32>
    %158 = arith.maximumf %156, %157 : vector<16x120xf32>
    %c0_90 = arith.constant 0 : index
    %c0_91 = arith.constant 0 : index
    %159 = vector.load %arg8[%c0_90, %c0_91] : memref<120x84xf32, #tpu.memory_space<vmem>>, vector<120x84xf32>
    %cst_92 = arith.constant dense<0.000000e+00> : vector<16x84xf32>
    %160 = tpu.matmul %158, %159, %cst_92 {dimension_numbers = #tpu.dot_dimension_numbers<[1], [0], [0], [1], [0, 0, 1, 1], [], []>} : vector<16x120xf32>, vector<120x84xf32>, vector<16x84xf32> -> vector<16x84xf32>
    %c0_93 = arith.constant 0 : index
    %c0_94 = arith.constant 0 : index
    %161 = vector.load %arg9[%c0_93, %c0_94] : memref<1x84xf32, #tpu.memory_space<vmem>>, vector<1x84xf32>
    %162 = vector.broadcast %161 : vector<1x84xf32> to vector<16x84xf32>
    %163 = arith.addf %160, %162 : vector<16x84xf32>
    %cst_95 = arith.constant 0.000000e+00 : f32
    %164 = vector.broadcast %cst_95 : f32 to vector<16x84xf32>
    %165 = arith.maximumf %163, %164 : vector<16x84xf32>
    %c0_96 = arith.constant 0 : index
    %c0_97 = arith.constant 0 : index
    %166 = vector.load %arg10[%c0_96, %c0_97] : memref<84x128xf32, #tpu.memory_space<vmem>>, vector<84x128xf32>
    %cst_98 = arith.constant dense<0.000000e+00> : vector<16x128xf32>
    %167 = tpu.matmul %165, %166, %cst_98 {dimension_numbers = #tpu.dot_dimension_numbers<[1], [0], [0], [1], [0, 0, 1, 1], [], []>} : vector<16x84xf32>, vector<84x128xf32>, vector<16x128xf32> -> vector<16x128xf32>
    %c0_99 = arith.constant 0 : index
    %c0_100 = arith.constant 0 : index
    %168 = vector.load %arg11[%c0_99, %c0_100] : memref<1x128xf32, #tpu.memory_space<vmem>>, vector<1x128xf32>
    %169 = vector.broadcast %168 : vector<1x128xf32> to vector<16x128xf32>
    %170 = arith.addf %167, %169 : vector<16x128xf32>
    %c0_101 = arith.constant 0 : index
    %c0_102 = arith.constant 0 : index
    %171 = vector.load %arg12[%c0_101, %c0_102] : memref<16x128xf32, #tpu.memory_space<vmem>>, vector<16x128xf32>
    tpu.vector_store %arg12[%c0_101, %c0_102], %170 {strides = array<i32>} : memref<16x128xf32, #tpu.memory_space<vmem>>, vector<16x128xf32>,
    return
  }
  func.func @transform_0(%arg0: i32) -> (i32, i32, i32) {
    %c0_i32 = arith.constant 0 : i32
    %c0_i32_0 = arith.constant 0 : i32
    %c0_i32_1 = arith.constant 0 : i32
    return %c0_i32, %arg0, %c0_i32_0 : i32, i32, i32
  }
  func.func @transform_1(%arg0: i32) -> (i32, i32, i32) {
    %c0_i32 = arith.constant 0 : i32
    %c0_i32_0 = arith.constant 0 : i32
    %c0_i32_1 = arith.constant 0 : i32
    %c0_i32_2 = arith.constant 0 : i32
    return %c0_i32, %c0_i32_0, %c0_i32_1 : i32, i32, i32
  }
  func.func @transform_2(%arg0: i32) -> (i32, i32) {
    %c0_i32 = arith.constant 0 : i32
    %c0_i32_0 = arith.constant 0 : i32
    %c0_i32_1 = arith.constant 0 : i32
    return %c0_i32, %c0_i32_0 : i32, i32
  }
  func.func @transform_3(%arg0: i32) -> (i32, i32, i32) {
    %c0_i32 = arith.constant 0 : i32
    %c0_i32_0 = arith.constant 0 : i32
    %c0_i32_1 = arith.constant 0 : i32
    %c0_i32_2 = arith.constant 0 : i32
    return %c0_i32, %c0_i32_0, %c0_i32_1 : i32, i32, i32
  }
  func.func @transform_4(%arg0: i32) -> (i32, i32) {
    %c0_i32 = arith.constant 0 : i32
    %c0_i32_0 = arith.constant 0 : i32
    %c0_i32_1 = arith.constant 0 : i32
    return %c0_i32, %c0_i32_0 : i32, i32
  }
  func.func @transform_5(%arg0: i32) -> (i32, i32, i32) {
    %c0_i32 = arith.constant 0 : i32
    %c0_i32_0 = arith.constant 0 : i32
    %c0_i32_1 = arith.constant 0 : i32
    %c0_i32_2 = arith.constant 0 : i32
    return %c0_i32, %c0_i32_0, %c0_i32_1 : i32, i32, i32
  }
  func.func @transform_6(%arg0: i32) -> (i32, i32) {
    %c0_i32 = arith.constant 0 : i32
    %c0_i32_0 = arith.constant 0 : i32
    %c0_i32_1 = arith.constant 0 : i32
    return %c0_i32, %c0_i32_0 : i32, i32
  }
  func.func @transform_7(%arg0: i32) -> (i32, i32) {
    %c0_i32 = arith.constant 0 : i32
    %c0_i32_0 = arith.constant 0 : i32
    %c0_i32_1 = arith.constant 0 : i32
    return %c0_i32, %c0_i32_0 : i32, i32
  }
  func.func @transform_8(%arg0: i32) -> (i32, i32) {
    %c0_i32 = arith.constant 0 : i32
    %c0_i32_0 = arith.constant 0 : i32
    %c0_i32_1 = arith.constant 0 : i32
    return %c0_i32, %c0_i32_0 : i32, i32
  }
  func.func @transform_9(%arg0: i32) -> (i32, i32) {
    %c0_i32 = arith.constant 0 : i32
    %c0_i32_0 = arith.constant 0 : i32
    %c0_i32_1 = arith.constant 0 : i32
    return %c0_i32, %c0_i32_0 : i32, i32
  }
  func.func @transform_10(%arg0: i32) -> (i32, i32) {
    %c0_i32 = arith.constant 0 : i32
    %c0_i32_0 = arith.constant 0 : i32
    %c0_i32_1 = arith.constant 0 : i32
    return %c0_i32, %c0_i32_0 : i32, i32
  }
  func.func @transform_11(%arg0: i32) -> (i32, i32) {
    %c0_i32 = arith.constant 0 : i32
    %c0_i32_0 = arith.constant 0 : i32
    return %arg0, %c0_i32 : i32, i32
  }
}

</mosaic_0001>

<bundles_post_ra>
// kernel: forward.1
= control target key start
LH: loop header
LB: loop body
LE: loop exit
PB: predicated region body
PF: predicated region fallthrough
CT: control target
= control target key end

     0   :  { %s12638_s17 = smov 0   ;;  %s12640_s18 = smov 0   ;;  %s16916_s0 = inlined_call_operand.vmem [shape: f32[64,32,3], index: 0, kind: input, shape index: {}]   ;;  %s16917_s1 = inlined_call_operand.vmem [shape: f32[5,3,6], index: 1, kind: input, shape index: {}]   ;;  %s16918_s2 = inlined_call_operand.vmem [shape: f32[1,6], index: 2, kind: input, shape index: {}]   ;;  %s16919_s3 = inlined_call_operand.vmem [shape: f32[5,6,16], index: 3, kind: input, shape index: {}]   ;;  %s16920_s4 = inlined_call_operand.vmem [shape: f32[1,16], index: 4, kind: input, shape index: {}]   ;;  %s16921_s5 = inlined_call_operand.vmem [shape: f32[13,16,120], index: 5, kind: input, shape index: {}]   ;;  %s16922_s6 = inlined_call_operand.vmem [shape: f32[1,120], index: 6, kind: input, shape index: {}]   ;;  %s16923_s7 = inlined_call_operand.vmem [shape: f32[120,84], index: 7, kind: input, shape index: {}]   ;;  %s16924_s8 = inlined_call_operand.vmem [shape: f32[1,84], index: 8, kind: input, shape index: {}]   ;;  %s16925_s9 = inlined_call_operand.vmem [shape: f32[84,128], index: 9, kind: input, shape index: {}]   ;;  %s16926_s10 = inlined_call_operand.vmem [shape: f32[1,128], index: 10, kind: input, shape index: {}]   ;;  %s16927_s11 = inlined_call_operand.vmem [shape: f32[32,128], index: 11, kind: output, shape index: {}]  }
   0x1   :  { %s12642_s19 = smov 0  }
   0x2 LB: > { %s8986_s20 = sadd.s32 4294967295, %s12576_s19   ;;  %s12655_s21 = sadd.s32 1, %s12576_s19   ;;  %s12576_s19 = sphi %s12642_s19, %s17696_s19   ;;  %s12572_s18 = sphi %s12640_s18, %s17695_s18   ;;  %s12568_s17 = sphi %s12638_s17, %s17694_s17  }
   0x3   : > { %s25_s22 = ssub.s32 %s12576_s19, %s12655_s21  ;;  %s28_s23 = sadd.s32 1, %s12572_s18 }
   0x4   : > { %p26_p0 = scmp.eq.s32.totalorder %s25_s22, 0  ;;  %p35_p1 = scmp.ne.s32.totalorder %s12572_s18, %s12568_s17 }
   0x5   : > { %p36_p2 = scmp.eq.s32.totalorder %s12576_s19, 0  ;;  %p8989_p4 = scmp.ge.s32.totalorder %s12576_s19, 2 }
   0x6   : > { %s12664_s24 = scalar_select %p26_p0, %s12572_s18, %s28_s23  }
   0x7   : > { %p37_p3 = por %p36_p2, %p35_p1  ;;  %327 = sbr.rel (%p8989_p4) target bundleno = 80 (0x50), region = 56 }
   0xc   : > { %330 = sbr.rel (!%p37_p3) target bundleno = 80 (0x50), region = 60  ;;  %s332_s25 = sand.u32 (%p37_p3), 1, %s12572_s18  }
   0xd   : > { %s9937_s26 = sshll.u32 (%p37_p3), %s12576_s19, 4  ;;  %s8990_s27 = sshll.u32 (%p37_p3), %s332_s25, 10 }
   0xe   : > { %s12672_s30 = scalar_lea.vmem (%p37_p3), %s16916_s0, %s9937_s26  ;;  %s12677_s12 = scalar_lea.vmem (%p37_p3), [#allocation2], %s8990_s27 }
   0xf   : > { %v620_v0 = vld [vmem:[%s12672_s30] sm:$0xff] (%p37_p3)  ;;  %v622_v1 = vld [vmem:[%s12672_s30 + $0x8] sm:$0xff] (%p37_p3) }
  0x10   : > { %v624_v2 = vld [vmem:[%s12672_s30 + $0x20] sm:$0xff] (%p37_p3)  ;;  %621 = vst [vmem:[%s12677_s12] sm:$0xff] (%p37_p3), %v620_v0  ;;  %623 = vst [vmem:[%s12677_s12 + $0x8] sm:$0xff] (%p37_p3), %v622_v1  ;;  %v626_v3 = vld [vmem:[%s12672_s30 + $0x28] sm:$0xff] (%p37_p3) }
  0x11   : > { %625 = vst [vmem:[%s12677_s12 + $0x10] sm:$0xff] %v624_v2  ;;  %v628_v4 = vld [vmem:[%s12672_s30 + $0x40] sm:$0xff]  ;;  %v630_v5 = vld [vmem:[%s12672_s30 + $0x48] sm:$0xff]  ;;  %627 = vst [vmem:[%s12677_s12 + $0x18] sm:$0xff] %v626_v3 }
  0x12   : > { %629 = vst [vmem:[%s12677_s12 + $0x20] sm:$0xff] %v628_v4  ;;  %631 = vst [vmem:[%s12677_s12 + $0x28] sm:$0xff] %v630_v5  ;;  %v632_v6 = vld [vmem:[%s12672_s30 + $0x60] sm:$0xff]  ;;  %v634_v7 = vld [vmem:[%s12672_s30 + $0x68] sm:$0xff] }
  0x13   : > { %v636_v8 = vld [vmem:[%s12672_s30 + $0x80] sm:$0xff]  ;;  %633 = vst [vmem:[%s12677_s12 + $0x30] sm:$0xff] %v632_v6  ;;  %635 = vst [vmem:[%s12677_s12 + $0x38] sm:$0xff] %v634_v7  ;;  %v638_v9 = vld [vmem:[%s12672_s30 + $0x88] sm:$0xff] }
  0x14   : > { %637 = vst [vmem:[%s12677_s12 + $0x40] sm:$0xff] %v636_v8  ;;  %v640_v10 = vld [vmem:[%s12672_s30 + $0xa0] sm:$0xff]  ;;  %v642_v11 = vld [vmem:[%s12672_s30 + $0xa8] sm:$0xff]  ;;  %639 = vst [vmem:[%s12677_s12 + $0x48] sm:$0xff] %v638_v9 }
  0x15   : > { %641 = vst [vmem:[%s12677_s12 + $0x50] sm:$0xff] %v640_v10  ;;  %643 = vst [vmem:[%s12677_s12 + $0x58] sm:$0xff] %v642_v11  ;;  %v644_v12 = vld [vmem:[%s12672_s30 + $0xc0] sm:$0xff]  ;;  %v646_v13 = vld [vmem:[%s12672_s30 + $0xc8] sm:$0xff] }
  0x16   : > { %v648_v14 = vld [vmem:[%s12672_s30 + $0xe0] sm:$0xff]  ;;  %645 = vst [vmem:[%s12677_s12 + $0x60] sm:$0xff] %v644_v12  ;;  %647 = vst [vmem:[%s12677_s12 + $0x68] sm:$0xff] %v646_v13  ;;  %v650_v15 = vld [vmem:[%s12672_s30 + $0xe8] sm:$0xff] }
  0x17   : > { %649 = vst [vmem:[%s12677_s12 + $0x70] sm:$0xff] %v648_v14  ;;  %v652_v16 = vld [vmem:[%s12672_s30 + $0x100] sm:$0xff]  ;;  %v654_v17 = vld [vmem:[%s12672_s30 + $0x108] sm:$0xff]  ;;  %651 = vst [vmem:[%s12677_s12 + $0x78] sm:$0xff] %v650_v15 }
  0x18   : > { %653 = vst [vmem:[%s12677_s12 + $0x80] sm:$0xff] %v652_v16  ;;  %655 = vst [vmem:[%s12677_s12 + $0x88] sm:$0xff] %v654_v17  ;;  %v656_v18 = vld [vmem:[%s12672_s30 + $0x120] sm:$0xff]  ;;  %v658_v19 = vld [vmem:[%s12672_s30 + $0x128] sm:$0xff] }
  0x19   : > { %v660_v20 = vld [vmem:[%s12672_s30 + $0x140] sm:$0xff]  ;;  %657 = vst [vmem:[%s12677_s12 + $0x90] sm:$0xff] %v656_v18  ;;  %659 = vst [vmem:[%s12677_s12 + $0x98] sm:$0xff] %v658_v19  ;;  %v662_v21 = vld [vmem:[%s12672_s30 + $0x148] sm:$0xff] }
  0x1a   : > { %661 = vst [vmem:[%s12677_s12 + $0xa0] sm:$0xff] %v660_v20  ;;  %v664_v22 = vld [vmem:[%s12672_s30 + $0x160] sm:$0xff]  ;;  %v666_v23 = vld [vmem:[%s12672_s30 + $0x168] sm:$0xff]  ;;  %663 = vst [vmem:[%s12677_s12 + $0xa8] sm:$0xff] %v662_v21 }
  0x1b   : > { %665 = vst [vmem:[%s12677_s12 + $0xb0] sm:$0xff] %v664_v22  ;;  %667 = vst [vmem:[%s12677_s12 + $0xb8] sm:$0xff] %v666_v23  ;;  %v668_v24 = vld [vmem:[%s12672_s30 + $0x180] sm:$0xff]  ;;  %v670_v25 = vld [vmem:[%s12672_s30 + $0x188] sm:$0xff] }
  0x1c   : > { %v672_v26 = vld [vmem:[%s12672_s30 + $0x1a0] sm:$0xff]  ;;  %669 = vst [vmem:[%s12677_s12 + $0xc0] sm:$0xff] %v668_v24  ;;  %671 = vst [vmem:[%s12677_s12 + $0xc8] sm:$0xff] %v670_v25  ;;  %v674_v27 = vld [vmem:[%s12672_s30 + $0x1a8] sm:$0xff] }
  0x1d   : > { %673 = vst [vmem:[%s12677_s12 + $0xd0] sm:$0xff] %v672_v26  ;;  %v676_v28 = vld [vmem:[%s12672_s30 + $0x1c0] sm:$0xff]  ;;  %v678_v29 = vld [vmem:[%s12672_s30 + $0x1c8] sm:$0xff]  ;;  %675 = vst [vmem:[%s12677_s12 + $0xd8] sm:$0xff] %v674_v27 }
  0x1e   : > { %677 = vst [vmem:[%s12677_s12 + $0xe0] sm:$0xff] %v676_v28  ;;  %679 = vst [vmem:[%s12677_s12 + $0xe8] sm:$0xff] %v678_v29  ;;  %v680_v30 = vld [vmem:[%s12672_s30 + $0x1e0] sm:$0xff]  ;;  %v682_v31 = vld [vmem:[%s12672_s30 + $0x1e8] sm:$0xff] }
  0x1f   : > { %v684_v32 = vld [vmem:[%s12672_s30 + $0x200] sm:$0xff]  ;;  %681 = vst [vmem:[%s12677_s12 + $0xf0] sm:$0xff] %v680_v30  ;;  %683 = vst [vmem:[%s12677_s12 + $0xf8] sm:$0xff] %v682_v31  ;;  %v686_v33 = vld [vmem:[%s12672_s30 + $0x208] sm:$0xff] }
  0x20   : > { %685 = vst [vmem:[%s12677_s12 + $0x100] sm:$0xff] %v684_v32  ;;  %v688_v34 = vld [vmem:[%s12672_s30 + $0x220] sm:$0xff]  ;;  %v690_v35 = vld [vmem:[%s12672_s30 + $0x228] sm:$0xff]  ;;  %687 = vst [vmem:[%s12677_s12 + $0x108] sm:$0xff] %v686_v33 }
  0x21   : > { %689 = vst [vmem:[%s12677_s12 + $0x110] sm:$0xff] %v688_v34  ;;  %691 = vst [vmem:[%s12677_s12 + $0x118] sm:$0xff] %v690_v35  ;;  %v692_v36 = vld [vmem:[%s12672_s30 + $0x240] sm:$0xff]  ;;  %v694_v37 = vld [vmem:[%s12672_s30 + $0x248] sm:$0xff] }
  0x22   : > { %v696_v38 = vld [vmem:[%s12672_s30 + $0x260] sm:$0xff]  ;;  %693 = vst [vmem:[%s12677_s12 + $0x120] sm:$0xff] %v692_v36  ;;  %695 = vst [vmem:[%s12677_s12 + $0x128] sm:$0xff] %v694_v37  ;;  %v698_v39 = vld [vmem:[%s12672_s30 + $0x268] sm:$0xff] }
  0x23   : > { %697 = vst [vmem:[%s12677_s12 + $0x130] sm:$0xff] %v696_v38  ;;  %v700_v40 = vld [vmem:[%s12672_s30 + $0x280] sm:$0xff]  ;;  %v702_v41 = vld [vmem:[%s12672_s30 + $0x288] sm:$0xff]  ;;  %699 = vst [vmem:[%s12677_s12 + $0x138] sm:$0xff] %v698_v39 }
  0x24   : > { %701 = vst [vmem:[%s12677_s12 + $0x140] sm:$0xff] %v700_v40  ;;  %703 = vst [vmem:[%s12677_s12 + $0x148] sm:$0xff] %v702_v41  ;;  %v704_v42 = vld [vmem:[%s12672_s30 + $0x2a0] sm:$0xff]  ;;  %v706_v43 = vld [vmem:[%s12672_s30 + $0x2a8] sm:$0xff] }
  0x25   : > { %v708_v44 = vld [vmem:[%s12672_s30 + $0x2c0] sm:$0xff]  ;;  %705 = vst [vmem:[%s12677_s12 + $0x150] sm:$0xff] %v704_v42  ;;  %707 = vst [vmem:[%s12677_s12 + $0x158] sm:$0xff] %v706_v43  ;;  %v710_v45 = vld [vmem:[%s12672_s30 + $0x2c8] sm:$0xff] }
  0x26   : > { %709 = vst [vmem:[%s12677_s12 + $0x160] sm:$0xff] %v708_v44  ;;  %v712_v46 = vld [vmem:[%s12672_s30 + $0x2e0] sm:$0xff]  ;;  %v714_v47 = vld [vmem:[%s12672_s30 + $0x2e8] sm:$0xff]  ;;  %711 = vst [vmem:[%s12677_s12 + $0x168] sm:$0xff] %v710_v45 }
  0x27   : > { %713 = vst [vmem:[%s12677_s12 + $0x170] sm:$0xff] %v712_v46  ;;  %715 = vst [vmem:[%s12677_s12 + $0x178] sm:$0xff] %v714_v47  ;;  %v716_v48 = vld [vmem:[%s12672_s30 + $0x300] sm:$0xff]  ;;  %v718_v49 = vld [vmem:[%s12672_s30 + $0x308] sm:$0xff] }
  0x28   : > { %v720_v50 = vld [vmem:[%s12672_s30 + $0x320] sm:$0xff]  ;;  %717 = vst [vmem:[%s12677_s12 + $0x180] sm:$0xff] %v716_v48  ;;  %719 = vst [vmem:[%s12677_s12 + $0x188] sm:$0xff] %v718_v49  ;;  %v722_v51 = vld [vmem:[%s12672_s30 + $0x328] sm:$0xff] }
  0x29   : > { %721 = vst [vmem:[%s12677_s12 + $0x190] sm:$0xff] %v720_v50  ;;  %v724_v52 = vld [vmem:[%s12672_s30 + $0x340] sm:$0xff]  ;;  %v726_v53 = vld [vmem:[%s12672_s30 + $0x348] sm:$0xff]  ;;  %723 = vst [vmem:[%s12677_s12 + $0x198] sm:$0xff] %v722_v51 }
  0x2a   : > { %725 = vst [vmem:[%s12677_s12 + $0x1a0] sm:$0xff] %v724_v52  ;;  %727 = vst [vmem:[%s12677_s12 + $0x1a8] sm:$0xff] %v726_v53  ;;  %v728_v54 = vld [vmem:[%s12672_s30 + $0x360] sm:$0xff]  ;;  %v730_v55 = vld [vmem:[%s12672_s30 + $0x368] sm:$0xff] }
  0x2b   : > { %v732_v56 = vld [vmem:[%s12672_s30 + $0x380] sm:$0xff]  ;;  %729 = vst [vmem:[%s12677_s12 + $0x1b0] sm:$0xff] %v728_v54  ;;  %731 = vst [vmem:[%s12677_s12 + $0x1b8] sm:$0xff] %v730_v55  ;;  %v734_v57 = vld [vmem:[%s12672_s30 + $0x388] sm:$0xff] }
  0x2c   : > { %733 = vst [vmem:[%s12677_s12 + $0x1c0] sm:$0xff] %v732_v56  ;;  %v736_v58 = vld [vmem:[%s12672_s30 + $0x3a0] sm:$0xff]  ;;  %v738_v59 = vld [vmem:[%s12672_s30 + $0x3a8] sm:$0xff]  ;;  %735 = vst [vmem:[%s12677_s12 + $0x1c8] sm:$0xff] %v734_v57 }
  0x2d   : > { %737 = vst [vmem:[%s12677_s12 + $0x1d0] sm:$0xff] %v736_v58  ;;  %739 = vst [vmem:[%s12677_s12 + $0x1d8] sm:$0xff] %v738_v59  ;;  %v740_v60 = vld [vmem:[%s12672_s30 + $0x3c0] sm:$0xff]  ;;  %v742_v61 = vld [vmem:[%s12672_s30 + $0x3c8] sm:$0xff] }
  0x2e   : > { %v744_v62 = vld [vmem:[%s12672_s30 + $0x3e0] sm:$0xff]  ;;  %741 = vst [vmem:[%s12677_s12 + $0x1e0] sm:$0xff] %v740_v60  ;;  %743 = vst [vmem:[%s12677_s12 + $0x1e8] sm:$0xff] %v742_v61  ;;  %v746_v63 = vld [vmem:[%s12672_s30 + $0x3e8] sm:$0xff] }
  0x2f   : > { %745 = vst [vmem:[%s12677_s12 + $0x1f0] sm:$0xff] %v744_v62  ;;  %v748_v0 = vld [vmem:[%s12672_s30 + $0x400] sm:$0xff]  ;;  %v750_v1 = vld [vmem:[%s12672_s30 + $0x408] sm:$0xff]  ;;  %747 = vst [vmem:[%s12677_s12 + $0x1f8] sm:$0xff] %v746_v63 }
  0x30   : > { %749 = vst [vmem:[%s12677_s12 + $0x200] sm:$0xff] %v748_v0  ;;  %751 = vst [vmem:[%s12677_s12 + $0x208] sm:$0xff] %v750_v1  ;;  %v752_v2 = vld [vmem:[%s12672_s30 + $0x420] sm:$0xff]  ;;  %v754_v3 = vld [vmem:[%s12672_s30 + $0x428] sm:$0xff] }
  0x31   : > { %v756_v4 = vld [vmem:[%s12672_s30 + $0x440] sm:$0xff]  ;;  %753 = vst [vmem:[%s12677_s12 + $0x210] sm:$0xff] %v752_v2  ;;  %755 = vst [vmem:[%s12677_s12 + $0x218] sm:$0xff] %v754_v3  ;;  %v758_v5 = vld [vmem:[%s12672_s30 + $0x448] sm:$0xff] }
  0x32   : > { %757 = vst [vmem:[%s12677_s12 + $0x220] sm:$0xff] %v756_v4  ;;  %v760_v6 = vld [vmem:[%s12672_s30 + $0x460] sm:$0xff]  ;;  %v762_v7 = vld [vmem:[%s12672_s30 + $0x468] sm:$0xff]  ;;  %759 = vst [vmem:[%s12677_s12 + $0x228] sm:$0xff] %v758_v5 }
  0x33   : > { %761 = vst [vmem:[%s12677_s12 + $0x230] sm:$0xff] %v760_v6  ;;  %763 = vst [vmem:[%s12677_s12 + $0x238] sm:$0xff] %v762_v7  ;;  %v764_v8 = vld [vmem:[%s12672_s30 + $0x480] sm:$0xff]  ;;  %v766_v9 = vld [vmem:[%s12672_s30 + $0x488] sm:$0xff] }
  0x34   : > { %v768_v10 = vld [vmem:[%s12672_s30 + $0x4a0] sm:$0xff]  ;;  %765 = vst [vmem:[%s12677_s12 + $0x240] sm:$0xff] %v764_v8  ;;  %767 = vst [vmem:[%s12677_s12 + $0x248] sm:$0xff] %v766_v9  ;;  %v770_v11 = vld [vmem:[%s12672_s30 + $0x4a8] sm:$0xff] }
  0x35   : > { %769 = vst [vmem:[%s12677_s12 + $0x250] sm:$0xff] %v768_v10  ;;  %v772_v12 = vld [vmem:[%s12672_s30 + $0x4c0] sm:$0xff]  ;;  %v774_v13 = vld [vmem:[%s12672_s30 + $0x4c8] sm:$0xff]  ;;  %771 = vst [vmem:[%s12677_s12 + $0x258] sm:$0xff] %v770_v11 }
  0x36   : > { %773 = vst [vmem:[%s12677_s12 + $0x260] sm:$0xff] %v772_v12  ;;  %775 = vst [vmem:[%s12677_s12 + $0x268] sm:$0xff] %v774_v13  ;;  %v776_v14 = vld [vmem:[%s12672_s30 + $0x4e0] sm:$0xff]  ;;  %v778_v15 = vld [vmem:[%s12672_s30 + $0x4e8] sm:$0xff] }
  0x37   : > { %v780_v16 = vld [vmem:[%s12672_s30 + $0x500] sm:$0xff]  ;;  %777 = vst [vmem:[%s12677_s12 + $0x270] sm:$0xff] %v776_v14  ;;  %779 = vst [vmem:[%s12677_s12 + $0x278] sm:$0xff] %v778_v15  ;;  %v782_v17 = vld [vmem:[%s12672_s30 + $0x508] sm:$0xff] }
  0x38   : > { %781 = vst [vmem:[%s12677_s12 + $0x280] sm:$0xff] %v780_v16  ;;  %v784_v18 = vld [vmem:[%s12672_s30 + $0x520] sm:$0xff]  ;;  %v786_v19 = vld [vmem:[%s12672_s30 + $0x528] sm:$0xff]  ;;  %783 = vst [vmem:[%s12677_s12 + $0x288] sm:$0xff] %v782_v17 }
  0x39   : > { %785 = vst [vmem:[%s12677_s12 + $0x290] sm:$0xff] %v784_v18  ;;  %787 = vst [vmem:[%s12677_s12 + $0x298] sm:$0xff] %v786_v19  ;;  %v788_v20 = vld [vmem:[%s12672_s30 + $0x540] sm:$0xff]  ;;  %v790_v21 = vld [vmem:[%s12672_s30 + $0x548] sm:$0xff] }
  0x3a   : > { %v792_v22 = vld [vmem:[%s12672_s30 + $0x560] sm:$0xff]  ;;  %789 = vst [vmem:[%s12677_s12 + $0x2a0] sm:$0xff] %v788_v20  ;;  %791 = vst [vmem:[%s12677_s12 + $0x2a8] sm:$0xff] %v790_v21  ;;  %v794_v23 = vld [vmem:[%s12672_s30 + $0x568] sm:$0xff] }
  0x3b   : > { %793 = vst [vmem:[%s12677_s12 + $0x2b0] sm:$0xff] %v792_v22  ;;  %v796_v24 = vld [vmem:[%s12672_s30 + $0x580] sm:$0xff]  ;;  %v798_v25 = vld [vmem:[%s12672_s30 + $0x588] sm:$0xff]  ;;  %795 = vst [vmem:[%s12677_s12 + $0x2b8] sm:$0xff] %v794_v23 }
  0x3c   : > { %797 = vst [vmem:[%s12677_s12 + $0x2c0] sm:$0xff] %v796_v24  ;;  %799 = vst [vmem:[%s12677_s12 + $0x2c8] sm:$0xff] %v798_v25  ;;  %v800_v26 = vld [vmem:[%s12672_s30 + $0x5a0] sm:$0xff]  ;;  %v802_v27 = vld [vmem:[%s12672_s30 + $0x5a8] sm:$0xff] }
  0x3d   : > { %v804_v28 = vld [vmem:[%s12672_s30 + $0x5c0] sm:$0xff]  ;;  %801 = vst [vmem:[%s12677_s12 + $0x2d0] sm:$0xff] %v800_v26  ;;  %803 = vst [vmem:[%s12677_s12 + $0x2d8] sm:$0xff] %v802_v27  ;;  %v806_v29 = vld [vmem:[%s12672_s30 + $0x5c8] sm:$0xff] }
  0x3e   : > { %805 = vst [vmem:[%s12677_s12 + $0x2e0] sm:$0xff] %v804_v28  ;;  %v808_v30 = vld [vmem:[%s12672_s30 + $0x5e0] sm:$0xff]  ;;  %v810_v31 = vld [vmem:[%s12672_s30 + $0x5e8] sm:$0xff]  ;;  %807 = vst [vmem:[%s12677_s12 + $0x2e8] sm:$0xff] %v806_v29 }
  0x3f   : > { %809 = vst [vmem:[%s12677_s12 + $0x2f0] sm:$0xff] %v808_v30  ;;  %811 = vst [vmem:[%s12677_s12 + $0x2f8] sm:$0xff] %v810_v31  ;;  %v812_v32 = vld [vmem:[%s12672_s30 + $0x600] sm:$0xff]  ;;  %v814_v33 = vld [vmem:[%s12672_s30 + $0x608] sm:$0xff] }
  0x40   : > { %v816_v34 = vld [vmem:[%s12672_s30 + $0x620] sm:$0xff]  ;;  %813 = vst [vmem:[%s12677_s12 + $0x300] sm:$0xff] %v812_v32  ;;  %815 = vst [vmem:[%s12677_s12 + $0x308] sm:$0xff] %v814_v33  ;;  %v818_v35 = vld [vmem:[%s12672_s30 + $0x628] sm:$0xff] }
  0x41   : > { %817 = vst [vmem:[%s12677_s12 + $0x310] sm:$0xff] %v816_v34  ;;  %v820_v36 = vld [vmem:[%s12672_s30 + $0x640] sm:$0xff]  ;;  %v822_v37 = vld [vmem:[%s12672_s30 + $0x648] sm:$0xff]  ;;  %819 = vst [vmem:[%s12677_s12 + $0x318] sm:$0xff] %v818_v35 }
  0x42   : > { %821 = vst [vmem:[%s12677_s12 + $0x320] sm:$0xff] %v820_v36  ;;  %823 = vst [vmem:[%s12677_s12 + $0x328] sm:$0xff] %v822_v37  ;;  %v824_v38 = vld [vmem:[%s12672_s30 + $0x660] sm:$0xff]  ;;  %v826_v39 = vld [vmem:[%s12672_s30 + $0x668] sm:$0xff] }
  0x43   : > { %v828_v40 = vld [vmem:[%s12672_s30 + $0x680] sm:$0xff]  ;;  %825 = vst [vmem:[%s12677_s12 + $0x330] sm:$0xff] %v824_v38  ;;  %827 = vst [vmem:[%s12677_s12 + $0x338] sm:$0xff] %v826_v39  ;;  %v830_v41 = vld [vmem:[%s12672_s30 + $0x688] sm:$0xff] }
  0x44   : > { %829 = vst [vmem:[%s12677_s12 + $0x340] sm:$0xff] %v828_v40  ;;  %v832_v42 = vld [vmem:[%s12672_s30 + $0x6a0] sm:$0xff]  ;;  %v834_v43 = vld [vmem:[%s12672_s30 + $0x6a8] sm:$0xff]  ;;  %831 = vst [vmem:[%s12677_s12 + $0x348] sm:$0xff] %v830_v41 }
  0x45   : > { %833 = vst [vmem:[%s12677_s12 + $0x350] sm:$0xff] %v832_v42  ;;  %835 = vst [vmem:[%s12677_s12 + $0x358] sm:$0xff] %v834_v43  ;;  %v836_v44 = vld [vmem:[%s12672_s30 + $0x6c0] sm:$0xff]  ;;  %v838_v45 = vld [vmem:[%s12672_s30 + $0x6c8] sm:$0xff] }
  0x46   : > { %v840_v46 = vld [vmem:[%s12672_s30 + $0x6e0] sm:$0xff]  ;;  %837 = vst [vmem:[%s12677_s12 + $0x360] sm:$0xff] %v836_v44  ;;  %839 = vst [vmem:[%s12677_s12 + $0x368] sm:$0xff] %v838_v45  ;;  %v842_v47 = vld [vmem:[%s12672_s30 + $0x6e8] sm:$0xff] }
  0x47   : > { %841 = vst [vmem:[%s12677_s12 + $0x370] sm:$0xff] %v840_v46  ;;  %v844_v48 = vld [vmem:[%s12672_s30 + $0x700] sm:$0xff]  ;;  %v846_v49 = vld [vmem:[%s12672_s30 + $0x708] sm:$0xff]  ;;  %843 = vst [vmem:[%s12677_s12 + $0x378] sm:$0xff] %v842_v47 }
  0x48   : > { %845 = vst [vmem:[%s12677_s12 + $0x380] sm:$0xff] %v844_v48  ;;  %847 = vst [vmem:[%s12677_s12 + $0x388] sm:$0xff] %v846_v49  ;;  %v848_v50 = vld [vmem:[%s12672_s30 + $0x720] sm:$0xff]  ;;  %v850_v51 = vld [vmem:[%s12672_s30 + $0x728] sm:$0xff] }
  0x49   : > { %v852_v52 = vld [vmem:[%s12672_s30 + $0x740] sm:$0xff]  ;;  %849 = vst [vmem:[%s12677_s12 + $0x390] sm:$0xff] %v848_v50  ;;  %851 = vst [vmem:[%s12677_s12 + $0x398] sm:$0xff] %v850_v51  ;;  %v854_v53 = vld [vmem:[%s12672_s30 + $0x748] sm:$0xff] }
  0x4a   : > { %853 = vst [vmem:[%s12677_s12 + $0x3a0] sm:$0xff] %v852_v52  ;;  %v856_v54 = vld [vmem:[%s12672_s30 + $0x760] sm:$0xff]  ;;  %v858_v55 = vld [vmem:[%s12672_s30 + $0x768] sm:$0xff]  ;;  %855 = vst [vmem:[%s12677_s12 + $0x3a8] sm:$0xff] %v854_v53 }
  0x4b   : > { %857 = vst [vmem:[%s12677_s12 + $0x3b0] sm:$0xff] %v856_v54  ;;  %859 = vst [vmem:[%s12677_s12 + $0x3b8] sm:$0xff] %v858_v55  ;;  %v860_v56 = vld [vmem:[%s12672_s30 + $0x780] sm:$0xff]  ;;  %v862_v57 = vld [vmem:[%s12672_s30 + $0x788] sm:$0xff] }
  0x4c   : > { %v864_v58 = vld [vmem:[%s12672_s30 + $0x7a0] sm:$0xff]  ;;  %861 = vst [vmem:[%s12677_s12 + $0x3c0] sm:$0xff] %v860_v56  ;;  %863 = vst [vmem:[%s12677_s12 + $0x3c8] sm:$0xff] %v862_v57  ;;  %v866_v59 = vld [vmem:[%s12672_s30 + $0x7a8] sm:$0xff] }
  0x4d   : > { %865 = vst [vmem:[%s12677_s12 + $0x3d0] sm:$0xff] %v864_v58  ;;  %v868_v60 = vld [vmem:[%s12672_s30 + $0x7c0] sm:$0xff]  ;;  %v870_v61 = vld [vmem:[%s12672_s30 + $0x7c8] sm:$0xff]  ;;  %867 = vst [vmem:[%s12677_s12 + $0x3d8] sm:$0xff] %v866_v59 }
  0x4e   : > { %869 = vst [vmem:[%s12677_s12 + $0x3e0] sm:$0xff] %v868_v60  ;;  %871 = vst [vmem:[%s12677_s12 + $0x3e8] sm:$0xff] %v870_v61  ;;  %v872_v62 = vld [vmem:[%s12672_s30 + $0x7e0] sm:$0xff]  ;;  %v874_v63 = vld [vmem:[%s12672_s30 + $0x7e8] sm:$0xff] }
  0x4f   : > { %873 = vst [vmem:[%s12677_s12 + $0x3f0] sm:$0xff] %v872_v62  ;;  %875 = vst [vmem:[%s12677_s12 + $0x3f8] sm:$0xff] %v874_v63 }
  0x50 PF: > { %p8993_p5 = scmp.ge.s32.totalorder %s12576_s19, 1  ;;  %p880_p6 = scmp.lt.s32.totalorder %s12576_s19, 3 }
  0x52   : > { %p881_p7 = pnand %p8993_p5, %p880_p6 }
  0x54   : > { %884 = sbr.rel (%p881_p7) target bundleno = 2106 (0x83a), region = 98 }
  0x59   : > { %v8997_v0 = vld [vmem:[%s16917_s1 + $0x4] sm:$0x7]  ;;  %vm1425_vm0 = vcmask 1042432   ;;  %v1061_v1 = vld [vmem:[%s16917_s1] sm:$0x7]  ;;  %s887_s22 = sand.u32 1, %s12568_s17  }
  0x5a   : > { %10890 = vmatprep.subr.msk.mxu0 %vm1425_vm0, %v8997_v0  ;;  %11072 = vmatprep.subr.msk.mxu1 %vm1425_vm0, %v1061_v1  ;;  %s8994_s23 = sshll.u32 %s887_s22, 10  ;;  %vm1064_vm1 = vcmask 23552   ;;  %v9240_v2 = vld [vmem:[%s16917_s1 + $0x8] sm:$0x7]  ;;  %v9362_v63 = vld [vmem:[%s16917_s1 + $0xc] sm:$0x7] }
  0x5b   : > { %10891 = vmatpush3.msk.msra.mxu0 %vm1425_vm0, %v8997_v0  ;;  %11073 = vmatpush3.msk.msra.mxu1 %vm1425_vm0, %v1061_v1  ;;  %s12948_s27 = scalar_lea.vmem [#allocation2], %s8994_s23  ;;  %v13315_v1 = vld [vmem:[%s16917_s1 + $0x10] sm:$0x7]  ;;  %vm5623_vm2 = vcmask 1045504   ;;  %vm5466_vm3 = vcmask 48128   ;;  %vm7592_vm4 = vcmask 130048  }
  0x5c   : > { %v935_v3 = vld [vmem:[%s12948_s27 + $0x10] sm:$0xff]  ;;  %v933_v4 = vld [vmem:[%s12948_s27] sm:$0xff]  ;;  %11254 = vmatprep.subr.msk.mxu0 %vm1425_vm0, %v9240_v2  ;;  %v936_v5 = vld [vmem:[%s12948_s27 + $0x18] sm:$0xff]  ;;  %11436 = vmatprep.subr.msk.mxu1 %vm1425_vm0, %v9362_v63  ;;  %vm8843_vm5 = vcmask 1043456   ;;  %vm8734_vm6 = vcmask 982016   ;;  %vm8836_vm7 = vcmask 687104  }
  0x5d   : > { %10892 = vmatprep.mubr.msk.f32.mxu0 %vm1064_vm1, %v935_v3  ;;  %11074 = vmatprep.mubr.msk.f32.mxu1 %vm1064_vm1, %v933_v4  ;;  %v934_v6 = vld [vmem:[%s12948_s27 + $0x8] sm:$0xff]  ;;  %v12958_v7 = vld [vmem:[%s12948_s27 + $0x20] sm:$0xff]  ;;  %v12970_v9 = vld [vmem:[%s12948_s27 + $0x30] sm:$0xff]  ;;  %s8995_s29 = sshll.u32 %s8986_s20, 1 }
  0x5e   : > { %10893 = vmatmul.mubr.msk.f32.vlgmr.msra.gmra.mxu0 %vm1064_vm1, %v936_v5  ;;  %11075 = vmatmul.mubr.msk.f32.vlgmr.msra.gmra.mxu1 %vm1064_vm1, %v934_v6  ;;  %v12966_v8 = vld [vmem:[%s12948_s27 + $0x28] sm:$0xff]  ;;  %v12980_v10 = vld [vmem:[%s12948_s27 + $0x38] sm:$0xff]  ;;  %v12983_v11 = vld [vmem:[%s12948_s27 + $0x40] sm:$0xff]  ;;  %p928_p8 = scmp.lt.s32.totalorder %s8995_s29, 3 }
  0x5f   : > { %11255 = vmatpush3.msk.msra.mxu0 %vm1425_vm0, %v9240_v2  ;;  %10895 = vmatprep.mubr.msk.f32.mxu0 %vm1064_vm1, %v12958_v7  ;;  %v12994_v12 = vld [vmem:[%s12948_s27 + $0x48] sm:$0xff]  ;;  %v12997_v13 = vld [vmem:[%s12948_s27 + $0x50] sm:$0xff]  ;;  %v13008_v14 = vld [vmem:[%s12948_s27 + $0x58] sm:$0xff] }
  0x60   : > { %11077 = vmatprep.mubr.msk.f32.mxu1 %vm1064_vm1, %v935_v3  ;;  %v13011_v15 = vld [vmem:[%s12948_s27 + $0x60] sm:$0xff]  ;;  %v13022_v16 = vld [vmem:[%s12948_s27 + $0x68] sm:$0xff]  ;;  %v13025_v17 = vld [vmem:[%s12948_s27 + $0x70] sm:$0xff]  ;;  %11437 = vmatpush3.msk.msra.mxu1 %vm1425_vm0, %v9362_v63  ;;  %s17698_s29 = smov (!%p928_p8, %s8995_s29), 3 }
  0x61   : > { %v13036_v18 = vld [vmem:[%s12948_s27 + $0x78] sm:$0xff]  ;;  %v13039_v19 = vld [vmem:[%s12948_s27 + $0x80] sm:$0xff]  ;;  %v13050_v20 = vld [vmem:[%s12948_s27 + $0x88] sm:$0xff]  ;;  %11618 = vmatprep.subr.msk.mxu0 %vm1425_vm0, %v13315_v1  ;;  %s8996_s30 = sshll.u32 %s17698_s29, 3 }
  0x62   : > { %10896 = vmatmul.mubr.msk.f32.gmra.mxu0 %vm1064_vm1, %v12966_v8  ;;  %11078 = vmatmul.mubr.msk.f32.gmra.mxu1 %vm1064_vm1, %v936_v5  ;;  %v13053_v21 = vld [vmem:[%s12948_s27 + $0x90] sm:$0xff]  ;;  %v13064_v22 = vld [vmem:[%s12948_s27 + $0x98] sm:$0xff]  ;;  %v13067_v23 = vld [vmem:[%s12948_s27 + $0xa0] sm:$0xff]  ;;  %s931_s16 = scalar_lea.vmem %s16927_s11, %s8996_s30 }
  0x63   : > { %10898 = vmatprep.mubr.msk.f32.mxu0 %vm1064_vm1, %v12970_v9  ;;  %11080 = vmatprep.mubr.msk.f32.mxu1 %vm1064_vm1, %v12958_v7  ;;  %v13078_v24 = vld [vmem:[%s12948_s27 + $0xa8] sm:$0xff]  ;;  %v13081_v25 = vld [vmem:[%s12948_s27 + $0xb0] sm:$0xff]  ;;  %v13092_v26 = vld [vmem:[%s12948_s27 + $0xb8] sm:$0xff] }
  0x64   : > { %v13095_v27 = vld [vmem:[%s12948_s27 + $0xc0] sm:$0xff]  ;;  %v13106_v28 = vld [vmem:[%s12948_s27 + $0xc8] sm:$0xff]  ;;  %v13109_v29 = vld [vmem:[%s12948_s27 + $0xd0] sm:$0xff] }
  0x65   : > { %v13120_v30 = vld [vmem:[%s12948_s27 + $0xd8] sm:$0xff]  ;;  %v13123_v31 = vld [vmem:[%s12948_s27 + $0xe0] sm:$0xff]  ;;  %v13134_v32 = vld [vmem:[%s12948_s27 + $0xe8] sm:$0xff] }
  0x66   : > { %10899 = vmatmul.mubr.msk.f32.gmra.mxu0 %vm1064_vm1, %v12980_v10  ;;  %11081 = vmatmul.mubr.msk.f32.gmra.mxu1 %vm1064_vm1, %v12966_v8  ;;  %v13137_v33 = vld [vmem:[%s12948_s27 + $0xf0] sm:$0xff]  ;;  %v13148_v34 = vld [vmem:[%s12948_s27 + $0xf8] sm:$0xff]  ;;  %v13151_v35 = vld [vmem:[%s12948_s27 + $0x100] sm:$0xff] }
  0x67   : > { %10901 = vmatprep.mubr.msk.f32.mxu0 %vm1064_vm1, %v12983_v11  ;;  %11083 = vmatprep.mubr.msk.f32.mxu1 %vm1064_vm1, %v12970_v9  ;;  %v13162_v36 = vld [vmem:[%s12948_s27 + $0x108] sm:$0xff]  ;;  %v13165_v37 = vld [vmem:[%s12948_s27 + $0x110] sm:$0xff]  ;;  %v13176_v38 = vld [vmem:[%s12948_s27 + $0x118] sm:$0xff] }
  0x68   : > { %v13179_v39 = vld [vmem:[%s12948_s27 + $0x120] sm:$0xff]  ;;  %v13190_v40 = vld [vmem:[%s12948_s27 + $0x128] sm:$0xff]  ;;  %v13193_v41 = vld [vmem:[%s12948_s27 + $0x130] sm:$0xff] }
  0x69   : > { %v13204_v42 = vld [vmem:[%s12948_s27 + $0x138] sm:$0xff]  ;;  %v13207_v43 = vld [vmem:[%s12948_s27 + $0x140] sm:$0xff]  ;;  %v13218_v44 = vld [vmem:[%s12948_s27 + $0x148] sm:$0xff] }
  0x6a   : > { %10902 = vmatmul.mubr.msk.f32.gmra.mxu0 %vm1064_vm1, %v12994_v12  ;;  %11084 = vmatmul.mubr.msk.f32.gmra.mxu1 %vm1064_vm1, %v12980_v10  ;;  %v13221_v45 = vld [vmem:[%s12948_s27 + $0x150] sm:$0xff]  ;;  %v13232_v46 = vld [vmem:[%s12948_s27 + $0x158] sm:$0xff]  ;;  %v13235_v47 = vld [vmem:[%s12948_s27 + $0x160] sm:$0xff] }
  0x6b   : > { %10904 = vmatprep.mubr.msk.f32.mxu0 %vm1064_vm1, %v12997_v13  ;;  %11086 = vmatprep.mubr.msk.f32.mxu1 %vm1064_vm1, %v12983_v11  ;;  %v13246_v48 = vld [vmem:[%s12948_s27 + $0x168] sm:$0xff]  ;;  %v13249_v49 = vld [vmem:[%s12948_s27 + $0x170] sm:$0xff]  ;;  %v13260_v50 = vld [vmem:[%s12948_s27 + $0x178] sm:$0xff] }
  0x6c   : > { %v13263_v51 = vld [vmem:[%s12948_s27 + $0x180] sm:$0xff]  ;;  %v982_v52 = vld [vmem:[%s12948_s27 + $0x188] sm:$0xff]  ;;  %v983_v53 = vld [vmem:[%s12948_s27 + $0x190] sm:$0xff] }
  0x6d   : > { %v984_v54 = vld [vmem:[%s12948_s27 + $0x198] sm:$0xff]  ;;  %v985_v55 = vld [vmem:[%s12948_s27 + $0x1a0] sm:$0xff]  ;;  %v986_v56 = vld [vmem:[%s12948_s27 + $0x1a8] sm:$0xff] }
  0x6e   : > { %10905 = vmatmul.mubr.msk.f32.gmra.mxu0 %vm1064_vm1, %v13008_v14  ;;  %11087 = vmatmul.mubr.msk.f32.gmra.mxu1 %vm1064_vm1, %v12994_v12  ;;  %v987_v57 = vld [vmem:[%s12948_s27 + $0x1b0] sm:$0xff]  ;;  %v988_v58 = vld [vmem:[%s12948_s27 + $0x1b8] sm:$0xff]  ;;  %v989_v59 = vld [vmem:[%s12948_s27 + $0x1c0] sm:$0xff] }
  0x6f   : > { %10907 = vmatprep.mubr.msk.f32.mxu0 %vm1064_vm1, %v13011_v15  ;;  %11089 = vmatprep.mubr.msk.f32.mxu1 %vm1064_vm1, %v12997_v13  ;;  %v990_v60 = vld [vmem:[%s12948_s27 + $0x1c8] sm:$0xff]  ;;  %v991_v61 = vld [vmem:[%s12948_s27 + $0x1d0] sm:$0xff]  ;;  %v992_v62 = vld [vmem:[%s12948_s27 + $0x1d8] sm:$0xff] }
  0x70   : > { %v993_v0 = vld [vmem:[%s12948_s27 + $0x1e0] sm:$0xff]  ;;  %v994_v2 = vld [vmem:[%s12948_s27 + $0x1e8] sm:$0xff]  ;;  %v995_v3 = vld [vmem:[%s12948_s27 + $0x1f0] sm:$0xff] }
  0x71   : > { %v996_v4 = vld [vmem:[%s12948_s27 + $0x1f8] sm:$0xff]  ;;  %v997_v5 = vld [vmem:[%s12948_s27 + $0x200] sm:$0xff]  ;;  %v998_v6 = vld [vmem:[%s12948_s27 + $0x208] sm:$0xff] }
  0x72   : > { %10908 = vmatmul.mubr.msk.f32.gmra.mxu0 %vm1064_vm1, %v13022_v16  ;;  %11090 = vmatmul.mubr.msk.f32.gmra.mxu1 %vm1064_vm1, %v13008_v14  ;;  %v1010_v63 = vld [vmem:[%s12948_s27 + $0x268] sm:$0xff] }
  0x73   : > { %10910 = vmatprep.mubr.msk.f32.mxu0 %vm1064_vm1, %v13025_v17  ;;  %11092 = vmatprep.mubr.msk.f32.mxu1 %vm1064_vm1, %v13011_v15 }
  0x76   : > { %10911 = vmatmul.mubr.msk.f32.gmra.mxu0 %vm1064_vm1, %v13036_v18  ;;  %11093 = vmatmul.mubr.msk.f32.gmra.mxu1 %vm1064_vm1, %v13022_v16 }
  0x77   : > { %10913 = vmatprep.mubr.msk.f32.mxu0 %vm1064_vm1, %v13039_v19  ;;  %11095 = vmatprep.mubr.msk.f32.mxu1 %vm1064_vm1, %v13025_v17 }
  0x7a   : > { %10914 = vmatmul.mubr.msk.f32.gmra.mxu0 %vm1064_vm1, %v13050_v20  ;;  %11096 = vmatmul.mubr.msk.f32.gmra.mxu1 %vm1064_vm1, %v13036_v18 }
  0x7b   : > { %10916 = vmatprep.mubr.msk.f32.mxu0 %vm1064_vm1, %v13053_v21  ;;  %11098 = vmatprep.mubr.msk.f32.mxu1 %vm1064_vm1, %v13039_v19 }
  0x7e   : > { %10917 = vmatmul.mubr.msk.f32.gmra.mxu0 %vm1064_vm1, %v13064_v22  ;;  %11099 = vmatmul.mubr.msk.f32.gmra.mxu1 %vm1064_vm1, %v13050_v20 }
  0x7f   : > { %10919 = vmatprep.mubr.msk.f32.mxu0 %vm1064_vm1, %v13067_v23  ;;  %11101 = vmatprep.mubr.msk.f32.mxu1 %vm1064_vm1, %v13053_v21 }
  0x82   : > { %10920 = vmatmul.mubr.msk.f32.gmra.mxu0 %vm1064_vm1, %v13078_v24  ;;  %11102 = vmatmul.mubr.msk.f32.gmra.mxu1 %vm1064_vm1, %v13064_v22 }
  0x83   : > { %10922 = vmatprep.mubr.msk.f32.mxu0 %vm1064_vm1, %v13081_v25  ;;  %11104 = vmatprep.mubr.msk.f32.mxu1 %vm1064_vm1, %v13067_v23 }
  0x86   : > { %10923 = vmatmul.mubr.msk.f32.gmra.mxu0 %vm1064_vm1, %v13092_v26  ;;  %11105 = vmatmul.mubr.msk.f32.gmra.mxu1 %vm1064_vm1, %v13078_v24 }
  0x87   : > { %10925 = vmatprep.mubr.msk.f32.mxu0 %vm1064_vm1, %v13095_v27  ;;  %11107 = vmatprep.mubr.msk.f32.mxu1 %vm1064_vm1, %v13081_v25 }
  0x8a   : > { %10926 = vmatmul.mubr.msk.f32.gmra.mxu0 %vm1064_vm1, %v13106_v28  ;;  %11108 = vmatmul.mubr.msk.f32.gmra.mxu1 %vm1064_vm1, %v13092_v26 }
  0x8b   : > { %10928 = vmatprep.mubr.msk.f32.mxu0 %vm1064_vm1, %v13109_v29  ;;  %11110 = vmatprep.mubr.msk.f32.mxu1 %vm1064_vm1, %v13095_v27 }
  0x8e   : > { %10929 = vmatmul.mubr.msk.f32.gmra.mxu0 %vm1064_vm1, %v13120_v30  ;;  %11111 = vmatmul.mubr.msk.f32.gmra.mxu1 %vm1064_vm1, %v13106_v28 }
  0x8f   : > { %10931 = vmatprep.mubr.msk.f32.mxu0 %vm1064_vm1, %v13123_v31  ;;  %11113 = vmatprep.mubr.msk.f32.mxu1 %vm1064_vm1, %v13109_v29 }
  0x92   : > { %10932 = vmatmul.mubr.msk.f32.gmra.mxu0 %vm1064_vm1, %v13134_v32  ;;  %11114 = vmatmul.mubr.msk.f32.gmra.mxu1 %vm1064_vm1, %v13120_v30 }
  0x93   : > { %10934 = vmatprep.mubr.msk.f32.mxu0 %vm1064_vm1, %v13137_v33  ;;  %11116 = vmatprep.mubr.msk.f32.mxu1 %vm1064_vm1, %v13123_v31 }
  0x96   : > { %10935 = vmatmul.mubr.msk.f32.gmra.mxu0 %vm1064_vm1, %v13148_v34  ;;  %11117 = vmatmul.mubr.msk.f32.gmra.mxu1 %vm1064_vm1, %v13134_v32 }
  0x97   : > { %10937 = vmatprep.mubr.msk.f32.mxu0 %vm1064_vm1, %v13151_v35  ;;  %11119 = vmatprep.mubr.msk.f32.mxu1 %vm1064_vm1, %v13137_v33 }
  0x9a   : > { %10938 = vmatmul.mubr.msk.f32.gmra.mxu0 %vm1064_vm1, %v13162_v36  ;;  %11120 = vmatmul.mubr.msk.f32.gmra.mxu1 %vm1064_vm1, %v13148_v34 }
  0x9b   : > { %10940 = vmatprep.mubr.msk.f32.mxu0 %vm1064_vm1, %v13165_v37  ;;  %11122 = vmatprep.mubr.msk.f32.mxu1 %vm1064_vm1, %v13151_v35 }
  0x9e   : > { %10941 = vmatmul.mubr.msk.f32.gmra.mxu0 %vm1064_vm1, %v13176_v38  ;;  %11123 = vmatmul.mubr.msk.f32.gmra.mxu1 %vm1064_vm1, %v13162_v36 }
  0x9f   : > { %10943 = vmatprep.mubr.msk.f32.mxu0 %vm1064_vm1, %v13179_v39  ;;  %11125 = vmatprep.mubr.msk.f32.mxu1 %vm1064_vm1, %v13165_v37 }
  0xa2   : > { %10944 = vmatmul.mubr.msk.f32.gmra.mxu0 %vm1064_vm1, %v13190_v40  ;;  %11126 = vmatmul.mubr.msk.f32.gmra.mxu1 %vm1064_vm1, %v13176_v38 }
  0xa3   : > { %10946 = vmatprep.mubr.msk.f32.mxu0 %vm1064_vm1, %v13193_v41  ;;  %11128 = vmatprep.mubr.msk.f32.mxu1 %vm1064_vm1, %v13179_v39 }
  0xa6   : > { %10947 = vmatmul.mubr.msk.f32.gmra.mxu0 %vm1064_vm1, %v13204_v42  ;;  %11129 = vmatmul.mubr.msk.f32.gmra.mxu1 %vm1064_vm1, %v13190_v40 }
  0xa7   : > { %10949 = vmatprep.mubr.msk.f32.mxu0 %vm1064_vm1, %v13207_v43  ;;  %11131 = vmatprep.mubr.msk.f32.mxu1 %vm1064_vm1, %v13193_v41 }
  0xaa   : > { %10950 = vmatmul.mubr.msk.f32.gmra.mxu0 %vm1064_vm1, %v13218_v44  ;;  %11132 = vmatmul.mubr.msk.f32.gmra.mxu1 %vm1064_vm1, %v13204_v42 }
  0xab   : > { %10952 = vmatprep.mubr.msk.f32.mxu0 %vm1064_vm1, %v13221_v45  ;;  %11134 = vmatprep.mubr.msk.f32.mxu1 %vm1064_vm1, %v13207_v43 }
  0xae   : > { %10953 = vmatmul.mubr.msk.f32.gmra.mxu0 %vm1064_vm1, %v13232_v46  ;;  %11135 = vmatmul.mubr.msk.f32.gmra.mxu1 %vm1064_vm1, %v13218_v44 }
  0xaf   : > { %10955 = vmatprep.mubr.msk.f32.mxu0 %vm1064_vm1, %v13235_v47  ;;  %11137 = vmatprep.mubr.msk.f32.mxu1 %vm1064_vm1, %v13221_v45 }
  0xb2   : > { %10956 = vmatmul.mubr.msk.f32.gmra.mxu0 %vm1064_vm1, %v13246_v48  ;;  %11138 = vmatmul.mubr.msk.f32.gmra.mxu1 %vm1064_vm1, %v13232_v46 }
  0xb3   : > { %10958 = vmatprep.mubr.msk.f32.mxu0 %vm1064_vm1, %v13249_v49  ;;  %11140 = vmatprep.mubr.msk.f32.mxu1 %vm1064_vm1, %v13235_v47 }
  0xb6   : > { %10959 = vmatmul.mubr.msk.f32.gmra.mxu0 %vm1064_vm1, %v13260_v50  ;;  %11141 = vmatmul.mubr.msk.f32.gmra.mxu1 %vm1064_vm1, %v13246_v48 }
  0xb7   : > { %10961 = vmatprep.mubr.msk.f32.mxu0 %vm1064_vm1, %v13263_v51  ;;  %11143 = vmatprep.mubr.msk.f32.mxu1 %vm1064_vm1, %v13249_v49 }
  0xba   : > { %10962 = vmatmul.mubr.msk.f32.gmra.mxu0 %vm1064_vm1, %v982_v52  ;;  %11144 = vmatmul.mubr.msk.f32.gmra.mxu1 %vm1064_vm1, %v13260_v50 }
  0xbb   : > { %10964 = vmatprep.mubr.msk.f32.mxu0 %vm1064_vm1, %v983_v53  ;;  %11146 = vmatprep.mubr.msk.f32.mxu1 %vm1064_vm1, %v13263_v51 }
  0xbe   : > { %10965 = vmatmul.mubr.msk.f32.gmra.mxu0 %vm1064_vm1, %v984_v54  ;;  %11147 = vmatmul.mubr.msk.f32.gmra.mxu1 %vm1064_vm1, %v982_v52  ;;  %v999_v52 = vld [vmem:[%s12948_s27 + $0x210] sm:$0xff] }
  0xbf   : > { %10967 = vmatprep.mubr.msk.f32.mxu0 %vm1064_vm1, %v985_v55  ;;  %11149 = vmatprep.mubr.msk.f32.mxu1 %vm1064_vm1, %v983_v53  ;;  %v1000_v53 = vld [vmem:[%s12948_s27 + $0x218] sm:$0xff] }
  0xc2   : > { %10968 = vmatmul.mubr.msk.f32.gmra.mxu0 %vm1064_vm1, %v986_v56  ;;  %11150 = vmatmul.mubr.msk.f32.gmra.mxu1 %vm1064_vm1, %v984_v54  ;;  %v1001_v54 = vld [vmem:[%s12948_s27 + $0x220] sm:$0xff] }
  0xc3   : > { %10970 = vmatprep.mubr.msk.f32.mxu0 %vm1064_vm1, %v987_v57  ;;  %11152 = vmatprep.mubr.msk.f32.mxu1 %vm1064_vm1, %v985_v55  ;;  %v1002_v55 = vld [vmem:[%s12948_s27 + $0x228] sm:$0xff] }
  0xc6   : > { %10971 = vmatmul.mubr.msk.f32.gmra.mxu0 %vm1064_vm1, %v988_v58  ;;  %11153 = vmatmul.mubr.msk.f32.gmra.mxu1 %vm1064_vm1, %v986_v56  ;;  %v1003_v56 = vld [vmem:[%s12948_s27 + $0x230] sm:$0xff] }
  0xc7   : > { %10973 = vmatprep.mubr.msk.f32.mxu0 %vm1064_vm1, %v989_v59  ;;  %11155 = vmatprep.mubr.msk.f32.mxu1 %vm1064_vm1, %v987_v57  ;;  %v1004_v57 = vld [vmem:[%s12948_s27 + $0x238] sm:$0xff] }
  0xca   : > { %10974 = vmatmul.mubr.msk.f32.gmra.mxu0 %vm1064_vm1, %v990_v60  ;;  %11156 = vmatmul.mubr.msk.f32.gmra.mxu1 %vm1064_vm1, %v988_v58  ;;  %v1005_v58 = vld [vmem:[%s12948_s27 + $0x240] sm:$0xff] }
  0xcb   : > { %10976 = vmatprep.mubr.msk.f32.mxu0 %vm1064_vm1, %v991_v61  ;;  %11158 = vmatprep.mubr.msk.f32.mxu1 %vm1064_vm1, %v989_v59  ;;  %v1006_v59 = vld [vmem:[%s12948_s27 + $0x248] sm:$0xff] }
  0xce   : > { %10977 = vmatmul.mubr.msk.f32.gmra.mxu0 %vm1064_vm1, %v992_v62  ;;  %11159 = vmatmul.mubr.msk.f32.gmra.mxu1 %vm1064_vm1, %v990_v60  ;;  %v1007_v60 = vld [vmem:[%s12948_s27 + $0x250] sm:$0xff] }
  0xcf   : > { %10979 = vmatprep.mubr.msk.f32.mxu0 %vm1064_vm1, %v993_v0  ;;  %11161 = vmatprep.mubr.msk.f32.mxu1 %vm1064_vm1, %v991_v61  ;;  %v1008_v61 = vld [vmem:[%s12948_s27 + $0x258] sm:$0xff] }
  0xd2   : > { %10980 = vmatmul.mubr.msk.f32.gmra.mxu0 %vm1064_vm1, %v994_v2  ;;  %11162 = vmatmul.mubr.msk.f32.gmra.mxu1 %vm1064_vm1, %v992_v62  ;;  %v1009_v62 = vld [vmem:[%s12948_s27 + $0x260] sm:$0xff] }
  0xd3   : > { %10982 = vmatprep.mubr.msk.f32.mxu0 %vm1064_vm1, %v995_v3  ;;  %11164 = vmatprep.mubr.msk.f32.mxu1 %vm1064_vm1, %v993_v0  ;;  %v1011_v0 = vld [vmem:[%s12948_s27 + $0x270] sm:$0xff] }
  0xd6   : > { %10983 = vmatmul.mubr.msk.f32.gmra.mxu0 %vm1064_vm1, %v996_v4  ;;  %11165 = vmatmul.mubr.msk.f32.gmra.mxu1 %vm1064_vm1, %v994_v2  ;;  %v1012_v2 = vld [vmem:[%s12948_s27 + $0x278] sm:$0xff] }
  0xd7   : > { %10985 = vmatprep.mubr.msk.f32.mxu0 %vm1064_vm1, %v997_v5  ;;  %11167 = vmatprep.mubr.msk.f32.mxu1 %vm1064_vm1, %v995_v3  ;;  %v1013_v3 = vld [vmem:[%s12948_s27 + $0x280] sm:$0xff] }
  0xda   : > { %10986 = vmatmul.mubr.msk.f32.gmra.mxu0 %vm1064_vm1, %v998_v6  ;;  %11168 = vmatmul.mubr.msk.f32.gmra.mxu1 %vm1064_vm1, %v996_v4  ;;  %v1014_v4 = vld [vmem:[%s12948_s27 + $0x288] sm:$0xff] }
  0xdb   : > { %10988 = vmatprep.mubr.msk.f32.mxu0 %vm1064_vm1, %v999_v52  ;;  %11170 = vmatprep.mubr.msk.f32.mxu1 %vm1064_vm1, %v997_v5  ;;  %v1015_v5 = vld [vmem:[%s12948_s27 + $0x290] sm:$0xff] }
  0xde   : > { %10989 = vmatmul.mubr.msk.f32.gmra.mxu0 %vm1064_vm1, %v1000_v53  ;;  %11171 = vmatmul.mubr.msk.f32.gmra.mxu1 %vm1064_vm1, %v998_v6  ;;  %v1016_v6 = vld [vmem:[%s12948_s27 + $0x298] sm:$0xff] }
  0xdf   : > { %10991 = vmatprep.mubr.msk.f32.mxu0 %vm1064_vm1, %v1001_v54  ;;  %11173 = vmatprep.mubr.msk.f32.mxu1 %vm1064_vm1, %v999_v52  ;;  %v1017_v52 = vld [vmem:[%s12948_s27 + $0x2a0] sm:$0xff] }
  0xe2   : > { %10992 = vmatmul.mubr.msk.f32.gmra.mxu0 %vm1064_vm1, %v1002_v55  ;;  %11174 = vmatmul.mubr.msk.f32.gmra.mxu1 %vm1064_vm1, %v1000_v53  ;;  %v1018_v53 = vld [vmem:[%s12948_s27 + $0x2a8] sm:$0xff] }
  0xe3   : > { %10994 = vmatprep.mubr.msk.f32.mxu0 %vm1064_vm1, %v1003_v56  ;;  %11176 = vmatprep.mubr.msk.f32.mxu1 %vm1064_vm1, %v1001_v54  ;;  %v1019_v54 = vld [vmem:[%s12948_s27 + $0x2b0] sm:$0xff] }
  0xe6   : > { %10995 = vmatmul.mubr.msk.f32.gmra.mxu0 %vm1064_vm1, %v1004_v57  ;;  %11177 = vmatmul.mubr.msk.f32.gmra.mxu1 %vm1064_vm1, %v1002_v55  ;;  %v1020_v55 = vld [vmem:[%s12948_s27 + $0x2b8] sm:$0xff] }
  0xe7   : > { %10997 = vmatprep.mubr.msk.f32.mxu0 %vm1064_vm1, %v1005_v58  ;;  %11179 = vmatprep.mubr.msk.f32.mxu1 %vm1064_vm1, %v1003_v56  ;;  %v1021_v56 = vld [vmem:[%s12948_s27 + $0x2c0] sm:$0xff] }
  0xea   : > { %10998 = vmatmul.mubr.msk.f32.gmra.mxu0 %vm1064_vm1, %v1006_v59  ;;  %11180 = vmatmul.mubr.msk.f32.gmra.mxu1 %vm1064_vm1, %v1004_v57  ;;  %v1022_v57 = vld [vmem:[%s12948_s27 + $0x2c8] sm:$0xff] }
  0xeb   : > { %11000 = vmatprep.mubr.msk.f32.mxu0 %vm1064_vm1, %v1007_v60  ;;  %11182 = vmatprep.mubr.msk.f32.mxu1 %vm1064_vm1, %v1005_v58  ;;  %v1023_v58 = vld [vmem:[%s12948_s27 + $0x2d0] sm:$0xff] }
  0xee   : > { %11001 = vmatmul.mubr.msk.f32.gmra.mxu0 %vm1064_vm1, %v1008_v61  ;;  %11183 = vmatmul.mubr.msk.f32.gmra.mxu1 %vm1064_vm1, %v1006_v59  ;;  %v1024_v59 = vld [vmem:[%s12948_s27 + $0x2d8] sm:$0xff] }
  0xef   : > { %11003 = vmatprep.mubr.msk.f32.mxu0 %vm1064_vm1, %v1009_v62  ;;  %11185 = vmatprep.mubr.msk.f32.mxu1 %vm1064_vm1, %v1007_v60  ;;  %v1025_v60 = vld [vmem:[%s12948_s27 + $0x2e0] sm:$0xff] }
  0xf2   : > { %11004 = vmatmul.mubr.msk.f32.gmra.mxu0 %vm1064_vm1, %v1010_v63  ;;  %11186 = vmatmul.mubr.msk.f32.gmra.mxu1 %vm1064_vm1, %v1008_v61  ;;  %v1026_v61 = vld [vmem:[%s12948_s27 + $0x2e8] sm:$0xff] }
  0xf3   : > { %11006 = vmatprep.mubr.msk.f32.mxu0 %vm1064_vm1, %v1011_v0  ;;  %11188 = vmatprep.mubr.msk.f32.mxu1 %vm1064_vm1, %v1009_v62  ;;  %v1027_v62 = vld [vmem:[%s12948_s27 + $0x2f0] sm:$0xff] }
  0xf6   : > { %11007 = vmatmul.mubr.msk.f32.gmra.mxu0 %vm1064_vm1, %v1012_v2  ;;  %11189 = vmatmul.mubr.msk.f32.gmra.mxu1 %vm1064_vm1, %v1010_v63  ;;  %v1028_v63 = vld [vmem:[%s12948_s27 + $0x2f8] sm:$0xff] }
  0xf7   : > { %11009 = vmatprep.mubr.msk.f32.mxu0 %vm1064_vm1, %v1013_v3  ;;  %11191 = vmatprep.mubr.msk.f32.mxu1 %vm1064_vm1, %v1011_v0  ;;  %v1029_v0 = vld [vmem:[%s12948_s27 + $0x300] sm:$0xff] }
  0xfa   : > { %11010 = vmatmul.mubr.msk.f32.gmra.mxu0 %vm1064_vm1, %v1014_v4  ;;  %11192 = vmatmul.mubr.msk.f32.gmra.mxu1 %vm1064_vm1, %v1012_v2  ;;  %v1030_v2 = vld [vmem:[%s12948_s27 + $0x308] sm:$0xff] }
  0xfb   : > { %11012 = vmatprep.mubr.msk.f32.mxu0 %vm1064_vm1, %v1015_v5  ;;  %11194 = vmatprep.mubr.msk.f32.mxu1 %vm1064_vm1, %v1013_v3  ;;  %v1031_v3 = vld [vmem:[%s12948_s27 + $0x310] sm:$0xff] }
  0xfe   : > { %11013 = vmatmul.mubr.msk.f32.gmra.mxu0 %vm1064_vm1, %v1016_v6  ;;  %11195 = vmatmul.mubr.msk.f32.gmra.mxu1 %vm1064_vm1, %v1014_v4  ;;  %v1032_v4 = vld [vmem:[%s12948_s27 + $0x318] sm:$0xff] }
  0xff   : > { %11015 = vmatprep.mubr.msk.f32.mxu0 %vm1064_vm1, %v1017_v52  ;;  %11197 = vmatprep.mubr.msk.f32.mxu1 %vm1064_vm1, %v1015_v5  ;;  %v1033_v5 = vld [vmem:[%s12948_s27 + $0x320] sm:$0xff] }
 0x102   : > { %11016 = vmatmul.mubr.msk.f32.gmra.mxu0 %vm1064_vm1, %v1018_v53  ;;  %11198 = vmatmul.mubr.msk.f32.gmra.mxu1 %vm1064_vm1, %v1016_v6 }
 0x103   : > { %11018 = vmatprep.mubr.msk.f32.mxu0 %vm1064_vm1, %v1019_v54  ;;  %11200 = vmatprep.mubr.msk.f32.mxu1 %vm1064_vm1, %v1017_v52 }
 0x106   : > { %11019 = vmatmul.mubr.msk.f32.gmra.mxu0 %vm1064_vm1, %v1020_v55  ;;  %11201 = vmatmul.mubr.msk.f32.gmra.mxu1 %vm1064_vm1, %v1018_v53 }
 0x107   : > { %11021 = vmatprep.mubr.msk.f32.mxu0 %vm1064_vm1, %v1021_v56  ;;  %11203 = vmatprep.mubr.msk.f32.mxu1 %vm1064_vm1, %v1019_v54  ;;  %v1034_v54 = vld [vmem:[%s12948_s27 + $0x328] sm:$0xff] }
 0x10a   : > { %11022 = vmatmul.mubr.msk.f32.gmra.mxu0 %vm1064_vm1, %v1022_v57  ;;  %11204 = vmatmul.mubr.msk.f32.gmra.mxu1 %vm1064_vm1, %v1020_v55 }
 0x10b   : > { %11024 = vmatprep.mubr.msk.f32.mxu0 %vm1064_vm1, %v1023_v58  ;;  %11206 = vmatprep.mubr.msk.f32.mxu1 %vm1064_vm1, %v1021_v56 }
 0x10e   : > { %11025 = vmatmul.mubr.msk.f32.gmra.mxu0 %vm1064_vm1, %v1024_v59  ;;  %11207 = vmatmul.mubr.msk.f32.gmra.mxu1 %vm1064_vm1, %v1022_v57  ;;  %v1035_v57 = vld [vmem:[%s12948_s27 + $0x330] sm:$0xff] }
 0x10f   : > { %11027 = vmatprep.mubr.msk.f32.mxu0 %vm1064_vm1, %v1025_v60  ;;  %11209 = vmatprep.mubr.msk.f32.mxu1 %vm1064_vm1, %v1023_v58 }
 0x112   : > { %11028 = vmatmul.mubr.msk.f32.gmra.mxu0 %vm1064_vm1, %v1026_v61  ;;  %11210 = vmatmul.mubr.msk.f32.gmra.mxu1 %vm1064_vm1, %v1024_v59 }
 0x113   : > { %11030 = vmatprep.mubr.msk.f32.mxu0 %vm1064_vm1, %v1027_v62  ;;  %11212 = vmatprep.mubr.msk.f32.mxu1 %vm1064_vm1, %v1025_v60 }
 0x116   : > { %11031 = vmatmul.mubr.msk.f32.gmra.mxu0 %vm1064_vm1, %v1028_v63  ;;  %11213 = vmatmul.mubr.msk.f32.gmra.mxu1 %vm1064_vm1, %v1026_v61 }
 0x117   : > { %11033 = vmatprep.mubr.msk.f32.mxu0 %vm1064_vm1, %v1029_v0  ;;  %11215 = vmatprep.mubr.msk.f32.mxu1 %vm1064_vm1, %v1027_v62  ;;  %v1036_v62 = vld [vmem:[%s12948_s27 + $0x338] sm:$0xff] }
 0x11a   : > { %11034 = vmatmul.mubr.msk.f32.gmra.mxu0 %vm1064_vm1, %v1030_v2  ;;  %11216 = vmatmul.mubr.msk.f32.gmra.mxu1 %vm1064_vm1, %v1028_v63 }
 0x11b   : > { %11036 = vmatprep.mubr.msk.f32.mxu0 %vm1064_vm1, %v1031_v3  ;;  %11218 = vmatprep.mubr.msk.f32.mxu1 %vm1064_vm1, %v1029_v0 }
 0x11e   : > { %v10894_v6 = vpop.f32.mrf.mxu0  ;;  %11037 = vmatmul.mubr.msk.f32.gmra.mxu0 %vm1064_vm1, %v1032_v4  ;;  %v11076_v52 = vpop.f32.mrf.mxu1  ;;  %11219 = vmatmul.mubr.msk.f32.gmra.mxu1 %vm1064_vm1, %v1030_v2  ;;  %v1037_v2 = vld [vmem:[%s12948_s27 + $0x340] sm:$0xff] }
 0x11f   : > { %v13441_v53 = vadd.f32 %v11076_v52, %v10894_v6  ;;  %11039 = vmatprep.mubr.msk.f32.mxu0 %vm1064_vm1, %v1033_v5  ;;  %11221 = vmatprep.mubr.msk.f32.mxu1 %vm1064_vm1, %v1031_v3 }
 0x120   : > { %v1495_v55 = vpop.f32.mrf.mxu0  ;;  %v2169_v56 = vpop.f32.mrf.mxu1 }
 0x121   : > { %v13447_v58 = vadd.f32 %v2169_v56, %v1495_v55 }
 0x122   : > { %v10897_v59 = vpop.f32.mrf.mxu0  ;;  %11040 = vmatmul.mubr.msk.f32.gmra.mxu0 %vm1064_vm1, %v1034_v54  ;;  %v11079_v60 = vpop.f32.mrf.mxu1  ;;  %11222 = vmatmul.mubr.msk.f32.gmra.mxu1 %vm1064_vm1, %v1032_v4 }
 0x123   : > { %v13451_v61 = vadd.f32 %v11079_v60, %v10897_v59  ;;  %11042 = vmatprep.mubr.msk.f32.mxu0 %vm1064_vm1, %v1035_v57  ;;  %11224 = vmatprep.mubr.msk.f32.mxu1 %vm1064_vm1, %v1033_v5  ;;  %v1038_v5 = vld [vmem:[%s12948_s27 + $0x348] sm:$0xff]  ;;  %v1039_v59 = vld [vmem:[%s12948_s27 + $0x350] sm:$0xff] }
 0x124   : > { %v1505_v63 = vpop.f32.mrf.mxu0  ;;  %v2179_v0 = vpop.f32.mrf.mxu1 }
 0x125   : > { %v13457_v3 = vadd.f32 %v2179_v0, %v1505_v63 }
 0x126   : > { %v10900_v6 = vpop.f32.mrf.mxu0  ;;  %11043 = vmatmul.mubr.msk.f32.gmra.mxu0 %vm1064_vm1, %v1036_v62  ;;  %v11082_v52 = vpop.f32.mrf.mxu1  ;;  %11225 = vmatmul.mubr.msk.f32.gmra.mxu1 %vm1064_vm1, %v1034_v54 }
 0x127   : > { %16968 = vst [vmem:[#allocation3_spill] sm:$0xff] %v13457_v3  ;;  %v13461_v4 = vadd.f32 %v11082_v52, %v10900_v6  ;;  %11045 = vmatprep.mubr.msk.f32.mxu0 %vm1064_vm1, %v1037_v2  ;;  %11227 = vmatprep.mubr.msk.f32.mxu1 %vm1064_vm1, %v1035_v57  ;;  %v1040_v57 = vld [vmem:[%s12948_s27 + $0x358] sm:$0xff] }
 0x128   : > { %v1515_v55 = vpop.f32.mrf.mxu0  ;;  %v2189_v56 = vpop.f32.mrf.mxu1 }
 0x129   : > { %16969 = vst [vmem:[#allocation4_spill] sm:$0xff] %v13461_v4  ;;  %v13467_v60 = vadd.f32 %v2189_v56, %v1515_v55  ;;  %v1041_v4 = vld [vmem:[%s12948_s27 + $0x360] sm:$0xff] }
 0x12a   : > { %v10903_v63 = vpop.f32.mrf.mxu0  ;;  %11046 = vmatmul.mubr.msk.f32.gmra.mxu0 %vm1064_vm1, %v1038_v5  ;;  %v11085_v0 = vpop.f32.mrf.mxu1  ;;  %11228 = vmatmul.mubr.msk.f32.gmra.mxu1 %vm1064_vm1, %v1036_v62 }
 0x12b   : > { %16970 = vst [vmem:[#allocation5_spill] sm:$0xff] %v13467_v60  ;;  %v13471_v54 = vadd.f32 %v11085_v0, %v10903_v63  ;;  %11048 = vmatprep.mubr.msk.f32.mxu0 %vm1064_vm1, %v1039_v59  ;;  %11230 = vmatprep.mubr.msk.f32.mxu1 %vm1064_vm1, %v1037_v2  ;;  %v1042_v2 = vld [vmem:[%s12948_s27 + $0x368] sm:$0xff] }
 0x12c   : > { %v1525_v6 = vpop.f32.mrf.mxu0  ;;  %v2199_v52 = vpop.f32.mrf.mxu1 }
 0x12d   : > { %16971 = vst [vmem:[#allocation6_spill] sm:$0xff] %v13471_v54  ;;  %v13477_v55 = vadd.f32 %v2199_v52, %v1525_v6  ;;  %v1043_v54 = vld [vmem:[%s12948_s27 + $0x370] sm:$0xff] }
 0x12e   : > { %v10906_v56 = vpop.f32.mrf.mxu0  ;;  %11049 = vmatmul.mubr.msk.f32.gmra.mxu0 %vm1064_vm1, %v1040_v57  ;;  %v11088_v60 = vpop.f32.mrf.mxu1  ;;  %11231 = vmatmul.mubr.msk.f32.gmra.mxu1 %vm1064_vm1, %v1038_v5 }
 0x12f   : > { %16972 = vst [vmem:[#allocation7_spill] sm:$0xff] %v13477_v55  ;;  %v13481_v62 = vadd.f32 %v11088_v60, %v10906_v56  ;;  %11051 = vmatprep.mubr.msk.f32.mxu0 %vm1064_vm1, %v1041_v4  ;;  %11233 = vmatprep.mubr.msk.f32.mxu1 %vm1064_vm1, %v1039_v59  ;;  %v1044_v59 = vld [vmem:[%s12948_s27 + $0x378] sm:$0xff] }
 0x130   : > { %v1535_v63 = vpop.f32.mrf.mxu0  ;;  %v2209_v0 = vpop.f32.mrf.mxu1 }
 0x131   : > { %16973 = vst [vmem:[#allocation8_spill] sm:$0xff] %v13481_v62  ;;  %v13487_v6 = vadd.f32 %v2209_v0, %v1535_v63  ;;  %v1045_v62 = vld [vmem:[%s12948_s27 + $0x380] sm:$0xff] }
 0x132   : > { %v10909_v52 = vpop.f32.mrf.mxu0  ;;  %11052 = vmatmul.mubr.msk.f32.gmra.mxu0 %vm1064_vm1, %v1042_v2  ;;  %v11091_v55 = vpop.f32.mrf.mxu1  ;;  %11234 = vmatmul.mubr.msk.f32.gmra.mxu1 %vm1064_vm1, %v1040_v57 }
 0x133   : > { %16974 = vst [vmem:[#allocation9_spill] sm:$0xff] %v13487_v6  ;;  %v13491_v5 = vadd.f32 %v11091_v55, %v10909_v52  ;;  %11054 = vmatprep.mubr.msk.f32.mxu0 %vm1064_vm1, %v1043_v54  ;;  %11236 = vmatprep.mubr.msk.f32.mxu1 %vm1064_vm1, %v1041_v4  ;;  %v1046_v4 = vld [vmem:[%s12948_s27 + $0x388] sm:$0xff] }
 0x134   : > { %v1545_v60 = vpop.f32.mrf.mxu0  ;;  %v2219_v56 = vpop.f32.mrf.mxu1 }
 0x135   : > { %16975 = vst [vmem:[#allocation10_spill] sm:$0xff] %v13491_v5  ;;  %v13497_v63 = vadd.f32 %v2219_v56, %v1545_v60  ;;  %v1047_v5 = vld [vmem:[%s12948_s27 + $0x390] sm:$0xff] }
 0x136   : > { %v10912_v0 = vpop.f32.mrf.mxu0  ;;  %11055 = vmatmul.mubr.msk.f32.gmra.mxu0 %vm1064_vm1, %v1044_v59  ;;  %v11094_v6 = vpop.f32.mrf.mxu1  ;;  %11237 = vmatmul.mubr.msk.f32.gmra.mxu1 %vm1064_vm1, %v1042_v2 }
 0x137   : > { %16976 = vst [vmem:[#allocation11_spill] sm:$0xff] %v13497_v63  ;;  %v13501_v57 = vadd.f32 %v11094_v6, %v10912_v0  ;;  %11057 = vmatprep.mubr.msk.f32.mxu0 %vm1064_vm1, %v1045_v62  ;;  %11239 = vmatprep.mubr.msk.f32.mxu1 %vm1064_vm1, %v1043_v54  ;;  %v1048_v54 = vld [vmem:[%s12948_s27 + $0x398] sm:$0xff] }
 0x138   : > { %v1555_v55 = vpop.f32.mrf.mxu0  ;;  %v2229_v52 = vpop.f32.mrf.mxu1 }
 0x139   : > { %16977 = vst [vmem:[#allocation12_spill] sm:$0xff] %v13501_v57  ;;  %v13507_v60 = vadd.f32 %v2229_v52, %v1555_v55  ;;  %v1049_v57 = vld [vmem:[%s12948_s27 + $0x3a0] sm:$0xff] }
 0x13a   : > { %v10915_v56 = vpop.f32.mrf.mxu0  ;;  %11058 = vmatmul.mubr.msk.f32.gmra.mxu0 %vm1064_vm1, %v1046_v4  ;;  %v11097_v63 = vpop.f32.mrf.mxu1  ;;  %11240 = vmatmul.mubr.msk.f32.gmra.mxu1 %vm1064_vm1, %v1044_v59 }
 0x13b   : > { %16978 = vst [vmem:[#allocation13_spill] sm:$0xff] %v13507_v60  ;;  %v13511_v2 = vadd.f32 %v11097_v63, %v10915_v56  ;;  %11060 = vmatprep.mubr.msk.f32.mxu0 %vm1064_vm1, %v1047_v5  ;;  %11242 = vmatprep.mubr.msk.f32.mxu1 %vm1064_vm1, %v1045_v62  ;;  %v1050_v62 = vld [vmem:[%s12948_s27 + $0x3a8] sm:$0xff] }
 0x13c   : > { %v1565_v6 = vpop.f32.mrf.mxu0  ;;  %v2239_v0 = vpop.f32.mrf.mxu1 }
 0x13d   : > { %16979 = vst [vmem:[#allocation14_spill] sm:$0xff] %v13511_v2  ;;  %v13517_v55 = vadd.f32 %v2239_v0, %v1565_v6  ;;  %v1051_v2 = vld [vmem:[%s12948_s27 + $0x3b0] sm:$0xff] }
 0x13e   : > { %v10918_v52 = vpop.f32.mrf.mxu0  ;;  %11061 = vmatmul.mubr.msk.f32.gmra.mxu0 %vm1064_vm1, %v1048_v54  ;;  %v11100_v60 = vpop.f32.mrf.mxu1  ;;  %11243 = vmatmul.mubr.msk.f32.gmra.mxu1 %vm1064_vm1, %v1046_v4 }
 0x13f   : > { %16980 = vst [vmem:[#allocation15_spill] sm:$0xff] %v13517_v55  ;;  %v13521_v59 = vadd.f32 %v11100_v60, %v10918_v52  ;;  %11063 = vmatprep.mubr.msk.f32.mxu0 %vm1064_vm1, %v1049_v57  ;;  %11245 = vmatprep.mubr.msk.f32.mxu1 %vm1064_vm1, %v1047_v5  ;;  %v1052_v5 = vld [vmem:[%s12948_s27 + $0x3b8] sm:$0xff] }
 0x140   : > { %v1575_v63 = vpop.f32.mrf.mxu0  ;;  %v2249_v56 = vpop.f32.mrf.mxu1 }
 0x141   : > { %16981 = vst [vmem:[#allocation16_spill] sm:$0xff] %v13521_v59  ;;  %v13527_v6 = vadd.f32 %v2249_v56, %v1575_v63  ;;  %v1053_v59 = vld [vmem:[%s12948_s27 + $0x3c0] sm:$0xff] }
 0x142   : > { %v10921_v0 = vpop.f32.mrf.mxu0  ;;  %11064 = vmatmul.mubr.msk.f32.gmra.mxu0 %vm1064_vm1, %v1050_v62  ;;  %v11103_v55 = vpop.f32.mrf.mxu1  ;;  %11246 = vmatmul.mubr.msk.f32.gmra.mxu1 %vm1064_vm1, %v1048_v54 }
 0x143   : > { %16982 = vst [vmem:[#allocation17_spill] sm:$0xff] %v13527_v6  ;;  %v13531_v4 = vadd.f32 %v11103_v55, %v10921_v0  ;;  %11066 = vmatprep.mubr.msk.f32.mxu0 %vm1064_vm1, %v1051_v2  ;;  %11248 = vmatprep.mubr.msk.f32.mxu1 %vm1064_vm1, %v1049_v57  ;;  %v1054_v55 = vld [vmem:[%s12948_s27 + $0x3c8] sm:$0xff] }
 0x144   : > { %v1585_v60 = vpop.f32.mrf.mxu0  ;;  %v2259_v52 = vpop.f32.mrf.mxu1 }
 0x145   : > { %16983 = vst [vmem:[#allocation18_spill] sm:$0xff] %v13531_v4  ;;  %v13537_v3 = vadd.f32 %v2259_v52, %v1585_v60 }
 0x146   : > { %v10924_v63 = vpop.f32.mrf.mxu0  ;;  %11067 = vmatmul.mubr.msk.f32.gmra.mxu0 %vm1064_vm1, %v1052_v5  ;;  %v11106_v56 = vpop.f32.mrf.mxu1  ;;  %11249 = vmatmul.mubr.msk.f32.gmra.mxu1 %vm1064_vm1, %v1050_v62 }
 0x147   : > { %v13541_v54 = vadd.f32 %v11106_v56, %v10924_v63  ;;  %11069 = vmatprep.mubr.msk.f32.mxu0 %vm1064_vm1, %v1053_v59  ;;  %11251 = vmatprep.mubr.msk.f32.mxu1 %vm1064_vm1, %v1051_v2 }
 0x148   : > { %v1595_v57 = vpop.f32.mrf.mxu0  ;;  %v2269_v0 = vpop.f32.mrf.mxu1 }
 0x149   : > { %v13546_v4 = vadd.f32 %v2269_v0, %v1595_v57 }
 0x14a   : > { %v10927_v6 = vpop.f32.mrf.mxu0  ;;  %11070 = vmatmul.mubr.msk.f32.gmra.mxu0 %vm1064_vm1, %v1054_v55  ;;  %v11109_v60 = vpop.f32.mrf.mxu1  ;;  %11252 = vmatmul.mubr.msk.f32.gmra.mxu1 %vm1064_vm1, %v1052_v5 }
 0x14b   : > { %v13550_v52 = vadd.f32 %v11109_v60, %v10927_v6  ;;  %11256 = vmatprep.mubr.msk.f32.mxu0 %vm1064_vm1, %v12958_v7  ;;  %11438 = vmatprep.mubr.msk.f32.mxu1 %vm1064_vm1, %v12970_v9 }
 0x14c   : > { %v1605_v2 = vpop.f32.mrf.mxu0  ;;  %v2279_v59 = vpop.f32.mrf.mxu1 }
 0x14d   : > { %v13556_v62 = vadd.f32 %v2279_v59, %v1605_v2 }
 0x14e   : > { %v10930_v63 = vpop.f32.mrf.mxu0  ;;  %v11112_v56 = vpop.f32.mrf.mxu1  ;;  %11257 = vmatmul.mubr.msk.f32.vlgmr.msra.gmra.mxu0 %vm1064_vm1, %v12966_v8  ;;  %11439 = vmatmul.mubr.msk.f32.vlgmr.msra.gmra.mxu1 %vm1064_vm1, %v12980_v10 }
 0x14f   : > { %v13562_v6 = vadd.f32 %v11112_v56, %v10930_v63  ;;  %11619 = vmatpush3.msk.msra.mxu0 %vm1425_vm0, %v13315_v1  ;;  %11259 = vmatprep.mubr.msk.f32.mxu0 %vm1064_vm1, %v12970_v9 }
 0x150   : > { %v1615_v7 = vpop.f32.mrf.mxu0  ;;  %v2289_v5 = vpop.f32.mrf.mxu1  ;;  %11441 = vmatprep.mubr.msk.f32.mxu1 %vm1064_vm1, %v12983_v11 }
 0x151   : > { %v13570_v55 = vadd.f32 %v2289_v5, %v1615_v7 }
 0x152   : > { %v10933_v57 = vpop.f32.mrf.mxu0  ;;  %v11115_v8 = vpop.f32.mrf.mxu1  ;;  %11260 = vmatmul.mubr.msk.f32.gmra.mxu0 %vm1064_vm1, %v12980_v10  ;;  %11442 = vmatmul.mubr.msk.f32.gmra.mxu1 %vm1064_vm1, %v12994_v12 }
 0x153   : > { %v13576_v0 = vadd.f32 %v11115_v8, %v10933_v57  ;;  %11262 = vmatprep.mubr.msk.f32.mxu0 %vm1064_vm1, %v12983_v11  ;;  %11444 = vmatprep.mubr.msk.f32.mxu1 %vm1064_vm1, %v12997_v13 }
 0x154   : > { %v1625_v9 = vpop.f32.mrf.mxu0  ;;  %v2299_v1 = vpop.f32.mrf.mxu1 }
 0x155   : > { %v13582_v60 = vadd.f32 %v2299_v1, %v1625_v9 }
 0x156   : > { %v10936_v2 = vpop.f32.mrf.mxu0  ;;  %v11118_v59 = vpop.f32.mrf.mxu1  ;;  %11263 = vmatmul.mubr.msk.f32.gmra.mxu0 %vm1064_vm1, %v12994_v12  ;;  %11445 = vmatmul.mubr.msk.f32.gmra.mxu1 %vm1064_vm1, %v13008_v14 }
 0x157   : > { %v13588_v10 = vadd.f32 %v11118_v59, %v10936_v2  ;;  %11265 = vmatprep.mubr.msk.f32.mxu0 %vm1064_vm1, %v12997_v13  ;;  %11447 = vmatprep.mubr.msk.f32.mxu1 %vm1064_vm1, %v13011_v15 }
 0x158   : > { %v1635_v11 = vpop.f32.mrf.mxu0  ;;  %v2309_v63 = vpop.f32.mrf.mxu1 }
 0x159   : > { %v13594_v56 = vadd.f32 %v2309_v63, %v1635_v11 }
 0x15a   : > { %v10939_v7 = vpop.f32.mrf.mxu0  ;;  %v11121_v5 = vpop.f32.mrf.mxu1  ;;  %11266 = vmatmul.mubr.msk.f32.gmra.mxu0 %vm1064_vm1, %v13008_v14  ;;  %11448 = vmatmul.mubr.msk.f32.gmra.mxu1 %vm1064_vm1, %v13022_v16 }
 0x15b   : > { %v13600_v12 = vadd.f32 %v11121_v5, %v10939_v7  ;;  %11268 = vmatprep.mubr.msk.f32.mxu0 %vm1064_vm1, %v13011_v15  ;;  %11450 = vmatprep.mubr.msk.f32.mxu1 %vm1064_vm1, %v13025_v17 }
 0x15c   : > { %v1645_v13 = vpop.f32.mrf.mxu0  ;;  %v2319_v57 = vpop.f32.mrf.mxu1 }
 0x15d   : > { %v13606_v8 = vadd.f32 %v2319_v57, %v1645_v13 }
 0x15e   : > { %v10942_v9 = vpop.f32.mrf.mxu0  ;;  %v11124_v1 = vpop.f32.mrf.mxu1  ;;  %11269 = vmatmul.mubr.msk.f32.gmra.mxu0 %vm1064_vm1, %v13022_v16  ;;  %11451 = vmatmul.mubr.msk.f32.gmra.mxu1 %vm1064_vm1, %v13036_v18 }
 0x15f   : > { %v13612_v14 = vadd.f32 %v11124_v1, %v10942_v9  ;;  %11271 = vmatprep.mubr.msk.f32.mxu0 %vm1064_vm1, %v13025_v17  ;;  %11453 = vmatprep.mubr.msk.f32.mxu1 %vm1064_vm1, %v13039_v19 }
 0x160   : > { %v1655_v15 = vpop.f32.mrf.mxu0  ;;  %v2329_v2 = vpop.f32.mrf.mxu1 }
 0x161   : > { %v13618_v59 = vadd.f32 %v2329_v2, %v1655_v15 }
 0x162   : > { %v10945_v11 = vpop.f32.mrf.mxu0  ;;  %v11127_v63 = vpop.f32.mrf.mxu1  ;;  %11272 = vmatmul.mubr.msk.f32.gmra.mxu0 %vm1064_vm1, %v13036_v18  ;;  %11454 = vmatmul.mubr.msk.f32.gmra.mxu1 %vm1064_vm1, %v13050_v20 }
 0x163   : > { %v13624_v16 = vadd.f32 %v11127_v63, %v10945_v11  ;;  %11274 = vmatprep.mubr.msk.f32.mxu0 %vm1064_vm1, %v13039_v19  ;;  %11456 = vmatprep.mubr.msk.f32.mxu1 %vm1064_vm1, %v13053_v21 }
 0x164   : > { %v1665_v17 = vpop.f32.mrf.mxu0  ;;  %v2339_v7 = vpop.f32.mrf.mxu1 }
 0x165   : > { %v13630_v5 = vadd.f32 %v2339_v7, %v1665_v17 }
 0x166   : > { %v10948_v13 = vpop.f32.mrf.mxu0  ;;  %v11130_v57 = vpop.f32.mrf.mxu1  ;;  %11275 = vmatmul.mubr.msk.f32.gmra.mxu0 %vm1064_vm1, %v13050_v20  ;;  %11457 = vmatmul.mubr.msk.f32.gmra.mxu1 %vm1064_vm1, %v13064_v22 }
 0x167   : > { %v13636_v18 = vadd.f32 %v11130_v57, %v10948_v13  ;;  %11277 = vmatprep.mubr.msk.f32.mxu0 %vm1064_vm1, %v13053_v21  ;;  %11459 = vmatprep.mubr.msk.f32.mxu1 %vm1064_vm1, %v13067_v23 }
 0x168   : > { %v1675_v19 = vpop.f32.mrf.mxu0  ;;  %v2349_v9 = vpop.f32.mrf.mxu1 }
 0x169   : > { %v13642_v1 = vadd.f32 %v2349_v9, %v1675_v19 }
 0x16a   : > { %v10951_v15 = vpop.f32.mrf.mxu0  ;;  %v11133_v2 = vpop.f32.mrf.mxu1  ;;  %11278 = vmatmul.mubr.msk.f32.gmra.mxu0 %vm1064_vm1, %v13064_v22  ;;  %11460 = vmatmul.mubr.msk.f32.gmra.mxu1 %vm1064_vm1, %v13078_v24 }
 0x16b   : > { %v13648_v20 = vadd.f32 %v11133_v2, %v10951_v15  ;;  %11280 = vmatprep.mubr.msk.f32.mxu0 %vm1064_vm1, %v13067_v23  ;;  %11462 = vmatprep.mubr.msk.f32.mxu1 %vm1064_vm1, %v13081_v25 }
 0x16c   : > { %v1685_v21 = vpop.f32.mrf.mxu0  ;;  %v2359_v11 = vpop.f32.mrf.mxu1 }
 0x16d   : > { %v13654_v63 = vadd.f32 %v2359_v11, %v1685_v21 }
 0x16e   : > { %v10954_v17 = vpop.f32.mrf.mxu0  ;;  %v11136_v7 = vpop.f32.mrf.mxu1  ;;  %11281 = vmatmul.mubr.msk.f32.gmra.mxu0 %vm1064_vm1, %v13078_v24  ;;  %11463 = vmatmul.mubr.msk.f32.gmra.mxu1 %vm1064_vm1, %v13092_v26 }
 0x16f   : > { %v13660_v22 = vadd.f32 %v11136_v7, %v10954_v17  ;;  %11283 = vmatprep.mubr.msk.f32.mxu0 %vm1064_vm1, %v13081_v25  ;;  %11465 = vmatprep.mubr.msk.f32.mxu1 %vm1064_vm1, %v13095_v27 }
 0x170   : > { %v1695_v23 = vpop.f32.mrf.mxu0  ;;  %v2369_v13 = vpop.f32.mrf.mxu1 }
 0x171   : > { %v13666_v57 = vadd.f32 %v2369_v13, %v1695_v23 }
 0x172   : > { %v10957_v19 = vpop.f32.mrf.mxu0  ;;  %v11139_v9 = vpop.f32.mrf.mxu1  ;;  %11284 = vmatmul.mubr.msk.f32.gmra.mxu0 %vm1064_vm1, %v13092_v26  ;;  %11466 = vmatmul.mubr.msk.f32.gmra.mxu1 %vm1064_vm1, %v13106_v28 }
 0x173   : > { %v13672_v24 = vadd.f32 %v11139_v9, %v10957_v19  ;;  %11286 = vmatprep.mubr.msk.f32.mxu0 %vm1064_vm1, %v13095_v27  ;;  %11468 = vmatprep.mubr.msk.f32.mxu1 %vm1064_vm1, %v13109_v29 }
 0x174   : > { %v1705_v25 = vpop.f32.mrf.mxu0  ;;  %v2379_v15 = vpop.f32.mrf.mxu1 }
 0x175   : > { %v13678_v2 = vadd.f32 %v2379_v15, %v1705_v25 }
 0x176   : > { %v10960_v21 = vpop.f32.mrf.mxu0  ;;  %v11142_v11 = vpop.f32.mrf.mxu1  ;;  %11287 = vmatmul.mubr.msk.f32.gmra.mxu0 %vm1064_vm1, %v13106_v28  ;;  %11469 = vmatmul.mubr.msk.f32.gmra.mxu1 %vm1064_vm1, %v13120_v30 }
 0x177   : > { %v13684_v26 = vadd.f32 %v11142_v11, %v10960_v21  ;;  %11289 = vmatprep.mubr.msk.f32.mxu0 %vm1064_vm1, %v13109_v29  ;;  %11471 = vmatprep.mubr.msk.f32.mxu1 %vm1064_vm1, %v13123_v31 }
 0x178   : > { %v1715_v27 = vpop.f32.mrf.mxu0  ;;  %v2389_v17 = vpop.f32.mrf.mxu1 }
 0x179   : > { %v13690_v7 = vadd.f32 %v2389_v17, %v1715_v27 }
 0x17a   : > { %v10963_v23 = vpop.f32.mrf.mxu0  ;;  %v11145_v13 = vpop.f32.mrf.mxu1  ;;  %11290 = vmatmul.mubr.msk.f32.gmra.mxu0 %vm1064_vm1, %v13120_v30  ;;  %11472 = vmatmul.mubr.msk.f32.gmra.mxu1 %vm1064_vm1, %v13134_v32 }
 0x17b   : > { %v13696_v28 = vadd.f32 %v11145_v13, %v10963_v23  ;;  %11292 = vmatprep.mubr.msk.f32.mxu0 %vm1064_vm1, %v13123_v31  ;;  %11474 = vmatprep.mubr.msk.f32.mxu1 %vm1064_vm1, %v13137_v33 }
 0x17c   : > { %v1725_v29 = vpop.f32.mrf.mxu0  ;;  %v2399_v19 = vpop.f32.mrf.mxu1 }
 0x17d   : > { %v13702_v9 = vadd.f32 %v2399_v19, %v1725_v29 }
 0x17e   : > { %v10966_v25 = vpop.f32.mrf.mxu0  ;;  %v11148_v15 = vpop.f32.mrf.mxu1  ;;  %11293 = vmatmul.mubr.msk.f32.gmra.mxu0 %vm1064_vm1, %v13134_v32  ;;  %11475 = vmatmul.mubr.msk.f32.gmra.mxu1 %vm1064_vm1, %v13148_v34 }
 0x17f   : > { %v13708_v30 = vadd.f32 %v11148_v15, %v10966_v25  ;;  %11295 = vmatprep.mubr.msk.f32.mxu0 %vm1064_vm1, %v13137_v33  ;;  %11477 = vmatprep.mubr.msk.f32.mxu1 %vm1064_vm1, %v13151_v35 }
 0x180   : > { %v1735_v31 = vpop.f32.mrf.mxu0  ;;  %v2409_v21 = vpop.f32.mrf.mxu1 }
 0x181   : > { %v13714_v11 = vadd.f32 %v2409_v21, %v1735_v31 }
 0x182   : > { %v10969_v27 = vpop.f32.mrf.mxu0  ;;  %v11151_v17 = vpop.f32.mrf.mxu1  ;;  %11296 = vmatmul.mubr.msk.f32.gmra.mxu0 %vm1064_vm1, %v13148_v34  ;;  %11478 = vmatmul.mubr.msk.f32.gmra.mxu1 %vm1064_vm1, %v13162_v36 }
 0x183   : > { %v13720_v32 = vadd.f32 %v11151_v17, %v10969_v27  ;;  %11298 = vmatprep.mubr.msk.f32.mxu0 %vm1064_vm1, %v13151_v35  ;;  %11480 = vmatprep.mubr.msk.f32.mxu1 %vm1064_vm1, %v13165_v37 }
 0x184   : > { %v1745_v33 = vpop.f32.mrf.mxu0  ;;  %v2419_v23 = vpop.f32.mrf.mxu1 }
 0x185   : > { %v13726_v13 = vadd.f32 %v2419_v23, %v1745_v33 }
 0x186   : > { %v10972_v29 = vpop.f32.mrf.mxu0  ;;  %v11154_v19 = vpop.f32.mrf.mxu1  ;;  %11299 = vmatmul.mubr.msk.f32.gmra.mxu0 %vm1064_vm1, %v13162_v36  ;;  %11481 = vmatmul.mubr.msk.f32.gmra.mxu1 %vm1064_vm1, %v13176_v38 }
 0x187   : > { %v13732_v34 = vadd.f32 %v11154_v19, %v10972_v29  ;;  %11301 = vmatprep.mubr.msk.f32.mxu0 %vm1064_vm1, %v13165_v37  ;;  %11483 = vmatprep.mubr.msk.f32.mxu1 %vm1064_vm1, %v13179_v39 }
 0x188   : > { %v1755_v35 = vpop.f32.mrf.mxu0  ;;  %v2429_v25 = vpop.f32.mrf.mxu1 }
 0x189   : > { %v13738_v15 = vadd.f32 %v2429_v25, %v1755_v35 }
 0x18a   : > { %v10975_v31 = vpop.f32.mrf.mxu0  ;;  %v11157_v21 = vpop.f32.mrf.mxu1  ;;  %11302 = vmatmul.mubr.msk.f32.gmra.mxu0 %vm1064_vm1, %v13176_v38  ;;  %11484 = vmatmul.mubr.msk.f32.gmra.mxu1 %vm1064_vm1, %v13190_v40 }
 0x18b   : > { %v13744_v36 = vadd.f32 %v11157_v21, %v10975_v31  ;;  %11304 = vmatprep.mubr.msk.f32.mxu0 %vm1064_vm1, %v13179_v39  ;;  %11486 = vmatprep.mubr.msk.f32.mxu1 %vm1064_vm1, %v13193_v41 }
 0x18c   : > { %v1765_v37 = vpop.f32.mrf.mxu0  ;;  %v2439_v27 = vpop.f32.mrf.mxu1 }
 0x18d   : > { %v13750_v17 = vadd.f32 %v2439_v27, %v1765_v37 }
 0x18e   : > { %v10978_v33 = vpop.f32.mrf.mxu0  ;;  %v11160_v23 = vpop.f32.mrf.mxu1  ;;  %11305 = vmatmul.mubr.msk.f32.gmra.mxu0 %vm1064_vm1, %v13190_v40  ;;  %11487 = vmatmul.mubr.msk.f32.gmra.mxu1 %vm1064_vm1, %v13204_v42 }
 0x18f   : > { %v13756_v38 = vadd.f32 %v11160_v23, %v10978_v33  ;;  %11307 = vmatprep.mubr.msk.f32.mxu0 %vm1064_vm1, %v13193_v41  ;;  %11489 = vmatprep.mubr.msk.f32.mxu1 %vm1064_vm1, %v13207_v43 }
 0x190   : > { %v1775_v39 = vpop.f32.mrf.mxu0  ;;  %v2449_v29 = vpop.f32.mrf.mxu1 }
 0x191   : > { %v13762_v19 = vadd.f32 %v2449_v29, %v1775_v39 }
 0x192   : > { %v10981_v35 = vpop.f32.mrf.mxu0  ;;  %v11163_v25 = vpop.f32.mrf.mxu1  ;;  %11308 = vmatmul.mubr.msk.f32.gmra.mxu0 %vm1064_vm1, %v13204_v42  ;;  %11490 = vmatmul.mubr.msk.f32.gmra.mxu1 %vm1064_vm1, %v13218_v44 }
 0x193   : > { %v13768_v40 = vadd.f32 %v11163_v25, %v10981_v35  ;;  %11310 = vmatprep.mubr.msk.f32.mxu0 %vm1064_vm1, %v13207_v43  ;;  %11492 = vmatprep.mubr.msk.f32.mxu1 %vm1064_vm1, %v13221_v45 }
 0x194   : > { %v1785_v41 = vpop.f32.mrf.mxu0  ;;  %v2459_v31 = vpop.f32.mrf.mxu1 }
 0x195   : > { %v13774_v21 = vadd.f32 %v2459_v31, %v1785_v41 }
 0x196   : > { %v10984_v37 = vpop.f32.mrf.mxu0  ;;  %v11166_v27 = vpop.f32.mrf.mxu1  ;;  %11311 = vmatmul.mubr.msk.f32.gmra.mxu0 %vm1064_vm1, %v13218_v44  ;;  %11493 = vmatmul.mubr.msk.f32.gmra.mxu1 %vm1064_vm1, %v13232_v46 }
 0x197   : > { %v13780_v42 = vadd.f32 %v11166_v27, %v10984_v37  ;;  %11313 = vmatprep.mubr.msk.f32.mxu0 %vm1064_vm1, %v13221_v45  ;;  %11495 = vmatprep.mubr.msk.f32.mxu1 %vm1064_vm1, %v13235_v47 }
 0x198   : > { %v1795_v43 = vpop.f32.mrf.mxu0  ;;  %v2469_v33 = vpop.f32.mrf.mxu1 }
 0x199   : > { %v13786_v23 = vadd.f32 %v2469_v33, %v1795_v43 }
 0x19a   : > { %v10987_v39 = vpop.f32.mrf.mxu0  ;;  %v11169_v29 = vpop.f32.mrf.mxu1  ;;  %11314 = vmatmul.mubr.msk.f32.gmra.mxu0 %vm1064_vm1, %v13232_v46  ;;  %11496 = vmatmul.mubr.msk.f32.gmra.mxu1 %vm1064_vm1, %v13246_v48  ;;  %v12373_v46 = vld [vmem:[%s12948_s27 + $0x168] sm:$0xff] }
 0x19b   : > { %v13792_v44 = vadd.f32 %v11169_v29, %v10987_v39  ;;  %11316 = vmatprep.mubr.msk.f32.mxu0 %vm1064_vm1, %v13235_v47  ;;  %11498 = vmatprep.mubr.msk.f32.mxu1 %vm1064_vm1, %v13249_v49  ;;  %v12374_v47 = vld [vmem:[%s12948_s27 + $0x170] sm:$0xff]  ;;  %v12375_v39 = vld [vmem:[%s12948_s27 + $0x178] sm:$0xff] }
 0x19c   : > { %v1805_v45 = vpop.f32.mrf.mxu0  ;;  %v2479_v35 = vpop.f32.mrf.mxu1 }
 0x19d   : > { %v13798_v25 = vadd.f32 %v2479_v35, %v1805_v45  ;;  %v12377_v45 = vld [vmem:[%s12948_s27 + $0x180] sm:$0xff] }
 0x19e   : > { %v10990_v41 = vpop.f32.mrf.mxu0  ;;  %v11172_v31 = vpop.f32.mrf.mxu1  ;;  %11317 = vmatmul.mubr.msk.f32.gmra.mxu0 %vm1064_vm1, %v12373_v46  ;;  %11499 = vmatmul.mubr.msk.f32.gmra.mxu1 %vm1064_vm1, %v13260_v50  ;;  %v12376_v50 = vld [vmem:[%s12948_s27 + $0x188] sm:$0xff] }
 0x19f   : > { %v13804_v48 = vadd.f32 %v11172_v31, %v10990_v41  ;;  %11319 = vmatprep.mubr.msk.f32.mxu0 %vm1064_vm1, %v12374_v47  ;;  %11501 = vmatprep.mubr.msk.f32.mxu1 %vm1064_vm1, %v13263_v51  ;;  %v12378_v51 = vld [vmem:[%s12948_s27 + $0x190] sm:$0xff] }
 0x1a0   : > { %v1815_v49 = vpop.f32.mrf.mxu0  ;;  %v2489_v37 = vpop.f32.mrf.mxu1 }
 0x1a1   : > { %v13810_v27 = vadd.f32 %v2489_v37, %v1815_v49  ;;  %v12379_v49 = vld [vmem:[%s12948_s27 + $0x198] sm:$0xff] }
 0x1a2   : > { %v10993_v43 = vpop.f32.mrf.mxu0  ;;  %v11175_v33 = vpop.f32.mrf.mxu1  ;;  %11320 = vmatmul.mubr.msk.f32.gmra.mxu0 %vm1064_vm1, %v12375_v39  ;;  %11502 = vmatmul.mubr.msk.f32.gmra.mxu1 %vm1064_vm1, %v12376_v50 }
 0x1a3   : > { %v13816_v29 = vadd.f32 %v11175_v33, %v10993_v43  ;;  %11322 = vmatprep.mubr.msk.f32.mxu0 %vm1064_vm1, %v12377_v45  ;;  %11504 = vmatprep.mubr.msk.f32.mxu1 %vm1064_vm1, %v12378_v51  ;;  %v12380_v43 = vld [vmem:[%s12948_s27 + $0x1a0] sm:$0xff] }
 0x1a4   : > { %v1825_v35 = vpop.f32.mrf.mxu0  ;;  %v2499_v41 = vpop.f32.mrf.mxu1 }
 0x1a5   : > { %v13822_v31 = vadd.f32 %v2499_v41, %v1825_v35 }
 0x1a6   : > { %v10996_v46 = vpop.f32.mrf.mxu0  ;;  %v11178_v47 = vpop.f32.mrf.mxu1  ;;  %11323 = vmatmul.mubr.msk.f32.gmra.mxu0 %vm1064_vm1, %v12376_v50  ;;  %11505 = vmatmul.mubr.msk.f32.gmra.mxu1 %vm1064_vm1, %v12379_v49  ;;  %v12381_v50 = vld [vmem:[%s12948_s27 + $0x1a8] sm:$0xff] }
 0x1a7   : > { %16984 = vst [vmem:[#allocation19_spill] sm:$0xff] %v13822_v31  ;;  %v13827_v37 = vadd.f32 %v11178_v47, %v10996_v46  ;;  %11325 = vmatprep.mubr.msk.f32.mxu0 %vm1064_vm1, %v12378_v51  ;;  %11507 = vmatprep.mubr.msk.f32.mxu1 %vm1064_vm1, %v12380_v43  ;;  %v12382_v51 = vld [vmem:[%s12948_s27 + $0x1b0] sm:$0xff] }
 0x1a8   : > { %v1835_v33 = vpop.f32.mrf.mxu0  ;;  %v2509_v39 = vpop.f32.mrf.mxu1 }
 0x1a9   : > { %16985 = vst [vmem:[#allocation20_spill] sm:$0xff] %v13827_v37  ;;  %v13832_v45 = vadd.f32 %v2509_v39, %v1835_v33 }
 0x1aa   : > { %v10999_v35 = vpop.f32.mrf.mxu0  ;;  %v11181_v41 = vpop.f32.mrf.mxu1  ;;  %11326 = vmatmul.mubr.msk.f32.gmra.mxu0 %vm1064_vm1, %v12379_v49  ;;  %11508 = vmatmul.mubr.msk.f32.gmra.mxu1 %vm1064_vm1, %v12381_v50  ;;  %v12383_v49 = vld [vmem:[%s12948_s27 + $0x1b8] sm:$0xff] }
 0x1ab   : > { %16986 = vst [vmem:[#allocation21_spill] sm:$0xff] %v13832_v45  ;;  %v13837_v46 = vadd.f32 %v11181_v41, %v10999_v35  ;;  %11328 = vmatprep.mubr.msk.f32.mxu0 %vm1064_vm1, %v12380_v43  ;;  %11510 = vmatprep.mubr.msk.f32.mxu1 %vm1064_vm1, %v12382_v51  ;;  %v12384_v43 = vld [vmem:[%s12948_s27 + $0x1c0] sm:$0xff] }
 0x1ac   : > { %v1845_v47 = vpop.f32.mrf.mxu0  ;;  %v2519_v37 = vpop.f32.mrf.mxu1 }
 0x1ad   : > { %16987 = vst [vmem:[#allocation22_spill] sm:$0xff] %v13837_v46  ;;  %v13842_v33 = vadd.f32 %v2519_v37, %v1845_v47 }
 0x1ae   : > { %v11002_v39 = vpop.f32.mrf.mxu0  ;;  %v11184_v45 = vpop.f32.mrf.mxu1  ;;  %11329 = vmatmul.mubr.msk.f32.gmra.mxu0 %vm1064_vm1, %v12381_v50  ;;  %11511 = vmatmul.mubr.msk.f32.gmra.mxu1 %vm1064_vm1, %v12383_v49  ;;  %v12385_v50 = vld [vmem:[%s12948_s27 + $0x1c8] sm:$0xff] }
 0x1af   : > { %16988 = vst [vmem:[#allocation23_spill] sm:$0xff] %v13842_v33  ;;  %v13847_v35 = vadd.f32 %v11184_v45, %v11002_v39  ;;  %11331 = vmatprep.mubr.msk.f32.mxu0 %vm1064_vm1, %v12382_v51  ;;  %11513 = vmatprep.mubr.msk.f32.mxu1 %vm1064_vm1, %v12384_v43  ;;  %v12386_v51 = vld [vmem:[%s12948_s27 + $0x1d0] sm:$0xff] }
 0x1b0   : > { %v1855_v41 = vpop.f32.mrf.mxu0  ;;  %v2529_v46 = vpop.f32.mrf.mxu1 }
 0x1b1   : > { %16989 = vst [vmem:[#allocation24_spill] sm:$0xff] %v13847_v35  ;;  %v13852_v37 = vadd.f32 %v2529_v46, %v1855_v41 }
 0x1b2   : > { %v11005_v47 = vpop.f32.mrf.mxu0  ;;  %v11187_v33 = vpop.f32.mrf.mxu1  ;;  %11332 = vmatmul.mubr.msk.f32.gmra.mxu0 %vm1064_vm1, %v12383_v49  ;;  %11514 = vmatmul.mubr.msk.f32.gmra.mxu1 %vm1064_vm1, %v12385_v50  ;;  %v12387_v49 = vld [vmem:[%s12948_s27 + $0x1d8] sm:$0xff] }
 0x1b3   : > { %16990 = vst [vmem:[#allocation25_spill] sm:$0xff] %v13852_v37  ;;  %v13857_v45 = vadd.f32 %v11187_v33, %v11005_v47  ;;  %11334 = vmatprep.mubr.msk.f32.mxu0 %vm1064_vm1, %v12384_v43  ;;  %11516 = vmatprep.mubr.msk.f32.mxu1 %vm1064_vm1, %v12386_v51  ;;  %v12388_v43 = vld [vmem:[%s12948_s27 + $0x1e0] sm:$0xff] }
 0x1b4   : > { %v1865_v39 = vpop.f32.mrf.mxu0  ;;  %v2539_v35 = vpop.f32.mrf.mxu1 }
 0x1b5   : > { %16991 = vst [vmem:[#allocation26_spill] sm:$0xff] %v13857_v45  ;;  %v13862_v46 = vadd.f32 %v2539_v35, %v1865_v39 }
 0x1b6   : > { %v11008_v41 = vpop.f32.mrf.mxu0  ;;  %v11190_v37 = vpop.f32.mrf.mxu1  ;;  %11335 = vmatmul.mubr.msk.f32.gmra.mxu0 %vm1064_vm1, %v12385_v50  ;;  %11517 = vmatmul.mubr.msk.f32.gmra.mxu1 %vm1064_vm1, %v12387_v49  ;;  %v12389_v50 = vld [vmem:[%s12948_s27 + $0x1e8] sm:$0xff] }
 0x1b7   : > { %16992 = vst [vmem:[#allocation27_spill] sm:$0xff] %v13862_v46  ;;  %v13867_v33 = vadd.f32 %v11190_v37, %v11008_v41  ;;  %11337 = vmatprep.mubr.msk.f32.mxu0 %vm1064_vm1, %v12386_v51  ;;  %11519 = vmatprep.mubr.msk.f32.mxu1 %vm1064_vm1, %v12388_v43  ;;  %v12390_v51 = vld [vmem:[%s12948_s27 + $0x1f0] sm:$0xff] }
 0x1b8   : > { %v1875_v47 = vpop.f32.mrf.mxu0  ;;  %v2549_v45 = vpop.f32.mrf.mxu1 }
 0x1b9   : > { %16993 = vst [vmem:[#allocation28_spill] sm:$0xff] %v13867_v33  ;;  %v13872_v35 = vadd.f32 %v2549_v45, %v1875_v47 }
 0x1ba   : > { %v11011_v39 = vpop.f32.mrf.mxu0  ;;  %v11193_v46 = vpop.f32.mrf.mxu1  ;;  %11338 = vmatmul.mubr.msk.f32.gmra.mxu0 %vm1064_vm1, %v12387_v49  ;;  %11520 = vmatmul.mubr.msk.f32.gmra.mxu1 %vm1064_vm1, %v12389_v50  ;;  %v12391_v49 = vld [vmem:[%s12948_s27 + $0x1f8] sm:$0xff] }
 0x1bb   : > { %16994 = vst [vmem:[#allocation29_spill] sm:$0xff] %v13872_v35  ;;  %v13877_v37 = vadd.f32 %v11193_v46, %v11011_v39  ;;  %11340 = vmatprep.mubr.msk.f32.mxu0 %vm1064_vm1, %v12388_v43  ;;  %11522 = vmatprep.mubr.msk.f32.mxu1 %vm1064_vm1, %v12390_v51  ;;  %v12392_v43 = vld [vmem:[%s12948_s27 + $0x200] sm:$0xff] }
 0x1bc   : > { %v1885_v41 = vpop.f32.mrf.mxu0  ;;  %v2559_v33 = vpop.f32.mrf.mxu1 }
 0x1bd   : > { %16995 = vst [vmem:[#allocation30_spill] sm:$0xff] %v13877_v37  ;;  %v13882_v45 = vadd.f32 %v2559_v33, %v1885_v41 }
 0x1be   : > { %v11014_v47 = vpop.f32.mrf.mxu0  ;;  %v11196_v35 = vpop.f32.mrf.mxu1  ;;  %11341 = vmatmul.mubr.msk.f32.gmra.mxu0 %vm1064_vm1, %v12389_v50  ;;  %11523 = vmatmul.mubr.msk.f32.gmra.mxu1 %vm1064_vm1, %v12391_v49  ;;  %v12393_v50 = vld [vmem:[%s12948_s27 + $0x208] sm:$0xff] }
 0x1bf   : > { %16996 = vst [vmem:[#allocation31_spill] sm:$0xff] %v13882_v45  ;;  %v13887_v46 = vadd.f32 %v11196_v35, %v11014_v47  ;;  %11343 = vmatprep.mubr.msk.f32.mxu0 %vm1064_vm1, %v12390_v51  ;;  %11525 = vmatprep.mubr.msk.f32.mxu1 %vm1064_vm1, %v12392_v43  ;;  %v12394_v51 = vld [vmem:[%s12948_s27 + $0x210] sm:$0xff] }
 0x1c0   : > { %v1895_v39 = vpop.f32.mrf.mxu0  ;;  %v2569_v37 = vpop.f32.mrf.mxu1 }
 0x1c1   : > { %16997 = vst [vmem:[#allocation32_spill] sm:$0xff] %v13887_v46  ;;  %v13892_v33 = vadd.f32 %v2569_v37, %v1895_v39 }
 0x1c2   : > { %v11017_v41 = vpop.f32.mrf.mxu0  ;;  %v11199_v45 = vpop.f32.mrf.mxu1  ;;  %11344 = vmatmul.mubr.msk.f32.gmra.mxu0 %vm1064_vm1, %v12391_v49  ;;  %11526 = vmatmul.mubr.msk.f32.gmra.mxu1 %vm1064_vm1, %v12393_v50  ;;  %v12395_v49 = vld [vmem:[%s12948_s27 + $0x218] sm:$0xff] }
 0x1c3   : > { %16998 = vst [vmem:[#allocation33_spill] sm:$0xff] %v13892_v33  ;;  %v13897_v35 = vadd.f32 %v11199_v45, %v11017_v41  ;;  %11346 = vmatprep.mubr.msk.f32.mxu0 %vm1064_vm1, %v12392_v43  ;;  %11528 = vmatprep.mubr.msk.f32.mxu1 %vm1064_vm1, %v12394_v51  ;;  %v12396_v43 = vld [vmem:[%s12948_s27 + $0x220] sm:$0xff] }
 0x1c4   : > { %v1905_v47 = vpop.f32.mrf.mxu0  ;;  %v2579_v46 = vpop.f32.mrf.mxu1 }
 0x1c5   : > { %16999 = vst [vmem:[#allocation34_spill] sm:$0xff] %v13897_v35  ;;  %v13902_v37 = vadd.f32 %v2579_v46, %v1905_v47 }
 0x1c6   : > { %v11020_v39 = vpop.f32.mrf.mxu0  ;;  %v11202_v33 = vpop.f32.mrf.mxu1  ;;  %11347 = vmatmul.mubr.msk.f32.gmra.mxu0 %vm1064_vm1, %v12393_v50  ;;  %11529 = vmatmul.mubr.msk.f32.gmra.mxu1 %vm1064_vm1, %v12395_v49  ;;  %v12397_v50 = vld [vmem:[%s12948_s27 + $0x228] sm:$0xff] }
 0x1c7   : > { %17000 = vst [vmem:[#allocation35_spill] sm:$0xff] %v13902_v37  ;;  %v13907_v45 = vadd.f32 %v11202_v33, %v11020_v39  ;;  %11349 = vmatprep.mubr.msk.f32.mxu0 %vm1064_vm1, %v12394_v51  ;;  %11531 = vmatprep.mubr.msk.f32.mxu1 %vm1064_vm1, %v12396_v43  ;;  %v12398_v51 = vld [vmem:[%s12948_s27 + $0x230] sm:$0xff] }
 0x1c8   : > { %v1915_v41 = vpop.f32.mrf.mxu0  ;;  %v2589_v35 = vpop.f32.mrf.mxu1 }
 0x1c9   : > { %17001 = vst [vmem:[#allocation36_spill] sm:$0xff] %v13907_v45  ;;  %v13912_v46 = vadd.f32 %v2589_v35, %v1915_v41 }
 0x1ca   : > { %v11023_v47 = vpop.f32.mrf.mxu0  ;;  %v11205_v37 = vpop.f32.mrf.mxu1  ;;  %11350 = vmatmul.mubr.msk.f32.gmra.mxu0 %vm1064_vm1, %v12395_v49  ;;  %11532 = vmatmul.mubr.msk.f32.gmra.mxu1 %vm1064_vm1, %v12397_v50  ;;  %v12399_v49 = vld [vmem:[%s12948_s27 + $0x238] sm:$0xff] }
 0x1cb   : > { %17002 = vst [vmem:[#allocation37_spill] sm:$0xff] %v13912_v46  ;;  %v13917_v33 = vadd.f32 %v11205_v37, %v11023_v47  ;;  %11352 = vmatprep.mubr.msk.f32.mxu0 %vm1064_vm1, %v12396_v43  ;;  %11534 = vmatprep.mubr.msk.f32.mxu1 %vm1064_vm1, %v12398_v51  ;;  %v12400_v43 = vld [vmem:[%s12948_s27 + $0x240] sm:$0xff] }
 0x1cc   : > { %v1925_v39 = vpop.f32.mrf.mxu0  ;;  %v2599_v45 = vpop.f32.mrf.mxu1 }
 0x1cd   : > { %17003 = vst [vmem:[#allocation38_spill] sm:$0xff] %v13917_v33  ;;  %v13922_v35 = vadd.f32 %v2599_v45, %v1925_v39 }
 0x1ce   : > { %v11026_v41 = vpop.f32.mrf.mxu0  ;;  %v11208_v46 = vpop.f32.mrf.mxu1  ;;  %11353 = vmatmul.mubr.msk.f32.gmra.mxu0 %vm1064_vm1, %v12397_v50  ;;  %11535 = vmatmul.mubr.msk.f32.gmra.mxu1 %vm1064_vm1, %v12399_v49  ;;  %v12401_v50 = vld [vmem:[%s12948_s27 + $0x248] sm:$0xff] }
 0x1cf   : > { %17004 = vst [vmem:[#allocation39_spill] sm:$0xff] %v13922_v35  ;;  %v13927_v37 = vadd.f32 %v11208_v46, %v11026_v41  ;;  %11355 = vmatprep.mubr.msk.f32.mxu0 %vm1064_vm1, %v12398_v51  ;;  %11537 = vmatprep.mubr.msk.f32.mxu1 %vm1064_vm1, %v12400_v43  ;;  %v12402_v51 = vld [vmem:[%s12948_s27 + $0x250] sm:$0xff] }
 0x1d0   : > { %v1935_v47 = vpop.f32.mrf.mxu0  ;;  %v2609_v33 = vpop.f32.mrf.mxu1 }
 0x1d1   : > { %17005 = vst [vmem:[#allocation40_spill] sm:$0xff] %v13927_v37  ;;  %v13932_v45 = vadd.f32 %v2609_v33, %v1935_v47 }
 0x1d2   : > { %v11029_v39 = vpop.f32.mrf.mxu0  ;;  %v11211_v35 = vpop.f32.mrf.mxu1  ;;  %11356 = vmatmul.mubr.msk.f32.gmra.mxu0 %vm1064_vm1, %v12399_v49  ;;  %11538 = vmatmul.mubr.msk.f32.gmra.mxu1 %vm1064_vm1, %v12401_v50  ;;  %v12403_v49 = vld [vmem:[%s12948_s27 + $0x258] sm:$0xff] }
 0x1d3   : > { %17006 = vst [vmem:[#allocation41_spill] sm:$0xff] %v13932_v45  ;;  %v13937_v46 = vadd.f32 %v11211_v35, %v11029_v39  ;;  %11358 = vmatprep.mubr.msk.f32.mxu0 %vm1064_vm1, %v12400_v43  ;;  %11540 = vmatprep.mubr.msk.f32.mxu1 %vm1064_vm1, %v12402_v51  ;;  %v12404_v43 = vld [vmem:[%s12948_s27 + $0x260] sm:$0xff] }
 0x1d4   : > { %v1945_v41 = vpop.f32.mrf.mxu0  ;;  %v2619_v37 = vpop.f32.mrf.mxu1 }
 0x1d5   : > { %17007 = vst [vmem:[#allocation42_spill] sm:$0xff] %v13937_v46  ;;  %v13942_v33 = vadd.f32 %v2619_v37, %v1945_v41 }
 0x1d6   : > { %v11032_v47 = vpop.f32.mrf.mxu0  ;;  %v11214_v45 = vpop.f32.mrf.mxu1  ;;  %11359 = vmatmul.mubr.msk.f32.gmra.mxu0 %vm1064_vm1, %v12401_v50  ;;  %11541 = vmatmul.mubr.msk.f32.gmra.mxu1 %vm1064_vm1, %v12403_v49  ;;  %v12405_v50 = vld [vmem:[%s12948_s27 + $0x268] sm:$0xff] }
 0x1d7   : > { %17008 = vst [vmem:[#allocation43_spill] sm:$0xff] %v13942_v33  ;;  %v13947_v35 = vadd.f32 %v11214_v45, %v11032_v47  ;;  %11361 = vmatprep.mubr.msk.f32.mxu0 %vm1064_vm1, %v12402_v51  ;;  %11543 = vmatprep.mubr.msk.f32.mxu1 %vm1064_vm1, %v12404_v43  ;;  %v12406_v51 = vld [vmem:[%s12948_s27 + $0x270] sm:$0xff] }
 0x1d8   : > { %v1955_v39 = vpop.f32.mrf.mxu0  ;;  %v2629_v46 = vpop.f32.mrf.mxu1 }
 0x1d9   : > { %17009 = vst [vmem:[#allocation44_spill] sm:$0xff] %v13947_v35  ;;  %v13952_v37 = vadd.f32 %v2629_v46, %v1955_v39 }
 0x1da   : > { %v11035_v41 = vpop.f32.mrf.mxu0  ;;  %v11217_v33 = vpop.f32.mrf.mxu1  ;;  %11362 = vmatmul.mubr.msk.f32.gmra.mxu0 %vm1064_vm1, %v12403_v49  ;;  %11544 = vmatmul.mubr.msk.f32.gmra.mxu1 %vm1064_vm1, %v12405_v50  ;;  %v12407_v49 = vld [vmem:[%s12948_s27 + $0x278] sm:$0xff] }
 0x1db   : > { %17010 = vst [vmem:[#allocation45_spill] sm:$0xff] %v13952_v37  ;;  %v13957_v45 = vadd.f32 %v11217_v33, %v11035_v41  ;;  %11364 = vmatprep.mubr.msk.f32.mxu0 %vm1064_vm1, %v12404_v43  ;;  %11546 = vmatprep.mubr.msk.f32.mxu1 %vm1064_vm1, %v12406_v51  ;;  %v12408_v43 = vld [vmem:[%s12948_s27 + $0x280] sm:$0xff] }
 0x1dc   : > { %v1965_v47 = vpop.f32.mrf.mxu0  ;;  %v2639_v35 = vpop.f32.mrf.mxu1 }
 0x1dd   : > { %17011 = vst [vmem:[#allocation46_spill] sm:$0xff] %v13957_v45  ;;  %v13962_v46 = vadd.f32 %v2639_v35, %v1965_v47 }
 0x1de   : > { %v11038_v39 = vpop.f32.mrf.mxu0  ;;  %v11220_v37 = vpop.f32.mrf.mxu1  ;;  %11365 = vmatmul.mubr.msk.f32.gmra.mxu0 %vm1064_vm1, %v12405_v50  ;;  %11547 = vmatmul.mubr.msk.f32.gmra.mxu1 %vm1064_vm1, %v12407_v49  ;;  %v12409_v50 = vld [vmem:[%s12948_s27 + $0x288] sm:$0xff] }
 0x1df   : > { %17012 = vst [vmem:[#allocation47_spill] sm:$0xff] %v13962_v46  ;;  %v13967_v33 = vadd.f32 %v11220_v37, %v11038_v39  ;;  %11367 = vmatprep.mubr.msk.f32.mxu0 %vm1064_vm1, %v12406_v51  ;;  %11549 = vmatprep.mubr.msk.f32.mxu1 %vm1064_vm1, %v12408_v43  ;;  %v12410_v51 = vld [vmem:[%s12948_s27 + $0x290] sm:$0xff] }
 0x1e0   : > { %v1975_v41 = vpop.f32.mrf.mxu0  ;;  %v2649_v45 = vpop.f32.mrf.mxu1 }
 0x1e1   : > { %17013 = vst [vmem:[#allocation48_spill] sm:$0xff] %v13967_v33  ;;  %v13972_v35 = vadd.f32 %v2649_v45, %v1975_v41 }
 0x1e2   : > { %v11041_v47 = vpop.f32.mrf.mxu0  ;;  %v11223_v46 = vpop.f32.mrf.mxu1  ;;  %11368 = vmatmul.mubr.msk.f32.gmra.mxu0 %vm1064_vm1, %v12407_v49  ;;  %11550 = vmatmul.mubr.msk.f32.gmra.mxu1 %vm1064_vm1, %v12409_v50  ;;  %v12411_v49 = vld [vmem:[%s12948_s27 + $0x298] sm:$0xff] }
 0x1e3   : > { %17014 = vst [vmem:[#allocation49_spill] sm:$0xff] %v13972_v35  ;;  %v13977_v37 = vadd.f32 %v11223_v46, %v11041_v47  ;;  %11370 = vmatprep.mubr.msk.f32.mxu0 %vm1064_vm1, %v12408_v43  ;;  %11552 = vmatprep.mubr.msk.f32.mxu1 %vm1064_vm1, %v12410_v51  ;;  %v12412_v43 = vld [vmem:[%s12948_s27 + $0x2a0] sm:$0xff] }
 0x1e4   : > { %v1985_v39 = vpop.f32.mrf.mxu0  ;;  %v2659_v33 = vpop.f32.mrf.mxu1 }
 0x1e5   : > { %17015 = vst [vmem:[#allocation50_spill] sm:$0xff] %v13977_v37  ;;  %v13982_v45 = vadd.f32 %v2659_v33, %v1985_v39 }
 0x1e6   : > { %v11044_v41 = vpop.f32.mrf.mxu0  ;;  %v11226_v35 = vpop.f32.mrf.mxu1  ;;  %11371 = vmatmul.mubr.msk.f32.gmra.mxu0 %vm1064_vm1, %v12409_v50  ;;  %11553 = vmatmul.mubr.msk.f32.gmra.mxu1 %vm1064_vm1, %v12411_v49  ;;  %v12413_v50 = vld [vmem:[%s12948_s27 + $0x2a8] sm:$0xff] }
 0x1e7   : > { %17016 = vst [vmem:[#allocation51_spill] sm:$0xff] %v13982_v45  ;;  %v13987_v46 = vadd.f32 %v11226_v35, %v11044_v41  ;;  %11373 = vmatprep.mubr.msk.f32.mxu0 %vm1064_vm1, %v12410_v51  ;;  %11555 = vmatprep.mubr.msk.f32.mxu1 %vm1064_vm1, %v12412_v43  ;;  %v12414_v51 = vld [vmem:[%s12948_s27 + $0x2b0] sm:$0xff] }
 0x1e8   : > { %v1995_v47 = vpop.f32.mrf.mxu0  ;;  %v2669_v37 = vpop.f32.mrf.mxu1 }
 0x1e9   : > { %17017 = vst [vmem:[#allocation52_spill] sm:$0xff] %v13987_v46  ;;  %v13992_v33 = vadd.f32 %v2669_v37, %v1995_v47 }
 0x1ea   : > { %v11047_v39 = vpop.f32.mrf.mxu0  ;;  %v11229_v45 = vpop.f32.mrf.mxu1  ;;  %11374 = vmatmul.mubr.msk.f32.gmra.mxu0 %vm1064_vm1, %v12411_v49  ;;  %11556 = vmatmul.mubr.msk.f32.gmra.mxu1 %vm1064_vm1, %v12413_v50  ;;  %v12415_v49 = vld [vmem:[%s12948_s27 + $0x2b8] sm:$0xff] }
 0x1eb   : > { %17018 = vst [vmem:[#allocation53_spill] sm:$0xff] %v13992_v33  ;;  %v13997_v35 = vadd.f32 %v11229_v45, %v11047_v39  ;;  %11376 = vmatprep.mubr.msk.f32.mxu0 %vm1064_vm1, %v12412_v43  ;;  %11558 = vmatprep.mubr.msk.f32.mxu1 %vm1064_vm1, %v12414_v51  ;;  %v12416_v43 = vld [vmem:[%s12948_s27 + $0x2c0] sm:$0xff] }
 0x1ec   : > { %v2005_v41 = vpop.f32.mrf.mxu0  ;;  %v2679_v46 = vpop.f32.mrf.mxu1 }
 0x1ed   : > { %17019 = vst [vmem:[#allocation54_spill] sm:$0xff] %v13997_v35  ;;  %v14002_v37 = vadd.f32 %v2679_v46, %v2005_v41 }
 0x1ee   : > { %v11050_v47 = vpop.f32.mrf.mxu0  ;;  %v11232_v33 = vpop.f32.mrf.mxu1  ;;  %11377 = vmatmul.mubr.msk.f32.gmra.mxu0 %vm1064_vm1, %v12413_v50  ;;  %11559 = vmatmul.mubr.msk.f32.gmra.mxu1 %vm1064_vm1, %v12415_v49  ;;  %v12417_v50 = vld [vmem:[%s12948_s27 + $0x2c8] sm:$0xff] }
 0x1ef   : > { %17020 = vst [vmem:[#allocation55_spill] sm:$0xff] %v14002_v37  ;;  %v14007_v45 = vadd.f32 %v11232_v33, %v11050_v47  ;;  %11379 = vmatprep.mubr.msk.f32.mxu0 %vm1064_vm1, %v12414_v51  ;;  %11561 = vmatprep.mubr.msk.f32.mxu1 %vm1064_vm1, %v12416_v43  ;;  %v12418_v51 = vld [vmem:[%s12948_s27 + $0x2d0] sm:$0xff] }
 0x1f0   : > { %v2015_v39 = vpop.f32.mrf.mxu0  ;;  %v2689_v35 = vpop.f32.mrf.mxu1 }
 0x1f1   : > { %17021 = vst [vmem:[#allocation56_spill] sm:$0xff] %v14007_v45  ;;  %v14012_v46 = vadd.f32 %v2689_v35, %v2015_v39 }
 0x1f2   : > { %v11053_v41 = vpop.f32.mrf.mxu0  ;;  %v11235_v37 = vpop.f32.mrf.mxu1  ;;  %11380 = vmatmul.mubr.msk.f32.gmra.mxu0 %vm1064_vm1, %v12415_v49  ;;  %11562 = vmatmul.mubr.msk.f32.gmra.mxu1 %vm1064_vm1, %v12417_v50  ;;  %v12419_v49 = vld [vmem:[%s12948_s27 + $0x2d8] sm:$0xff] }
 0x1f3   : > { %17022 = vst [vmem:[#allocation57_spill] sm:$0xff] %v14012_v46  ;;  %v14017_v33 = vadd.f32 %v11235_v37, %v11053_v41  ;;  %11382 = vmatprep.mubr.msk.f32.mxu0 %vm1064_vm1, %v12416_v43  ;;  %11564 = vmatprep.mubr.msk.f32.mxu1 %vm1064_vm1, %v12418_v51  ;;  %v12420_v43 = vld [vmem:[%s12948_s27 + $0x2e0] sm:$0xff] }
 0x1f4   : > { %v2025_v47 = vpop.f32.mrf.mxu0  ;;  %v2699_v45 = vpop.f32.mrf.mxu1 }
 0x1f5   : > { %17023 = vst [vmem:[#allocation58_spill] sm:$0xff] %v14017_v33  ;;  %v14022_v35 = vadd.f32 %v2699_v45, %v2025_v47 }
 0x1f6   : > { %v11056_v39 = vpop.f32.mrf.mxu0  ;;  %v11238_v46 = vpop.f32.mrf.mxu1  ;;  %11383 = vmatmul.mubr.msk.f32.gmra.mxu0 %vm1064_vm1, %v12417_v50  ;;  %11565 = vmatmul.mubr.msk.f32.gmra.mxu1 %vm1064_vm1, %v12419_v49  ;;  %v12421_v50 = vld [vmem:[%s12948_s27 + $0x2e8] sm:$0xff] }
 0x1f7   : > { %17024 = vst [vmem:[#allocation59_spill] sm:$0xff] %v14022_v35  ;;  %v14027_v37 = vadd.f32 %v11238_v46, %v11056_v39  ;;  %11385 = vmatprep.mubr.msk.f32.mxu0 %vm1064_vm1, %v12418_v51  ;;  %11567 = vmatprep.mubr.msk.f32.mxu1 %vm1064_vm1, %v12420_v43  ;;  %v12422_v51 = vld [vmem:[%s12948_s27 + $0x2f0] sm:$0xff] }
 0x1f8   : > { %v2035_v41 = vpop.f32.mrf.mxu0  ;;  %v2709_v33 = vpop.f32.mrf.mxu1 }
 0x1f9   : > { %17025 = vst [vmem:[#allocation60_spill] sm:$0xff] %v14027_v37  ;;  %v14032_v45 = vadd.f32 %v2709_v33, %v2035_v41 }
 0x1fa   : > { %v11059_v47 = vpop.f32.mrf.mxu0  ;;  %v11241_v35 = vpop.f32.mrf.mxu1  ;;  %11386 = vmatmul.mubr.msk.f32.gmra.mxu0 %vm1064_vm1, %v12419_v49  ;;  %11568 = vmatmul.mubr.msk.f32.gmra.mxu1 %vm1064_vm1, %v12421_v50  ;;  %v12423_v49 = vld [vmem:[%s12948_s27 + $0x2f8] sm:$0xff] }
 0x1fb   : > { %17026 = vst [vmem:[#allocation61_spill] sm:$0xff] %v14032_v45  ;;  %v14037_v46 = vadd.f32 %v11241_v35, %v11059_v47  ;;  %11388 = vmatprep.mubr.msk.f32.mxu0 %vm1064_vm1, %v12420_v43  ;;  %11570 = vmatprep.mubr.msk.f32.mxu1 %vm1064_vm1, %v12422_v51  ;;  %v12424_v43 = vld [vmem:[%s12948_s27 + $0x300] sm:$0xff] }
 0x1fc   : > { %v2045_v39 = vpop.f32.mrf.mxu0  ;;  %v2719_v37 = vpop.f32.mrf.mxu1 }
 0x1fd   : > { %17027 = vst [vmem:[#allocation62_spill] sm:$0xff] %v14037_v46  ;;  %v14042_v33 = vadd.f32 %v2719_v37, %v2045_v39 }
 0x1fe   : > { %v11062_v41 = vpop.f32.mrf.mxu0  ;;  %v11244_v45 = vpop.f32.mrf.mxu1  ;;  %11389 = vmatmul.mubr.msk.f32.gmra.mxu0 %vm1064_vm1, %v12421_v50  ;;  %11571 = vmatmul.mubr.msk.f32.gmra.mxu1 %vm1064_vm1, %v12423_v49  ;;  %v12425_v50 = vld [vmem:[%s12948_s27 + $0x308] sm:$0xff] }
 0x1ff   : > { %17028 = vst [vmem:[#allocation63_spill] sm:$0xff] %v14042_v33  ;;  %v14047_v35 = vadd.f32 %v11244_v45, %v11062_v41  ;;  %11391 = vmatprep.mubr.msk.f32.mxu0 %vm1064_vm1, %v12422_v51  ;;  %11573 = vmatprep.mubr.msk.f32.mxu1 %vm1064_vm1, %v12424_v43  ;;  %v12426_v51 = vld [vmem:[%s12948_s27 + $0x310] sm:$0xff] }
 0x200   : > { %v2055_v47 = vpop.f32.mrf.mxu0  ;;  %v2729_v46 = vpop.f32.mrf.mxu1 }
 0x201   : > { %17029 = vst [vmem:[#allocation64_spill] sm:$0xff] %v14047_v35  ;;  %v14052_v37 = vadd.f32 %v2729_v46, %v2055_v47 }
 0x202   : > { %v11065_v39 = vpop.f32.mrf.mxu0  ;;  %v11247_v33 = vpop.f32.mrf.mxu1  ;;  %11392 = vmatmul.mubr.msk.f32.gmra.mxu0 %vm1064_vm1, %v12423_v49  ;;  %11574 = vmatmul.mubr.msk.f32.gmra.mxu1 %vm1064_vm1, %v12425_v50  ;;  %v12427_v49 = vld [vmem:[%s12948_s27 + $0x318] sm:$0xff] }
 0x203   : > { %17030 = vst [vmem:[#allocation65_spill] sm:$0xff] %v14052_v37  ;;  %v14057_v45 = vadd.f32 %v11247_v33, %v11065_v39  ;;  %11394 = vmatprep.mubr.msk.f32.mxu0 %vm1064_vm1, %v12424_v43  ;;  %11576 = vmatprep.mubr.msk.f32.mxu1 %vm1064_vm1, %v12426_v51  ;;  %v12428_v33 = vld [vmem:[%s12948_s27 + $0x320] sm:$0xff] }
 0x204   : > { %v2065_v41 = vpop.f32.mrf.mxu0  ;;  %v2739_v35 = vpop.f32.mrf.mxu1 }
 0x205   : > { %17031 = vst [vmem:[#allocation66_spill] sm:$0xff] %v14057_v45  ;;  %v14062_v46 = vadd.f32 %v2739_v35, %v2065_v41  ;;  %v9607_v41 = vld [vmem:[%s16919_s3 + $0x8] sm:$0x3f] }
 0x206   : > { %v11068_v47 = vpop.f32.mrf.mxu0  ;;  %v11250_v37 = vpop.f32.mrf.mxu1  ;;  %11395 = vmatmul.mubr.msk.f32.gmra.mxu0 %vm1064_vm1, %v12425_v50  ;;  %11577 = vmatmul.mubr.msk.f32.gmra.mxu1 %vm1064_vm1, %v12427_v49 }
 0x207   : > { %17032 = vst [vmem:[#allocation67_spill] sm:$0xff] %v14062_v46  ;;  %v14067_v31 = vadd.f32 %v11250_v37, %v11068_v47  ;;  %11397 = vmatprep.mubr.msk.f32.mxu0 %vm1064_vm1, %v12426_v51  ;;  %11579 = vmatprep.mubr.msk.f32.mxu1 %vm1064_vm1, %v12428_v33  ;;  %v12429_v37 = vld [vmem:[%s12948_s27 + $0x328] sm:$0xff]  ;;  %v12430_v47 = vld [vmem:[%s12948_s27 + $0x330] sm:$0xff] }
 0x208   : > { %v2075_v43 = vpop.f32.mrf.mxu0  ;;  %v2749_v39 = vpop.f32.mrf.mxu1  ;;  %11800 = vmatprep.subr.msk.mxu1 %vm5623_vm2, %v9607_v41 }
 0x209   : > { %17033 = vst [vmem:[#allocation68_spill] sm:$0xff] %v14067_v31  ;;  %v14072_v35 = vadd.f32 %v2749_v39, %v2075_v43  ;;  %11801 = vmatpush3.msk.msra.mxu1 %vm5623_vm2, %v9607_v41 }
 0x20a   : > { %v11071_v50 = vpop.f32.mrf.mxu0  ;;  %v11253_v46 = vpop.f32.mrf.mxu1  ;;  %11398 = vmatmul.mubr.msk.f32.gmra.mxu0 %vm1064_vm1, %v12427_v49  ;;  %11580 = vmatmul.mubr.msk.f32.gmra.mxu1 %vm1064_vm1, %v12429_v37 }
 0x20b   : > { %17034 = vst [vmem:[#allocation69_spill] sm:$0xff] %v14072_v35  ;;  %v14080_v51 = vadd.f32 %v11253_v46, %v11071_v50  ;;  %11400 = vmatprep.mubr.msk.f32.mxu0 %vm1064_vm1, %v12428_v33  ;;  %11582 = vmatprep.mubr.msk.f32.mxu1 %vm1064_vm1, %v12430_v47  ;;  %v14091_v50 = vld [vmem:[%s12948_s27 + $0x338] sm:$0xff] }
 0x20c   : > { %v2085_v43 = vpop.f32.mrf.mxu0  ;;  %v2759_v39 = vpop.f32.mrf.mxu1  ;;  %17037 = vst [vmem:[#allocation72_spill] sm:$0xff] %v14091_v50 }
 0x20d   : > { %17035 = vst [vmem:[#allocation70_spill] sm:$0xff] %v14080_v51  ;;  %v14086_v35 = vadd.f32 %v2759_v39, %v2085_v43  ;;  %v14098_v51 = vld [vmem:[%s12948_s27 + $0x340] sm:$0xff] }
 0x20e   : > { %v11258_v49 = vpop.f32.mrf.mxu0  ;;  %11401 = vmatmul.mubr.msk.f32.gmra.mxu0 %vm1064_vm1, %v12429_v37  ;;  %v11440_v46 = vpop.f32.mrf.mxu1  ;;  %11583 = vmatmul.mubr.msk.f32.gmra.mxu1 %vm1064_vm1, %v14091_v50  ;;  %17038 = vst [vmem:[#allocation73_spill] sm:$0xff] %v14098_v51 }
 0x20f   : > { %17036 = vst [vmem:[#allocation71_spill] sm:$0xff] %v14086_v35  ;;  %v3445_v33 = vadd.f32 %v11258_v49, %v13441_v53  ;;  %11403 = vmatprep.mubr.msk.f32.mxu0 %vm1064_vm1, %v12430_v47  ;;  %11585 = vmatprep.mubr.msk.f32.mxu1 %vm1064_vm1, %v14098_v51  ;;  %v14108_v49 = vld [vmem:[%s12948_s27 + $0x348] sm:$0xff] }
 0x210   : > { %v2845_v41 = vpop.f32.mrf.mxu0  ;;  %v3641_v43 = vpop.f32.mrf.mxu1  ;;  %17040 = vst [vmem:[#allocation75_spill] sm:$0xff] %v14108_v49 }
 0x211   : > { %v3444_v37 = vadd.f32 %v2845_v41, %v13447_v58  ;;  %v14103_v39 = vadd.f32 %v11440_v46, %v3445_v33  ;;  %v14118_v58 = vld [vmem:[%s12948_s27 + $0x350] sm:$0xff]  ;;  %v17043_v41 = vld [vmem:[#allocation3_spill] sm:$0xff] }
 0x212   : > { %v11261_v35 = vpop.f32.mrf.mxu0  ;;  %11404 = vmatmul.mubr.msk.f32.gmra.mxu0 %vm1064_vm1, %v14091_v50  ;;  %v11443_v53 = vpop.f32.mrf.mxu1  ;;  %11586 = vmatmul.mubr.msk.f32.gmra.mxu1 %vm1064_vm1, %v14108_v49  ;;  %17042 = vst [vmem:[#allocation77_spill] sm:$0xff] %v14118_v58 }
 0x213   : > { %17039 = vst [vmem:[#allocation74_spill] sm:$0xff] %v14103_v39  ;;  %v3447_v47 = vadd.f32 %v11261_v35, %v13451_v61  ;;  %v14113_v31 = vadd.f32 %v3641_v43, %v3444_v37  ;;  %11406 = vmatprep.mubr.msk.f32.mxu0 %vm1064_vm1, %v14098_v51  ;;  %11588 = vmatprep.mubr.msk.f32.mxu1 %vm1064_vm1, %v14118_v58  ;;  %v14128_v35 = vld [vmem:[%s12948_s27 + $0x358] sm:$0xff]  ;;  %v17046_v43 = vld [vmem:[#allocation4_spill] sm:$0xff] }
 0x214   : > { %v2855_v46 = vpop.f32.mrf.mxu0  ;;  %v3651_v33 = vpop.f32.mrf.mxu1  ;;  %17045 = vst [vmem:[#allocation78_spill] sm:$0xff] %v14128_v35 }
 0x215   : > { %17041 = vst [vmem:[#allocation76_spill] sm:$0xff] %v14113_v31  ;;  %v3446_v39 = vadd.f32 %v2855_v46, %v17043_v41  ;;  %v14123_v50 = vadd.f32 %v11443_v53, %v3447_v47  ;;  %v14138_v53 = vld [vmem:[%s12948_s27 + $0x360] sm:$0xff]  ;;  %v17048_v41 = vld [vmem:[#allocation5_spill] sm:$0xff] }
 0x216   : > { %v11264_v45 = vpop.f32.mrf.mxu0  ;;  %11407 = vmatmul.mubr.msk.f32.gmra.mxu0 %vm1064_vm1, %v14108_v49  ;;  %v11446_v61 = vpop.f32.mrf.mxu1  ;;  %11589 = vmatmul.mubr.msk.f32.gmra.mxu1 %vm1064_vm1, %v14128_v35 }
 0x217   : > { %17044 = vst [vmem:[#allocation3_spill] sm:$0xff] %v14123_v50  ;;  %v3449_v37 = vadd.f32 %v11264_v45, %v17046_v43  ;;  %v14133_v31 = vadd.f32 %v3651_v33, %v3446_v39  ;;  %11409 = vmatprep.mubr.msk.f32.mxu0 %vm1064_vm1, %v14118_v58  ;;  %11591 = vmatprep.mubr.msk.f32.mxu1 %vm1064_vm1, %v14138_v53  ;;  %v14148_v39 = vld [vmem:[%s12948_s27 + $0x368] sm:$0xff]  ;;  %v17050_v33 = vld [vmem:[#allocation6_spill] sm:$0xff] }
 0x218   : > { %v2865_v47 = vpop.f32.mrf.mxu0  ;;  %v3661_v46 = vpop.f32.mrf.mxu1 }
 0x219   : > { %17047 = vst [vmem:[#allocation4_spill] sm:$0xff] %v14133_v31  ;;  %v3448_v50 = vadd.f32 %v2865_v47, %v17048_v41  ;;  %v14143_v49 = vadd.f32 %v11446_v61, %v3449_v37  ;;  %v14158_v61 = vld [vmem:[%s12948_s27 + $0x370] sm:$0xff]  ;;  %v17052_v41 = vld [vmem:[#allocation7_spill] sm:$0xff] }
 0x21a   : > { %v11267_v51 = vpop.f32.mrf.mxu0  ;;  %11410 = vmatmul.mubr.msk.f32.gmra.mxu0 %vm1064_vm1, %v14128_v35  ;;  %v11449_v45 = vpop.f32.mrf.mxu1  ;;  %11592 = vmatmul.mubr.msk.f32.gmra.mxu1 %vm1064_vm1, %v14148_v39 }
 0x21b   : > { %17049 = vst [vmem:[#allocation5_spill] sm:$0xff] %v14143_v49  ;;  %v3451_v43 = vadd.f32 %v11267_v51, %v17050_v33  ;;  %v14153_v31 = vadd.f32 %v3661_v46, %v3448_v50  ;;  %11412 = vmatprep.mubr.msk.f32.mxu0 %vm1064_vm1, %v14138_v53  ;;  %11594 = vmatprep.mubr.msk.f32.mxu1 %vm1064_vm1, %v14158_v61  ;;  %v14170_v50 = vld [vmem:[%s12948_s27 + $0x378] sm:$0xff]  ;;  %v17056_v46 = vld [vmem:[#allocation8_spill] sm:$0xff] }
 0x21c   : > { %v2875_v37 = vpop.f32.mrf.mxu0  ;;  %v3671_v47 = vpop.f32.mrf.mxu1  ;;  %17055 = vst [vmem:[#allocation80_spill] sm:$0xff] %v14170_v50 }
 0x21d   : > { %17051 = vst [vmem:[#allocation6_spill] sm:$0xff] %v14153_v31  ;;  %v3450_v49 = vadd.f32 %v2875_v37, %v17052_v41  ;;  %v14163_v35 = vadd.f32 %v11449_v45, %v3451_v43  ;;  %v14182_v45 = vld [vmem:[%s12948_s27 + $0x380] sm:$0xff]  ;;  %v17061_v41 = vld [vmem:[#allocation9_spill] sm:$0xff] }
 0x21e   : > { %v11270_v58 = vpop.f32.mrf.mxu0  ;;  %11413 = vmatmul.mubr.msk.f32.gmra.mxu0 %vm1064_vm1, %v14148_v39  ;;  %v14167_v51 = vpop.f32.mrf.mxu1  ;;  %11595 = vmatmul.mubr.msk.f32.gmra.mxu1 %vm1064_vm1, %v14170_v50  ;;  %17059 = vst [vmem:[#allocation82_spill] sm:$0xff] %v14182_v45 }
 0x21f   : > { %17053 = vst [vmem:[#allocation7_spill] sm:$0xff] %v14163_v35  ;;  %17054 = vst [vmem:[#allocation79_spill] sm:$0xff] %v14167_v51  ;;  %v14175_v33 = vadd.f32 %v11270_v58, %v17056_v46  ;;  %v14177_v31 = vadd.f32 %v3671_v47, %v3450_v49  ;;  %11415 = vmatprep.mubr.msk.f32.mxu0 %vm1064_vm1, %v14158_v61  ;;  %11597 = vmatprep.mubr.msk.f32.mxu1 %vm1064_vm1, %v14182_v45  ;;  %v14196_v58 = vld [vmem:[%s12948_s27 + $0x388] sm:$0xff]  ;;  %v17065_v47 = vld [vmem:[#allocation10_spill] sm:$0xff] }
 0x220   : > { %v2885_v43 = vpop.f32.mrf.mxu0  ;;  %v14186_v37 = vpop.f32.mrf.mxu1  ;;  %17064 = vst [vmem:[#allocation85_spill] sm:$0xff] %v14196_v58 }
 0x221   : > { %17057 = vst [vmem:[#allocation8_spill] sm:$0xff] %v14175_v33  ;;  %17058 = vst [vmem:[#allocation81_spill] sm:$0xff] %v14177_v31  ;;  %v14189_v51 = vadd.f32 %v2885_v43, %v17061_v41  ;;  %v14206_v43 = vld [vmem:[%s12948_s27 + $0x390] sm:$0xff] }
 0x222   : > { %17060 = vst [vmem:[#allocation83_spill] sm:$0xff] %v14186_v37  ;;  %v11273_v35 = vpop.f32.mrf.mxu0  ;;  %11416 = vmatmul.mubr.msk.f32.gmra.mxu0 %vm1064_vm1, %v14170_v50  ;;  %v14193_v49 = vpop.f32.mrf.mxu1  ;;  %11598 = vmatmul.mubr.msk.f32.gmra.mxu1 %vm1064_vm1, %v14196_v58  ;;  %17067 = vst [vmem:[#allocation86_spill] sm:$0xff] %v14206_v43 }
 0x223   : > { %17062 = vst [vmem:[#allocation9_spill] sm:$0xff] %v14189_v51  ;;  %17063 = vst [vmem:[#allocation84_spill] sm:$0xff] %v14193_v49  ;;  %v14201_v46 = vadd.f32 %v11273_v35, %v17065_v47  ;;  %11418 = vmatprep.mubr.msk.f32.mxu0 %vm1064_vm1, %v14182_v45  ;;  %11600 = vmatprep.mubr.msk.f32.mxu1 %vm1064_vm1, %v14206_v43  ;;  %v17069_v49 = vld [vmem:[#allocation11_spill] sm:$0xff]  ;;  %v14220_v47 = vld [vmem:[%s12948_s27 + $0x398] sm:$0xff] }
 0x224   : > { %v2895_v41 = vpop.f32.mrf.mxu0  ;;  %v14210_v37 = vpop.f32.mrf.mxu1  ;;  %17072 = vst [vmem:[#allocation89_spill] sm:$0xff] %v14220_v47 }
 0x225   : > { %17066 = vst [vmem:[#allocation10_spill] sm:$0xff] %v14201_v46  ;;  %17068 = vst [vmem:[#allocation87_spill] sm:$0xff] %v14210_v37  ;;  %v14213_v51 = vadd.f32 %v2895_v41, %v17069_v49  ;;  %v17073_v46 = vld [vmem:[#allocation12_spill] sm:$0xff]  ;;  %v14230_v49 = vld [vmem:[%s12948_s27 + $0x3a0] sm:$0xff] }
 0x226   : > { %v11276_v31 = vpop.f32.mrf.mxu0  ;;  %11419 = vmatmul.mubr.msk.f32.gmra.mxu0 %vm1064_vm1, %v14196_v58  ;;  %v14217_v35 = vpop.f32.mrf.mxu1  ;;  %11601 = vmatmul.mubr.msk.f32.gmra.mxu1 %vm1064_vm1, %v14220_v47  ;;  %17075 = vst [vmem:[#allocation90_spill] sm:$0xff] %v14230_v49 }
 0x227   : > { %17070 = vst [vmem:[#allocation11_spill] sm:$0xff] %v14213_v51  ;;  %17071 = vst [vmem:[#allocation88_spill] sm:$0xff] %v14217_v35  ;;  %v14225_v33 = vadd.f32 %v11276_v31, %v17073_v46  ;;  %11421 = vmatprep.mubr.msk.f32.mxu0 %vm1064_vm1, %v14206_v43  ;;  %11603 = vmatprep.mubr.msk.f32.mxu1 %vm1064_vm1, %v14230_v49  ;;  %v17077_v35 = vld [vmem:[#allocation13_spill] sm:$0xff]  ;;  %v14244_v46 = vld [vmem:[%s12948_s27 + $0x3a8] sm:$0xff] }
 0x228   : > { %v2905_v41 = vpop.f32.mrf.mxu0  ;;  %v14234_v37 = vpop.f32.mrf.mxu1  ;;  %17080 = vst [vmem:[#allocation93_spill] sm:$0xff] %v14244_v46 }
 0x229   : > { %17074 = vst [vmem:[#allocation12_spill] sm:$0xff] %v14225_v33  ;;  %17076 = vst [vmem:[#allocation91_spill] sm:$0xff] %v14234_v37  ;;  %v14237_v51 = vadd.f32 %v2905_v41, %v17077_v35  ;;  %v17081_v33 = vld [vmem:[#allocation14_spill] sm:$0xff]  ;;  %v12446_v35 = vld [vmem:[%s12948_s27 + $0x3b0] sm:$0xff] }
 0x22a   : > { %v11279_v58 = vpop.f32.mrf.mxu0  ;;  %11422 = vmatmul.mubr.msk.f32.gmra.mxu0 %vm1064_vm1, %v14220_v47  ;;  %v14241_v31 = vpop.f32.mrf.mxu1  ;;  %11604 = vmatmul.mubr.msk.f32.gmra.mxu1 %vm1064_vm1, %v14244_v46 }
 0x22b   : > { %17078 = vst [vmem:[#allocation13_spill] sm:$0xff] %v14237_v51  ;;  %17079 = vst [vmem:[#allocation92_spill] sm:$0xff] %v14241_v31  ;;  %v14249_v43 = vadd.f32 %v11279_v58, %v17081_v33  ;;  %11424 = vmatprep.mubr.msk.f32.mxu0 %vm1064_vm1, %v14230_v49  ;;  %11606 = vmatprep.mubr.msk.f32.mxu1 %vm1064_vm1, %v12446_v35  ;;  %v17084_v31 = vld [vmem:[#allocation15_spill] sm:$0xff]  ;;  %v12447_v58 = vld [vmem:[%s12948_s27 + $0x3b8] sm:$0xff] }
 0x22c   : > { %v2915_v41 = vpop.f32.mrf.mxu0  ;;  %v14255_v37 = vpop.f32.mrf.mxu1 }
 0x22d   : > { %17082 = vst [vmem:[#allocation14_spill] sm:$0xff] %v14249_v43  ;;  %17083 = vst [vmem:[#allocation94_spill] sm:$0xff] %v14255_v37  ;;  %v14258_v51 = vadd.f32 %v2915_v41, %v17084_v31  ;;  %v17087_v43 = vld [vmem:[#allocation16_spill] sm:$0xff]  ;;  %v12448_v37 = vld [vmem:[%s12948_s27 + $0x3c0] sm:$0xff] }
 0x22e   : > { %v11282_v47 = vpop.f32.mrf.mxu0  ;;  %11425 = vmatmul.mubr.msk.f32.gmra.mxu0 %vm1064_vm1, %v14244_v46  ;;  %v14262_v33 = vpop.f32.mrf.mxu1  ;;  %11607 = vmatmul.mubr.msk.f32.gmra.mxu1 %vm1064_vm1, %v12447_v58  ;;  %v17090_v46 = vld [vmem:[#allocation17_spill] sm:$0xff] }
 0x22f   : > { %17085 = vst [vmem:[#allocation15_spill] sm:$0xff] %v14258_v51  ;;  %17086 = vst [vmem:[#allocation95_spill] sm:$0xff] %v14262_v33  ;;  %v14267_v49 = vadd.f32 %v11282_v47, %v17087_v43  ;;  %11427 = vmatprep.mubr.msk.f32.mxu0 %vm1064_vm1, %v12446_v35  ;;  %11609 = vmatprep.mubr.msk.f32.mxu1 %vm1064_vm1, %v12448_v37  ;;  %v1055_v51 = vld [vmem:[%s12948_s27 + $0x3d0] sm:$0xff]  ;;  %v12449_v43 = vld [vmem:[%s12948_s27 + $0x3c8] sm:$0xff] }
 0x230   : > { %v2925_v31 = vpop.f32.mrf.mxu0  ;;  %v14272_v41 = vpop.f32.mrf.mxu1  ;;  %v17093_v47 = vld [vmem:[#allocation18_spill] sm:$0xff] }
 0x231   : > { %17088 = vst [vmem:[#allocation16_spill] sm:$0xff] %v14267_v49  ;;  %17089 = vst [vmem:[#allocation96_spill] sm:$0xff] %v14272_v41  ;;  %v14276_v45 = vadd.f32 %v2925_v31, %v17090_v46  ;;  %v1056_v41 = vld [vmem:[%s12948_s27 + $0x3d8] sm:$0xff]  ;;  %v1057_v31 = vld [vmem:[%s12948_s27 + $0x3e0] sm:$0xff] }
 0x232   : > { %v11285_v33 = vpop.f32.mrf.mxu0  ;;  %11428 = vmatmul.mubr.msk.f32.gmra.mxu0 %vm1064_vm1, %v12447_v58  ;;  %v14279_v50 = vpop.f32.mrf.mxu1  ;;  %11610 = vmatmul.mubr.msk.f32.gmra.mxu1 %vm1064_vm1, %v12449_v43 }
 0x233   : > { %17091 = vst [vmem:[#allocation17_spill] sm:$0xff] %v14276_v45  ;;  %17092 = vst [vmem:[#allocation97_spill] sm:$0xff] %v14279_v50  ;;  %v14284_v35 = vadd.f32 %v11285_v33, %v17093_v47  ;;  %11430 = vmatprep.mubr.msk.f32.mxu0 %vm1064_vm1, %v12448_v37  ;;  %11612 = vmatprep.mubr.msk.f32.mxu1 %vm1064_vm1, %v1055_v51  ;;  %v1058_v33 = vld [vmem:[%s12948_s27 + $0x3e8] sm:$0xff] }
 0x234   : > { %v2935_v49 = vpop.f32.mrf.mxu0  ;;  %v14289_v46 = vpop.f32.mrf.mxu1 }
 0x235   : > { %v14293_v58 = vadd.f32 %v2935_v49, %v13537_v3 }
 0x236   : > { %v11288_v50 = vpop.f32.mrf.mxu0  ;;  %11431 = vmatmul.mubr.msk.f32.gmra.mxu0 %vm1064_vm1, %v12449_v43  ;;  %v14296_v45 = vpop.f32.mrf.mxu1  ;;  %11613 = vmatmul.mubr.msk.f32.gmra.mxu1 %vm1064_vm1, %v1056_v41 }
 0x237   : > { %17094 = vst [vmem:[#allocation18_spill] sm:$0xff] %v14296_v45  ;;  %v14300_v37 = vadd.f32 %v11288_v50, %v13541_v54  ;;  %11433 = vmatprep.mubr.msk.f32.mxu0 %vm1064_vm1, %v1055_v51  ;;  %11615 = vmatprep.mubr.msk.f32.mxu1 %vm1064_vm1, %v1057_v31  ;;  %v12450_v51 = vld [vmem:[%s12948_s27 + $0x40] sm:$0xff] }
 0x238   : > { %v2945_v47 = vpop.f32.mrf.mxu0  ;;  %v14305_v3 = vpop.f32.mrf.mxu1 }
 0x239   : > { %v14308_v49 = vadd.f32 %v2945_v47, %v13546_v4 }
 0x23a   : > { %v11291_v43 = vpop.f32.mrf.mxu0  ;;  %11434 = vmatmul.mubr.msk.f32.gmra.mxu0 %vm1064_vm1, %v1056_v41  ;;  %v14311_v45 = vpop.f32.mrf.mxu1  ;;  %11616 = vmatmul.mubr.msk.f32.gmra.mxu1 %vm1064_vm1, %v1058_v33  ;;  %v12451_v41 = vld [vmem:[%s12948_s27 + $0x48] sm:$0xff]  ;;  %v12452_v33 = vld [vmem:[%s12948_s27 + $0x50] sm:$0xff] }
 0x23b   : > { %17095 = vst [vmem:[#allocation98_spill] sm:$0xff] %v14311_v45  ;;  %v14315_v54 = vadd.f32 %v11291_v43, %v13550_v52  ;;  %11620 = vmatprep.mubr.msk.f32.mxu0 %vm1064_vm1, %v12450_v51 }
 0x23c   : > { %v2955_v50 = vpop.f32.mrf.mxu0  ;;  %v14319_v31 = vpop.f32.mrf.mxu1 }
 0x23d   : > { %17096 = vst [vmem:[#allocation99_spill] sm:$0xff] %v14319_v31  ;;  %v14322_v4 = vadd.f32 %v2955_v50, %v13556_v62  ;;  %v12453_v31 = vld [vmem:[%s12948_s27 + $0x58] sm:$0xff] }
 0x23e   : > { %v11294_v47 = vpop.f32.mrf.mxu0  ;;  %11621 = vmatmul.mubr.msk.f32.vlgmr.msra.gmra.mxu0 %vm1064_vm1, %v12451_v41  ;;  %v14326_v45 = vpop.f32.mrf.mxu1 }
 0x23f   : > { %17097 = vst [vmem:[#allocation100_spill] sm:$0xff] %v14326_v45  ;;  %v14329_v52 = vadd.f32 %v11294_v47, %v13562_v6  ;;  %11623 = vmatprep.mubr.msk.f32.mxu0 %vm1064_vm1, %v12452_v33  ;;  %v12454_v47 = vld [vmem:[%s12948_s27 + $0x60] sm:$0xff] }
 0x240   : > { %v2965_v43 = vpop.f32.mrf.mxu0  ;;  %v14333_v51 = vpop.f32.mrf.mxu1 }
 0x241   : > { %17098 = vst [vmem:[#allocation101_spill] sm:$0xff] %v14333_v51  ;;  %v14336_v62 = vadd.f32 %v2965_v43, %v13570_v55  ;;  %v12455_v51 = vld [vmem:[%s12948_s27 + $0x68] sm:$0xff] }
 0x242   : > { %v11297_v50 = vpop.f32.mrf.mxu0  ;;  %11624 = vmatmul.mubr.msk.f32.gmra.mxu0 %vm1064_vm1, %v12453_v31  ;;  %v14340_v41 = vpop.f32.mrf.mxu1 }
 0x243   : > { %17099 = vst [vmem:[#allocation102_spill] sm:$0xff] %v14340_v41  ;;  %v14343_v6 = vadd.f32 %v11297_v50, %v13576_v0  ;;  %11626 = vmatprep.mubr.msk.f32.mxu0 %vm1064_vm1, %v12454_v47  ;;  %v12456_v50 = vld [vmem:[%s12948_s27 + $0x70] sm:$0xff] }
 0x244   : > { %v2975_v33 = vpop.f32.mrf.mxu0  ;;  %v14347_v45 = vpop.f32.mrf.mxu1 }
 0x245   : > { %17100 = vst [vmem:[#allocation103_spill] sm:$0xff] %v14347_v45  ;;  %v14350_v55 = vadd.f32 %v2975_v33, %v13582_v60  ;;  %v12457_v45 = vld [vmem:[%s12948_s27 + $0x78] sm:$0xff] }
 0x246   : > { %v11300_v43 = vpop.f32.mrf.mxu0  ;;  %11627 = vmatmul.mubr.msk.f32.gmra.mxu0 %vm1064_vm1, %v12455_v51  ;;  %v14354_v31 = vpop.f32.mrf.mxu1 }
 0x247   : > { %17101 = vst [vmem:[#allocation104_spill] sm:$0xff] %v14354_v31  ;;  %v14357_v0 = vadd.f32 %v11300_v43, %v13588_v10  ;;  %11629 = vmatprep.mubr.msk.f32.mxu0 %vm1064_vm1, %v12456_v50  ;;  %v12458_v43 = vld [vmem:[%s12948_s27 + $0x80] sm:$0xff] }
 0x248   : > { %v2985_v47 = vpop.f32.mrf.mxu0  ;;  %v14361_v41 = vpop.f32.mrf.mxu1 }
 0x249   : > { %17102 = vst [vmem:[#allocation105_spill] sm:$0xff] %v14361_v41  ;;  %v14364_v60 = vadd.f32 %v2985_v47, %v13594_v56  ;;  %v12459_v41 = vld [vmem:[%s12948_s27 + $0x88] sm:$0xff] }
 0x24a   : > { %v11303_v33 = vpop.f32.mrf.mxu0  ;;  %11630 = vmatmul.mubr.msk.f32.gmra.mxu0 %vm1064_vm1, %v12457_v45  ;;  %v14368_v51 = vpop.f32.mrf.mxu1 }
 0x24b   : > { %17103 = vst [vmem:[#allocation106_spill] sm:$0xff] %v14368_v51  ;;  %v14371_v10 = vadd.f32 %v11303_v33, %v13600_v12  ;;  %11632 = vmatprep.mubr.msk.f32.mxu0 %vm1064_vm1, %v12458_v43  ;;  %v12460_v33 = vld [vmem:[%s12948_s27 + $0x90] sm:$0xff] }
 0x24c   : > { %v2995_v50 = vpop.f32.mrf.mxu0  ;;  %v14375_v31 = vpop.f32.mrf.mxu1 }
 0x24d   : > { %17104 = vst [vmem:[#allocation107_spill] sm:$0xff] %v14375_v31  ;;  %v14378_v56 = vadd.f32 %v2995_v50, %v13606_v8  ;;  %v12461_v31 = vld [vmem:[%s12948_s27 + $0x98] sm:$0xff] }
 0x24e   : > { %v11306_v47 = vpop.f32.mrf.mxu0  ;;  %11633 = vmatmul.mubr.msk.f32.gmra.mxu0 %vm1064_vm1, %v12459_v41  ;;  %v14382_v45 = vpop.f32.mrf.mxu1 }
 0x24f   : > { %17105 = vst [vmem:[#allocation108_spill] sm:$0xff] %v14382_v45  ;;  %v14385_v12 = vadd.f32 %v11306_v47, %v13612_v14  ;;  %11635 = vmatprep.mubr.msk.f32.mxu0 %vm1064_vm1, %v12460_v33  ;;  %v12462_v47 = vld [vmem:[%s12948_s27 + $0xa0] sm:$0xff] }
 0x250   : > { %v3005_v43 = vpop.f32.mrf.mxu0  ;;  %v14389_v51 = vpop.f32.mrf.mxu1 }
 0x251   : > { %17106 = vst [vmem:[#allocation109_spill] sm:$0xff] %v14389_v51  ;;  %v14392_v8 = vadd.f32 %v3005_v43, %v13618_v59  ;;  %v12463_v51 = vld [vmem:[%s12948_s27 + $0xa8] sm:$0xff] }
 0x252   : > { %v11309_v50 = vpop.f32.mrf.mxu0  ;;  %11636 = vmatmul.mubr.msk.f32.gmra.mxu0 %vm1064_vm1, %v12461_v31  ;;  %v14396_v41 = vpop.f32.mrf.mxu1 }
 0x253   : > { %17107 = vst [vmem:[#allocation110_spill] sm:$0xff] %v14396_v41  ;;  %v14399_v14 = vadd.f32 %v11309_v50, %v13624_v16  ;;  %11638 = vmatprep.mubr.msk.f32.mxu0 %vm1064_vm1, %v12462_v47  ;;  %v12464_v50 = vld [vmem:[%s12948_s27 + $0xb0] sm:$0xff] }
 0x254   : > { %v3015_v33 = vpop.f32.mrf.mxu0  ;;  %v14403_v45 = vpop.f32.mrf.mxu1 }
 0x255   : > { %17108 = vst [vmem:[#allocation111_spill] sm:$0xff] %v14403_v45  ;;  %v14406_v59 = vadd.f32 %v3015_v33, %v13630_v5  ;;  %v12465_v45 = vld [vmem:[%s12948_s27 + $0xb8] sm:$0xff] }
 0x256   : > { %v11312_v43 = vpop.f32.mrf.mxu0  ;;  %11639 = vmatmul.mubr.msk.f32.gmra.mxu0 %vm1064_vm1, %v12463_v51  ;;  %v14410_v31 = vpop.f32.mrf.mxu1 }
 0x257   : > { %17109 = vst [vmem:[#allocation112_spill] sm:$0xff] %v14410_v31  ;;  %v14413_v16 = vadd.f32 %v11312_v43, %v13636_v18  ;;  %11641 = vmatprep.mubr.msk.f32.mxu0 %vm1064_vm1, %v12464_v50  ;;  %v12466_v43 = vld [vmem:[%s12948_s27 + $0xc0] sm:$0xff] }
 0x258   : > { %v3025_v47 = vpop.f32.mrf.mxu0  ;;  %v14417_v41 = vpop.f32.mrf.mxu1 }
 0x259   : > { %17110 = vst [vmem:[#allocation113_spill] sm:$0xff] %v14417_v41  ;;  %v14420_v5 = vadd.f32 %v3025_v47, %v13642_v1  ;;  %v12467_v41 = vld [vmem:[%s12948_s27 + $0xc8] sm:$0xff] }
 0x25a   : > { %v11315_v33 = vpop.f32.mrf.mxu0  ;;  %11642 = vmatmul.mubr.msk.f32.gmra.mxu0 %vm1064_vm1, %v12465_v45  ;;  %v14424_v51 = vpop.f32.mrf.mxu1 }
 0x25b   : > { %17111 = vst [vmem:[#allocation114_spill] sm:$0xff] %v14424_v51  ;;  %v14427_v18 = vadd.f32 %v11315_v33, %v13648_v20  ;;  %11644 = vmatprep.mubr.msk.f32.mxu0 %vm1064_vm1, %v12466_v43  ;;  %v12468_v33 = vld [vmem:[%s12948_s27 + $0xd0] sm:$0xff] }
 0x25c   : > { %v3035_v50 = vpop.f32.mrf.mxu0  ;;  %v14431_v31 = vpop.f32.mrf.mxu1 }
 0x25d   : > { %17112 = vst [vmem:[#allocation115_spill] sm:$0xff] %v14431_v31  ;;  %v14434_v1 = vadd.f32 %v3035_v50, %v13654_v63  ;;  %v12469_v31 = vld [vmem:[%s12948_s27 + $0xd8] sm:$0xff] }
 0x25e   : > { %v11318_v47 = vpop.f32.mrf.mxu0  ;;  %11645 = vmatmul.mubr.msk.f32.gmra.mxu0 %vm1064_vm1, %v12467_v41  ;;  %v14438_v45 = vpop.f32.mrf.mxu1 }
 0x25f   : > { %17113 = vst [vmem:[#allocation116_spill] sm:$0xff] %v14438_v45  ;;  %v14441_v20 = vadd.f32 %v11318_v47, %v13660_v22  ;;  %11647 = vmatprep.mubr.msk.f32.mxu0 %vm1064_vm1, %v12468_v33  ;;  %v12470_v47 = vld [vmem:[%s12948_s27 + $0xe0] sm:$0xff] }
 0x260   : > { %v3045_v43 = vpop.f32.mrf.mxu0  ;;  %v14445_v51 = vpop.f32.mrf.mxu1 }
 0x261   : > { %17114 = vst [vmem:[#allocation117_spill] sm:$0xff] %v14445_v51  ;;  %v14448_v63 = vadd.f32 %v3045_v43, %v13666_v57  ;;  %v12471_v51 = vld [vmem:[%s12948_s27 + $0xe8] sm:$0xff] }
 0x262   : > { %v11321_v50 = vpop.f32.mrf.mxu0  ;;  %11648 = vmatmul.mubr.msk.f32.gmra.mxu0 %vm1064_vm1, %v12469_v31  ;;  %v14452_v41 = vpop.f32.mrf.mxu1 }
 0x263   : > { %17115 = vst [vmem:[#allocation118_spill] sm:$0xff] %v14452_v41  ;;  %v14455_v22 = vadd.f32 %v11321_v50, %v13672_v24  ;;  %11650 = vmatprep.mubr.msk.f32.mxu0 %vm1064_vm1, %v12470_v47  ;;  %v12472_v50 = vld [vmem:[%s12948_s27 + $0xf0] sm:$0xff] }
 0x264   : > { %v3055_v33 = vpop.f32.mrf.mxu0  ;;  %v14459_v45 = vpop.f32.mrf.mxu1 }
 0x265   : > { %17116 = vst [vmem:[#allocation119_spill] sm:$0xff] %v14459_v45  ;;  %v14462_v57 = vadd.f32 %v3055_v33, %v13678_v2  ;;  %v12473_v45 = vld [vmem:[%s12948_s27 + $0xf8] sm:$0xff] }
 0x266   : > { %v11324_v43 = vpop.f32.mrf.mxu0  ;;  %11651 = vmatmul.mubr.msk.f32.gmra.mxu0 %vm1064_vm1, %v12471_v51  ;;  %v14466_v31 = vpop.f32.mrf.mxu1 }
 0x267   : > { %17117 = vst [vmem:[#allocation120_spill] sm:$0xff] %v14466_v31  ;;  %v14469_v24 = vadd.f32 %v11324_v43, %v13684_v26  ;;  %11653 = vmatprep.mubr.msk.f32.mxu0 %vm1064_vm1, %v12472_v50  ;;  %v12474_v43 = vld [vmem:[%s12948_s27 + $0x100] sm:$0xff] }
 0x268   : > { %v3065_v47 = vpop.f32.mrf.mxu0  ;;  %v14473_v41 = vpop.f32.mrf.mxu1 }
 0x269   : > { %17118 = vst [vmem:[#allocation121_spill] sm:$0xff] %v14473_v41  ;;  %v14476_v2 = vadd.f32 %v3065_v47, %v13690_v7  ;;  %v12475_v41 = vld [vmem:[%s12948_s27 + $0x108] sm:$0xff] }
 0x26a   : > { %v11327_v33 = vpop.f32.mrf.mxu0  ;;  %11654 = vmatmul.mubr.msk.f32.gmra.mxu0 %vm1064_vm1, %v12473_v45  ;;  %v14480_v51 = vpop.f32.mrf.mxu1 }
 0x26b   : > { %17119 = vst [vmem:[#allocation122_spill] sm:$0xff] %v14480_v51  ;;  %v14483_v26 = vadd.f32 %v11327_v33, %v13696_v28  ;;  %11656 = vmatprep.mubr.msk.f32.mxu0 %vm1064_vm1, %v12474_v43  ;;  %v12476_v33 = vld [vmem:[%s12948_s27 + $0x110] sm:$0xff] }
 0x26c   : > { %v3075_v50 = vpop.f32.mrf.mxu0  ;;  %v14487_v31 = vpop.f32.mrf.mxu1 }
 0x26d   : > { %17120 = vst [vmem:[#allocation123_spill] sm:$0xff] %v14487_v31  ;;  %v14490_v7 = vadd.f32 %v3075_v50, %v13702_v9  ;;  %v12477_v31 = vld [vmem:[%s12948_s27 + $0x118] sm:$0xff] }
 0x26e   : > { %v11330_v47 = vpop.f32.mrf.mxu0  ;;  %11657 = vmatmul.mubr.msk.f32.gmra.mxu0 %vm1064_vm1, %v12475_v41  ;;  %v14494_v45 = vpop.f32.mrf.mxu1 }
 0x26f   : > { %17121 = vst [vmem:[#allocation124_spill] sm:$0xff] %v14494_v45  ;;  %v14497_v28 = vadd.f32 %v11330_v47, %v13708_v30  ;;  %11659 = vmatprep.mubr.msk.f32.mxu0 %vm1064_vm1, %v12476_v33  ;;  %v12478_v47 = vld [vmem:[%s12948_s27 + $0x120] sm:$0xff] }
 0x270   : > { %v3085_v43 = vpop.f32.mrf.mxu0  ;;  %v14501_v51 = vpop.f32.mrf.mxu1 }
 0x271   : > { %17122 = vst [vmem:[#allocation125_spill] sm:$0xff] %v14501_v51  ;;  %v14504_v9 = vadd.f32 %v3085_v43, %v13714_v11  ;;  %v12479_v51 = vld [vmem:[%s12948_s27 + $0x128] sm:$0xff] }
 0x272   : > { %v11333_v50 = vpop.f32.mrf.mxu0  ;;  %11660 = vmatmul.mubr.msk.f32.gmra.mxu0 %vm1064_vm1, %v12477_v31  ;;  %v14508_v41 = vpop.f32.mrf.mxu1 }
 0x273   : > { %17123 = vst [vmem:[#allocation126_spill] sm:$0xff] %v14508_v41  ;;  %v14511_v30 = vadd.f32 %v11333_v50, %v13720_v32  ;;  %11662 = vmatprep.mubr.msk.f32.mxu0 %vm1064_vm1, %v12478_v47  ;;  %v12480_v50 = vld [vmem:[%s12948_s27 + $0x130] sm:$0xff] }
 0x274   : > { %v3095_v33 = vpop.f32.mrf.mxu0  ;;  %v14515_v45 = vpop.f32.mrf.mxu1 }
 0x275   : > { %17124 = vst [vmem:[#allocation127_spill] sm:$0xff] %v14515_v45  ;;  %v14518_v11 = vadd.f32 %v3095_v33, %v13726_v13  ;;  %v12481_v45 = vld [vmem:[%s12948_s27 + $0x138] sm:$0xff] }
 0x276   : > { %v11336_v43 = vpop.f32.mrf.mxu0  ;;  %11663 = vmatmul.mubr.msk.f32.gmra.mxu0 %vm1064_vm1, %v12479_v51  ;;  %v14522_v31 = vpop.f32.mrf.mxu1 }
 0x277   : > { %17125 = vst [vmem:[#allocation128_spill] sm:$0xff] %v14522_v31  ;;  %v14525_v32 = vadd.f32 %v11336_v43, %v13732_v34  ;;  %11665 = vmatprep.mubr.msk.f32.mxu0 %vm1064_vm1, %v12480_v50  ;;  %v12482_v43 = vld [vmem:[%s12948_s27 + $0x140] sm:$0xff] }
 0x278   : > { %v3105_v47 = vpop.f32.mrf.mxu0  ;;  %v14529_v41 = vpop.f32.mrf.mxu1 }
 0x279   : > { %17126 = vst [vmem:[#allocation129_spill] sm:$0xff] %v14529_v41  ;;  %v14532_v13 = vadd.f32 %v3105_v47, %v13738_v15  ;;  %v12483_v41 = vld [vmem:[%s12948_s27 + $0x148] sm:$0xff] }
 0x27a   : > { %v11339_v33 = vpop.f32.mrf.mxu0  ;;  %11666 = vmatmul.mubr.msk.f32.gmra.mxu0 %vm1064_vm1, %v12481_v45  ;;  %v14536_v51 = vpop.f32.mrf.mxu1 }
 0x27b   : > { %17127 = vst [vmem:[#allocation130_spill] sm:$0xff] %v14536_v51  ;;  %v14539_v34 = vadd.f32 %v11339_v33, %v13744_v36  ;;  %11668 = vmatprep.mubr.msk.f32.mxu0 %vm1064_vm1, %v12482_v43  ;;  %v12484_v33 = vld [vmem:[%s12948_s27 + $0x150] sm:$0xff] }
 0x27c   : > { %v3115_v50 = vpop.f32.mrf.mxu0  ;;  %v14543_v31 = vpop.f32.mrf.mxu1 }
 0x27d   : > { %17128 = vst [vmem:[#allocation131_spill] sm:$0xff] %v14543_v31  ;;  %v14546_v15 = vadd.f32 %v3115_v50, %v13750_v17  ;;  %v12485_v31 = vld [vmem:[%s12948_s27 + $0x158] sm:$0xff] }
 0x27e   : > { %v11342_v47 = vpop.f32.mrf.mxu0  ;;  %11669 = vmatmul.mubr.msk.f32.gmra.mxu0 %vm1064_vm1, %v12483_v41  ;;  %v14550_v45 = vpop.f32.mrf.mxu1 }
 0x27f   : > { %17129 = vst [vmem:[#allocation132_spill] sm:$0xff] %v14546_v15  ;;  %17130 = vst [vmem:[#allocation133_spill] sm:$0xff] %v14550_v45  ;;  %v14553_v36 = vadd.f32 %v11342_v47, %v13756_v38  ;;  %11671 = vmatprep.mubr.msk.f32.mxu0 %vm1064_vm1, %v12484_v33  ;;  %v12486_v47 = vld [vmem:[%s12948_s27 + $0x160] sm:$0xff]  ;;  %v17333_v15 = vld [vmem:[#allocation89_spill] sm:$0xff] }
 0x280   : > { %v3125_v43 = vpop.f32.mrf.mxu0  ;;  %v14557_v51 = vpop.f32.mrf.mxu1 }
 0x281   : > { %17131 = vst [vmem:[#allocation134_spill] sm:$0xff] %v14553_v36  ;;  %17132 = vst [vmem:[#allocation135_spill] sm:$0xff] %v14557_v51  ;;  %v14560_v17 = vadd.f32 %v3125_v43, %v13762_v19  ;;  %v12487_v51 = vld [vmem:[%s12948_s27 + $0x168] sm:$0xff] }
 0x282   : > { %v11345_v50 = vpop.f32.mrf.mxu0  ;;  %11672 = vmatmul.mubr.msk.f32.gmra.mxu0 %vm1064_vm1, %v12485_v31  ;;  %v14564_v41 = vpop.f32.mrf.mxu1 }
 0x283   : > { %17133 = vst [vmem:[#allocation136_spill] sm:$0xff] %v14560_v17  ;;  %17134 = vst [vmem:[#allocation137_spill] sm:$0xff] %v14564_v41  ;;  %v14567_v38 = vadd.f32 %v11345_v50, %v13768_v40  ;;  %11674 = vmatprep.mubr.msk.f32.mxu0 %vm1064_vm1, %v12486_v47  ;;  %v12488_v50 = vld [vmem:[%s12948_s27 + $0x170] sm:$0xff]  ;;  %v17330_v17 = vld [vmem:[#allocation86_spill] sm:$0xff] }
 0x284   : > { %v3135_v33 = vpop.f32.mrf.mxu0  ;;  %v14571_v45 = vpop.f32.mrf.mxu1 }
 0x285   : > { %17135 = vst [vmem:[#allocation138_spill] sm:$0xff] %v14567_v38  ;;  %17136 = vst [vmem:[#allocation139_spill] sm:$0xff] %v14571_v45  ;;  %v14574_v19 = vadd.f32 %v3135_v33, %v13774_v21  ;;  %v12489_v45 = vld [vmem:[%s12948_s27 + $0x178] sm:$0xff]  ;;  %v17320_v38 = vld [vmem:[#allocation80_spill] sm:$0xff] }
 0x286   : > { %v11348_v43 = vpop.f32.mrf.mxu0  ;;  %11675 = vmatmul.mubr.msk.f32.gmra.mxu0 %vm1064_vm1, %v12487_v51  ;;  %v14578_v31 = vpop.f32.mrf.mxu1 }
 0x287   : > { %17137 = vst [vmem:[#allocation140_spill] sm:$0xff] %v14574_v19  ;;  %17138 = vst [vmem:[#allocation141_spill] sm:$0xff] %v14578_v31  ;;  %v14581_v40 = vadd.f32 %v11348_v43, %v13780_v42  ;;  %11677 = vmatprep.mubr.msk.f32.mxu0 %vm1064_vm1, %v12488_v50  ;;  %v12490_v43 = vld [vmem:[%s12948_s27 + $0x180] sm:$0xff]  ;;  %v17319_v19 = vld [vmem:[#allocation6_spill] sm:$0xff] }
 0x288   : > { %v3145_v47 = vpop.f32.mrf.mxu0  ;;  %v14585_v41 = vpop.f32.mrf.mxu1 }
 0x289   : > { %17139 = vst [vmem:[#allocation142_spill] sm:$0xff] %v14581_v40  ;;  %17140 = vst [vmem:[#allocation143_spill] sm:$0xff] %v14585_v41  ;;  %v14588_v21 = vadd.f32 %v3145_v47, %v13786_v23  ;;  %v12491_v41 = vld [vmem:[%s12948_s27 + $0x188] sm:$0xff] }
 0x28a   : > { %v11351_v33 = vpop.f32.mrf.mxu0  ;;  %11678 = vmatmul.mubr.msk.f32.gmra.mxu0 %vm1064_vm1, %v12489_v45  ;;  %v14592_v51 = vpop.f32.mrf.mxu1 }
 0x28b   : > { %17141 = vst [vmem:[#allocation144_spill] sm:$0xff] %v14588_v21  ;;  %17142 = vst [vmem:[#allocation145_spill] sm:$0xff] %v14592_v51  ;;  %v14595_v42 = vadd.f32 %v11351_v33, %v13792_v44  ;;  %11680 = vmatprep.mubr.msk.f32.mxu0 %vm1064_vm1, %v12490_v43  ;;  %v12492_v33 = vld [vmem:[%s12948_s27 + $0x190] sm:$0xff] }
 0x28c   : > { %v3155_v50 = vpop.f32.mrf.mxu0  ;;  %v14599_v31 = vpop.f32.mrf.mxu1  ;;  %v17306_v21 = vld [vmem:[#allocation73_spill] sm:$0xff] }
 0x28d   : > { %17143 = vst [vmem:[#allocation146_spill] sm:$0xff] %v14595_v42  ;;  %17144 = vst [vmem:[#allocation147_spill] sm:$0xff] %v14599_v31  ;;  %v14602_v23 = vadd.f32 %v3155_v50, %v13798_v25  ;;  %v12493_v31 = vld [vmem:[%s12948_s27 + $0x198] sm:$0xff] }
 0x28e   : > { %v11354_v47 = vpop.f32.mrf.mxu0  ;;  %11681 = vmatmul.mubr.msk.f32.gmra.mxu0 %vm1064_vm1, %v12491_v41  ;;  %v14606_v45 = vpop.f32.mrf.mxu1 }
 0x28f   : > { %17145 = vst [vmem:[#allocation148_spill] sm:$0xff] %v14602_v23  ;;  %17146 = vst [vmem:[#allocation149_spill] sm:$0xff] %v14606_v45  ;;  %v14609_v44 = vadd.f32 %v11354_v47, %v13804_v48  ;;  %11683 = vmatprep.mubr.msk.f32.mxu0 %vm1064_vm1, %v12492_v33  ;;  %v12494_v47 = vld [vmem:[%s12948_s27 + $0x1a0] sm:$0xff] }
 0x290   : > { %v3165_v43 = vpop.f32.mrf.mxu0  ;;  %v14613_v51 = vpop.f32.mrf.mxu1 }
 0x291   : > { %17147 = vst [vmem:[#allocation150_spill] sm:$0xff] %v14609_v44  ;;  %17148 = vst [vmem:[#allocation151_spill] sm:$0xff] %v14613_v51  ;;  %v14616_v25 = vadd.f32 %v3165_v43, %v13810_v27  ;;  %v17153_v51 = vld [vmem:[#allocation19_spill] sm:$0xff] }
 0x292   : > { %v11357_v50 = vpop.f32.mrf.mxu0  ;;  %11684 = vmatmul.mubr.msk.f32.gmra.mxu0 %vm1064_vm1, %v12493_v31  ;;  %v14620_v41 = vpop.f32.mrf.mxu1 }
 0x293   : > { %17149 = vst [vmem:[#allocation152_spill] sm:$0xff] %v14616_v25  ;;  %17150 = vst [vmem:[#allocation153_spill] sm:$0xff] %v14620_v41  ;;  %v14623_v48 = vadd.f32 %v11357_v50, %v13816_v29  ;;  %11686 = vmatprep.mubr.msk.f32.mxu0 %vm1064_vm1, %v12494_v47  ;;  %v12495_v25 = vld [vmem:[%s12948_s27 + $0x1a8] sm:$0xff]  ;;  %v12496_v50 = vld [vmem:[%s12948_s27 + $0x1b0] sm:$0xff] }
 0x294   : > { %v3175_v33 = vpop.f32.mrf.mxu0  ;;  %v14627_v45 = vpop.f32.mrf.mxu1  ;;  %v17156_v41 = vld [vmem:[#allocation20_spill] sm:$0xff] }
 0x295   : > { %17151 = vst [vmem:[#allocation154_spill] sm:$0xff] %v14623_v48  ;;  %17152 = vst [vmem:[#allocation155_spill] sm:$0xff] %v14627_v45  ;;  %v14630_v27 = vadd.f32 %v3175_v33, %v17153_v51  ;;  %v17159_v45 = vld [vmem:[#allocation21_spill] sm:$0xff] }
 0x296   : > { %v11360_v43 = vpop.f32.mrf.mxu0  ;;  %11687 = vmatmul.mubr.msk.f32.gmra.mxu0 %vm1064_vm1, %v12495_v25  ;;  %v14634_v31 = vpop.f32.mrf.mxu1 }
 0x297   : > { %17154 = vst [vmem:[#allocation19_spill] sm:$0xff] %v14630_v27  ;;  %17155 = vst [vmem:[#allocation156_spill] sm:$0xff] %v14634_v31  ;;  %v14637_v29 = vadd.f32 %v11360_v43, %v17156_v41  ;;  %11689 = vmatprep.mubr.msk.f32.mxu0 %vm1064_vm1, %v12496_v50  ;;  %v12497_v27 = vld [vmem:[%s12948_s27 + $0x1b8] sm:$0xff]  ;;  %v12498_v43 = vld [vmem:[%s12948_s27 + $0x1c0] sm:$0xff] }
 0x298   : > { %v3185_v47 = vpop.f32.mrf.mxu0  ;;  %v14641_v48 = vpop.f32.mrf.mxu1  ;;  %v17162_v31 = vld [vmem:[#allocation22_spill] sm:$0xff] }
 0x299   : > { %17157 = vst [vmem:[#allocation20_spill] sm:$0xff] %v14637_v29  ;;  %17158 = vst [vmem:[#allocation157_spill] sm:$0xff] %v14641_v48  ;;  %v14644_v51 = vadd.f32 %v3185_v47, %v17159_v45  ;;  %v17165_v48 = vld [vmem:[#allocation23_spill] sm:$0xff] }
 0x29a   : > { %v11363_v33 = vpop.f32.mrf.mxu0  ;;  %11690 = vmatmul.mubr.msk.f32.gmra.mxu0 %vm1064_vm1, %v12497_v27  ;;  %v14648_v25 = vpop.f32.mrf.mxu1 }
 0x29b   : > { %17160 = vst [vmem:[#allocation21_spill] sm:$0xff] %v14644_v51  ;;  %17161 = vst [vmem:[#allocation158_spill] sm:$0xff] %v14648_v25  ;;  %v14651_v41 = vadd.f32 %v11363_v33, %v17162_v31  ;;  %11692 = vmatprep.mubr.msk.f32.mxu0 %vm1064_vm1, %v12498_v43  ;;  %v12499_v51 = vld [vmem:[%s12948_s27 + $0x1c8] sm:$0xff]  ;;  %v12500_v33 = vld [vmem:[%s12948_s27 + $0x1d0] sm:$0xff] }
 0x29c   : > { %v3195_v50 = vpop.f32.mrf.mxu0  ;;  %v14655_v29 = vpop.f32.mrf.mxu1  ;;  %v17168_v25 = vld [vmem:[#allocation24_spill] sm:$0xff] }
 0x29d   : > { %17163 = vst [vmem:[#allocation22_spill] sm:$0xff] %v14651_v41  ;;  %17164 = vst [vmem:[#allocation159_spill] sm:$0xff] %v14655_v29  ;;  %v14658_v45 = vadd.f32 %v3195_v50, %v17165_v48  ;;  %v17171_v29 = vld [vmem:[#allocation25_spill] sm:$0xff] }
 0x29e   : > { %v11366_v47 = vpop.f32.mrf.mxu0  ;;  %11693 = vmatmul.mubr.msk.f32.gmra.mxu0 %vm1064_vm1, %v12499_v51  ;;  %v14662_v27 = vpop.f32.mrf.mxu1 }
 0x29f   : > { %17166 = vst [vmem:[#allocation23_spill] sm:$0xff] %v14658_v45  ;;  %17167 = vst [vmem:[#allocation160_spill] sm:$0xff] %v14662_v27  ;;  %v14665_v31 = vadd.f32 %v11366_v47, %v17168_v25  ;;  %11695 = vmatprep.mubr.msk.f32.mxu0 %vm1064_vm1, %v12500_v33  ;;  %v12501_v45 = vld [vmem:[%s12948_s27 + $0x1d8] sm:$0xff]  ;;  %v12502_v47 = vld [vmem:[%s12948_s27 + $0x1e0] sm:$0xff] }
 0x2a0   : > { %v3205_v43 = vpop.f32.mrf.mxu0  ;;  %v14669_v41 = vpop.f32.mrf.mxu1  ;;  %v17174_v27 = vld [vmem:[#allocation26_spill] sm:$0xff] }
 0x2a1   : > { %17169 = vst [vmem:[#allocation24_spill] sm:$0xff] %v14665_v31  ;;  %17170 = vst [vmem:[#allocation161_spill] sm:$0xff] %v14669_v41  ;;  %v14672_v48 = vadd.f32 %v3205_v43, %v17171_v29  ;;  %v17177_v41 = vld [vmem:[#allocation27_spill] sm:$0xff] }
 0x2a2   : > { %v11369_v50 = vpop.f32.mrf.mxu0  ;;  %11696 = vmatmul.mubr.msk.f32.gmra.mxu0 %vm1064_vm1, %v12501_v45  ;;  %v14676_v51 = vpop.f32.mrf.mxu1 }
 0x2a3   : > { %17172 = vst [vmem:[#allocation25_spill] sm:$0xff] %v14672_v48  ;;  %17173 = vst [vmem:[#allocation162_spill] sm:$0xff] %v14676_v51  ;;  %v14679_v25 = vadd.f32 %v11369_v50, %v17174_v27  ;;  %11698 = vmatprep.mubr.msk.f32.mxu0 %vm1064_vm1, %v12502_v47  ;;  %v12503_v48 = vld [vmem:[%s12948_s27 + $0x1e8] sm:$0xff]  ;;  %v12504_v50 = vld [vmem:[%s12948_s27 + $0x1f0] sm:$0xff] }
 0x2a4   : > { %v3215_v33 = vpop.f32.mrf.mxu0  ;;  %v14683_v31 = vpop.f32.mrf.mxu1  ;;  %v17180_v51 = vld [vmem:[#allocation28_spill] sm:$0xff] }
 0x2a5   : > { %17175 = vst [vmem:[#allocation26_spill] sm:$0xff] %v14679_v25  ;;  %17176 = vst [vmem:[#allocation163_spill] sm:$0xff] %v14683_v31  ;;  %v14686_v29 = vadd.f32 %v3215_v33, %v17177_v41  ;;  %v17183_v31 = vld [vmem:[#allocation29_spill] sm:$0xff] }
 0x2a6   : > { %v11372_v43 = vpop.f32.mrf.mxu0  ;;  %11699 = vmatmul.mubr.msk.f32.gmra.mxu0 %vm1064_vm1, %v12503_v48  ;;  %v14690_v45 = vpop.f32.mrf.mxu1 }
 0x2a7   : > { %17178 = vst [vmem:[#allocation27_spill] sm:$0xff] %v14686_v29  ;;  %17179 = vst [vmem:[#allocation164_spill] sm:$0xff] %v14690_v45  ;;  %v14693_v27 = vadd.f32 %v11372_v43, %v17180_v51  ;;  %11701 = vmatprep.mubr.msk.f32.mxu0 %vm1064_vm1, %v12504_v50  ;;  %v12505_v29 = vld [vmem:[%s12948_s27 + $0x1f8] sm:$0xff]  ;;  %v12506_v43 = vld [vmem:[%s12948_s27 + $0x200] sm:$0xff] }
 0x2a8   : > { %v3225_v47 = vpop.f32.mrf.mxu0  ;;  %v14697_v25 = vpop.f32.mrf.mxu1  ;;  %v17186_v45 = vld [vmem:[#allocation30_spill] sm:$0xff] }
 0x2a9   : > { %17181 = vst [vmem:[#allocation28_spill] sm:$0xff] %v14693_v27  ;;  %17182 = vst [vmem:[#allocation165_spill] sm:$0xff] %v14697_v25  ;;  %v14700_v41 = vadd.f32 %v3225_v47, %v17183_v31  ;;  %v9768_v50 = vld [vmem:[%s16919_s3 + $0x18] sm:$0x3f] }
 0x2aa   : > { %v11375_v33 = vpop.f32.mrf.mxu0  ;;  %11702 = vmatmul.mubr.msk.f32.gmra.mxu0 %vm1064_vm1, %v12505_v29  ;;  %v14704_v48 = vpop.f32.mrf.mxu1  ;;  %12040 = vmatprep.subr.msk.mxu0 %vm5623_vm2, %v9768_v50  ;;  %v17189_v29 = vld [vmem:[#allocation31_spill] sm:$0xff] }
 0x2ab   : > { %17184 = vst [vmem:[#allocation29_spill] sm:$0xff] %v14700_v41  ;;  %17185 = vst [vmem:[#allocation166_spill] sm:$0xff] %v14704_v48  ;;  %v14707_v51 = vadd.f32 %v11375_v33, %v17186_v45  ;;  %11704 = vmatprep.mubr.msk.f32.mxu0 %vm1064_vm1, %v12506_v43  ;;  %12041 = vmatpush3.msk.msra.mxu0 %vm5623_vm2, %v9768_v50  ;;  %v12507_v33 = vld [vmem:[%s12948_s27 + $0x208] sm:$0xff]  ;;  %v12508_v41 = vld [vmem:[%s12948_s27 + $0x210] sm:$0xff] }
 0x2ac   : > { %v3235_v25 = vpop.f32.mrf.mxu0  ;;  %v14714_v31 = vpop.f32.mrf.mxu1  ;;  %v17192_v48 = vld [vmem:[#allocation32_spill] sm:$0xff] }
 0x2ad   : > { %17187 = vst [vmem:[#allocation30_spill] sm:$0xff] %v14707_v51  ;;  %17188 = vst [vmem:[#allocation167_spill] sm:$0xff] %v14714_v31  ;;  %v14718_v47 = vadd.f32 %v3235_v25, %v17189_v29  ;;  %v17195_v25 = vld [vmem:[#allocation33_spill] sm:$0xff] }
 0x2ae   : > { %v11378_v45 = vpop.f32.mrf.mxu0  ;;  %11705 = vmatmul.mubr.msk.f32.gmra.mxu0 %vm1064_vm1, %v12507_v33  ;;  %v14723_v43 = vpop.f32.mrf.mxu1 }
 0x2af   : > { %17190 = vst [vmem:[#allocation31_spill] sm:$0xff] %v14718_v47  ;;  %17191 = vst [vmem:[#allocation168_spill] sm:$0xff] %v14723_v43  ;;  %v14726_v51 = vadd.f32 %v11378_v45, %v17192_v48  ;;  %11707 = vmatprep.mubr.msk.f32.mxu0 %vm1064_vm1, %v12508_v41  ;;  %v12509_v47 = vld [vmem:[%s12948_s27 + $0x218] sm:$0xff]  ;;  %v12510_v45 = vld [vmem:[%s12948_s27 + $0x220] sm:$0xff] }
 0x2b0   : > { %v3245_v31 = vpop.f32.mrf.mxu0  ;;  %v14730_v27 = vpop.f32.mrf.mxu1  ;;  %v17198_v43 = vld [vmem:[#allocation34_spill] sm:$0xff] }
 0x2b1   : > { %17193 = vst [vmem:[#allocation32_spill] sm:$0xff] %v14726_v51  ;;  %17194 = vst [vmem:[#allocation169_spill] sm:$0xff] %v14730_v27  ;;  %v14733_v29 = vadd.f32 %v3245_v31, %v17195_v25  ;;  %v17201_v27 = vld [vmem:[#allocation35_spill] sm:$0xff] }
 0x2b2   : > { %v11381_v50 = vpop.f32.mrf.mxu0  ;;  %11708 = vmatmul.mubr.msk.f32.gmra.mxu0 %vm1064_vm1, %v12509_v47  ;;  %v14737_v33 = vpop.f32.mrf.mxu1 }
 0x2b3   : > { %17196 = vst [vmem:[#allocation33_spill] sm:$0xff] %v14733_v29  ;;  %17197 = vst [vmem:[#allocation170_spill] sm:$0xff] %v14737_v33  ;;  %v14740_v48 = vadd.f32 %v11381_v50, %v17198_v43  ;;  %11710 = vmatprep.mubr.msk.f32.mxu0 %vm1064_vm1, %v12510_v45  ;;  %v12511_v29 = vld [vmem:[%s12948_s27 + $0x228] sm:$0xff]  ;;  %v12512_v50 = vld [vmem:[%s12948_s27 + $0x230] sm:$0xff] }
 0x2b4   : > { %v3255_v41 = vpop.f32.mrf.mxu0  ;;  %v14744_v51 = vpop.f32.mrf.mxu1  ;;  %v17204_v33 = vld [vmem:[#allocation36_spill] sm:$0xff] }
 0x2b5   : > { %17199 = vst [vmem:[#allocation34_spill] sm:$0xff] %v14740_v48  ;;  %17200 = vst [vmem:[#allocation171_spill] sm:$0xff] %v14744_v51  ;;  %v14747_v31 = vadd.f32 %v3255_v41, %v17201_v27  ;;  %v17207_v51 = vld [vmem:[#allocation37_spill] sm:$0xff] }
 0x2b6   : > { %v11384_v25 = vpop.f32.mrf.mxu0  ;;  %11711 = vmatmul.mubr.msk.f32.gmra.mxu0 %vm1064_vm1, %v12511_v29  ;;  %v14751_v47 = vpop.f32.mrf.mxu1 }
 0x2b7   : > { %17202 = vst [vmem:[#allocation35_spill] sm:$0xff] %v14747_v31  ;;  %17203 = vst [vmem:[#allocation172_spill] sm:$0xff] %v14751_v47  ;;  %v14754_v43 = vadd.f32 %v11384_v25, %v17204_v33  ;;  %11713 = vmatprep.mubr.msk.f32.mxu0 %vm1064_vm1, %v12512_v50  ;;  %v12513_v31 = vld [vmem:[%s12948_s27 + $0x238] sm:$0xff]  ;;  %v12514_v25 = vld [vmem:[%s12948_s27 + $0x240] sm:$0xff] }
 0x2b8   : > { %v3265_v45 = vpop.f32.mrf.mxu0  ;;  %v14758_v48 = vpop.f32.mrf.mxu1  ;;  %v17210_v47 = vld [vmem:[#allocation38_spill] sm:$0xff] }
 0x2b9   : > { %17205 = vst [vmem:[#allocation36_spill] sm:$0xff] %v14754_v43  ;;  %17206 = vst [vmem:[#allocation173_spill] sm:$0xff] %v14758_v48  ;;  %v14761_v27 = vadd.f32 %v3265_v45, %v17207_v51  ;;  %v17213_v48 = vld [vmem:[#allocation39_spill] sm:$0xff] }
 0x2ba   : > { %v11387_v41 = vpop.f32.mrf.mxu0  ;;  %11714 = vmatmul.mubr.msk.f32.gmra.mxu0 %vm1064_vm1, %v12513_v31  ;;  %v14765_v29 = vpop.f32.mrf.mxu1 }
 0x2bb   : > { %17208 = vst [vmem:[#allocation37_spill] sm:$0xff] %v14761_v27  ;;  %17209 = vst [vmem:[#allocation174_spill] sm:$0xff] %v14765_v29  ;;  %v14768_v33 = vadd.f32 %v11387_v41, %v17210_v47  ;;  %11716 = vmatprep.mubr.msk.f32.mxu0 %vm1064_vm1, %v12514_v25  ;;  %v12515_v27 = vld [vmem:[%s12948_s27 + $0x248] sm:$0xff]  ;;  %v12516_v41 = vld [vmem:[%s12948_s27 + $0x250] sm:$0xff] }
 0x2bc   : > { %v3275_v50 = vpop.f32.mrf.mxu0  ;;  %v14772_v43 = vpop.f32.mrf.mxu1  ;;  %v17216_v29 = vld [vmem:[#allocation40_spill] sm:$0xff] }
 0x2bd   : > { %17211 = vst [vmem:[#allocation38_spill] sm:$0xff] %v14768_v33  ;;  %17212 = vst [vmem:[#allocation175_spill] sm:$0xff] %v14772_v43  ;;  %v14775_v51 = vadd.f32 %v3275_v50, %v17213_v48  ;;  %v17219_v43 = vld [vmem:[#allocation41_spill] sm:$0xff] }
 0x2be   : > { %v11390_v45 = vpop.f32.mrf.mxu0  ;;  %11717 = vmatmul.mubr.msk.f32.gmra.mxu0 %vm1064_vm1, %v12515_v27  ;;  %v14779_v31 = vpop.f32.mrf.mxu1 }
 0x2bf   : > { %17214 = vst [vmem:[#allocation39_spill] sm:$0xff] %v14775_v51  ;;  %17215 = vst [vmem:[#allocation176_spill] sm:$0xff] %v14779_v31  ;;  %v14782_v47 = vadd.f32 %v11390_v45, %v17216_v29  ;;  %11719 = vmatprep.mubr.msk.f32.mxu0 %vm1064_vm1, %v12516_v41  ;;  %v12517_v51 = vld [vmem:[%s12948_s27 + $0x258] sm:$0xff]  ;;  %v12518_v45 = vld [vmem:[%s12948_s27 + $0x260] sm:$0xff] }
 0x2c0   : > { %v3285_v25 = vpop.f32.mrf.mxu0  ;;  %v14786_v33 = vpop.f32.mrf.mxu1  ;;  %v17222_v31 = vld [vmem:[#allocation42_spill] sm:$0xff] }
 0x2c1   : > { %17217 = vst [vmem:[#allocation40_spill] sm:$0xff] %v14782_v47  ;;  %17218 = vst [vmem:[#allocation177_spill] sm:$0xff] %v14786_v33  ;;  %v14789_v48 = vadd.f32 %v3285_v25, %v17219_v43  ;;  %v17225_v33 = vld [vmem:[#allocation43_spill] sm:$0xff] }
 0x2c2   : > { %v11393_v50 = vpop.f32.mrf.mxu0  ;;  %11720 = vmatmul.mubr.msk.f32.gmra.mxu0 %vm1064_vm1, %v12517_v51  ;;  %v14793_v27 = vpop.f32.mrf.mxu1 }
 0x2c3   : > { %17220 = vst [vmem:[#allocation41_spill] sm:$0xff] %v14789_v48  ;;  %17221 = vst [vmem:[#allocation178_spill] sm:$0xff] %v14793_v27  ;;  %v14796_v29 = vadd.f32 %v11393_v50, %v17222_v31  ;;  %11722 = vmatprep.mubr.msk.f32.mxu0 %vm1064_vm1, %v12518_v45  ;;  %v12519_v48 = vld [vmem:[%s12948_s27 + $0x268] sm:$0xff]  ;;  %v12520_v50 = vld [vmem:[%s12948_s27 + $0x270] sm:$0xff] }
 0x2c4   : > { %v3295_v41 = vpop.f32.mrf.mxu0  ;;  %v14800_v47 = vpop.f32.mrf.mxu1  ;;  %v17228_v27 = vld [vmem:[#allocation44_spill] sm:$0xff] }
 0x2c5   : > { %17223 = vst [vmem:[#allocation42_spill] sm:$0xff] %v14796_v29  ;;  %17224 = vst [vmem:[#allocation179_spill] sm:$0xff] %v14800_v47  ;;  %v14803_v43 = vadd.f32 %v3295_v41, %v17225_v33  ;;  %v17231_v47 = vld [vmem:[#allocation45_spill] sm:$0xff] }
 0x2c6   : > { %v11396_v25 = vpop.f32.mrf.mxu0  ;;  %11723 = vmatmul.mubr.msk.f32.gmra.mxu0 %vm1064_vm1, %v12519_v48  ;;  %v14807_v51 = vpop.f32.mrf.mxu1 }
 0x2c7   : > { %17226 = vst [vmem:[#allocation43_spill] sm:$0xff] %v14803_v43  ;;  %17227 = vst [vmem:[#allocation180_spill] sm:$0xff] %v14807_v51  ;;  %v14810_v31 = vadd.f32 %v11396_v25, %v17228_v27  ;;  %11725 = vmatprep.mubr.msk.f32.mxu0 %vm1064_vm1, %v12520_v50  ;;  %v12521_v43 = vld [vmem:[%s12948_s27 + $0x278] sm:$0xff]  ;;  %v12522_v25 = vld [vmem:[%s12948_s27 + $0x280] sm:$0xff] }
 0x2c8   : > { %v3305_v45 = vpop.f32.mrf.mxu0  ;;  %v14814_v29 = vpop.f32.mrf.mxu1  ;;  %v17234_v51 = vld [vmem:[#allocation46_spill] sm:$0xff] }
 0x2c9   : > { %17229 = vst [vmem:[#allocation44_spill] sm:$0xff] %v14810_v31  ;;  %17230 = vst [vmem:[#allocation181_spill] sm:$0xff] %v14814_v29  ;;  %v14817_v33 = vadd.f32 %v3305_v45, %v17231_v47  ;;  %v17237_v29 = vld [vmem:[#allocation47_spill] sm:$0xff] }
 0x2ca   : > { %v11399_v41 = vpop.f32.mrf.mxu0  ;;  %11726 = vmatmul.mubr.msk.f32.gmra.mxu0 %vm1064_vm1, %v12521_v43  ;;  %v14821_v48 = vpop.f32.mrf.mxu1 }
 0x2cb   : > { %17232 = vst [vmem:[#allocation45_spill] sm:$0xff] %v14817_v33  ;;  %17233 = vst [vmem:[#allocation182_spill] sm:$0xff] %v14821_v48  ;;  %v14824_v27 = vadd.f32 %v11399_v41, %v17234_v51  ;;  %11728 = vmatprep.mubr.msk.f32.mxu0 %vm1064_vm1, %v12522_v25  ;;  %v12523_v33 = vld [vmem:[%s12948_s27 + $0x288] sm:$0xff]  ;;  %v12524_v41 = vld [vmem:[%s12948_s27 + $0x290] sm:$0xff] }
 0x2cc   : > { %v3315_v50 = vpop.f32.mrf.mxu0  ;;  %v14828_v31 = vpop.f32.mrf.mxu1  ;;  %v17240_v48 = vld [vmem:[#allocation48_spill] sm:$0xff] }
 0x2cd   : > { %17235 = vst [vmem:[#allocation46_spill] sm:$0xff] %v14824_v27  ;;  %17236 = vst [vmem:[#allocation183_spill] sm:$0xff] %v14828_v31  ;;  %v14831_v47 = vadd.f32 %v3315_v50, %v17237_v29  ;;  %v17243_v31 = vld [vmem:[#allocation49_spill] sm:$0xff] }
 0x2ce   : > { %v11402_v45 = vpop.f32.mrf.mxu0  ;;  %11729 = vmatmul.mubr.msk.f32.gmra.mxu0 %vm1064_vm1, %v12523_v33  ;;  %v14835_v43 = vpop.f32.mrf.mxu1 }
 0x2cf   : > { %17238 = vst [vmem:[#allocation47_spill] sm:$0xff] %v14831_v47  ;;  %17239 = vst [vmem:[#allocation184_spill] sm:$0xff] %v14835_v43  ;;  %v14838_v51 = vadd.f32 %v11402_v45, %v17240_v48  ;;  %11731 = vmatprep.mubr.msk.f32.mxu0 %vm1064_vm1, %v12524_v41  ;;  %v12525_v47 = vld [vmem:[%s12948_s27 + $0x298] sm:$0xff]  ;;  %v12526_v45 = vld [vmem:[%s12948_s27 + $0x2a0] sm:$0xff] }
 0x2d0   : > { %v3325_v25 = vpop.f32.mrf.mxu0  ;;  %v14842_v27 = vpop.f32.mrf.mxu1  ;;  %v17246_v43 = vld [vmem:[#allocation50_spill] sm:$0xff] }
 0x2d1   : > { %17241 = vst [vmem:[#allocation48_spill] sm:$0xff] %v14838_v51  ;;  %17242 = vst [vmem:[#allocation185_spill] sm:$0xff] %v14842_v27  ;;  %v14845_v29 = vadd.f32 %v3325_v25, %v17243_v31  ;;  %v17249_v27 = vld [vmem:[#allocation51_spill] sm:$0xff] }
 0x2d2   : > { %v11405_v50 = vpop.f32.mrf.mxu0  ;;  %11732 = vmatmul.mubr.msk.f32.gmra.mxu0 %vm1064_vm1, %v12525_v47  ;;  %v14849_v33 = vpop.f32.mrf.mxu1 }
 0x2d3   : > { %17244 = vst [vmem:[#allocation49_spill] sm:$0xff] %v14845_v29  ;;  %17245 = vst [vmem:[#allocation186_spill] sm:$0xff] %v14849_v33  ;;  %v14852_v48 = vadd.f32 %v11405_v50, %v17246_v43  ;;  %11734 = vmatprep.mubr.msk.f32.mxu0 %vm1064_vm1, %v12526_v45  ;;  %v12527_v29 = vld [vmem:[%s12948_s27 + $0x2a8] sm:$0xff]  ;;  %v12528_v50 = vld [vmem:[%s12948_s27 + $0x2b0] sm:$0xff] }
 0x2d4   : > { %v3335_v41 = vpop.f32.mrf.mxu0  ;;  %v14856_v51 = vpop.f32.mrf.mxu1  ;;  %v17252_v33 = vld [vmem:[#allocation52_spill] sm:$0xff] }
 0x2d5   : > { %17247 = vst [vmem:[#allocation50_spill] sm:$0xff] %v14852_v48  ;;  %17248 = vst [vmem:[#allocation187_spill] sm:$0xff] %v14856_v51  ;;  %v14859_v31 = vadd.f32 %v3335_v41, %v17249_v27  ;;  %v17255_v51 = vld [vmem:[#allocation53_spill] sm:$0xff] }
 0x2d6   : > { %v11408_v25 = vpop.f32.mrf.mxu0  ;;  %11735 = vmatmul.mubr.msk.f32.gmra.mxu0 %vm1064_vm1, %v12527_v29  ;;  %v14863_v47 = vpop.f32.mrf.mxu1 }
 0x2d7   : > { %17250 = vst [vmem:[#allocation51_spill] sm:$0xff] %v14859_v31  ;;  %17251 = vst [vmem:[#allocation188_spill] sm:$0xff] %v14863_v47  ;;  %v14866_v43 = vadd.f32 %v11408_v25, %v17252_v33  ;;  %11737 = vmatprep.mubr.msk.f32.mxu0 %vm1064_vm1, %v12528_v50  ;;  %v12529_v31 = vld [vmem:[%s12948_s27 + $0x2b8] sm:$0xff]  ;;  %v12530_v25 = vld [vmem:[%s12948_s27 + $0x2c0] sm:$0xff] }
 0x2d8   : > { %v3345_v45 = vpop.f32.mrf.mxu0  ;;  %v14870_v48 = vpop.f32.mrf.mxu1  ;;  %v17258_v47 = vld [vmem:[#allocation54_spill] sm:$0xff] }
 0x2d9   : > { %17253 = vst [vmem:[#allocation52_spill] sm:$0xff] %v14866_v43  ;;  %17254 = vst [vmem:[#allocation189_spill] sm:$0xff] %v14870_v48  ;;  %v14873_v27 = vadd.f32 %v3345_v45, %v17255_v51  ;;  %v17261_v48 = vld [vmem:[#allocation55_spill] sm:$0xff] }
 0x2da   : > { %v11411_v41 = vpop.f32.mrf.mxu0  ;;  %11738 = vmatmul.mubr.msk.f32.gmra.mxu0 %vm1064_vm1, %v12529_v31  ;;  %v14877_v29 = vpop.f32.mrf.mxu1 }
 0x2db   : > { %17256 = vst [vmem:[#allocation53_spill] sm:$0xff] %v14873_v27  ;;  %17257 = vst [vmem:[#allocation190_spill] sm:$0xff] %v14877_v29  ;;  %v14880_v33 = vadd.f32 %v11411_v41, %v17258_v47  ;;  %11740 = vmatprep.mubr.msk.f32.mxu0 %vm1064_vm1, %v12530_v25  ;;  %v12531_v27 = vld [vmem:[%s12948_s27 + $0x2c8] sm:$0xff]  ;;  %v12532_v41 = vld [vmem:[%s12948_s27 + $0x2d0] sm:$0xff] }
 0x2dc   : > { %v3355_v50 = vpop.f32.mrf.mxu0  ;;  %v14884_v43 = vpop.f32.mrf.mxu1  ;;  %v17264_v29 = vld [vmem:[#allocation56_spill] sm:$0xff] }
 0x2dd   : > { %17259 = vst [vmem:[#allocation54_spill] sm:$0xff] %v14880_v33  ;;  %17260 = vst [vmem:[#allocation191_spill] sm:$0xff] %v14884_v43  ;;  %v14887_v51 = vadd.f32 %v3355_v50, %v17261_v48  ;;  %v17267_v43 = vld [vmem:[#allocation57_spill] sm:$0xff] }
 0x2de   : > { %v11414_v45 = vpop.f32.mrf.mxu0  ;;  %11741 = vmatmul.mubr.msk.f32.gmra.mxu0 %vm1064_vm1, %v12531_v27  ;;  %v14891_v31 = vpop.f32.mrf.mxu1 }
 0x2df   : > { %17262 = vst [vmem:[#allocation55_spill] sm:$0xff] %v14887_v51  ;;  %17263 = vst [vmem:[#allocation192_spill] sm:$0xff] %v14891_v31  ;;  %v14894_v47 = vadd.f32 %v11414_v45, %v17264_v29  ;;  %11743 = vmatprep.mubr.msk.f32.mxu0 %vm1064_vm1, %v12532_v41  ;;  %v12533_v51 = vld [vmem:[%s12948_s27 + $0x2d8] sm:$0xff]  ;;  %v12534_v45 = vld [vmem:[%s12948_s27 + $0x2e0] sm:$0xff] }
 0x2e0   : > { %v3365_v25 = vpop.f32.mrf.mxu0  ;;  %v14898_v33 = vpop.f32.mrf.mxu1  ;;  %v17270_v31 = vld [vmem:[#allocation58_spill] sm:$0xff] }
 0x2e1   : > { %17265 = vst [vmem:[#allocation56_spill] sm:$0xff] %v14894_v47  ;;  %17266 = vst [vmem:[#allocation193_spill] sm:$0xff] %v14898_v33  ;;  %v14901_v48 = vadd.f32 %v3365_v25, %v17267_v43  ;;  %v17273_v33 = vld [vmem:[#allocation59_spill] sm:$0xff] }
 0x2e2   : > { %v11417_v50 = vpop.f32.mrf.mxu0  ;;  %11744 = vmatmul.mubr.msk.f32.gmra.mxu0 %vm1064_vm1, %v12533_v51  ;;  %v14905_v27 = vpop.f32.mrf.mxu1 }
 0x2e3   : > { %17268 = vst [vmem:[#allocation57_spill] sm:$0xff] %v14901_v48  ;;  %17269 = vst [vmem:[#allocation194_spill] sm:$0xff] %v14905_v27  ;;  %v14908_v29 = vadd.f32 %v11417_v50, %v17270_v31  ;;  %11746 = vmatprep.mubr.msk.f32.mxu0 %vm1064_vm1, %v12534_v45  ;;  %v12535_v48 = vld [vmem:[%s12948_s27 + $0x2e8] sm:$0xff]  ;;  %v12536_v50 = vld [vmem:[%s12948_s27 + $0x2f0] sm:$0xff] }
 0x2e4   : > { %v3375_v41 = vpop.f32.mrf.mxu0  ;;  %v14912_v47 = vpop.f32.mrf.mxu1  ;;  %v17276_v27 = vld [vmem:[#allocation60_spill] sm:$0xff] }
 0x2e5   : > { %17271 = vst [vmem:[#allocation58_spill] sm:$0xff] %v14908_v29  ;;  %17272 = vst [vmem:[#allocation195_spill] sm:$0xff] %v14912_v47  ;;  %v14915_v43 = vadd.f32 %v3375_v41, %v17273_v33  ;;  %v17279_v47 = vld [vmem:[#allocation61_spill] sm:$0xff] }
 0x2e6   : > { %v11420_v25 = vpop.f32.mrf.mxu0  ;;  %11747 = vmatmul.mubr.msk.f32.gmra.mxu0 %vm1064_vm1, %v12535_v48  ;;  %v14919_v51 = vpop.f32.mrf.mxu1 }
 0x2e7   : > { %17274 = vst [vmem:[#allocation59_spill] sm:$0xff] %v14915_v43  ;;  %17275 = vst [vmem:[#allocation196_spill] sm:$0xff] %v14919_v51  ;;  %v14922_v31 = vadd.f32 %v11420_v25, %v17276_v27  ;;  %11749 = vmatprep.mubr.msk.f32.mxu0 %vm1064_vm1, %v12536_v50  ;;  %v12537_v43 = vld [vmem:[%s12948_s27 + $0x2f8] sm:$0xff]  ;;  %v12538_v25 = vld [vmem:[%s12948_s27 + $0x300] sm:$0xff] }
 0x2e8   : > { %v3385_v45 = vpop.f32.mrf.mxu0  ;;  %v14926_v29 = vpop.f32.mrf.mxu1  ;;  %v17282_v51 = vld [vmem:[#allocation62_spill] sm:$0xff] }
 0x2e9   : > { %17277 = vst [vmem:[#allocation60_spill] sm:$0xff] %v14922_v31  ;;  %17278 = vst [vmem:[#allocation197_spill] sm:$0xff] %v14926_v29  ;;  %v14929_v33 = vadd.f32 %v3385_v45, %v17279_v47  ;;  %v17285_v29 = vld [vmem:[#allocation63_spill] sm:$0xff] }
 0x2ea   : > { %v11423_v41 = vpop.f32.mrf.mxu0  ;;  %11750 = vmatmul.mubr.msk.f32.gmra.mxu0 %vm1064_vm1, %v12537_v43  ;;  %v14933_v48 = vpop.f32.mrf.mxu1 }
 0x2eb   : > { %17280 = vst [vmem:[#allocation61_spill] sm:$0xff] %v14929_v33  ;;  %17281 = vst [vmem:[#allocation198_spill] sm:$0xff] %v14933_v48  ;;  %v14936_v27 = vadd.f32 %v11423_v41, %v17282_v51  ;;  %11752 = vmatprep.mubr.msk.f32.mxu0 %vm1064_vm1, %v12538_v25  ;;  %v12539_v33 = vld [vmem:[%s12948_s27 + $0x308] sm:$0xff]  ;;  %v12540_v41 = vld [vmem:[%s12948_s27 + $0x310] sm:$0xff] }
 0x2ec   : > { %v3395_v50 = vpop.f32.mrf.mxu0  ;;  %v14940_v31 = vpop.f32.mrf.mxu1  ;;  %v17288_v48 = vld [vmem:[#allocation64_spill] sm:$0xff] }
 0x2ed   : > { %17283 = vst [vmem:[#allocation62_spill] sm:$0xff] %v14936_v27  ;;  %17284 = vst [vmem:[#allocation199_spill] sm:$0xff] %v14940_v31  ;;  %v14943_v47 = vadd.f32 %v3395_v50, %v17285_v29  ;;  %v17291_v31 = vld [vmem:[#allocation65_spill] sm:$0xff] }
 0x2ee   : > { %v11426_v45 = vpop.f32.mrf.mxu0  ;;  %11753 = vmatmul.mubr.msk.f32.gmra.mxu0 %vm1064_vm1, %v12539_v33  ;;  %v14947_v43 = vpop.f32.mrf.mxu1 }
 0x2ef   : > { %17286 = vst [vmem:[#allocation63_spill] sm:$0xff] %v14943_v47  ;;  %17287 = vst [vmem:[#allocation200_spill] sm:$0xff] %v14947_v43  ;;  %v14950_v51 = vadd.f32 %v11426_v45, %v17288_v48  ;;  %11755 = vmatprep.mubr.msk.f32.mxu0 %vm1064_vm1, %v12540_v41  ;;  %v12541_v47 = vld [vmem:[%s12948_s27 + $0x318] sm:$0xff]  ;;  %v12542_v45 = vld [vmem:[%s12948_s27 + $0x320] sm:$0xff] }
 0x2f0   : > { %v3405_v25 = vpop.f32.mrf.mxu0  ;;  %v14954_v27 = vpop.f32.mrf.mxu1  ;;  %v17294_v43 = vld [vmem:[#allocation66_spill] sm:$0xff] }
 0x2f1   : > { %17289 = vst [vmem:[#allocation64_spill] sm:$0xff] %v14950_v51  ;;  %17290 = vst [vmem:[#allocation201_spill] sm:$0xff] %v14954_v27  ;;  %v14957_v29 = vadd.f32 %v3405_v25, %v17291_v31  ;;  %v17297_v27 = vld [vmem:[#allocation67_spill] sm:$0xff]  ;;  %v12543_v25 = vld [vmem:[%s12948_s27 + $0x328] sm:$0xff] }
 0x2f2   : > { %v11429_v50 = vpop.f32.mrf.mxu0  ;;  %11756 = vmatmul.mubr.msk.f32.gmra.mxu0 %vm1064_vm1, %v12541_v47  ;;  %v14961_v33 = vpop.f32.mrf.mxu1  ;;  %v17299_v47 = vld [vmem:[#allocation68_spill] sm:$0xff] }
 0x2f3   : > { %17292 = vst [vmem:[#allocation65_spill] sm:$0xff] %v14957_v29  ;;  %17293 = vst [vmem:[#allocation202_spill] sm:$0xff] %v14961_v33  ;;  %v14964_v48 = vadd.f32 %v11429_v50, %v17294_v43  ;;  %11758 = vmatprep.mubr.msk.f32.mxu0 %vm1064_vm1, %v12542_v45  ;;  %v12544_v33 = vld [vmem:[%s12948_s27 + $0x330] sm:$0xff] }
 0x2f4   : > { %v3415_v41 = vpop.f32.mrf.mxu0  ;;  %v14968_v51 = vpop.f32.mrf.mxu1  ;;  %v17301_v45 = vld [vmem:[#allocation69_spill] sm:$0xff] }
 0x2f5   : > { %17295 = vst [vmem:[#allocation66_spill] sm:$0xff] %v14964_v48  ;;  %17296 = vst [vmem:[#allocation203_spill] sm:$0xff] %v14968_v51  ;;  %v14971_v44 = vadd.f32 %v3415_v41, %v17297_v27  ;;  %v17304_v41 = vld [vmem:[#allocation72_spill] sm:$0xff] }
 0x2f6   : > { %v11432_v31 = vpop.f32.mrf.mxu0  ;;  %11759 = vmatmul.mubr.msk.f32.gmra.mxu0 %vm1064_vm1, %v12543_v25  ;;  %v11614_v29 = vpop.f32.mrf.mxu1  ;;  %v17305_v25 = vld [vmem:[#allocation70_spill] sm:$0xff] }
 0x2f7   : > { %17298 = vst [vmem:[#allocation67_spill] sm:$0xff] %v14971_v44  ;;  %v3561_v23 = vadd.f32 %v11432_v31, %v17299_v47  ;;  %11761 = vmatprep.mubr.msk.f32.mxu0 %vm1064_vm1, %v12544_v33  ;;  %v17307_v33 = vld [vmem:[#allocation71_spill] sm:$0xff] }
 0x2f8   : > { %v3425_v43 = vpop.f32.mrf.mxu0  ;;  %v14978_v50 = vpop.f32.mrf.mxu1 }
 0x2f9   : > { %17300 = vst [vmem:[#allocation68_spill] sm:$0xff] %v14978_v50  ;;  %v14981_v48 = vadd.f32 %v3425_v43, %v17301_v45  ;;  %v14983_v51 = vadd.f32 %v11614_v29, %v3561_v23  ;;  %v14998_v23 = vld [vmem:[%s16919_s3] sm:$0x3f]  ;;  %v17311_v45 = vld [vmem:[#allocation74_spill] sm:$0xff] }
 0x2fa   : > { %v11435_v27 = vpop.f32.mrf.mxu0  ;;  %11762 = vmatmul.mubr.msk.f32.gmra.mxu0 %vm1064_vm1, %v17304_v41  ;;  %v11617_v44 = vpop.f32.mrf.mxu1  ;;  %v17310_v43 = vld [vmem:[#allocation75_spill] sm:$0xff]  ;;  %11880 = vmatprep.subr.msk.mxu1 %vm5623_vm2, %v14998_v23  ;;  %v17313_v41 = vld [vmem:[#allocation76_spill] sm:$0xff] }
 0x2fb   : > { %17302 = vst [vmem:[#allocation69_spill] sm:$0xff] %v14981_v48  ;;  %17303 = vst [vmem:[#allocation204_spill] sm:$0xff] %v14983_v51  ;;  %v3563_v42 = vadd.f32 %v11435_v27, %v17305_v25  ;;  %11764 = vmatprep.mubr.msk.f32.mxu0 %vm1064_vm1, %v17306_v21  ;;  %v17312_v27 = vld [vmem:[#allocation77_spill] sm:$0xff]  ;;  %v17316_v51 = vld [vmem:[#allocation4_spill] sm:$0xff] }
 0x2fc   : > { %v3435_v31 = vpop.f32.mrf.mxu0 }
 0x2fd   : > { %v14991_v47 = vadd.f32 %v3435_v31, %v17307_v33  ;;  %v14993_v50 = vadd.f32 %v11617_v44, %v3563_v42  ;;  %v15010_v42 = vld [vmem:[%s16918_s2] ss:$0 sm:$0xff]  ;;  %v17314_v33 = vld [vmem:[#allocation78_spill] sm:$0xff] }
 0x2fe   : > { %v11622_v29 = vpop.f32.mrf.mxu0  ;;  %11765 = vmatmul.mubr.msk.f32.gmra.mxu0 %vm1064_vm1, %v17310_v43 }
 0x2ff   : > { %17308 = vst [vmem:[#allocation72_spill] sm:$0xff] %v14991_v47  ;;  %17309 = vst [vmem:[#allocation70_spill] sm:$0xff] %v14993_v50  ;;  %v5037_v21 = vadd.f32 %v11622_v29, %v17311_v45  ;;  %11767 = vmatprep.mubr.msk.f32.mxu0 %vm1064_vm1, %v17312_v27  ;;  %v17315_v50 = vld [vmem:[#allocation3_spill] sm:$0xff] }
 0x300   : > { %v4437_v44 = vpop.f32.mrf.mxu0 }
 0x301   : > { %v5036_v25 = vadd.f32 %v4437_v44, %v17313_v41  ;;  %v5164_v43 = vadd.f32 %v15010_v42, %v5037_v21 }
 0x302   : > { %v11625_v31 = vpop.f32.mrf.mxu0  ;;  %11768 = vmatmul.mubr.msk.f32.gmra.mxu0 %vm1064_vm1, %v17314_v33  ;;  %v17317_v33 = vld [vmem:[#allocation5_spill] sm:$0xff] }
 0x303   : > { %v5039_v47 = vadd.f32 %v11625_v31, %v17315_v50  ;;  %11770 = vmatprep.mubr.msk.f32.mxu0 %vm1064_vm1, %v14138_v53  ;;  %v5163_v45 = vadd.f32 %v15010_v42, %v5036_v25  ;;  %v5284_v44 = vmax.f32 %v5164_v43, 0.0  ;;  %v17322_v43 = vld [vmem:[#allocation7_spill] sm:$0xff] }
 0x304   : > { %v4447_v29 = vpop.f32.mrf.mxu0 }
 0x305   : > { %v5166_v27 = vadd.f32 %v15010_v42, %v5039_v47  ;;  %v5038_v48 = vadd.f32 %v4447_v29, %v17316_v51  ;;  %v5283_v31 = vmax.f32 %v5163_v45, 0.0  ;;  %v17324_v45 = vld [vmem:[#allocation8_spill] sm:$0xff] }
 0x306   : > { %v11628_v40 = vpop.f32.mrf.mxu0  ;;  %11771 = vmatmul.mubr.msk.f32.gmra.mxu0 %vm1064_vm1, %v14148_v39 }
 0x307   : > { %v5286_v41 = vmax.f32 %v5166_v27, 0.0  ;;  %v5165_v21 = vadd.f32 %v15010_v42, %v5038_v48  ;;  %v5041_v50 = vadd.f32 %v11628_v40, %v17317_v33  ;;  %11773 = vmatprep.mubr.msk.f32.mxu0 %vm1064_vm1, %v14158_v61  ;;  %v17323_v27 = vld [vmem:[#allocation82_spill] sm:$0xff]  ;;  %v17326_v33 = vld [vmem:[#allocation81_spill] sm:$0xff] }
 0x308   : > { %v4457_v53 = vpop.f32.mrf.mxu0 }
 0x309   : > { %v15028_v25 = vmax.f32 %v5284_v44, %v5286_v41  ;;  %v5285_v47 = vmax.f32 %v5165_v21, 0.0  ;;  %v5040_v51 = vadd.f32 %v4457_v53, %v17319_v19  ;;  %v5168_v48 = vadd.f32 %v15010_v42, %v5041_v50  ;;  %v17325_v44 = vld [vmem:[#allocation79_spill] sm:$0xff]  ;;  %v17329_v50 = vld [vmem:[#allocation85_spill] sm:$0xff] }
 0x30a   : > { %v11631_v29 = vpop.f32.mrf.mxu0  ;;  %11774 = vmatmul.mubr.msk.f32.gmra.mxu0 %vm1064_vm1, %v17320_v38  ;;  %v4249_v41 = vadd.f32 %v17325_v44, %v17324_v45  ;;  %v17327_v38 = vld [vmem:[#allocation9_spill] sm:$0xff]  ;;  %v17332_v45 = vld [vmem:[#allocation84_spill] sm:$0xff] }
 0x30b   : > { %17318 = vst [vmem:[#allocation73_spill] sm:$0xff] %v15028_v25  ;;  %v15033_v39 = vmax.f32 %v5283_v31, %v5285_v47  ;;  %v5043_v40 = vadd.f32 %v11631_v29, %v17322_v43  ;;  %11776 = vmatprep.mubr.msk.f32.mxu0 %vm1064_vm1, %v17323_v27  ;;  %v5167_v21 = vadd.f32 %v15010_v42, %v5040_v51  ;;  %v17328_v31 = vld [vmem:[#allocation83_spill] sm:$0xff]  ;;  %v5288_v29 = vmax.f32 %v5168_v48, 0.0  ;;  %v17331_v51 = vld [vmem:[#allocation10_spill] sm:$0xff] }
 0x30c   : > { %v4467_v61 = vpop.f32.mrf.mxu0  ;;  %v4248_v47 = vadd.f32 %v17328_v31, %v17327_v38  ;;  %v17334_v48 = vld [vmem:[#allocation11_spill] sm:$0xff] }
 0x30d   : > { %17321 = vst [vmem:[#allocation71_spill] sm:$0xff] %v15033_v39  ;;  %v5170_v19 = vadd.f32 %v15010_v42, %v5043_v40  ;;  %v5042_v53 = vadd.f32 %v4467_v61, %v17326_v33  ;;  %v4251_v40 = vadd.f32 %v17332_v45, %v17331_v51  ;;  %v5287_v61 = vmax.f32 %v5167_v21, 0.0  ;;  %v17339_v45 = vld [vmem:[#allocation13_spill] sm:$0xff] }
 0x30e   : > { %v11634_v25 = vpop.f32.mrf.mxu0  ;;  %11777 = vmatmul.mubr.msk.f32.gmra.mxu0 %vm1064_vm1, %v17329_v50  ;;  %v17336_v50 = vld [vmem:[#allocation90_spill] sm:$0xff] }
 0x30f   : > { %v5290_v43 = vmax.f32 %v5170_v19, 0.0  ;;  %v5169_v27 = vadd.f32 %v15010_v42, %v5042_v53  ;;  %v5045_v39 = vadd.f32 %v11634_v25, %v4249_v41  ;;  %11779 = vmatprep.mubr.msk.f32.mxu0 %vm1064_vm1, %v17330_v17  ;;  %v17335_v19 = vld [vmem:[#allocation87_spill] sm:$0xff] }
 0x310   : > { %v4477_v44 = vpop.f32.mrf.mxu0  ;;  %v4250_v25 = vadd.f32 %v17335_v19, %v17334_v48  ;;  %v12545_v19 = vld [vmem:[%s12948_s27 + $0x3b0] sm:$0xff] }
 0x311   : > { %v15053_v33 = vmax.f32 %v5288_v29, %v5290_v43  ;;  %v5289_v38 = vmax.f32 %v5169_v27, 0.0  ;;  %v5044_v31 = vadd.f32 %v4477_v44, %v4248_v47  ;;  %v5172_v17 = vadd.f32 %v15010_v42, %v5045_v39  ;;  %v17337_v29 = vld [vmem:[#allocation12_spill] sm:$0xff]  ;;  %v17340_v44 = vld [vmem:[#allocation91_spill] sm:$0xff] }
 0x312   : > { %v11637_v36 = vpop.f32.mrf.mxu0  ;;  %11780 = vmatmul.mubr.msk.f32.gmra.mxu0 %vm1064_vm1, %v17333_v15  ;;  %v17338_v47 = vld [vmem:[#allocation88_spill] sm:$0xff]  ;;  %v4252_v39 = vadd.f32 %v17340_v44, %v17339_v45  ;;  %v12546_v44 = vld [vmem:[%s12948_s27 + $0x3b8] sm:$0xff] }
 0x313   : > { %v15059_v41 = vmax.f32 %v5287_v61, %v5289_v38  ;;  %v5047_v53 = vadd.f32 %v11637_v36, %v4251_v40  ;;  %11782 = vmatprep.mubr.msk.f32.mxu0 %vm1064_vm1, %v17336_v50  ;;  %v4253_v43 = vadd.f32 %v17338_v47, %v17337_v29  ;;  %v5171_v27 = vadd.f32 %v15010_v42, %v5044_v31  ;;  %v17341_v40 = vld [vmem:[#allocation93_spill] sm:$0xff] }
 0x314   : > { %v4487_v21 = vpop.f32.mrf.mxu0  ;;  %v5292_v61 = vmax.f32 %v5172_v17, 0.0 }
 0x315   : > { %v5174_v15 = vadd.f32 %v15010_v42, %v5047_v53  ;;  %v5046_v51 = vadd.f32 %v4487_v21, %v4250_v25  ;;  %11802 = vmatprep.mubr.msk.f32.mxu1 %vm5466_vm3, %v15059_v41  ;;  %v17342_v25 = vld [vmem:[#allocation14_spill] sm:$0xff]  ;;  %v17343_v53 = vld [vmem:[#allocation92_spill] sm:$0xff]  ;;  %v5291_v29 = vmax.f32 %v5171_v27, 0.0 }
 0x316   : > { %v11640_v36 = vpop.f32.mrf.mxu0  ;;  %11783 = vmatmul.mubr.msk.f32.gmra.mxu0 %vm1064_vm1, %v17341_v40  ;;  %11803 = vmatmul.mubr.msk.f32.vlgmr.msra.gmra.mxu1 %vm5466_vm3, %v15053_v33  ;;  %v4255_v50 = vadd.f32 %v17343_v53, %v17342_v25  ;;  %v12547_v25 = vld [vmem:[%s12948_s27 + $0x3c0] sm:$0xff] }
 0x317   : > { %v5294_v38 = vmax.f32 %v5174_v15, 0.0  ;;  %v5173_v31 = vadd.f32 %v15010_v42, %v5046_v51  ;;  %v5049_v48 = vadd.f32 %v11640_v36, %v4253_v43  ;;  %11785 = vmatprep.mubr.msk.f32.mxu0 %vm1064_vm1, %v12545_v19  ;;  %11881 = vmatpush3.msk.msra.mxu1 %vm5623_vm2, %v14998_v23  ;;  %v17344_v43 = vld [vmem:[#allocation15_spill] sm:$0xff]  ;;  %v17345_v51 = vld [vmem:[#allocation94_spill] sm:$0xff] }
 0x318   : > { %v4497_v21 = vpop.f32.mrf.mxu0  ;;  %v4254_v36 = vadd.f32 %v17345_v51, %v17344_v43 }
 0x319   : > { %v15083_v47 = vmax.f32 %v5292_v61, %v5294_v38  ;;  %v5293_v45 = vmax.f32 %v5173_v31, 0.0  ;;  %v5048_v17 = vadd.f32 %v4497_v21, %v4252_v39  ;;  %v5176_v23 = vadd.f32 %v15010_v42, %v5049_v48  ;;  %v17346_v61 = vld [vmem:[#allocation16_spill] sm:$0xff]  ;;  %v17347_v39 = vld [vmem:[#allocation95_spill] sm:$0xff] }
 0x31a   : > { %v11643_v15 = vpop.f32.mrf.mxu0  ;;  %11786 = vmatmul.mubr.msk.f32.gmra.mxu0 %vm1064_vm1, %v12546_v44  ;;  %v4257_v38 = vadd.f32 %v17347_v39, %v17346_v61 }
 0x31b   : > { %v15089_v40 = vmax.f32 %v5291_v29, %v5293_v45  ;;  %v5051_v19 = vadd.f32 %v11643_v15, %v4255_v50  ;;  %11788 = vmatprep.mubr.msk.f32.mxu0 %vm1064_vm1, %v12547_v25  ;;  %v5175_v31 = vadd.f32 %v15010_v42, %v5048_v17  ;;  %v17348_v29 = vld [vmem:[#allocation17_spill] sm:$0xff]  ;;  %v17349_v45 = vld [vmem:[#allocation96_spill] sm:$0xff]  ;;  %v5296_v44 = vmax.f32 %v5176_v23, 0.0  ;;  %v12550_v23 = vld [vmem:[%s12948_s27 + $0x3d8] sm:$0xff] }
 0x31c   : > { %v4507_v27 = vpop.f32.mrf.mxu0  ;;  %v4256_v48 = vadd.f32 %v17349_v45, %v17348_v29  ;;  %v12548_v15 = vld [vmem:[%s12948_s27 + $0x3c8] sm:$0xff] }
 0x31d   : > { %v5178_v53 = vadd.f32 %v15010_v42, %v5051_v19  ;;  %v5050_v21 = vadd.f32 %v4507_v27, %v4254_v36  ;;  %11805 = vmatprep.mubr.msk.f32.mxu1 %vm5466_vm3, %v15089_v40  ;;  %v12549_v36 = vld [vmem:[%s12948_s27 + $0x3d0] sm:$0xff]  ;;  %v5295_v61 = vmax.f32 %v5175_v31, 0.0 }
 0x31e   : > { %v11646_v50 = vpop.f32.mrf.mxu0  ;;  %11789 = vmatmul.mubr.msk.f32.gmra.mxu0 %vm1064_vm1, %v12548_v15  ;;  %11806 = vmatmul.mubr.msk.f32.gmra.mxu1 %vm5466_vm3, %v15083_v47  ;;  %v17350_v19 = vld [vmem:[#allocation97_spill] sm:$0xff] }
 0x31f   : > { %v5298_v43 = vmax.f32 %v5178_v53, 0.0  ;;  %v5177_v17 = vadd.f32 %v15010_v42, %v5050_v21  ;;  %v5053_v51 = vadd.f32 %v11646_v50, %v4257_v38  ;;  %11791 = vmatprep.mubr.msk.f32.mxu0 %vm1064_vm1, %v12549_v36  ;;  %v4259_v25 = vadd.f32 %v17350_v19, %v14284_v35  ;;  %v12551_v50 = vld [vmem:[%s12948_s27 + $0x3e0] sm:$0xff] }
 0x320   : > { %v4517_v27 = vpop.f32.mrf.mxu0  ;;  %v4258_v38 = vadd.f32 %v14289_v46, %v14293_v58  ;;  %v4260_v46 = vadd.f32 %v14305_v3, %v14308_v49 }
 0x321   : > { %v15111_v39 = vmax.f32 %v5296_v44, %v5298_v43  ;;  %v5297_v29 = vmax.f32 %v5177_v17, 0.0  ;;  %v5052_v45 = vadd.f32 %v4517_v27, %v4256_v48  ;;  %v5180_v21 = vadd.f32 %v15010_v42, %v5053_v51  ;;  %v1059_v44 = vld [vmem:[%s12948_s27 + $0x3f0] sm:$0xff]  ;;  %v17351_v48 = vld [vmem:[#allocation18_spill] sm:$0xff]  ;;  %v12552_v51 = vld [vmem:[%s12948_s27 + $0x3e8] sm:$0xff] }
 0x322   : > { %v11649_v15 = vpop.f32.mrf.mxu0  ;;  %11792 = vmatmul.mubr.msk.f32.gmra.mxu0 %vm1064_vm1, %v12550_v23  ;;  %v4261_v43 = vadd.f32 %v17351_v48, %v14300_v37 }
 0x323   : > { %v15117_v53 = vmax.f32 %v5295_v61, %v5297_v29  ;;  %v5055_v35 = vadd.f32 %v11649_v15, %v4259_v25  ;;  %11794 = vmatprep.mubr.msk.f32.mxu0 %vm1064_vm1, %v12551_v50  ;;  %v5179_v17 = vadd.f32 %v15010_v42, %v5052_v45  ;;  %v5300_v25 = vmax.f32 %v5180_v21, 0.0  ;;  %v1060_v29 = vld [vmem:[%s12948_s27 + $0x3f8] sm:$0xff]  ;;  %v17353_v21 = vld [vmem:[#allocation99_spill] sm:$0xff] }
 0x324   : > { %v4527_v31 = vpop.f32.mrf.mxu0  ;;  %v17352_v45 = vld [vmem:[#allocation98_spill] sm:$0xff] }
 0x325   : > { %v5182_v36 = vadd.f32 %v15010_v42, %v5055_v35  ;;  %v5054_v19 = vadd.f32 %v4527_v31, %v4258_v38  ;;  %11808 = vmatprep.mubr.msk.f32.mxu1 %vm5466_vm3, %v15117_v53  ;;  %v4263_v15 = vadd.f32 %v17352_v45, %v14315_v54  ;;  %v5299_v3 = vmax.f32 %v5179_v17, 0.0  ;;  %v17354_v17 = vld [vmem:[#allocation100_spill] sm:$0xff] }
 0x326   : > { %v11652_v58 = vpop.f32.mrf.mxu0  ;;  %11795 = vmatmul.mubr.msk.f32.gmra.mxu0 %vm1064_vm1, %v12552_v51  ;;  %11809 = vmatmul.mubr.msk.f32.gmra.mxu1 %vm5466_vm3, %v15111_v39  ;;  %v4262_v31 = vadd.f32 %v17353_v21, %v14322_v4  ;;  %v17355_v4 = vld [vmem:[#allocation101_spill] sm:$0xff] }
 0x327   : > { %v5302_v37 = vmax.f32 %v5182_v36, 0.0  ;;  %v5181_v27 = vadd.f32 %v15010_v42, %v5054_v19  ;;  %v5057_v61 = vadd.f32 %v11652_v58, %v4261_v43  ;;  %11797 = vmatprep.mubr.msk.f32.mxu0 %vm1064_vm1, %v1059_v44  ;;  %v4265_v36 = vadd.f32 %v17354_v17, %v14329_v52 }
 0x328   : > { %v4537_v23 = vpop.f32.mrf.mxu0  ;;  %v4264_v51 = vadd.f32 %v17355_v4, %v14336_v62 }
 0x329   : > { %v15140_v49 = vmax.f32 %v5300_v25, %v5302_v37  ;;  %v5301_v38 = vmax.f32 %v5181_v27, 0.0  ;;  %v5056_v35 = vadd.f32 %v4537_v23, %v4260_v46  ;;  %v5184_v44 = vadd.f32 %v15010_v42, %v5057_v61 }
 0x32a   : > { %v11655_v50 = vpop.f32.mrf.mxu0  ;;  %11798 = vmatmul.mubr.msk.f32.gmra.mxu0 %vm1064_vm1, %v1060_v29  ;;  %v17356_v29 = vld [vmem:[#allocation102_spill] sm:$0xff] }
 0x32b   : > { %v15145_v48 = vmax.f32 %v5299_v3, %v5301_v38  ;;  %v5059_v43 = vadd.f32 %v11655_v50, %v4263_v15  ;;  %12042 = vmatprep.mubr.msk.f32.mxu0 %vm5466_vm3, %v15117_v53  ;;  %v5183_v19 = vadd.f32 %v15010_v42, %v5056_v35  ;;  %v5304_v37 = vmax.f32 %v5184_v44, 0.0  ;;  %v17357_v50 = vld [vmem:[#allocation103_spill] sm:$0xff] }
 0x32c   : > { %v4547_v54 = vpop.f32.mrf.mxu0  ;;  %v4267_v45 = vadd.f32 %v17356_v29, %v14343_v6  ;;  %v4266_v21 = vadd.f32 %v17357_v50, %v14350_v55  ;;  %v17358_v6 = vld [vmem:[#allocation104_spill] sm:$0xff]  ;;  %v17359_v55 = vld [vmem:[#allocation105_spill] sm:$0xff] }
 0x32d   : > { %v5186_v46 = vadd.f32 %v15010_v42, %v5059_v43  ;;  %v5058_v58 = vadd.f32 %v4547_v54, %v4262_v31  ;;  %11811 = vmatprep.mubr.msk.f32.mxu1 %vm5466_vm3, %v15145_v48  ;;  %v5303_v62 = vmax.f32 %v5183_v19, 0.0  ;;  %v4269_v54 = vadd.f32 %v17358_v6, %v14357_v0 }
 0x32e   : > { %v11658_v25 = vpop.f32.mrf.mxu0  ;;  %11812 = vmatmul.mubr.msk.f32.gmra.mxu1 %vm5466_vm3, %v15140_v49  ;;  %12043 = vmatmul.mubr.msk.f32.vlgmr.msra.gmra.mxu0 %vm5466_vm3, %v15111_v39 }
 0x32f   : > { %v5306_v52 = vmax.f32 %v5186_v46, 0.0  ;;  %v5185_v27 = vadd.f32 %v15010_v42, %v5058_v58  ;;  %v5061_v61 = vadd.f32 %v11658_v25, %v4265_v36  ;;  %12045 = vmatprep.mubr.msk.f32.mxu0 %vm5466_vm3, %v15145_v48  ;;  %v4268_v58 = vadd.f32 %v17359_v55, %v14364_v60 }
 0x330   : > { %v4557_v15 = vpop.f32.mrf.mxu0 }
 0x331   : > { %v15167_v23 = vmax.f32 %v5304_v37, %v5306_v52  ;;  %v5305_v3 = vmax.f32 %v5185_v27, 0.0  ;;  %v5060_v38 = vadd.f32 %v4557_v15, %v4264_v51  ;;  %v5188_v44 = vadd.f32 %v15010_v42, %v5061_v61  ;;  %v17360_v52 = vld [vmem:[#allocation106_spill] sm:$0xff] }
 0x332   : > { %v11661_v35 = vpop.f32.mrf.mxu0  ;;  %12046 = vmatmul.mubr.msk.f32.gmra.mxu0 %vm5466_vm3, %v15140_v49  ;;  %v4271_v27 = vadd.f32 %v17360_v52, %v14371_v10 }
 0x333   : > { %v15173_v31 = vmax.f32 %v5303_v62, %v5305_v3  ;;  %v5063_v43 = vadd.f32 %v11661_v35, %v4267_v45  ;;  %v5187_v36 = vadd.f32 %v15010_v42, %v5060_v38  ;;  %v5308_v0 = vmax.f32 %v5188_v44, 0.0  ;;  %v17361_v3 = vld [vmem:[#allocation107_spill] sm:$0xff]  ;;  %v17362_v44 = vld [vmem:[#allocation108_spill] sm:$0xff] }
 0x334   : > { %v4567_v17 = vpop.f32.mrf.mxu0  ;;  %v4270_v38 = vadd.f32 %v17361_v3, %v14378_v56  ;;  %v17363_v56 = vld [vmem:[#allocation109_spill] sm:$0xff]  ;;  %v17366_v3 = vld [vmem:[#allocation112_spill] sm:$0xff] }
 0x335   : > { %v5190_v19 = vadd.f32 %v15010_v42, %v5063_v43  ;;  %v5062_v46 = vadd.f32 %v4567_v17, %v4266_v21  ;;  %11814 = vmatprep.mubr.msk.f32.mxu1 %vm5466_vm3, %v15173_v31  ;;  %12048 = vmatprep.mubr.msk.f32.mxu0 %vm5466_vm3, %v15173_v31  ;;  %v5307_v29 = vmax.f32 %v5187_v36, 0.0  ;;  %v4273_v43 = vadd.f32 %v17362_v44, %v14385_v12 }
 0x336   : > { %v11664_v4 = vpop.f32.mrf.mxu0  ;;  %11815 = vmatmul.mubr.msk.f32.gmra.mxu1 %vm5466_vm3, %v15167_v23  ;;  %12049 = vmatmul.mubr.msk.f32.gmra.mxu0 %vm5466_vm3, %v15167_v23  ;;  %v4272_v36 = vadd.f32 %v17363_v56, %v14392_v8  ;;  %v17368_v56 = vld [vmem:[#allocation114_spill] sm:$0xff] }
 0x337   : > { %v5310_v51 = vmax.f32 %v5190_v19, 0.0  ;;  %v5189_v25 = vadd.f32 %v15010_v42, %v5062_v46  ;;  %v5065_v37 = vadd.f32 %v11664_v4, %v4269_v54  ;;  %v17364_v4 = vld [vmem:[#allocation110_spill] sm:$0xff] }
 0x338   : > { %v4577_v61 = vpop.f32.mrf.mxu0 }
 0x339   : > { %v15193_v45 = vmax.f32 %v5308_v0, %v5310_v51  ;;  %v5309_v60 = vmax.f32 %v5189_v25, 0.0  ;;  %v5064_v15 = vadd.f32 %v4577_v61, %v4268_v58  ;;  %v5192_v50 = vadd.f32 %v15010_v42, %v5065_v37  ;;  %v17365_v61 = vld [vmem:[#allocation111_spill] sm:$0xff] }
 0x33a   : > { %v11667_v62 = vpop.f32.mrf.mxu0  ;;  %v4275_v0 = vadd.f32 %v17364_v4, %v14399_v14  ;;  %v17369_v4 = vld [vmem:[#allocation115_spill] sm:$0xff] }
 0x33b   : > { %v15197_v35 = vmax.f32 %v5307_v29, %v5309_v60  ;;  %v5067_v21 = vadd.f32 %v11667_v62, %v4271_v27  ;;  %v5191_v10 = vadd.f32 %v15010_v42, %v5064_v15  ;;  %v5312_v12 = vmax.f32 %v5192_v50, 0.0 }
 0x33c   : > { %v4587_v6 = vpop.f32.mrf.mxu0  ;;  %v4274_v29 = vadd.f32 %v17365_v61, %v14406_v59  ;;  %v17367_v59 = vld [vmem:[#allocation113_spill] sm:$0xff] }
 0x33d   : > { %v5194_v54 = vadd.f32 %v15010_v42, %v5067_v21  ;;  %v5066_v17 = vadd.f32 %v4587_v6, %v4270_v38  ;;  %11817 = vmatprep.mubr.msk.f32.mxu1 %vm5466_vm3, %v15197_v35  ;;  %12051 = vmatprep.mubr.msk.f32.mxu0 %vm5466_vm3, %v15197_v35  ;;  %v5311_v25 = vmax.f32 %v5191_v10, 0.0  ;;  %v4277_v38 = vadd.f32 %v17366_v3, %v14413_v16 }
 0x33e   : > { %v11670_v19 = vpop.f32.mrf.mxu0  ;;  %11818 = vmatmul.mubr.msk.f32.gmra.mxu1 %vm5466_vm3, %v15193_v45  ;;  %12052 = vmatmul.mubr.msk.f32.gmra.mxu0 %vm5466_vm3, %v15193_v45 }
 0x33f   : > { %v5314_v46 = vmax.f32 %v5194_v54, 0.0  ;;  %v5193_v55 = vadd.f32 %v15010_v42, %v5066_v17  ;;  %v5069_v58 = vadd.f32 %v11670_v19, %v4273_v43  ;;  %v4276_v43 = vadd.f32 %v17367_v59, %v14420_v5 }
 0x340   : > { %v4597_v51 = vpop.f32.mrf.mxu0 }
 0x341   : > { %v15217_v37 = vmax.f32 %v5312_v12, %v5314_v46  ;;  %v5313_v8 = vmax.f32 %v5193_v55, 0.0  ;;  %v5068_v52 = vadd.f32 %v4597_v51, %v4272_v36  ;;  %v5196_v15 = vadd.f32 %v15010_v42, %v5069_v58 }
 0x342   : > { %v11673_v27 = vpop.f32.mrf.mxu0  ;;  %v4279_v36 = vadd.f32 %v17368_v56, %v14427_v18 }
 0x343   : > { %v15221_v60 = vmax.f32 %v5311_v25, %v5313_v8  ;;  %v5071_v62 = vadd.f32 %v11673_v27, %v4275_v0  ;;  %v5195_v14 = vadd.f32 %v15010_v42, %v5068_v52  ;;  %v5316_v16 = vmax.f32 %v5196_v15, 0.0  ;;  %v17370_v52 = vld [vmem:[#allocation116_spill] sm:$0xff] }
 0x344   : > { %v4607_v50 = vpop.f32.mrf.mxu0  ;;  %v4278_v0 = vadd.f32 %v17369_v4, %v14434_v1  ;;  %v4281_v27 = vadd.f32 %v17370_v52, %v14441_v20  ;;  %v17371_v1 = vld [vmem:[#allocation117_spill] sm:$0xff] }
 0x345   : > { %v5198_v21 = vadd.f32 %v15010_v42, %v5071_v62  ;;  %v5070_v44 = vadd.f32 %v4607_v50, %v4274_v29  ;;  %11820 = vmatprep.mubr.msk.f32.mxu1 %vm5466_vm3, %v15221_v60  ;;  %12054 = vmatprep.mubr.msk.f32.mxu0 %vm5466_vm3, %v15221_v60  ;;  %v5315_v12 = vmax.f32 %v5195_v14, 0.0  ;;  %v4280_v62 = vadd.f32 %v17371_v1, %v14448_v63 }
 0x346   : > { %v11676_v6 = vpop.f32.mrf.mxu0  ;;  %11821 = vmatmul.mubr.msk.f32.gmra.mxu1 %vm5466_vm3, %v15217_v37  ;;  %12055 = vmatmul.mubr.msk.f32.gmra.mxu0 %vm5466_vm3, %v15217_v37 }
 0x347   : > { %v5318_v10 = vmax.f32 %v5198_v21, 0.0  ;;  %v5197_v54 = vadd.f32 %v15010_v42, %v5070_v44  ;;  %v5073_v17 = vadd.f32 %v11676_v6, %v4277_v38  ;;  %v17372_v21 = vld [vmem:[#allocation118_spill] sm:$0xff] }
 0x348   : > { %v4617_v19 = vpop.f32.mrf.mxu0  ;;  %v4283_v44 = vadd.f32 %v17372_v21, %v14455_v22 }
 0x349   : > { %v15241_v46 = vmax.f32 %v5316_v16, %v5318_v10  ;;  %v5317_v5 = vmax.f32 %v5197_v54, 0.0  ;;  %v5072_v55 = vadd.f32 %v4617_v19, %v4276_v43  ;;  %v5200_v25 = vadd.f32 %v15010_v42, %v5073_v17  ;;  %v17373_v54 = vld [vmem:[#allocation119_spill] sm:$0xff] }
 0x34a   : > { %v11679_v58 = vpop.f32.mrf.mxu0  ;;  %v4282_v17 = vadd.f32 %v17373_v54, %v14462_v57  ;;  %v17375_v57 = vld [vmem:[#allocation121_spill] sm:$0xff] }
 0x34b   : > { %v15245_v51 = vmax.f32 %v5315_v12, %v5317_v5  ;;  %v5075_v8 = vadd.f32 %v11679_v58, %v4279_v36  ;;  %v5199_v18 = vadd.f32 %v15010_v42, %v5072_v55  ;;  %v5320_v20 = vmax.f32 %v5200_v25, 0.0  ;;  %v17374_v12 = vld [vmem:[#allocation120_spill] sm:$0xff] }
 0x34c   : > { %v4627_v61 = vpop.f32.mrf.mxu0  ;;  %v4285_v5 = vadd.f32 %v17374_v12, %v14469_v24  ;;  %v17380_v12 = vld [vmem:[#allocation126_spill] sm:$0xff] }
 0x34d   : > { %v5202_v29 = vadd.f32 %v15010_v42, %v5075_v8  ;;  %v5074_v15 = vadd.f32 %v4627_v61, %v4278_v0  ;;  %11823 = vmatprep.mubr.msk.f32.mxu1 %vm5466_vm3, %v15245_v51  ;;  %12057 = vmatprep.mubr.msk.f32.mxu0 %vm5466_vm3, %v15245_v51  ;;  %v5319_v43 = vmax.f32 %v5199_v18, 0.0  ;;  %v4284_v0 = vadd.f32 %v17375_v57, %v14476_v2  ;;  %v17376_v61 = vld [vmem:[#allocation122_spill] sm:$0xff] }
 0x34e   : > { %v11682_v3 = vpop.f32.mrf.mxu0  ;;  %11824 = vmatmul.mubr.msk.f32.gmra.mxu1 %vm5466_vm3, %v15241_v46  ;;  %12058 = vmatmul.mubr.msk.f32.gmra.mxu0 %vm5466_vm3, %v15241_v46  ;;  %v4287_v18 = vadd.f32 %v17376_v61, %v14483_v26 }
 0x34f   : > { %v5322_v38 = vmax.f32 %v5202_v29, 0.0  ;;  %v5201_v50 = vadd.f32 %v15010_v42, %v5074_v15  ;;  %v5077_v14 = vadd.f32 %v11682_v3, %v4281_v27 }
 0x350   : > { %v4637_v59 = vpop.f32.mrf.mxu0 }
 0x351   : > { %v15265_v6 = vmax.f32 %v5320_v20, %v5322_v38  ;;  %v5321_v63 = vmax.f32 %v5201_v50, 0.0  ;;  %v5076_v16 = vadd.f32 %v4637_v59, %v4280_v62  ;;  %v5204_v36 = vadd.f32 %v15010_v42, %v5077_v14  ;;  %v17377_v20 = vld [vmem:[#allocation123_spill] sm:$0xff] }
 0x352   : > { %v11685_v10 = vpop.f32.mrf.mxu0  ;;  %v4286_v38 = vadd.f32 %v17377_v20, %v14490_v7  ;;  %v17379_v7 = vld [vmem:[#allocation125_spill] sm:$0xff] }
 0x353   : > { %v15269_v56 = vmax.f32 %v5319_v43, %v5321_v63  ;;  %v5079_v19 = vadd.f32 %v11685_v10, %v4283_v44  ;;  %v5203_v22 = vadd.f32 %v15010_v42, %v5076_v16  ;;  %v5324_v24 = vmax.f32 %v5204_v36, 0.0  ;;  %v17378_v44 = vld [vmem:[#allocation124_spill] sm:$0xff] }
 0x354   : > { %v4647_v55 = vpop.f32.mrf.mxu0  ;;  %v4289_v59 = vadd.f32 %v17378_v44, %v14497_v28  ;;  %v4288_v10 = vadd.f32 %v17379_v7, %v14504_v9  ;;  %v17385_v7 = vld [vmem:[#allocation132_spill] sm:$0xff] }
 0x355   : > { %v5206_v58 = vadd.f32 %v15010_v42, %v5079_v19  ;;  %v5078_v4 = vadd.f32 %v4647_v55, %v4282_v17  ;;  %11826 = vmatprep.mubr.msk.f32.mxu1 %vm5466_vm3, %v15269_v56  ;;  %12060 = vmatprep.mubr.msk.f32.mxu0 %vm5466_vm3, %v15269_v56  ;;  %v5323_v15 = vmax.f32 %v5203_v22, 0.0 }
 0x356   : > { %v11688_v25 = vpop.f32.mrf.mxu0  ;;  %11827 = vmatmul.mubr.msk.f32.gmra.mxu1 %vm5466_vm3, %v15265_v6  ;;  %12061 = vmatmul.mubr.msk.f32.gmra.mxu0 %vm5466_vm3, %v15265_v6 }
 0x357   : > { %v5326_v8 = vmax.f32 %v5206_v58, 0.0  ;;  %v5205_v52 = vadd.f32 %v15010_v42, %v5078_v4  ;;  %v5081_v27 = vadd.f32 %v11688_v25, %v4285_v5  ;;  %v4291_v5 = vadd.f32 %v17380_v12, %v14511_v30  ;;  %v17388_v12 = vld [vmem:[#allocation133_spill] sm:$0xff] }
 0x358   : > { %v4657_v29 = vpop.f32.mrf.mxu0 }
 0x359   : > { %v15289_v1 = vmax.f32 %v5324_v24, %v5326_v8  ;;  %v5325_v2 = vmax.f32 %v5205_v52, 0.0  ;;  %v5080_v62 = vadd.f32 %v4657_v29, %v4284_v0  ;;  %v5208_v14 = vadd.f32 %v15010_v42, %v5081_v27  ;;  %v17381_v0 = vld [vmem:[#allocation127_spill] sm:$0xff]  ;;  %v17382_v27 = vld [vmem:[#allocation128_spill] sm:$0xff] }
 0x35a   : > { %v11691_v3 = vpop.f32.mrf.mxu0  ;;  %v4290_v25 = vadd.f32 %v17381_v0, %v14518_v11  ;;  %v4293_v61 = vadd.f32 %v17382_v27, %v14525_v32  ;;  %v15331_v11 = vld [vmem:[%s16919_s3 + $0x10] sm:$0x3f] }
 0x35b   : > { %v15293_v50 = vmax.f32 %v5323_v15, %v5325_v2  ;;  %v5083_v21 = vadd.f32 %v11691_v3, %v4287_v18  ;;  %v5207_v26 = vadd.f32 %v15010_v42, %v5080_v62  ;;  %v5328_v28 = vmax.f32 %v5208_v14, 0.0  ;;  %v17383_v2 = vld [vmem:[#allocation129_spill] sm:$0xff]  ;;  %11960 = vmatprep.subr.msk.mxu1 %vm5623_vm2, %v15331_v11 }
 0x35c   : > { %v4667_v43 = vpop.f32.mrf.mxu0  ;;  %v4292_v32 = vadd.f32 %v17383_v2, %v14532_v13 }
 0x35d   : > { %v5210_v63 = vadd.f32 %v15010_v42, %v5083_v21  ;;  %v5082_v16 = vadd.f32 %v4667_v43, %v4286_v38  ;;  %11829 = vmatprep.mubr.msk.f32.mxu1 %vm5466_vm3, %v15293_v50  ;;  %12063 = vmatprep.mubr.msk.f32.mxu0 %vm5466_vm3, %v15293_v50  ;;  %v5327_v22 = vmax.f32 %v5207_v26, 0.0  ;;  %v17384_v21 = vld [vmem:[#allocation130_spill] sm:$0xff] }
 0x35e   : > { %v11694_v54 = vpop.f32.mrf.mxu0  ;;  %11830 = vmatmul.mubr.msk.f32.gmra.mxu1 %vm5466_vm3, %v15289_v1  ;;  %12064 = vmatmul.mubr.msk.f32.gmra.mxu0 %vm5466_vm3, %v15289_v1  ;;  %v4295_v44 = vadd.f32 %v17384_v21, %v14539_v34 }
 0x35f   : > { %v5330_v17 = vmax.f32 %v5210_v63, 0.0  ;;  %v5209_v36 = vadd.f32 %v15010_v42, %v5082_v16  ;;  %v5085_v19 = vadd.f32 %v11694_v54, %v4289_v59 }
 0x360   : > { %v4677_v55 = vpop.f32.mrf.mxu0 }
 0x361   : > { %v15313_v58 = vmax.f32 %v5328_v28, %v5330_v17  ;;  %v5329_v9 = vmax.f32 %v5209_v36, 0.0  ;;  %v5084_v4 = vadd.f32 %v4677_v55, %v4288_v10  ;;  %v5212_v8 = vadd.f32 %v15010_v42, %v5085_v19  ;;  %v17386_v10 = vld [vmem:[#allocation131_spill] sm:$0xff]  ;;  %v17387_v19 = vld [vmem:[#allocation134_spill] sm:$0xff] }
 0x362   : > { %v11697_v57 = vpop.f32.mrf.mxu0  ;;  %v4294_v54 = vadd.f32 %v17386_v10, %v17385_v7 }
 0x363   : > { %v15317_v24 = vmax.f32 %v5327_v22, %v5329_v9  ;;  %v5087_v52 = vadd.f32 %v11697_v57, %v4291_v5  ;;  %v5211_v30 = vadd.f32 %v15010_v42, %v5084_v4  ;;  %v5332_v3 = vmax.f32 %v5212_v8, 0.0  ;;  %v17389_v4 = vld [vmem:[#allocation136_spill] sm:$0xff]  ;;  %v17390_v57 = vld [vmem:[#allocation135_spill] sm:$0xff] }
 0x364   : > { %v4687_v18 = vpop.f32.mrf.mxu0  ;;  %v4297_v5 = vadd.f32 %v17388_v12, %v17387_v19  ;;  %v4296_v0 = vadd.f32 %v17390_v57, %v17389_v4  ;;  %v17398_v19 = vld [vmem:[#allocation143_spill] sm:$0xff]  ;;  %v17399_v4 = vld [vmem:[#allocation146_spill] sm:$0xff]  ;;  %v17400_v57 = vld [vmem:[#allocation145_spill] sm:$0xff] }
 0x365   : > { %v5214_v29 = vadd.f32 %v15010_v42, %v5087_v52  ;;  %v5086_v15 = vadd.f32 %v4687_v18, %v4290_v25  ;;  %11832 = vmatprep.mubr.msk.f32.mxu1 %vm5466_vm3, %v15317_v24  ;;  %12066 = vmatprep.mubr.msk.f32.mxu0 %vm5466_vm3, %v15317_v24  ;;  %v5331_v13 = vmax.f32 %v5211_v30, 0.0  ;;  %v17391_v18 = vld [vmem:[#allocation138_spill] sm:$0xff]  ;;  %v17392_v30 = vld [vmem:[#allocation137_spill] sm:$0xff] }
 0x366   : > { %v11700_v62 = vpop.f32.mrf.mxu0  ;;  %11833 = vmatmul.mubr.msk.f32.gmra.mxu1 %vm5466_vm3, %v15313_v58  ;;  %12067 = vmatmul.mubr.msk.f32.gmra.mxu0 %vm5466_vm3, %v15313_v58 }
 0x367   : > { %v5334_v20 = vmax.f32 %v5214_v29, 0.0  ;;  %v5213_v38 = vadd.f32 %v15010_v42, %v5086_v15  ;;  %v5089_v14 = vadd.f32 %v11700_v62, %v4293_v61  ;;  %v4299_v29 = vadd.f32 %v17392_v30, %v17391_v18  ;;  %v17401_v30 = vld [vmem:[#allocation148_spill] sm:$0xff] }
 0x368   : > { %v4697_v59 = vpop.f32.mrf.mxu0 }
 0x369   : > { %v15344_v43 = vmax.f32 %v5332_v3, %v5334_v20  ;;  %v5333_v26 = vmax.f32 %v5213_v38, 0.0  ;;  %v5088_v63 = vadd.f32 %v4697_v59, %v4292_v32  ;;  %v5216_v17 = vadd.f32 %v15010_v42, %v5089_v14  ;;  %v17393_v38 = vld [vmem:[#allocation140_spill] sm:$0xff]  ;;  %v17394_v14 = vld [vmem:[#allocation139_spill] sm:$0xff] }
 0x36a   : > { %v11703_v16 = vpop.f32.mrf.mxu0  ;;  %v4298_v21 = vadd.f32 %v17394_v14, %v17393_v38  ;;  %v17404_v38 = vld [vmem:[#allocation149_spill] sm:$0xff] }
 0x36b   : > { %v15348_v28 = vmax.f32 %v5331_v13, %v5333_v26  ;;  %v5091_v36 = vadd.f32 %v11703_v16, %v4295_v44  ;;  %v5215_v34 = vadd.f32 %v15010_v42, %v5088_v63  ;;  %v5336_v8 = vmax.f32 %v5216_v17, 0.0  ;;  %v17395_v26 = vld [vmem:[#allocation142_spill] sm:$0xff]  ;;  %v17396_v63 = vld [vmem:[#allocation141_spill] sm:$0xff] }
 0x36c   : > { %v4707_v55 = vpop.f32.mrf.mxu0  ;;  %v4301_v16 = vadd.f32 %v17396_v63, %v17395_v26  ;;  %v17405_v63 = vld [vmem:[#allocation152_spill] sm:$0xff] }
 0x36d   : > { %v5218_v22 = vadd.f32 %v15010_v42, %v5091_v36  ;;  %v5090_v9 = vadd.f32 %v4707_v55, %v4294_v54  ;;  %11835 = vmatprep.mubr.msk.f32.mxu1 %vm5466_vm3, %v15348_v28  ;;  %12069 = vmatprep.mubr.msk.f32.mxu0 %vm5466_vm3, %v15348_v28  ;;  %v5335_v2 = vmax.f32 %v5215_v34, 0.0  ;;  %v17397_v36 = vld [vmem:[#allocation144_spill] sm:$0xff] }
 0x36e   : > { %v11706_v25 = vpop.f32.mrf.mxu0  ;;  %11836 = vmatmul.mubr.msk.f32.gmra.mxu1 %vm5466_vm3, %v15344_v43  ;;  %12070 = vmatmul.mubr.msk.f32.gmra.mxu0 %vm5466_vm3, %v15344_v43  ;;  %v4300_v12 = vadd.f32 %v17398_v19, %v17397_v36 }
 0x36f   : > { %v5338_v52 = vmax.f32 %v5218_v22, 0.0  ;;  %v5217_v27 = vadd.f32 %v15010_v42, %v5090_v9  ;;  %v5093_v61 = vadd.f32 %v11706_v25, %v4297_v5 }
 0x370   : > { %v4717_v15 = vpop.f32.mrf.mxu0 }
 0x371   : > { %v15368_v32 = vmax.f32 %v5336_v8, %v5338_v52  ;;  %v5337_v62 = vmax.f32 %v5217_v27, 0.0  ;;  %v5092_v3 = vadd.f32 %v4717_v15, %v4296_v0  ;;  %v5220_v59 = vadd.f32 %v15010_v42, %v5093_v61 }
 0x372   : > { %v11709_v20 = vpop.f32.mrf.mxu0  ;;  %v4303_v0 = vadd.f32 %v17400_v57, %v17399_v4 }
 0x373   : > { %v15372_v44 = vmax.f32 %v5335_v2, %v5337_v62  ;;  %v5095_v13 = vadd.f32 %v11709_v20, %v4299_v29  ;;  %v5219_v10 = vadd.f32 %v15010_v42, %v5092_v3  ;;  %v5340_v55 = vmax.f32 %v5220_v59, 0.0  ;;  %v17402_v29 = vld [vmem:[#allocation147_spill] sm:$0xff]  ;;  %v17403_v20 = vld [vmem:[#allocation150_spill] sm:$0xff] }
 0x374   : > { %v4727_v7 = vpop.f32.mrf.mxu0  ;;  %v4302_v15 = vadd.f32 %v17402_v29, %v17401_v30  ;;  %v4305_v14 = vadd.f32 %v17404_v38, %v17403_v20  ;;  %v17411_v29 = vld [vmem:[#allocation20_spill] sm:$0xff] }
 0x375   : > { %v5222_v54 = vadd.f32 %v15010_v42, %v5095_v13  ;;  %v5094_v17 = vadd.f32 %v4727_v7, %v4298_v21  ;;  %11838 = vmatprep.mubr.msk.f32.mxu1 %vm5466_vm3, %v15372_v44  ;;  %12072 = vmatprep.mubr.msk.f32.mxu0 %vm5466_vm3, %v15372_v44  ;;  %v5339_v8 = vmax.f32 %v5219_v10, 0.0 }
 0x376   : > { %v11712_v5 = vpop.f32.mrf.mxu0  ;;  %11839 = vmatmul.mubr.msk.f32.gmra.mxu1 %vm5466_vm3, %v15368_v32  ;;  %12073 = vmatmul.mubr.msk.f32.gmra.mxu0 %vm5466_vm3, %v15368_v32 }
 0x377   : > { %v5342_v34 = vmax.f32 %v5222_v54, 0.0  ;;  %v5221_v22 = vadd.f32 %v15010_v42, %v5094_v17  ;;  %v5097_v9 = vadd.f32 %v11712_v5, %v4301_v16  ;;  %v17406_v16 = vld [vmem:[#allocation151_spill] sm:$0xff]  ;;  %v17408_v5 = vld [vmem:[#allocation153_spill] sm:$0xff] }
 0x378   : > { %v4737_v25 = vpop.f32.mrf.mxu0  ;;  %v4304_v7 = vadd.f32 %v17406_v16, %v17405_v63 }
 0x379   : > { %v15392_v52 = vmax.f32 %v5340_v55, %v5342_v34  ;;  %v5341_v27 = vmax.f32 %v5221_v22, 0.0  ;;  %v5096_v61 = vadd.f32 %v4737_v25, %v4300_v12  ;;  %v5224_v62 = vadd.f32 %v15010_v42, %v5097_v9  ;;  %v17407_v12 = vld [vmem:[#allocation154_spill] sm:$0xff]  ;;  %v17409_v25 = vld [vmem:[#allocation19_spill] sm:$0xff] }
 0x37a   : > { %v11715_v18 = vpop.f32.mrf.mxu0  ;;  %v4307_v55 = vadd.f32 %v17408_v5, %v17407_v12 }
 0x37b   : > { %v15396_v2 = vmax.f32 %v5339_v8, %v5341_v27  ;;  %v5099_v3 = vadd.f32 %v11715_v18, %v4303_v0  ;;  %v5223_v59 = vadd.f32 %v15010_v42, %v5096_v61  ;;  %v5344_v54 = vmax.f32 %v5224_v62, 0.0  ;;  %v17410_v8 = vld [vmem:[#allocation155_spill] sm:$0xff] }
 0x37c   : > { %v4747_v21 = vpop.f32.mrf.mxu0  ;;  %v4306_v27 = vadd.f32 %v17410_v8, %v17409_v25 }
 0x37d   : > { %v5226_v13 = vadd.f32 %v15010_v42, %v5099_v3  ;;  %v5098_v26 = vadd.f32 %v4747_v21, %v4302_v15  ;;  %11841 = vmatprep.mubr.msk.f32.mxu1 %vm5466_vm3, %v15396_v2  ;;  %12075 = vmatprep.mubr.msk.f32.mxu0 %vm5466_vm3, %v15396_v2  ;;  %v5343_v22 = vmax.f32 %v5223_v59, 0.0  ;;  %v17412_v15 = vld [vmem:[#allocation156_spill] sm:$0xff]  ;;  %v17413_v21 = vld [vmem:[#allocation21_spill] sm:$0xff] }
 0x37e   : > { %v11718_v10 = vpop.f32.mrf.mxu0  ;;  %11842 = vmatmul.mubr.msk.f32.gmra.mxu1 %vm5466_vm3, %v15392_v52  ;;  %12076 = vmatmul.mubr.msk.f32.gmra.mxu0 %vm5466_vm3, %v15392_v52  ;;  %v4309_v62 = vadd.f32 %v17412_v15, %v17411_v29  ;;  %v17414_v59 = vld [vmem:[#allocation157_spill] sm:$0xff] }
 0x37f   : > { %v5346_v17 = vmax.f32 %v5226_v13, 0.0  ;;  %v5225_v36 = vadd.f32 %v15010_v42, %v5098_v26  ;;  %v5101_v19 = vadd.f32 %v11718_v10, %v4305_v14  ;;  %v4308_v13 = vadd.f32 %v17414_v59, %v17413_v21 }
 0x380   : > { %v4757_v34 = vpop.f32.mrf.mxu0 }
 0x381   : > { %v15416_v9 = vmax.f32 %v5344_v54, %v5346_v17  ;;  %v5345_v4 = vmax.f32 %v5225_v36, 0.0  ;;  %v5100_v57 = vadd.f32 %v4757_v34, %v4304_v7  ;;  %v5228_v18 = vadd.f32 %v15010_v42, %v5101_v19  ;;  %v17415_v54 = vld [vmem:[#allocation22_spill] sm:$0xff] }
 0x382   : > { %v11721_v0 = vpop.f32.mrf.mxu0  ;;  %v17416_v17 = vld [vmem:[#allocation158_spill] sm:$0xff] }
 0x383   : > { %v15420_v61 = vmax.f32 %v5343_v22, %v5345_v4  ;;  %v5103_v30 = vadd.f32 %v11721_v0, %v4307_v55  ;;  %v5227_v20 = vadd.f32 %v15010_v42, %v5100_v57  ;;  %v5348_v63 = vmax.f32 %v5228_v18, 0.0  ;;  %v17417_v4 = vld [vmem:[#allocation23_spill] sm:$0xff]  ;;  %v17419_v18 = vld [vmem:[#allocation24_spill] sm:$0xff] }
 0x384   : > { %v4767_v3 = vpop.f32.mrf.mxu0  ;;  %v4311_v36 = vadd.f32 %v17416_v17, %v17415_v54  ;;  %v17418_v57 = vld [vmem:[#allocation159_spill] sm:$0xff] }
 0x385   : > { %v5230_v38 = vadd.f32 %v15010_v42, %v5103_v30  ;;  %v5102_v14 = vadd.f32 %v4767_v3, %v4306_v27  ;;  %11844 = vmatprep.mubr.msk.f32.mxu1 %vm5466_vm3, %v15420_v61  ;;  %12078 = vmatprep.mubr.msk.f32.mxu0 %vm5466_vm3, %v15420_v61  ;;  %v5347_v12 = vmax.f32 %v5227_v20, 0.0  ;;  %v4310_v0 = vadd.f32 %v17418_v57, %v17417_v4  ;;  %v17420_v30 = vld [vmem:[#allocation160_spill] sm:$0xff]  ;;  %v17426_v4 = vld [vmem:[#allocation163_spill] sm:$0xff] }
 0x386   : > { %v11724_v26 = vpop.f32.mrf.mxu0  ;;  %11845 = vmatmul.mubr.msk.f32.gmra.mxu1 %vm5466_vm3, %v15416_v9  ;;  %12079 = vmatmul.mubr.msk.f32.gmra.mxu0 %vm5466_vm3, %v15416_v9  ;;  %v4313_v29 = vadd.f32 %v17420_v30, %v17419_v18  ;;  %v17427_v18 = vld [vmem:[#allocation28_spill] sm:$0xff] }
 0x387   : > { %v5350_v16 = vmax.f32 %v5230_v38, 0.0  ;;  %v5229_v7 = vadd.f32 %v15010_v42, %v5102_v14  ;;  %v5105_v10 = vadd.f32 %v11724_v26, %v4309_v62  ;;  %v17421_v38 = vld [vmem:[#allocation25_spill] sm:$0xff]  ;;  %v17428_v30 = vld [vmem:[#allocation164_spill] sm:$0xff] }
 0x388   : > { %v4777_v19 = vpop.f32.mrf.mxu0  ;;  %v17422_v14 = vld [vmem:[#allocation161_spill] sm:$0xff] }
 0x389   : > { %v15440_v5 = vmax.f32 %v5348_v63, %v5350_v16  ;;  %v5349_v55 = vmax.f32 %v5229_v7, 0.0  ;;  %v5104_v34 = vadd.f32 %v4777_v19, %v4308_v13  ;;  %v5232_v8 = vadd.f32 %v15010_v42, %v5105_v10  ;;  %v17423_v7 = vld [vmem:[#allocation26_spill] sm:$0xff] }
 0x38a   : > { %v11727_v22 = vpop.f32.mrf.mxu0  ;;  %v4312_v21 = vadd.f32 %v17422_v14, %v17421_v38  ;;  %v17424_v10 = vld [vmem:[#allocation162_spill] sm:$0xff]  ;;  %v17429_v38 = vld [vmem:[#allocation29_spill] sm:$0xff] }
 0x38b   : > { %v15444_v25 = vmax.f32 %v5347_v12, %v5349_v55  ;;  %v5107_v27 = vadd.f32 %v11727_v22, %v4311_v36  ;;  %v5231_v62 = vadd.f32 %v15010_v42, %v5104_v34  ;;  %v5352_v13 = vmax.f32 %v5232_v8, 0.0  ;;  %v17425_v22 = vld [vmem:[#allocation27_spill] sm:$0xff]  ;;  %v17430_v14 = vld [vmem:[#allocation165_spill] sm:$0xff] }
 0x38c   : > { %v4787_v15 = vpop.f32.mrf.mxu0  ;;  %v4315_v54 = vadd.f32 %v17424_v10, %v17423_v7  ;;  %v4314_v57 = vadd.f32 %v17426_v4, %v17425_v22  ;;  %v17431_v7 = vld [vmem:[#allocation30_spill] sm:$0xff]  ;;  %v17433_v4 = vld [vmem:[#allocation31_spill] sm:$0xff] }
 0x38d   : > { %v5234_v3 = vadd.f32 %v15010_v42, %v5107_v27  ;;  %v5106_v20 = vadd.f32 %v4787_v15, %v4310_v0  ;;  %11847 = vmatprep.mubr.msk.f32.mxu1 %vm5466_vm3, %v15444_v25  ;;  %12081 = vmatprep.mubr.msk.f32.mxu0 %vm5466_vm3, %v15444_v25  ;;  %v5351_v36 = vmax.f32 %v5231_v62, 0.0  ;;  %v17432_v10 = vld [vmem:[#allocation166_spill] sm:$0xff] }
 0x38e   : > { %v11730_v59 = vpop.f32.mrf.mxu0  ;;  %11848 = vmatmul.mubr.msk.f32.gmra.mxu1 %vm5466_vm3, %v15440_v5  ;;  %12082 = vmatmul.mubr.msk.f32.gmra.mxu0 %vm5466_vm3, %v15440_v5 }
 0x38f   : > { %v5354_v26 = vmax.f32 %v5234_v3, 0.0  ;;  %v5233_v63 = vadd.f32 %v15010_v42, %v5106_v20  ;;  %v5109_v16 = vadd.f32 %v11730_v59, %v4313_v29  ;;  %v4317_v29 = vadd.f32 %v17428_v30, %v17427_v18 }
 0x390   : > { %v4797_v17 = vpop.f32.mrf.mxu0 }
 0x391   : > { %v15464_v19 = vmax.f32 %v5352_v13, %v5354_v26  ;;  %v5353_v12 = vmax.f32 %v5233_v63, 0.0  ;;  %v5108_v55 = vadd.f32 %v4797_v17, %v4312_v21  ;;  %v5236_v8 = vadd.f32 %v15010_v42, %v5109_v16 }
 0x392   : > { %v11733_v34 = vpop.f32.mrf.mxu0  ;;  %v4316_v21 = vadd.f32 %v17430_v14, %v17429_v38 }
 0x393   : > { %v15468_v0 = vmax.f32 %v5351_v36, %v5353_v12  ;;  %v5111_v27 = vadd.f32 %v11733_v34, %v4315_v54  ;;  %v5235_v3 = vadd.f32 %v15010_v42, %v5108_v55  ;;  %v5356_v13 = vmax.f32 %v5236_v8, 0.0 }
 0x394   : > { %v4807_v15 = vpop.f32.mrf.mxu0  ;;  %v4319_v54 = vadd.f32 %v17432_v10, %v17431_v7 }
 0x395   : > { %v5238_v62 = vadd.f32 %v15010_v42, %v5111_v27  ;;  %v5110_v20 = vadd.f32 %v4807_v15, %v4314_v57  ;;  %11850 = vmatprep.mubr.msk.f32.mxu1 %vm5466_vm3, %v15468_v0  ;;  %12084 = vmatprep.mubr.msk.f32.mxu0 %vm5466_vm3, %v15468_v0  ;;  %v5355_v36 = vmax.f32 %v5235_v3, 0.0  ;;  %v17434_v57 = vld [vmem:[#allocation167_spill] sm:$0xff]  ;;  %v17435_v15 = vld [vmem:[#allocation32_spill] sm:$0xff] }
 0x396   : > { %v11736_v59 = vpop.f32.mrf.mxu0  ;;  %11851 = vmatmul.mubr.msk.f32.gmra.mxu1 %vm5466_vm3, %v15464_v19  ;;  %12085 = vmatmul.mubr.msk.f32.gmra.mxu0 %vm5466_vm3, %v15464_v19  ;;  %v4318_v27 = vadd.f32 %v17434_v57, %v17433_v4  ;;  %v15500_v3 = vld [vmem:[%s16918_s2] ss:$0 sm:$0xff] }
 0x397   : > { %v5358_v26 = vmax.f32 %v5238_v62, 0.0  ;;  %v5237_v63 = vadd.f32 %v15010_v42, %v5110_v20  ;;  %v5113_v16 = vadd.f32 %v11736_v59, %v4317_v29  ;;  %v17436_v29 = vld [vmem:[#allocation168_spill] sm:$0xff]  ;;  %v17438_v59 = vld [vmem:[#allocation169_spill] sm:$0xff] }
 0x398   : > { %v4817_v17 = vpop.f32.mrf.mxu0  ;;  %v4321_v62 = vadd.f32 %v17436_v29, %v17435_v15  ;;  %v17443_v15 = vld [vmem:[#allocation171_spill] sm:$0xff] }
 0x399   : > { %v15488_v12 = vmax.f32 %v5356_v13, %v5358_v26  ;;  %v5357_v55 = vmax.f32 %v5237_v63, 0.0  ;;  %v5112_v34 = vadd.f32 %v4817_v17, %v4316_v21  ;;  %v5240_v8 = vadd.f32 %v15010_v42, %v5113_v16  ;;  %v17437_v42 = vld [vmem:[#allocation33_spill] sm:$0xff]  ;;  %v17440_v17 = vld [vmem:[#allocation170_spill] sm:$0xff] }
 0x39a   : > { %v11739_v22 = vpop.f32.mrf.mxu0  ;;  %v4320_v13 = vadd.f32 %v17438_v59, %v17437_v42 }
 0x39b   : > { %v15492_v18 = vmax.f32 %v5355_v36, %v5357_v55  ;;  %v5115_v30 = vadd.f32 %v11739_v22, %v4319_v54  ;;  %v5239_v38 = vadd.f32 %v15500_v3, %v5112_v34  ;;  %v5360_v63 = vmax.f32 %v5240_v8, 0.0  ;;  %v17439_v54 = vld [vmem:[#allocation34_spill] sm:$0xff] }
 0x39c   : > { %v4827_v20 = vpop.f32.mrf.mxu0  ;;  %v4323_v36 = vadd.f32 %v17440_v17, %v17439_v54 }
 0x39d   : > { %v5242_v14 = vadd.f32 %v15500_v3, %v5115_v30  ;;  %v5114_v21 = vadd.f32 %v4827_v20, %v4318_v27  ;;  %11853 = vmatprep.mubr.msk.f32.mxu1 %vm5466_vm3, %v15492_v18  ;;  %12087 = vmatprep.mubr.msk.f32.mxu0 %vm5466_vm3, %v15492_v18  ;;  %v5359_v34 = vmax.f32 %v5239_v38, 0.0  ;;  %v17442_v30 = vld [vmem:[#allocation35_spill] sm:$0xff] }
 0x39e   : > { %v11742_v26 = vpop.f32.mrf.mxu0  ;;  %11854 = vmatmul.mubr.msk.f32.gmra.mxu1 %vm5466_vm3, %v15488_v12  ;;  %12088 = vmatmul.mubr.msk.f32.gmra.mxu0 %vm5466_vm3, %v15488_v12  ;;  %v4322_v29 = vadd.f32 %v17443_v15, %v17442_v30 }
 0x39f   : > { %v5362_v16 = vmax.f32 %v5242_v14, 0.0  ;;  %v5241_v7 = vadd.f32 %v15500_v3, %v5114_v21  ;;  %v5117_v10 = vadd.f32 %v11742_v26, %v4321_v62  ;;  %v17444_v21 = vld [vmem:[#allocation36_spill] sm:$0xff] }
 0x3a0   : > { %v4837_v55 = vpop.f32.mrf.mxu0  ;;  %v17445_v62 = vld [vmem:[#allocation172_spill] sm:$0xff] }
 0x3a1   : > { %v15517_v22 = vmax.f32 %v5360_v63, %v5362_v16  ;;  %v5361_v4 = vmax.f32 %v5241_v7, 0.0  ;;  %v5116_v57 = vadd.f32 %v4837_v55, %v4320_v13  ;;  %v5244_v8 = vadd.f32 %v15500_v3, %v5117_v10  ;;  %v17446_v13 = vld [vmem:[#allocation37_spill] sm:$0xff] }
 0x3a2   : > { %v11745_v27 = vpop.f32.mrf.mxu0  ;;  %v4325_v42 = vadd.f32 %v17445_v62, %v17444_v21  ;;  %v17447_v16 = vld [vmem:[#allocation173_spill] sm:$0xff]  ;;  %v17451_v62 = vld [vmem:[#allocation39_spill] sm:$0xff] }
 0x3a3   : > { %17441 = vst [vmem:[#allocation75_spill] sm:$0xff] %v15517_v22  ;;  %v15521_v20 = vmax.f32 %v5359_v34, %v5361_v4  ;;  %v5119_v14 = vadd.f32 %v11745_v27, %v4323_v36  ;;  %v5243_v26 = vadd.f32 %v15500_v3, %v5116_v57  ;;  %v4324_v7 = vadd.f32 %v17447_v16, %v17446_v13  ;;  %v17448_v34 = vld [vmem:[#allocation38_spill] sm:$0xff] }
 0x3a4   : > { %v4847_v59 = vpop.f32.mrf.mxu0  ;;  %v5364_v54 = vmax.f32 %v5244_v8, 0.0  ;;  %v17449_v4 = vld [vmem:[#allocation174_spill] sm:$0xff] }
 0x3a5   : > { %v5246_v38 = vadd.f32 %v15500_v3, %v5119_v14  ;;  %v5118_v63 = vadd.f32 %v4847_v59, %v4322_v29  ;;  %11856 = vmatprep.mubr.msk.f32.mxu1 %vm5466_vm3, %v15521_v20  ;;  %12090 = vmatprep.mubr.msk.f32.mxu0 %vm5466_vm3, %v15521_v20  ;;  %v4327_v57 = vadd.f32 %v17449_v4, %v17448_v34  ;;  %v5363_v30 = vmax.f32 %v5243_v26, 0.0  ;;  %v17452_v59 = vld [vmem:[#allocation175_spill] sm:$0xff] }
 0x3a6   : > { %v11748_v10 = vpop.f32.mrf.mxu0  ;;  %11857 = vmatmul.mubr.msk.f32.gmra.mxu1 %vm5466_vm3, %v15517_v22  ;;  %12091 = vmatmul.mubr.msk.f32.gmra.mxu0 %vm5466_vm3, %v15517_v22  ;;  %v4326_v13 = vadd.f32 %v17452_v59, %v17451_v62 }
 0x3a7   : > { %v5366_v17 = vmax.f32 %v5246_v38, 0.0  ;;  %v5245_v36 = vadd.f32 %v15500_v3, %v5118_v63  ;;  %v5121_v55 = vadd.f32 %v11748_v10, %v4325_v42  ;;  %v17454_v63 = vld [vmem:[#allocation40_spill] sm:$0xff] }
 0x3a8   : > { %v4857_v27 = vpop.f32.mrf.mxu0  ;;  %v17455_v42 = vld [vmem:[#allocation176_spill] sm:$0xff] }
 0x3a9   : > { %v15541_v15 = vmax.f32 %v5364_v54, %v5366_v17  ;;  %v5365_v29 = vmax.f32 %v5245_v36, 0.0  ;;  %v5120_v14 = vadd.f32 %v4857_v27, %v4324_v7  ;;  %v5248_v8 = vadd.f32 %v15500_v3, %v5121_v55  ;;  %v17456_v7 = vld [vmem:[#allocation41_spill] sm:$0xff] }
 0x3aa   : > { %v11751_v21 = vpop.f32.mrf.mxu0  ;;  %v4329_v10 = vadd.f32 %v17455_v42, %v17454_v63  ;;  %v17457_v17 = vld [vmem:[#allocation177_spill] sm:$0xff]  ;;  %v17461_v42 = vld [vmem:[#allocation43_spill] sm:$0xff] }
 0x3ab   : > { %17450 = vst [vmem:[#allocation74_spill] sm:$0xff] %v15541_v15  ;;  %v15545_v16 = vmax.f32 %v5363_v30, %v5365_v29  ;;  %v5123_v38 = vadd.f32 %v11751_v21, %v4327_v57  ;;  %v5247_v34 = vadd.f32 %v15500_v3, %v5120_v14  ;;  %v4328_v36 = vadd.f32 %v17457_v17, %v17456_v7  ;;  %v17458_v30 = vld [vmem:[#allocation42_spill] sm:$0xff]  ;;  %v17462_v7 = vld [vmem:[#allocation179_spill] sm:$0xff] }
 0x3ac   : > { %v4867_v22 = vpop.f32.mrf.mxu0  ;;  %v5368_v4 = vmax.f32 %v5248_v8, 0.0  ;;  %v17459_v29 = vld [vmem:[#allocation178_spill] sm:$0xff]  ;;  %v4330_v17 = vadd.f32 %v17462_v7, %v17461_v42 }
 0x3ad   : > { %17453 = vst [vmem:[#allocation77_spill] sm:$0xff] %v15545_v16  ;;  %v5250_v26 = vadd.f32 %v15500_v3, %v5123_v38  ;;  %v5122_v54 = vadd.f32 %v4867_v22, %v4326_v13  ;;  %11859 = vmatprep.mubr.msk.f32.mxu1 %vm5466_vm3, %v15545_v16  ;;  %12093 = vmatprep.mubr.msk.f32.mxu0 %vm5466_vm3, %v15545_v16  ;;  %v5367_v62 = vmax.f32 %v5247_v34, 0.0 }
 0x3ae   : > { %v11754_v55 = vpop.f32.mrf.mxu0  ;;  %11860 = vmatmul.mubr.msk.f32.gmra.mxu1 %vm5466_vm3, %v15541_v15  ;;  %12094 = vmatmul.mubr.msk.f32.gmra.mxu0 %vm5466_vm3, %v15541_v15  ;;  %v4331_v14 = vadd.f32 %v17459_v29, %v17458_v30 }
 0x3af   : > { %v5370_v57 = vmax.f32 %v5250_v26, 0.0  ;;  %v5249_v22 = vadd.f32 %v15500_v3, %v5122_v54  ;;  %v5125_v27 = vadd.f32 %v11754_v55, %v4329_v10  ;;  %v17464_v54 = vld [vmem:[#allocation44_spill] sm:$0xff] }
 0x3b0   : > { %v4877_v21 = vpop.f32.mrf.mxu0  ;;  %v17465_v10 = vld [vmem:[#allocation180_spill] sm:$0xff] }
 0x3b1   : > { %v15565_v59 = vmax.f32 %v5368_v4, %v5370_v57  ;;  %v5369_v13 = vmax.f32 %v5249_v22, 0.0  ;;  %v5124_v38 = vadd.f32 %v4877_v21, %v4328_v36  ;;  %v5252_v8 = vadd.f32 %v15500_v3, %v5125_v27  ;;  %v17466_v36 = vld [vmem:[#allocation45_spill] sm:$0xff] }
 0x3b2   : > { %v11757_v63 = vpop.f32.mrf.mxu0  ;;  %v4333_v55 = vadd.f32 %v17465_v10, %v17464_v54  ;;  %v17467_v57 = vld [vmem:[#allocation181_spill] sm:$0xff]  ;;  %v17471_v10 = vld [vmem:[#allocation47_spill] sm:$0xff] }
 0x3b3   : > { %17460 = vst [vmem:[#allocation76_spill] sm:$0xff] %v15565_v59  ;;  %v15569_v16 = vmax.f32 %v5367_v62, %v5369_v13  ;;  %v5127_v26 = vadd.f32 %v11757_v63, %v4331_v14  ;;  %v5251_v30 = vadd.f32 %v15500_v3, %v5124_v38  ;;  %v4332_v22 = vadd.f32 %v17467_v57, %v17466_v36  ;;  %v17468_v62 = vld [vmem:[#allocation46_spill] sm:$0xff]  ;;  %v17472_v36 = vld [vmem:[#allocation183_spill] sm:$0xff] }
 0x3b4   : > { %v4887_v15 = vpop.f32.mrf.mxu0  ;;  %v5372_v29 = vmax.f32 %v5252_v8, 0.0  ;;  %v17469_v13 = vld [vmem:[#allocation182_spill] sm:$0xff]  ;;  %v4334_v57 = vadd.f32 %v17472_v36, %v17471_v10 }
 0x3b5   : > { %17463 = vst [vmem:[#allocation78_spill] sm:$0xff] %v15569_v16  ;;  %v5254_v34 = vadd.f32 %v15500_v3, %v5127_v26  ;;  %v5126_v4 = vadd.f32 %v4887_v15, %v4330_v17  ;;  %11862 = vmatprep.mubr.msk.f32.mxu1 %vm5466_vm3, %v15569_v16  ;;  %12096 = vmatprep.mubr.msk.f32.mxu0 %vm5466_vm3, %v15569_v16  ;;  %v5371_v42 = vmax.f32 %v5251_v30, 0.0 }
 0x3b6   : > { %v11760_v27 = vpop.f32.mrf.mxu0  ;;  %11863 = vmatmul.mubr.msk.f32.gmra.mxu1 %vm5466_vm3, %v15565_v59  ;;  %12097 = vmatmul.mubr.msk.f32.gmra.mxu0 %vm5466_vm3, %v15565_v59  ;;  %v4335_v38 = vadd.f32 %v17469_v13, %v17468_v62 }
 0x3b7   : > { %v5374_v14 = vmax.f32 %v5254_v34, 0.0  ;;  %v5253_v15 = vadd.f32 %v15500_v3, %v5126_v4  ;;  %v5129_v21 = vadd.f32 %v11760_v27, %v4333_v55  ;;  %v17474_v4 = vld [vmem:[#allocation48_spill] sm:$0xff] }
 0x3b8   : > { %v4897_v63 = vpop.f32.mrf.mxu0  ;;  %v17475_v55 = vld [vmem:[#allocation184_spill] sm:$0xff] }
 0x3b9   : > { %v15589_v7 = vmax.f32 %v5372_v29, %v5374_v14  ;;  %v5373_v17 = vmax.f32 %v5253_v15, 0.0  ;;  %v5128_v26 = vadd.f32 %v4897_v63, %v4332_v22  ;;  %v5256_v8 = vadd.f32 %v15500_v3, %v5129_v21  ;;  %v17476_v22 = vld [vmem:[#allocation49_spill] sm:$0xff] }
 0x3ba   : > { %v11763_v54 = vpop.f32.mrf.mxu0  ;;  %v4337_v27 = vadd.f32 %v17475_v55, %v17474_v4  ;;  %v17477_v14 = vld [vmem:[#allocation185_spill] sm:$0xff]  ;;  %v17481_v55 = vld [vmem:[#allocation51_spill] sm:$0xff] }
 0x3bb   : > { %17470 = vst [vmem:[#allocation3_spill] sm:$0xff] %v15589_v7  ;;  %v15593_v16 = vmax.f32 %v5371_v42, %v5373_v17  ;;  %v5131_v34 = vadd.f32 %v11763_v54, %v4335_v38  ;;  %v5255_v62 = vadd.f32 %v15500_v3, %v5128_v26  ;;  %v4336_v15 = vadd.f32 %v17477_v14, %v17476_v22  ;;  %v17478_v42 = vld [vmem:[#allocation50_spill] sm:$0xff]  ;;  %v17482_v22 = vld [vmem:[#allocation187_spill] sm:$0xff] }
 0x3bc   : > { %v4907_v59 = vpop.f32.mrf.mxu0  ;;  %v5376_v13 = vmax.f32 %v5256_v8, 0.0  ;;  %v17479_v17 = vld [vmem:[#allocation186_spill] sm:$0xff]  ;;  %v4338_v14 = vadd.f32 %v17482_v22, %v17481_v55 }
 0x3bd   : > { %17473 = vst [vmem:[#allocation4_spill] sm:$0xff] %v15593_v16  ;;  %v5258_v30 = vadd.f32 %v15500_v3, %v5131_v34  ;;  %v5130_v29 = vadd.f32 %v4907_v59, %v4334_v57  ;;  %11865 = vmatprep.mubr.msk.f32.mxu1 %vm5466_vm3, %v15593_v16  ;;  %12099 = vmatprep.mubr.msk.f32.mxu0 %vm5466_vm3, %v15593_v16  ;;  %v5375_v10 = vmax.f32 %v5255_v62, 0.0 }
 0x3be   : > { %v11766_v21 = vpop.f32.mrf.mxu0  ;;  %11866 = vmatmul.mubr.msk.f32.gmra.mxu1 %vm5466_vm3, %v15589_v7  ;;  %12100 = vmatmul.mubr.msk.f32.gmra.mxu0 %vm5466_vm3, %v15589_v7  ;;  %v4339_v26 = vadd.f32 %v17479_v17, %v17478_v42 }
 0x3bf   : > { %v5378_v38 = vmax.f32 %v5258_v30, 0.0  ;;  %v5257_v59 = vadd.f32 %v15500_v3, %v5130_v29  ;;  %v5133_v63 = vadd.f32 %v11766_v21, %v4337_v27  ;;  %v17484_v29 = vld [vmem:[#allocation52_spill] sm:$0xff] }
 0x3c0   : > { %v4917_v54 = vpop.f32.mrf.mxu0  ;;  %v17485_v27 = vld [vmem:[#allocation188_spill] sm:$0xff] }
 0x3c1   : > { %v15613_v36 = vmax.f32 %v5376_v13, %v5378_v38  ;;  %v5377_v57 = vmax.f32 %v5257_v59, 0.0  ;;  %v5132_v34 = vadd.f32 %v4917_v54, %v4336_v15  ;;  %v5260_v8 = vadd.f32 %v15500_v3, %v5133_v63  ;;  %v17486_v15 = vld [vmem:[#allocation53_spill] sm:$0xff] }
 0x3c2   : > { %v11769_v4 = vpop.f32.mrf.mxu0  ;;  %v4341_v21 = vadd.f32 %v17485_v27, %v17484_v29  ;;  %v17487_v38 = vld [vmem:[#allocation189_spill] sm:$0xff]  ;;  %v17491_v27 = vld [vmem:[#allocation55_spill] sm:$0xff] }
 0x3c3   : > { %17480 = vst [vmem:[#allocation5_spill] sm:$0xff] %v15613_v36  ;;  %v15617_v16 = vmax.f32 %v5375_v10, %v5377_v57  ;;  %v5135_v30 = vadd.f32 %v11769_v4, %v4339_v26  ;;  %v5259_v42 = vadd.f32 %v15500_v3, %v5132_v34  ;;  %v4340_v59 = vadd.f32 %v17487_v38, %v17486_v15  ;;  %v17488_v10 = vld [vmem:[#allocation54_spill] sm:$0xff]  ;;  %v17492_v15 = vld [vmem:[#allocation191_spill] sm:$0xff] }
 0x3c4   : > { %v4927_v7 = vpop.f32.mrf.mxu0  ;;  %v5380_v17 = vmax.f32 %v5260_v8, 0.0  ;;  %v17489_v57 = vld [vmem:[#allocation190_spill] sm:$0xff]  ;;  %v4342_v38 = vadd.f32 %v17492_v15, %v17491_v27 }
 0x3c5   : > { %17483 = vst [vmem:[#allocation6_spill] sm:$0xff] %v15617_v16  ;;  %v5262_v62 = vadd.f32 %v15500_v3, %v5135_v30  ;;  %v5134_v13 = vadd.f32 %v4927_v7, %v4338_v14  ;;  %11868 = vmatprep.mubr.msk.f32.mxu1 %vm5466_vm3, %v15617_v16  ;;  %12102 = vmatprep.mubr.msk.f32.mxu0 %vm5466_vm3, %v15617_v16  ;;  %v5379_v55 = vmax.f32 %v5259_v42, 0.0 }
 0x3c6   : > { %v11772_v63 = vpop.f32.mrf.mxu0  ;;  %11869 = vmatmul.mubr.msk.f32.gmra.mxu1 %vm5466_vm3, %v15613_v36  ;;  %12103 = vmatmul.mubr.msk.f32.gmra.mxu0 %vm5466_vm3, %v15613_v36  ;;  %v4343_v34 = vadd.f32 %v17489_v57, %v17488_v10 }
 0x3c7   : > { %v5382_v26 = vmax.f32 %v5262_v62, 0.0  ;;  %v5261_v7 = vadd.f32 %v15500_v3, %v5134_v13  ;;  %v5137_v54 = vadd.f32 %v11772_v63, %v4341_v21  ;;  %v17494_v13 = vld [vmem:[#allocation56_spill] sm:$0xff] }
 0x3c8   : > { %v4937_v4 = vpop.f32.mrf.mxu0  ;;  %v17495_v21 = vld [vmem:[#allocation192_spill] sm:$0xff] }
 0x3c9   : > { %v15637_v22 = vmax.f32 %v5380_v17, %v5382_v26  ;;  %v5381_v14 = vmax.f32 %v5261_v7, 0.0  ;;  %v5136_v30 = vadd.f32 %v4937_v4, %v4340_v59  ;;  %v5264_v8 = vadd.f32 %v15500_v3, %v5137_v54  ;;  %v17496_v59 = vld [vmem:[#allocation57_spill] sm:$0xff] }
 0x3ca   : > { %v11775_v29 = vpop.f32.mrf.mxu0  ;;  %v4345_v63 = vadd.f32 %v17495_v21, %v17494_v13  ;;  %v17497_v26 = vld [vmem:[#allocation193_spill] sm:$0xff]  ;;  %v17501_v21 = vld [vmem:[#allocation59_spill] sm:$0xff] }
 0x3cb   : > { %17490 = vst [vmem:[#allocation80_spill] sm:$0xff] %v15637_v22  ;;  %v15641_v16 = vmax.f32 %v5379_v55, %v5381_v14  ;;  %v5139_v62 = vadd.f32 %v11775_v29, %v4343_v34  ;;  %v5263_v10 = vadd.f32 %v15500_v3, %v5136_v30  ;;  %v4344_v7 = vadd.f32 %v17497_v26, %v17496_v59  ;;  %v17498_v55 = vld [vmem:[#allocation58_spill] sm:$0xff]  ;;  %v17502_v59 = vld [vmem:[#allocation195_spill] sm:$0xff] }
 0x3cc   : > { %v4947_v36 = vpop.f32.mrf.mxu0  ;;  %v5384_v57 = vmax.f32 %v5264_v8, 0.0  ;;  %v17499_v14 = vld [vmem:[#allocation194_spill] sm:$0xff]  ;;  %v4346_v26 = vadd.f32 %v17502_v59, %v17501_v21 }
 0x3cd   : > { %17493 = vst [vmem:[#allocation7_spill] sm:$0xff] %v15641_v16  ;;  %v5266_v42 = vadd.f32 %v15500_v3, %v5139_v62  ;;  %v5138_v17 = vadd.f32 %v4947_v36, %v4342_v38  ;;  %11871 = vmatprep.mubr.msk.f32.mxu1 %vm5466_vm3, %v15641_v16  ;;  %12105 = vmatprep.mubr.msk.f32.mxu0 %vm5466_vm3, %v15641_v16  ;;  %v5383_v27 = vmax.f32 %v5263_v10, 0.0 }
 0x3ce   : > { %v11778_v54 = vpop.f32.mrf.mxu0  ;;  %11872 = vmatmul.mubr.msk.f32.gmra.mxu1 %vm5466_vm3, %v15637_v22  ;;  %12106 = vmatmul.mubr.msk.f32.gmra.mxu0 %vm5466_vm3, %v15637_v22  ;;  %v4347_v30 = vadd.f32 %v17499_v14, %v17498_v55 }
 0x3cf   : > { %v5386_v34 = vmax.f32 %v5266_v42, 0.0  ;;  %v5265_v36 = vadd.f32 %v15500_v3, %v5138_v17  ;;  %v5141_v4 = vadd.f32 %v11778_v54, %v4345_v63  ;;  %v17504_v17 = vld [vmem:[#allocation60_spill] sm:$0xff] }
 0x3d0   : > { %v4957_v29 = vpop.f32.mrf.mxu0  ;;  %v17505_v63 = vld [vmem:[#allocation196_spill] sm:$0xff] }
 0x3d1   : > { %v15661_v15 = vmax.f32 %v5384_v57, %v5386_v34  ;;  %v5385_v38 = vmax.f32 %v5265_v36, 0.0  ;;  %v5140_v62 = vadd.f32 %v4957_v29, %v4344_v7  ;;  %v5268_v8 = vadd.f32 %v15500_v3, %v5141_v4  ;;  %v17506_v7 = vld [vmem:[#allocation61_spill] sm:$0xff] }
 0x3d2   : > { %v11781_v13 = vpop.f32.mrf.mxu0  ;;  %v4349_v54 = vadd.f32 %v17505_v63, %v17504_v17  ;;  %v17507_v34 = vld [vmem:[#allocation197_spill] sm:$0xff]  ;;  %v17510_v63 = vld [vmem:[#allocation63_spill] sm:$0xff] }
 0x3d3   : > { %17500 = vst [vmem:[#allocation82_spill] sm:$0xff] %v15661_v15  ;;  %v15665_v16 = vmax.f32 %v5383_v27, %v5385_v38  ;;  %v5143_v42 = vadd.f32 %v11781_v13, %v4347_v30  ;;  %v5267_v55 = vadd.f32 %v15500_v3, %v5140_v62  ;;  %v4348_v36 = vadd.f32 %v17507_v34, %v17506_v7  ;;  %v17508_v27 = vld [vmem:[#allocation62_spill] sm:$0xff]  ;;  %v17511_v7 = vld [vmem:[#allocation199_spill] sm:$0xff] }
 0x3d4   : > { %v4967_v22 = vpop.f32.mrf.mxu0  ;;  %v5388_v14 = vmax.f32 %v5268_v8, 0.0  ;;  %v17509_v38 = vld [vmem:[#allocation198_spill] sm:$0xff]  ;;  %v4350_v34 = vadd.f32 %v17511_v7, %v17510_v63 }
 0x3d5   : > { %17503 = vst [vmem:[#allocation8_spill] sm:$0xff] %v15665_v16  ;;  %v5270_v10 = vadd.f32 %v15500_v3, %v5143_v42  ;;  %v5142_v57 = vadd.f32 %v4967_v22, %v4346_v26  ;;  %11874 = vmatprep.mubr.msk.f32.mxu1 %vm5466_vm3, %v15665_v16  ;;  %12108 = vmatprep.mubr.msk.f32.mxu0 %vm5466_vm3, %v15665_v16  ;;  %v5387_v21 = vmax.f32 %v5267_v55, 0.0 }
 0x3d6   : > { %v11784_v4 = vpop.f32.mrf.mxu0  ;;  %11875 = vmatmul.mubr.msk.f32.gmra.mxu1 %vm5466_vm3, %v15661_v15  ;;  %12109 = vmatmul.mubr.msk.f32.gmra.mxu0 %vm5466_vm3, %v15661_v15  ;;  %v4351_v62 = vadd.f32 %v17509_v38, %v17508_v27 }
 0x3d7   : > { %v5390_v30 = vmax.f32 %v5270_v10, 0.0  ;;  %v5269_v22 = vadd.f32 %v15500_v3, %v5142_v57  ;;  %v5145_v29 = vadd.f32 %v11784_v4, %v4349_v54  ;;  %v17512_v57 = vld [vmem:[#allocation64_spill] sm:$0xff] }
 0x3d8   : > { %v4977_v13 = vpop.f32.mrf.mxu0  ;;  %v17513_v54 = vld [vmem:[#allocation200_spill] sm:$0xff] }
 0x3d9   : > { %v15685_v59 = vmax.f32 %v5388_v14, %v5390_v30  ;;  %v5389_v26 = vmax.f32 %v5269_v22, 0.0  ;;  %v5144_v42 = vadd.f32 %v4977_v13, %v4348_v36  ;;  %v5272_v8 = vadd.f32 %v15500_v3, %v5145_v29  ;;  %v17514_v36 = vld [vmem:[#allocation65_spill] sm:$0xff] }
 0x3da   : > { %v11787_v17 = vpop.f32.mrf.mxu0  ;;  %v4353_v4 = vadd.f32 %v17513_v54, %v17512_v57  ;;  %v17515_v30 = vld [vmem:[#allocation201_spill] sm:$0xff]  ;;  %v17519_v54 = vld [vmem:[#allocation67_spill] sm:$0xff] }
 0x3db   : > { %v15689_v16 = vmax.f32 %v5387_v21, %v5389_v26  ;;  %v5147_v10 = vadd.f32 %v11787_v17, %v4351_v62  ;;  %v5271_v27 = vadd.f32 %v15500_v3, %v5144_v42  ;;  %v4352_v22 = vadd.f32 %v17515_v30, %v17514_v36  ;;  %v17516_v21 = vld [vmem:[#allocation71_spill] sm:$0xff]  ;;  %v17517_v26 = vld [vmem:[#allocation66_spill] sm:$0xff]  ;;  %v17521_v36 = vld [vmem:[#allocation73_spill] sm:$0xff] }
 0x3dc   : > { %v4987_v15 = vpop.f32.mrf.mxu0  ;;  %v5392_v38 = vmax.f32 %v5272_v8, 0.0  ;;  %v17518_v42 = vld [vmem:[#allocation202_spill] sm:$0xff]  ;;  %v15716_v8 = vld [vmem:[%s16919_s3 + $0x20] sm:$0x3f] }
 0x3dd   : > { %v5274_v55 = vadd.f32 %v15500_v3, %v5147_v10  ;;  %v5146_v14 = vadd.f32 %v4987_v15, %v4350_v34  ;;  %11877 = vmatprep.mubr.msk.f32.mxu1 %vm5466_vm3, %v15689_v16  ;;  %12111 = vmatprep.mubr.msk.f32.mxu0 %vm5466_vm3, %v15689_v16  ;;  %v4355_v17 = vadd.f32 %v17518_v42, %v17517_v26  ;;  %v5391_v7 = vmax.f32 %v5271_v27, 0.0 }
 0x3de   : > { %v11790_v29 = vpop.f32.mrf.mxu0  ;;  %11878 = vmatmul.mubr.msk.f32.gmra.mxu1 %vm5466_vm3, %v15685_v59  ;;  %12112 = vmatmul.mubr.msk.f32.gmra.mxu0 %vm5466_vm3, %v15685_v59 }
 0x3df   : > { %v5394_v62 = vmax.f32 %v5274_v55, 0.0  ;;  %v5273_v15 = vadd.f32 %v15500_v3, %v5146_v14  ;;  %v5149_v13 = vadd.f32 %v11790_v29, %v4353_v4  ;;  %11882 = vmatprep.mubr.msk.f32.mxu1 %vm5466_vm3, %v17516_v21  ;;  %v17520_v55 = vld [vmem:[#allocation203_spill] sm:$0xff]  ;;  %v17523_v21 = vld [vmem:[#allocation68_spill] sm:$0xff] }
 0x3e0   : > { %v4997_v63 = vpop.f32.mrf.mxu0  ;;  %v4354_v4 = vadd.f32 %v17520_v55, %v17519_v54 }
 0x3e1   : > { %v15711_v34 = vmax.f32 %v5392_v38, %v5394_v62  ;;  %v5393_v10 = vmax.f32 %v5273_v15, 0.0  ;;  %v5148_v57 = vadd.f32 %v4997_v63, %v4352_v22  ;;  %v5276_v27 = vadd.f32 %v15500_v3, %v5149_v13  ;;  %v17522_v13 = vld [vmem:[#allocation69_spill] sm:$0xff]  ;;  %v17524_v63 = vld [vmem:[#allocation204_spill] sm:$0xff] }
 0x3e2   : > { %v11793_v14 = vpop.f32.mrf.mxu0  ;;  %11883 = vmatmul.mubr.msk.f32.vlgmr.msra.gmra.mxu1 %vm5466_vm3, %v17521_v36  ;;  %v4356_v26 = vadd.f32 %v17523_v21, %v17522_v13  ;;  %v17526_v36 = vld [vmem:[#allocation72_spill] sm:$0xff] }
 0x3e3   : > { %v15722_v30 = vmax.f32 %v5391_v7, %v5393_v10  ;;  %v5151_v29 = vadd.f32 %v11793_v14, %v4355_v17  ;;  %11961 = vmatpush3.msk.msra.mxu1 %vm5623_vm2, %v15331_v11  ;;  %11885 = vmatprep.mubr.msk.f32.mxu1 %vm5466_vm3, %v15059_v41  ;;  %v5275_v38 = vadd.f32 %v15500_v3, %v5148_v57  ;;  %v5396_v41 = vmax.f32 %v5276_v27, 0.0  ;;  %v4231_v10 = vpop.f32.mrf.mxu1 }
 0x3e4   : > { %v5007_v22 = vpop.f32.mrf.mxu0  ;;  %12120 = vmatprep.subr.msk.mxu1 %vm5623_vm2, %v15716_v8  ;;  %v4358_v27 = vadd.f32 %v4231_v10, %v17526_v36 }
 0x3e5   : > { %v5278_v62 = vadd.f32 %v15500_v3, %v5151_v29  ;;  %v5150_v15 = vadd.f32 %v5007_v22, %v4354_v4  ;;  %12114 = vmatprep.mubr.msk.f32.mxu0 %vm5466_vm3, %v15722_v30  ;;  %v5395_v54 = vmax.f32 %v5275_v38, 0.0 }
 0x3e6   : > { %v11796_v42 = vpop.f32.mrf.mxu0  ;;  %11886 = vmatmul.mubr.msk.f32.gmra.mxu1 %vm5466_vm3, %v15053_v33  ;;  %12115 = vmatmul.mubr.msk.f32.gmra.mxu0 %vm5466_vm3, %v15711_v34 }
 0x3e7   : > { %v5398_v11 = vmax.f32 %v5278_v62, 0.0  ;;  %v5277_v17 = vadd.f32 %v15500_v3, %v5150_v15  ;;  %v5153_v7 = vadd.f32 %v11796_v42, %v17524_v63  ;;  %11888 = vmatprep.mubr.msk.f32.mxu1 %vm5466_vm3, %v15089_v40  ;;  %v17527_v62 = vld [vmem:[#allocation70_spill] sm:$0xff] }
 0x3e8   : > { %v5017_v57 = vpop.f32.mrf.mxu0 }
 0x3e9   : > { %v15745_v55 = vmax.f32 %v5396_v41, %v5398_v11  ;;  %v5397_v4 = vmax.f32 %v5277_v17, 0.0  ;;  %v5152_v14 = vadd.f32 %v5017_v57, %v4356_v26  ;;  %v5280_v22 = vadd.f32 %v15500_v3, %v5153_v7 }
 0x3ea   : > { %v11799_v33 = vpop.f32.mrf.mxu0  ;;  %11889 = vmatmul.mubr.msk.f32.gmra.mxu1 %vm5466_vm3, %v15083_v47 }
 0x3eb   : > { %17525 = vst [vmem:[#allocation79_spill] sm:$0xff] %v15745_v55  ;;  %v15750_v29 = vmax.f32 %v5395_v54, %v5397_v4  ;;  %v5155_v15 = vadd.f32 %v11799_v33, %v17527_v62  ;;  %11891 = vmatprep.mubr.msk.f32.mxu1 %vm5466_vm3, %v15117_v53  ;;  %v5279_v13 = vadd.f32 %v15500_v3, %v5152_v14  ;;  %v5400_v42 = vmax.f32 %v5280_v22, 0.0 }
 0x3ec   : > { %v5027_v38 = vpop.f32.mrf.mxu0 }
 0x3ed   : > { %v5282_v21 = vadd.f32 %v15500_v3, %v5155_v15  ;;  %v5154_v26 = vadd.f32 %v5027_v38, %v4358_v27  ;;  %12117 = vmatprep.mubr.msk.f32.mxu0 %vm5466_vm3, %v15750_v29  ;;  %v5399_v17 = vmax.f32 %v5279_v13, 0.0 }
 0x3ee   : > { %11892 = vmatmul.mubr.msk.f32.gmra.mxu1 %vm5466_vm3, %v15111_v39  ;;  %12118 = vmatmul.mubr.msk.f32.gmra.mxu0 %vm5466_vm3, %v15745_v55 }
 0x3ef   : > { %v5402_v41 = vmax.f32 %v5282_v21, 0.0  ;;  %v5281_v11 = vadd.f32 %v15500_v3, %v5154_v26  ;;  %11894 = vmatprep.mubr.msk.f32.mxu1 %vm5466_vm3, %v15145_v48  ;;  %v15795_v3 = vpop.f32.mrf.mxu1  ;;  %v17538_v21 = vld [vmem:[#allocation75_spill] sm:$0xff]  ;;  %v17539_v26 = vld [vmem:[#allocation77_spill] sm:$0xff] }
 0x3f1   : > { %v15767_v63 = vmax.f32 %v5400_v42, %v5402_v41  ;;  %v5401_v7 = vmax.f32 %v5281_v11, 0.0  ;;  %v15801_v57 = vpop.f32.mrf.mxu1  ;;  %v17542_v11 = vld [vmem:[#allocation74_spill] sm:$0xff] }
 0x3f2   : > { %11895 = vmatmul.mubr.msk.f32.gmra.mxu1 %vm5466_vm3, %v15140_v49 }
 0x3f3   : > { %17528 = vst [vmem:[#allocation81_spill] sm:$0xff] %v15767_v63  ;;  %v15771_v10 = vmax.f32 %v5399_v17, %v5401_v7  ;;  %11897 = vmatprep.mubr.msk.f32.mxu1 %vm5466_vm3, %v15173_v31  ;;  %v15803_v54 = vpop.f32.mrf.mxu1  ;;  %v17543_v17 = vld [vmem:[#allocation78_spill] sm:$0xff] }
 0x3f5   : > { %17529 = vst [vmem:[#allocation9_spill] sm:$0xff] %v15771_v10  ;;  %v15809_v4 = vpop.f32.mrf.mxu1 }
 0x3f6   : > { %11898 = vmatmul.mubr.msk.f32.gmra.mxu1 %vm5466_vm3, %v15167_v23 }
 0x3f7   : > { %11900 = vmatprep.mubr.msk.f32.mxu1 %vm5466_vm3, %v15197_v35  ;;  %v15815_v14 = vpop.f32.mrf.mxu1 }
 0x3f9   : > { %v15821_v33 = vpop.f32.mrf.mxu1 }
 0x3fa   : > { %11901 = vmatmul.mubr.msk.f32.gmra.mxu1 %vm5466_vm3, %v15193_v45  ;;  %17530 = vst [vmem:[#allocation83_spill] sm:$0xff] %v15821_v33  ;;  %v17558_v33 = vld [vmem:[#allocation82_spill] sm:$0xff] }
 0x3fb   : > { %11903 = vmatprep.mubr.msk.f32.mxu1 %vm5466_vm3, %v15221_v60  ;;  %v15823_v36 = vpop.f32.mrf.mxu1 }
 0x3fc   : > { %17531 = vst [vmem:[#allocation85_spill] sm:$0xff] %v15823_v36  ;;  %v17555_v36 = vld [vmem:[#allocation80_spill] sm:$0xff] }
 0x3fd   : > { %v15829_v27 = vpop.f32.mrf.mxu1 }
 0x3fe   : > { %11904 = vmatmul.mubr.msk.f32.gmra.mxu1 %vm5466_vm3, %v15217_v37  ;;  %17532 = vst [vmem:[#allocation86_spill] sm:$0xff] %v15829_v27  ;;  %v17552_v27 = vld [vmem:[#allocation5_spill] sm:$0xff] }
 0x3ff   : > { %11906 = vmatprep.mubr.msk.f32.mxu1 %vm5466_vm3, %v15245_v51  ;;  %v15835_v22 = vpop.f32.mrf.mxu1 }
 0x400   : > { %17533 = vst [vmem:[#allocation10_spill] sm:$0xff] %v15835_v22 }
 0x401   : > { %v15841_v62 = vpop.f32.mrf.mxu1 }
 0x402   : > { %11907 = vmatmul.mubr.msk.f32.gmra.mxu1 %vm5466_vm3, %v15241_v46  ;;  %17534 = vst [vmem:[#allocation84_spill] sm:$0xff] %v15841_v62  ;;  %v17548_v62 = vld [vmem:[#allocation3_spill] sm:$0xff] }
 0x403   : > { %11909 = vmatprep.mubr.msk.f32.mxu1 %vm5466_vm3, %v15269_v56  ;;  %v15843_v15 = vpop.f32.mrf.mxu1 }
 0x404   : > { %17535 = vst [vmem:[#allocation89_spill] sm:$0xff] %v15843_v15 }
 0x405   : > { %v15849_v38 = vpop.f32.mrf.mxu1 }
 0x406   : > { %11910 = vmatmul.mubr.msk.f32.gmra.mxu1 %vm5466_vm3, %v15265_v6  ;;  %17536 = vst [vmem:[#allocation11_spill] sm:$0xff] %v15849_v38  ;;  %v17545_v38 = vld [vmem:[#allocation76_spill] sm:$0xff] }
 0x407   : > { %11912 = vmatprep.mubr.msk.f32.mxu1 %vm5466_vm3, %v15293_v50  ;;  %v15855_v13 = vpop.f32.mrf.mxu1 }
 0x408   : > { %17537 = vst [vmem:[#allocation87_spill] sm:$0xff] %v15855_v13  ;;  %v17546_v13 = vld [vmem:[#allocation4_spill] sm:$0xff] }
 0x409   : > { %v15861_v42 = vpop.f32.mrf.mxu1 }
 0x40a   : > { %11913 = vmatmul.mubr.msk.f32.gmra.mxu1 %vm5466_vm3, %v15289_v1  ;;  %17540 = vst [vmem:[#allocation90_spill] sm:$0xff] %v15861_v42 }
 0x40b   : > { %11915 = vmatprep.mubr.msk.f32.mxu1 %vm5466_vm3, %v15317_v24 }
 0x40e   : > { %11916 = vmatmul.mubr.msk.f32.gmra.mxu1 %vm5466_vm3, %v15313_v58  ;;  %v15863_v41 = vpop.f32.mrf.mxu1 }
 0x40f   : > { %11918 = vmatprep.mubr.msk.f32.mxu1 %vm5466_vm3, %v15348_v28  ;;  %17541 = vst [vmem:[#allocation12_spill] sm:$0xff] %v15863_v41  ;;  %v17549_v41 = vld [vmem:[#allocation6_spill] sm:$0xff] }
 0x410   : > { %v15869_v7 = vpop.f32.mrf.mxu1 }
 0x411   : > { %17544 = vst [vmem:[#allocation88_spill] sm:$0xff] %v15869_v7  ;;  %v17553_v7 = vld [vmem:[#allocation7_spill] sm:$0xff] }
 0x412   : > { %11919 = vmatmul.mubr.msk.f32.gmra.mxu1 %vm5466_vm3, %v15344_v43 }
 0x413   : > { %11921 = vmatprep.mubr.msk.f32.mxu1 %vm5466_vm3, %v15372_v44 }
 0x416   : > { %11922 = vmatmul.mubr.msk.f32.gmra.mxu1 %vm5466_vm3, %v15368_v32  ;;  %v15875_v15 = vpop.f32.mrf.mxu1 }
 0x417   : > { %11924 = vmatprep.mubr.msk.f32.mxu1 %vm5466_vm3, %v15396_v2  ;;  %17547 = vst [vmem:[#allocation13_spill] sm:$0xff] %v15875_v15  ;;  %v17556_v15 = vld [vmem:[#allocation8_spill] sm:$0xff] }
 0x418   : > { %v15881_v42 = vpop.f32.mrf.mxu1 }
 0x419   : > { %17550 = vst [vmem:[#allocation91_spill] sm:$0xff] %v15881_v42 }
 0x41a   : > { %11925 = vmatmul.mubr.msk.f32.gmra.mxu1 %vm5466_vm3, %v15392_v52 }
 0x41b   : > { %11927 = vmatprep.mubr.msk.f32.mxu1 %vm5466_vm3, %v15420_v61 }
 0x41e   : > { %11928 = vmatmul.mubr.msk.f32.gmra.mxu1 %vm5466_vm3, %v15416_v9  ;;  %v15883_v22 = vpop.f32.mrf.mxu1 }
 0x41f   : > { %11930 = vmatprep.mubr.msk.f32.mxu1 %vm5466_vm3, %v15444_v25  ;;  %17551 = vst [vmem:[#allocation93_spill] sm:$0xff] %v15883_v22 }
 0x420   : > { %v15889_v63 = vpop.f32.mrf.mxu1 }
 0x421   : > { %17554 = vst [vmem:[#allocation14_spill] sm:$0xff] %v15889_v63 }
 0x422   : > { %11931 = vmatmul.mubr.msk.f32.gmra.mxu1 %vm5466_vm3, %v15440_v5 }
 0x423   : > { %11933 = vmatprep.mubr.msk.f32.mxu1 %vm5466_vm3, %v15468_v0 }
 0x426   : > { %11934 = vmatmul.mubr.msk.f32.gmra.mxu1 %vm5466_vm3, %v15464_v19  ;;  %v15895_v10 = vpop.f32.mrf.mxu1 }
 0x427   : > { %11936 = vmatprep.mubr.msk.f32.mxu1 %vm5466_vm3, %v15492_v18  ;;  %17557 = vst [vmem:[#allocation92_spill] sm:$0xff] %v15895_v10 }
 0x428   : > { %v15901_v22 = vpop.f32.mrf.mxu1 }
 0x429   : > { %17559 = vst [vmem:[#allocation15_spill] sm:$0xff] %v15901_v22 }
 0x42a   : > { %11937 = vmatmul.mubr.msk.f32.gmra.mxu1 %vm5466_vm3, %v15488_v12 }
 0x42b   : > { %11939 = vmatprep.mubr.msk.f32.mxu1 %vm5466_vm3, %v15521_v20 }
 0x42e   : > { %11940 = vmatmul.mubr.msk.f32.gmra.mxu1 %vm5466_vm3, %v17538_v21  ;;  %v15903_v42 = vpop.f32.mrf.mxu1 }
 0x42f   : > { %11942 = vmatprep.mubr.msk.f32.mxu1 %vm5466_vm3, %v17539_v26  ;;  %17560 = vst [vmem:[#allocation94_spill] sm:$0xff] %v15903_v42 }
 0x430   : > { %v15911_v10 = vpop.f32.mrf.mxu1 }
 0x431   : > { %17561 = vst [vmem:[#allocation16_spill] sm:$0xff] %v15911_v10 }
 0x432   : > { %11943 = vmatmul.mubr.msk.f32.gmra.mxu1 %vm5466_vm3, %v17542_v11 }
 0x433   : > { %11945 = vmatprep.mubr.msk.f32.mxu1 %vm5466_vm3, %v17543_v17 }
 0x436   : > { %11946 = vmatmul.mubr.msk.f32.gmra.mxu1 %vm5466_vm3, %v17545_v38 }
 0x437   : > { %11948 = vmatprep.mubr.msk.f32.mxu1 %vm5466_vm3, %v17546_v13 }
 0x43a   : > { %11949 = vmatmul.mubr.msk.f32.gmra.mxu1 %vm5466_vm3, %v17548_v62 }
 0x43b   : > { %11951 = vmatprep.mubr.msk.f32.mxu1 %vm5466_vm3, %v17549_v41 }
 0x43e   : > { %11952 = vmatmul.mubr.msk.f32.gmra.mxu1 %vm5466_vm3, %v17552_v27 }
 0x43f   : > { %11954 = vmatprep.mubr.msk.f32.mxu1 %vm5466_vm3, %v17553_v7 }
 0x442   : > { %11955 = vmatmul.mubr.msk.f32.gmra.mxu1 %vm5466_vm3, %v17555_v36 }
 0x443   : > { %11957 = vmatprep.mubr.msk.f32.mxu1 %vm5466_vm3, %v17556_v15 }
 0x446   : > { %11958 = vmatmul.mubr.msk.f32.gmra.mxu1 %vm5466_vm3, %v17558_v33 }
 0x447   : > { %11962 = vmatprep.mubr.msk.f32.mxu1 %vm5466_vm3, %v15089_v40  ;;  %v15917_v40 = vpop.f32.mrf.mxu1 }
 0x448   : > { %17562 = vst [vmem:[#allocation95_spill] sm:$0xff] %v15917_v40 }
 0x44a   : > { %11963 = vmatmul.mubr.msk.f32.vlgmr.msra.gmra.mxu1 %vm5466_vm3, %v15083_v47  ;;  %v15923_v47 = vpop.f32.mrf.mxu1 }
 0x44b   : > { %12121 = vmatpush3.msk.msra.mxu1 %vm5623_vm2, %v15716_v8  ;;  %11965 = vmatprep.mubr.msk.f32.mxu1 %vm5466_vm3, %v15117_v53  ;;  %17563 = vst [vmem:[#allocation17_spill] sm:$0xff] %v15923_v47 }
 0x44c   : > { %v15925_v8 = vpop.f32.mrf.mxu1 }
 0x44d   : > { %17564 = vst [vmem:[#allocation96_spill] sm:$0xff] %v15925_v8 }
 0x44e   : > { %11966 = vmatmul.mubr.msk.f32.gmra.mxu1 %vm5466_vm3, %v15111_v39  ;;  %v15931_v39 = vpop.f32.mrf.mxu1 }
 0x44f   : > { %11968 = vmatprep.mubr.msk.f32.mxu1 %vm5466_vm3, %v15145_v48  ;;  %17565 = vst [vmem:[#allocation97_spill] sm:$0xff] %v15931_v39 }
 0x450   : > { %v15937_v53 = vpop.f32.mrf.mxu1 }
 0x451   : > { %17566 = vst [vmem:[#allocation18_spill] sm:$0xff] %v15937_v53 }
 0x452   : > { %11969 = vmatmul.mubr.msk.f32.gmra.mxu1 %vm5466_vm3, %v15140_v49  ;;  %v15943_v8 = vpop.f32.mrf.mxu1 }
 0x453   : > { %11971 = vmatprep.mubr.msk.f32.mxu1 %vm5466_vm3, %v15173_v31  ;;  %17567 = vst [vmem:[#allocation98_spill] sm:$0xff] %v15943_v8 }
 0x454   : > { %v15945_v47 = vpop.f32.mrf.mxu1 }
 0x455   : > { %17568 = vst [vmem:[#allocation99_spill] sm:$0xff] %v15945_v47 }
 0x456   : > { %11972 = vmatmul.mubr.msk.f32.gmra.mxu1 %vm5466_vm3, %v15167_v23  ;;  %v15951_v39 = vpop.f32.mrf.mxu1 }
 0x457   : > { %11974 = vmatprep.mubr.msk.f32.mxu1 %vm5466_vm3, %v15197_v35  ;;  %17569 = vst [vmem:[#allocation100_spill] sm:$0xff] %v15951_v39 }
 0x458   : > { %v15957_v53 = vpop.f32.mrf.mxu1 }
 0x459   : > { %17570 = vst [vmem:[#allocation101_spill] sm:$0xff] %v15957_v53 }
 0x45a   : > { %11975 = vmatmul.mubr.msk.f32.gmra.mxu1 %vm5466_vm3, %v15193_v45  ;;  %v15963_v47 = vpop.f32.mrf.mxu1 }
 0x45b   : > { %11977 = vmatprep.mubr.msk.f32.mxu1 %vm5466_vm3, %v15221_v60  ;;  %17571 = vst [vmem:[#allocation102_spill] sm:$0xff] %v15963_v47 }
 0x45e   : > { %11978 = vmatmul.mubr.msk.f32.gmra.mxu1 %vm5466_vm3, %v15217_v37  ;;  %v15965_v8 = vpop.f32.mrf.mxu1 }
 0x45f   : > { %11980 = vmatprep.mubr.msk.f32.mxu1 %vm5466_vm3, %v15245_v51  ;;  %17572 = vst [vmem:[#allocation103_spill] sm:$0xff] %v15965_v8 }
 0x460   : > { %v15971_v39 = vpop.f32.mrf.mxu1 }
 0x461   : > { %17573 = vst [vmem:[#allocation104_spill] sm:$0xff] %v15971_v39 }
 0x462   : > { %11981 = vmatmul.mubr.msk.f32.gmra.mxu1 %vm5466_vm3, %v15241_v46 }
 0x463   : > { %11983 = vmatprep.mubr.msk.f32.mxu1 %vm5466_vm3, %v15269_v56 }
 0x466   : > { %11984 = vmatmul.mubr.msk.f32.gmra.mxu1 %vm5466_vm3, %v15265_v6  ;;  %v15977_v53 = vpop.f32.mrf.mxu1 }
 0x467   : > { %11986 = vmatprep.mubr.msk.f32.mxu1 %vm5466_vm3, %v15293_v50  ;;  %17574 = vst [vmem:[#allocation105_spill] sm:$0xff] %v15977_v53 }
 0x468   : > { %v15983_v8 = vpop.f32.mrf.mxu1 }
 0x469   : > { %17575 = vst [vmem:[#allocation106_spill] sm:$0xff] %v15983_v8 }
 0x46a   : > { %11987 = vmatmul.mubr.msk.f32.gmra.mxu1 %vm5466_vm3, %v15289_v1 }
 0x46b   : > { %11989 = vmatprep.mubr.msk.f32.mxu1 %vm5466_vm3, %v15317_v24 }
 0x46e   : > { %11990 = vmatmul.mubr.msk.f32.gmra.mxu1 %vm5466_vm3, %v15313_v58  ;;  %v15985_v47 = vpop.f32.mrf.mxu1 }
 0x46f   : > { %11992 = vmatprep.mubr.msk.f32.mxu1 %vm5466_vm3, %v15348_v28  ;;  %17576 = vst [vmem:[#allocation107_spill] sm:$0xff] %v15985_v47 }
 0x470   : > { %v15991_v39 = vpop.f32.mrf.mxu1 }
 0x471   : > { %17577 = vst [vmem:[#allocation108_spill] sm:$0xff] %v15991_v39 }
 0x472   : > { %11993 = vmatmul.mubr.msk.f32.gmra.mxu1 %vm5466_vm3, %v15344_v43 }
 0x473   : > { %11995 = vmatprep.mubr.msk.f32.mxu1 %vm5466_vm3, %v15372_v44 }
 0x476   : > { %11996 = vmatmul.mubr.msk.f32.gmra.mxu1 %vm5466_vm3, %v15368_v32  ;;  %v15997_v53 = vpop.f32.mrf.mxu1 }
 0x477   : > { %11998 = vmatprep.mubr.msk.f32.mxu1 %vm5466_vm3, %v15396_v2  ;;  %17578 = vst [vmem:[#allocation109_spill] sm:$0xff] %v15997_v53 }
 0x478   : > { %v16003_v47 = vpop.f32.mrf.mxu1 }
 0x479   : > { %17579 = vst [vmem:[#allocation110_spill] sm:$0xff] %v16003_v47 }
 0x47a   : > { %11999 = vmatmul.mubr.msk.f32.gmra.mxu1 %vm5466_vm3, %v15392_v52 }
 0x47b   : > { %12001 = vmatprep.mubr.msk.f32.mxu1 %vm5466_vm3, %v15420_v61 }
 0x47e   : > { %12002 = vmatmul.mubr.msk.f32.gmra.mxu1 %vm5466_vm3, %v15416_v9  ;;  %v16005_v8 = vpop.f32.mrf.mxu1 }
 0x47f   : > { %12004 = vmatprep.mubr.msk.f32.mxu1 %vm5466_vm3, %v15444_v25  ;;  %17580 = vst [vmem:[#allocation111_spill] sm:$0xff] %v16005_v8 }
 0x480   : > { %v16011_v39 = vpop.f32.mrf.mxu1 }
 0x481   : > { %17581 = vst [vmem:[#allocation112_spill] sm:$0xff] %v16011_v39 }
 0x482   : > { %12005 = vmatmul.mubr.msk.f32.gmra.mxu1 %vm5466_vm3, %v15440_v5 }
 0x483   : > { %12007 = vmatprep.mubr.msk.f32.mxu1 %vm5466_vm3, %v15468_v0 }
 0x486   : > { %12008 = vmatmul.mubr.msk.f32.gmra.mxu1 %vm5466_vm3, %v15464_v19  ;;  %v16017_v53 = vpop.f32.mrf.mxu1 }
 0x487   : > { %12010 = vmatprep.mubr.msk.f32.mxu1 %vm5466_vm3, %v15492_v18  ;;  %17582 = vst [vmem:[#allocation113_spill] sm:$0xff] %v16017_v53 }
 0x488   : > { %v16023_v8 = vpop.f32.mrf.mxu1 }
 0x489   : > { %17583 = vst [vmem:[#allocation114_spill] sm:$0xff] %v16023_v8 }
 0x48a   : > { %12011 = vmatmul.mubr.msk.f32.gmra.mxu1 %vm5466_vm3, %v15488_v12 }
 0x48b   : > { %12013 = vmatprep.mubr.msk.f32.mxu1 %vm5466_vm3, %v15521_v20 }
 0x48e   : > { %12014 = vmatmul.mubr.msk.f32.gmra.mxu1 %vm5466_vm3, %v17538_v21  ;;  %v16025_v47 = vpop.f32.mrf.mxu1 }
 0x48f   : > { %12016 = vmatprep.mubr.msk.f32.mxu1 %vm5466_vm3, %v17539_v26  ;;  %17584 = vst [vmem:[#allocation115_spill] sm:$0xff] %v16025_v47 }
 0x490   : > { %v16031_v39 = vpop.f32.mrf.mxu1 }
 0x491   : > { %17585 = vst [vmem:[#allocation116_spill] sm:$0xff] %v16031_v39 }
 0x492   : > { %12017 = vmatmul.mubr.msk.f32.gmra.mxu1 %vm5466_vm3, %v17542_v11 }
 0x493   : > { %12019 = vmatprep.mubr.msk.f32.mxu1 %vm5466_vm3, %v17543_v17 }
 0x496   : > { %12020 = vmatmul.mubr.msk.f32.gmra.mxu1 %vm5466_vm3, %v17545_v38  ;;  %v16037_v53 = vpop.f32.mrf.mxu1 }
 0x497   : > { %12022 = vmatprep.mubr.msk.f32.mxu1 %vm5466_vm3, %v17546_v13  ;;  %17586 = vst [vmem:[#allocation117_spill] sm:$0xff] %v16037_v53 }
 0x498   : > { %v16043_v8 = vpop.f32.mrf.mxu1 }
 0x499   : > { %17587 = vst [vmem:[#allocation118_spill] sm:$0xff] %v16043_v8 }
 0x49a   : > { %12023 = vmatmul.mubr.msk.f32.gmra.mxu1 %vm5466_vm3, %v17548_v62 }
 0x49b   : > { %12025 = vmatprep.mubr.msk.f32.mxu1 %vm5466_vm3, %v17549_v41 }
 0x49e   : > { %v16045_v47 = vpop.f32.mrf.mxu1  ;;  %12026 = vmatmul.mubr.msk.f32.gmra.mxu1 %vm5466_vm3, %v17552_v27 }
 0x49f   : > { %17588 = vst [vmem:[#allocation119_spill] sm:$0xff] %v16045_v47  ;;  %12028 = vmatprep.mubr.msk.f32.mxu1 %vm5466_vm3, %v17553_v7 }
 0x4a0   : > { %v16051_v39 = vpop.f32.mrf.mxu1 }
 0x4a1   : > { %17589 = vst [vmem:[#allocation120_spill] sm:$0xff] %v16051_v39 }
 0x4a2   : > { %v16053_v40 = vpop.f32.mrf.mxu1  ;;  %12029 = vmatmul.mubr.msk.f32.gmra.mxu1 %vm5466_vm3, %v17555_v36 }
 0x4a3   : > { %12031 = vmatprep.mubr.msk.f32.mxu1 %vm5466_vm3, %v17556_v15 }
 0x4a4   : > { %v16059_v53 = vpop.f32.mrf.mxu1 }
 0x4a6   : > { %v16061_v8 = vpop.f32.mrf.mxu1  ;;  %12032 = vmatmul.mubr.msk.f32.gmra.mxu1 %vm5466_vm3, %v17558_v33 }
 0x4a7   : > { %12034 = vmatprep.mubr.msk.f32.mxu1 %vm5466_vm3, %v15689_v16 }
 0x4a8   : > { %v16067_v47 = vpop.f32.mrf.mxu1 }
 0x4aa   : > { %v16069_v39 = vpop.f32.mrf.mxu1  ;;  %12035 = vmatmul.mubr.msk.f32.gmra.mxu1 %vm5466_vm3, %v15685_v59 }
 0x4ab   : > { %12037 = vmatprep.mubr.msk.f32.mxu1 %vm5466_vm3, %v15722_v30 }
 0x4ac   : > { %v16075_v10 = vpop.f32.mrf.mxu1 }
 0x4ad   : > { %17590 = vst [vmem:[#allocation121_spill] sm:$0xff] %v16075_v10 }
 0x4ae   : > { %v16077_v42 = vpop.f32.mrf.mxu1  ;;  %12038 = vmatmul.mubr.msk.f32.gmra.mxu1 %vm5466_vm3, %v15711_v34 }
 0x4af   : > { %12122 = vmatprep.mubr.msk.f32.mxu1 %vm5466_vm3, %v15145_v48 }
 0x4b0   : > { %v16083_v22 = vpop.f32.mrf.mxu1 }
 0x4b1   : > { %17591 = vst [vmem:[#allocation122_spill] sm:$0xff] %v16083_v22 }
 0x4b2   : > { %v16085_v63 = vpop.f32.mrf.mxu1  ;;  %12123 = vmatmul.mubr.msk.f32.vlgmr.msra.gmra.mxu1 %vm5466_vm3, %v15140_v49 }
 0x4b3   : > { %12125 = vmatprep.mubr.msk.f32.mxu1 %vm5466_vm3, %v15173_v31 }
 0x4b4   : > { %v16091_v55 = vpop.f32.mrf.mxu1 }
 0x4b6   : > { %v16093_v10 = vpop.f32.mrf.mxu1  ;;  %12126 = vmatmul.mubr.msk.f32.gmra.mxu1 %vm5466_vm3, %v15167_v23 }
 0x4b7   : > { %12128 = vmatprep.mubr.msk.f32.mxu1 %vm5466_vm3, %v15197_v35 }
 0x4b8   : > { %v16099_v48 = vpop.f32.mrf.mxu1 }
 0x4ba   : > { %v16101_v22 = vpop.f32.mrf.mxu1  ;;  %12129 = vmatmul.mubr.msk.f32.gmra.mxu1 %vm5466_vm3, %v15193_v45 }
 0x4bb   : > { %12131 = vmatprep.mubr.msk.f32.mxu1 %vm5466_vm3, %v15221_v60 }
 0x4bc   : > { %v16107_v49 = vpop.f32.mrf.mxu1 }
 0x4be   : > { %v16109_v31 = vpop.f32.mrf.mxu1  ;;  %12132 = vmatmul.mubr.msk.f32.gmra.mxu1 %vm5466_vm3, %v15217_v37 }
 0x4bf   : > { %12134 = vmatprep.mubr.msk.f32.mxu1 %vm5466_vm3, %v15245_v51  ;;  %v9878_v51 = vld [vmem:[%s16921_s5 + $0x18] sm:$0xff] }
 0x4c0   : > { %v16115_v23 = vpop.f32.mrf.mxu1  ;;  %12200 = vmatprep.subr.mxu0 %v9878_v51 }
 0x4c1   : > { %12201 = vmatpush3.msra.mxu0 %v9878_v51 }
 0x4c2   : > { %v16117_v35 = vpop.f32.mrf.mxu1  ;;  %12135 = vmatmul.mubr.msk.f32.gmra.mxu1 %vm5466_vm3, %v15241_v46 }
 0x4c3   : > { %12137 = vmatprep.mubr.msk.f32.mxu1 %vm5466_vm3, %v15269_v56 }
 0x4c4   : > { %v16123_v45 = vpop.f32.mrf.mxu1 }
 0x4c6   : > { %v16125_v60 = vpop.f32.mrf.mxu1  ;;  %12138 = vmatmul.mubr.msk.f32.gmra.mxu1 %vm5466_vm3, %v15265_v6 }
 0x4c7   : > { %12140 = vmatprep.mubr.msk.f32.mxu1 %vm5466_vm3, %v15293_v50 }
 0x4c8   : > { %v16131_v37 = vpop.f32.mrf.mxu1 }
 0x4ca   : > { %v16136_v46 = vpop.f32.mrf.mxu1  ;;  %12141 = vmatmul.mubr.msk.f32.gmra.mxu1 %vm5466_vm3, %v15289_v1 }
 0x4cb   : > { %17592 = vst [vmem:[#allocation123_spill] sm:$0xff] %v16136_v46  ;;  %12143 = vmatprep.mubr.msk.f32.mxu1 %vm5466_vm3, %v15317_v24 }
 0x4cc   : > { %v16142_v6 = vpop.f32.mrf.mxu1 }
 0x4ce   : > { %v16144_v56 = vpop.f32.mrf.mxu1  ;;  %12144 = vmatmul.mubr.msk.f32.gmra.mxu1 %vm5466_vm3, %v15313_v58 }
 0x4cf   : > { %12146 = vmatprep.mubr.msk.f32.mxu1 %vm5466_vm3, %v15348_v28 }
 0x4d0   : > { %v16150_v50 = vpop.f32.mrf.mxu1 }
 0x4d2   : > { %v16152_v46 = vpop.f32.mrf.mxu1  ;;  %12147 = vmatmul.mubr.msk.f32.gmra.mxu1 %vm5466_vm3, %v15344_v43 }
 0x4d3   : > { %12149 = vmatprep.mubr.msk.f32.mxu1 %vm5466_vm3, %v15372_v44 }
 0x4d4   : > { %v16158_v1 = vpop.f32.mrf.mxu1 }
 0x4d6   : > { %v16160_v24 = vpop.f32.mrf.mxu1  ;;  %12150 = vmatmul.mubr.msk.f32.gmra.mxu1 %vm5466_vm3, %v15368_v32 }
 0x4d7   : > { %12152 = vmatprep.mubr.msk.f32.mxu1 %vm5466_vm3, %v15396_v2 }
 0x4d8   : > { %v16166_v58 = vpop.f32.mrf.mxu1 }
 0x4da   : > { %v16168_v28 = vpop.f32.mrf.mxu1  ;;  %12153 = vmatmul.mubr.msk.f32.gmra.mxu1 %vm5466_vm3, %v15392_v52 }
 0x4db   : > { %12155 = vmatprep.mubr.msk.f32.mxu1 %vm5466_vm3, %v15420_v61 }
 0x4dc   : > { %v16174_v43 = vpop.f32.mrf.mxu1 }
 0x4de   : > { %v16176_v44 = vpop.f32.mrf.mxu1  ;;  %12156 = vmatmul.mubr.msk.f32.gmra.mxu1 %vm5466_vm3, %v15416_v9 }
 0x4df   : > { %12158 = vmatprep.mubr.msk.f32.mxu1 %vm5466_vm3, %v15444_v25 }
 0x4e0   : > { %v16182_v32 = vpop.f32.mrf.mxu1 }
 0x4e2   : > { %v16184_v2 = vpop.f32.mrf.mxu1  ;;  %12159 = vmatmul.mubr.msk.f32.gmra.mxu1 %vm5466_vm3, %v15440_v5 }
 0x4e3   : > { %12161 = vmatprep.mubr.msk.f32.mxu1 %vm5466_vm3, %v15468_v0 }
 0x4e4   : > { %v16190_v52 = vpop.f32.mrf.mxu1 }
 0x4e6   : > { %v16192_v61 = vpop.f32.mrf.mxu1  ;;  %12162 = vmatmul.mubr.msk.f32.gmra.mxu1 %vm5466_vm3, %v15464_v19 }
 0x4e7   : > { %12164 = vmatprep.mubr.msk.f32.mxu1 %vm5466_vm3, %v15492_v18 }
 0x4e8   : > { %v16198_v9 = vpop.f32.mrf.mxu1 }
 0x4ea   : > { %v16200_v25 = vpop.f32.mrf.mxu1  ;;  %12165 = vmatmul.mubr.msk.f32.gmra.mxu1 %vm5466_vm3, %v15488_v12 }
 0x4eb   : > { %12167 = vmatprep.mubr.msk.f32.mxu1 %vm5466_vm3, %v15521_v20 }
 0x4ec   : > { %v16206_v5 = vpop.f32.mrf.mxu1 }
 0x4ee   : > { %v16208_v0 = vpop.f32.mrf.mxu1  ;;  %12168 = vmatmul.mubr.msk.f32.gmra.mxu1 %vm5466_vm3, %v17538_v21 }
 0x4ef   : > { %12170 = vmatprep.mubr.msk.f32.mxu1 %vm5466_vm3, %v17539_v26 }
 0x4f0   : > { %v16214_v19 = vpop.f32.mrf.mxu1 }
 0x4f2   : > { %v16216_v18 = vpop.f32.mrf.mxu1  ;;  %12171 = vmatmul.mubr.msk.f32.gmra.mxu1 %vm5466_vm3, %v17542_v11 }
 0x4f3   : > { %12173 = vmatprep.mubr.msk.f32.mxu1 %vm5466_vm3, %v17543_v17 }
 0x4f4   : > { %v16222_v12 = vpop.f32.mrf.mxu1 }
 0x4f6   : > { %v16224_v20 = vpop.f32.mrf.mxu1  ;;  %12174 = vmatmul.mubr.msk.f32.gmra.mxu1 %vm5466_vm3, %v17545_v38 }
 0x4f7   : > { %12176 = vmatprep.mubr.msk.f32.mxu1 %vm5466_vm3, %v17546_v13  ;;  %v9877_v13 = vld [vmem:[%s16921_s5 + $0x10] sm:$0xff] }
 0x4f8   : > { %v16230_v21 = vpop.f32.mrf.mxu1  ;;  %12202 = vmatprep.subr.mxu0 %v9877_v13 }
 0x4f9   : > { %12203 = vmatpush3.msra.mxu0 %v9877_v13 }
 0x4fa   : > { %v16232_v26 = vpop.f32.mrf.mxu1  ;;  %12177 = vmatmul.mubr.msk.f32.gmra.mxu1 %vm5466_vm3, %v17548_v62 }
 0x4fb   : > { %12179 = vmatprep.mubr.msk.f32.mxu1 %vm5466_vm3, %v17549_v41 }
 0x4fc   : > { %v16238_v11 = vpop.f32.mrf.mxu1 }
 0x4fd   : > { %17593 = vst [vmem:[#allocation124_spill] sm:$0xff] %v16238_v11 }
 0x4fe   : > { %v16240_v17 = vpop.f32.mrf.mxu1  ;;  %12180 = vmatmul.mubr.msk.f32.gmra.mxu1 %vm5466_vm3, %v17552_v27 }
 0x4ff   : > { %12182 = vmatprep.mubr.msk.f32.mxu1 %vm5466_vm3, %v17553_v7 }
 0x500   : > { %v16246_v38 = vpop.f32.mrf.mxu1 }
 0x502   : > { %v16251_v62 = vpop.f32.mrf.mxu1  ;;  %12183 = vmatmul.mubr.msk.f32.gmra.mxu1 %vm5466_vm3, %v17555_v36  ;;  %v6033_v36 = vadd.f32 %v16053_v40, %v15795_v3  ;;  %v6043_v40 = vadd.f32 %v16061_v8, %v15803_v54  ;;  %v17595_v8 = vld [vmem:[#allocation79_spill] sm:$0xff] }
 0x503   : > { %12185 = vmatprep.mubr.msk.f32.mxu1 %vm5466_vm3, %v17556_v15  ;;  %v16272_v15 = vld [vmem:[%s16921_s5 + $0x8] sm:$0xff] }
 0x504   : > { %v16257_v27 = vpop.f32.mrf.mxu1  ;;  %17594 = vst [vmem:[#allocation125_spill] sm:$0xff] %v16272_v15  ;;  %12207 = vmatprep.subr.mxu0 %v16272_v15 }
 0x506   : > { %v16259_v41 = vpop.f32.mrf.mxu1  ;;  %12186 = vmatmul.mubr.msk.f32.gmra.mxu1 %vm5466_vm3, %v17558_v33  ;;  %v6028_v33 = vadd.f32 %v16059_v53, %v15801_v57 }
 0x507   : > { %12188 = vmatprep.mubr.msk.f32.mxu1 %vm5466_vm3, %v15689_v16 }
 0x508   : > { %v16265_v7 = vpop.f32.mrf.mxu1 }
 0x50a   : > { %v11964_v51 = vpop.f32.mrf.mxu1  ;;  %12189 = vmatmul.mubr.msk.f32.gmra.mxu1 %vm5466_vm3, %v15685_v59  ;;  %v6038_v59 = vadd.f32 %v16067_v47, %v15809_v4  ;;  %v17599_v4 = vld [vmem:[#allocation9_spill] sm:$0xff] }
 0x50b   : > { %v16279_v16 = vadd.f32 %v11964_v51, %v6033_v36  ;;  %12191 = vmatprep.mubr.msk.f32.mxu1 %vm5466_vm3, %v15722_v30  ;;  %v6053_v30 = vadd.f32 %v16069_v39, %v15815_v14  ;;  %v17596_v36 = vld [vmem:[#allocation83_spill] sm:$0xff]  ;;  %v17602_v39 = vld [vmem:[#allocation81_spill] sm:$0xff] }
 0x50c   : > { %v6363_v3 = vpop.f32.mrf.mxu1 }
 0x50d   : > { %v16285_v13 = vadd.f32 %v6363_v3, %v6028_v33 }
 0x50e   : > { %v11967_v11 = vpop.f32.mrf.mxu1  ;;  %12192 = vmatmul.mubr.msk.f32.gmra.mxu1 %vm5466_vm3, %v15711_v34  ;;  %v17597_v34 = vld [vmem:[#allocation121_spill] sm:$0xff] }
 0x50f   : > { %v16291_v15 = vadd.f32 %v11967_v11, %v6043_v40  ;;  %12194 = vmatprep.mubr.msk.f32.mxu1 %vm5466_vm3, %v15750_v29  ;;  %v6048_v51 = vadd.f32 %v17597_v34, %v17596_v36  ;;  %v17600_v29 = vld [vmem:[#allocation85_spill] sm:$0xff]  ;;  %v17603_v40 = vld [vmem:[#allocation86_spill] sm:$0xff] }
 0x510   : > { %v6373_v57 = vpop.f32.mrf.mxu1  ;;  %v6063_v11 = vadd.f32 %v16077_v42, %v17600_v29  ;;  %v17607_v29 = vld [vmem:[#allocation89_spill] sm:$0xff] }
 0x511   : > { %v16297_v53 = vadd.f32 %v6373_v57, %v6038_v59  ;;  %v17604_v59 = vld [vmem:[#allocation122_spill] sm:$0xff] }
 0x512   : > { %v11970_v54 = vpop.f32.mrf.mxu1  ;;  %12195 = vmatmul.mubr.msk.f32.gmra.mxu1 %vm5466_vm3, %v17595_v8  ;;  %v6058_v57 = vadd.f32 %v17604_v59, %v17603_v40 }
 0x513   : > { %v16303_v33 = vadd.f32 %v11970_v54, %v6053_v30  ;;  %12197 = vmatprep.mubr.msk.f32.mxu1 %vm5466_vm3, %v17599_v4  ;;  %v17605_v54 = vld [vmem:[#allocation10_spill] sm:$0xff] }
 0x514   : > { %v6383_v47 = vpop.f32.mrf.mxu1  ;;  %v6073_v36 = vadd.f32 %v16085_v63, %v17605_v54 }
 0x515   : > { %17598 = vst [vmem:[#allocation126_spill] sm:$0xff] %v16303_v33  ;;  %v16309_v3 = vadd.f32 %v6383_v47, %v6048_v51  ;;  %v17606_v33 = vld [vmem:[#allocation84_spill] sm:$0xff] }
 0x516   : > { %v11973_v14 = vpop.f32.mrf.mxu1  ;;  %12198 = vmatmul.mubr.msk.f32.gmra.mxu1 %vm5466_vm3, %v17602_v39  ;;  %v6068_v42 = vadd.f32 %v16091_v55, %v17606_v33  ;;  %v6083_v39 = vadd.f32 %v16093_v10, %v17607_v29  ;;  %v17610_v33 = vld [vmem:[#allocation90_spill] sm:$0xff] }
 0x517   : > { %17601 = vst [vmem:[#allocation127_spill] sm:$0xff] %v16309_v3  ;;  %v16315_v8 = vadd.f32 %v11973_v14, %v6063_v11  ;;  %v17608_v14 = vld [vmem:[#allocation11_spill] sm:$0xff] }
 0x518   : > { %v6393_v30 = vpop.f32.mrf.mxu1  ;;  %v6078_v40 = vadd.f32 %v16099_v48, %v17608_v14 }
 0x519   : > { %v16319_v34 = vadd.f32 %v6393_v30, %v6058_v57  ;;  %v17609_v57 = vld [vmem:[#allocation87_spill] sm:$0xff] }
 0x51a   : > { %v11976_v4 = vpop.f32.mrf.mxu1  ;;  %v6093_v30 = vadd.f32 %v16101_v22, %v17609_v57 }
 0x51b   : > { %v16323_v51 = vadd.f32 %v11976_v4, %v6073_v36  ;;  %v6088_v36 = vadd.f32 %v16107_v49, %v17610_v33 }
 0x51c   : > { %v6403_v47 = vpop.f32.mrf.mxu1 }
 0x51d   : > { %v16327_v3 = vadd.f32 %v6403_v47, %v6068_v42  ;;  %v17611_v42 = vld [vmem:[#allocation12_spill] sm:$0xff] }
 0x51e   : > { %v11979_v11 = vpop.f32.mrf.mxu1  ;;  %v6103_v47 = vadd.f32 %v16109_v31, %v17611_v42 }
 0x51f   : > { %v16331_v59 = vadd.f32 %v11979_v11, %v6083_v39  ;;  %v17612_v39 = vld [vmem:[#allocation88_spill] sm:$0xff] }
 0x520   : > { %v6413_v63 = vpop.f32.mrf.mxu1  ;;  %v6098_v11 = vadd.f32 %v16115_v23, %v17612_v39 }
 0x521   : > { %v16335_v54 = vadd.f32 %v6413_v63, %v6078_v40  ;;  %v17613_v40 = vld [vmem:[#allocation13_spill] sm:$0xff] }
 0x522   : > { %v11982_v55 = vpop.f32.mrf.mxu1  ;;  %v6113_v63 = vadd.f32 %v16117_v35, %v17613_v40 }
 0x523   : > { %v16339_v4 = vadd.f32 %v11982_v55, %v6093_v30  ;;  %v17615_v30 = vld [vmem:[#allocation91_spill] sm:$0xff] }
 0x524   : > { %v6423_v10 = vpop.f32.mrf.mxu1  ;;  %v6108_v55 = vadd.f32 %v16123_v45, %v17615_v30 }
 0x525   : > { %v16343_v29 = vadd.f32 %v6423_v10, %v6088_v36  ;;  %v17616_v36 = vld [vmem:[#allocation93_spill] sm:$0xff] }
 0x526   : > { %v11985_v48 = vpop.f32.mrf.mxu1  ;;  %v6123_v10 = vadd.f32 %v16125_v60, %v17616_v36 }
 0x527   : > { %v16347_v14 = vadd.f32 %v11985_v48, %v6103_v47  ;;  %v17617_v47 = vld [vmem:[#allocation14_spill] sm:$0xff] }
 0x528   : > { %v6433_v22 = vpop.f32.mrf.mxu1  ;;  %v6118_v48 = vadd.f32 %v16131_v37, %v17617_v47 }
 0x529   : > { %v16351_v57 = vadd.f32 %v6433_v22, %v6098_v11  ;;  %v17618_v11 = vld [vmem:[#allocation92_spill] sm:$0xff]  ;;  %v17619_v22 = vld [vmem:[#allocation123_spill] sm:$0xff] }
 0x52a   : > { %v11988_v49 = vpop.f32.mrf.mxu1  ;;  %v6133_v40 = vadd.f32 %v17619_v22, %v17618_v11  ;;  %v17623_v11 = vld [vmem:[#allocation95_spill] sm:$0xff] }
 0x52b   : > { %17614 = vst [vmem:[#allocation128_spill] sm:$0xff] %v16351_v57  ;;  %v16355_v33 = vadd.f32 %v11988_v49, %v6113_v63  ;;  %v17620_v63 = vld [vmem:[#allocation15_spill] sm:$0xff] }
 0x52c   : > { %v6443_v31 = vpop.f32.mrf.mxu1  ;;  %v6128_v49 = vadd.f32 %v16142_v6, %v17620_v63  ;;  %v6153_v6 = vadd.f32 %v16152_v46, %v17623_v11 }
 0x52d   : > { %v16359_v42 = vadd.f32 %v6443_v31, %v6108_v55  ;;  %v17621_v55 = vld [vmem:[#allocation94_spill] sm:$0xff] }
 0x52e   : > { %v11991_v23 = vpop.f32.mrf.mxu1  ;;  %v6143_v31 = vadd.f32 %v16144_v56, %v17621_v55 }
 0x52f   : > { %v16363_v39 = vadd.f32 %v11991_v23, %v6123_v10  ;;  %v17622_v10 = vld [vmem:[#allocation16_spill] sm:$0xff] }
 0x530   : > { %v6453_v35 = vpop.f32.mrf.mxu1  ;;  %v6138_v23 = vadd.f32 %v16150_v50, %v17622_v10  ;;  %v17626_v50 = vld [vmem:[#allocation96_spill] sm:$0xff]  ;;  %v17627_v10 = vld [vmem:[#allocation97_spill] sm:$0xff] }
 0x531   : > { %v16367_v57 = vadd.f32 %v6453_v35, %v6118_v48  ;;  %v16381_v48 = vpop.f32.mrf.mxu0  ;;  %v6163_v55 = vadd.f32 %v16160_v24, %v17626_v50  ;;  %v6158_v46 = vadd.f32 %v16166_v58, %v17627_v10  ;;  %v17632_v58 = vld [vmem:[#allocation99_spill] sm:$0xff] }
 0x532   : > { %v11994_v45 = vpop.f32.mrf.mxu1 }
 0x533   : > { %v16371_v30 = vadd.f32 %v11994_v45, %v6133_v40  ;;  %v17624_v45 = vld [vmem:[#allocation17_spill] sm:$0xff] }
 0x534   : > { %v6463_v60 = vpop.f32.mrf.mxu1  ;;  %v6148_v56 = vadd.f32 %v16158_v1, %v17624_v45  ;;  %v17629_v1 = vld [vmem:[#allocation18_spill] sm:$0xff] }
 0x535   : > { %v16375_v36 = vadd.f32 %v6463_v60, %v6128_v49  ;;  %v16391_v49 = vpop.f32.mrf.mxu0 }
 0x536   : > { %v11997_v37 = vpop.f32.mrf.mxu1 }
 0x537   : > { %v16379_v47 = vadd.f32 %v11997_v37, %v6143_v31 }
 0x538   : > { %v6473_v35 = vpop.f32.mrf.mxu1 }
 0x539   : > { %v16385_v22 = vadd.f32 %v6473_v35, %v6138_v23  ;;  %v16401_v35 = vpop.f32.mrf.mxu0 }
 0x53a   : > { %v12000_v40 = vpop.f32.mrf.mxu1 }
 0x53b   : > { %v16389_v63 = vadd.f32 %v12000_v40, %v6153_v6  ;;  %v6173_v6 = vadd.f32 %v16168_v28, %v17629_v1 }
 0x53c   : > { %v6483_v60 = vpop.f32.mrf.mxu1 }
 0x53d   : > { %17625 = vst [vmem:[#allocation129_spill] sm:$0xff] %v16389_v63  ;;  %v16395_v31 = vadd.f32 %v6483_v60, %v6148_v56  ;;  %v17630_v63 = vld [vmem:[#allocation98_spill] sm:$0xff]  ;;  %v16411_v60 = vpop.f32.mrf.mxu0 }
 0x53e   : > { %v12003_v37 = vpop.f32.mrf.mxu1  ;;  %v6168_v24 = vadd.f32 %v16174_v43, %v17630_v63  ;;  %v17635_v43 = vld [vmem:[#allocation101_spill] sm:$0xff] }
 0x53f   : > { %v16399_v23 = vadd.f32 %v12003_v37, %v6163_v55  ;;  %v6183_v55 = vadd.f32 %v16176_v44, %v17632_v58  ;;  %v6193_v63 = vadd.f32 %v16184_v2, %v17635_v43  ;;  %v17640_v2 = vld [vmem:[#allocation104_spill] sm:$0xff] }
 0x540   : > { %v6493_v11 = vpop.f32.mrf.mxu1 }
 0x541   : > { %17628 = vst [vmem:[#allocation130_spill] sm:$0xff] %v16399_v23  ;;  %v16405_v40 = vadd.f32 %v6493_v11, %v6158_v46  ;;  %v17633_v23 = vld [vmem:[#allocation100_spill] sm:$0xff]  ;;  %v16421_v11 = vpop.f32.mrf.mxu0 }
 0x542   : > { %v12006_v45 = vpop.f32.mrf.mxu1  ;;  %v6178_v28 = vadd.f32 %v16182_v32, %v17633_v23  ;;  %v17638_v32 = vld [vmem:[#allocation103_spill] sm:$0xff] }
 0x543   : > { %v16409_v56 = vadd.f32 %v12006_v45, %v6173_v6  ;;  %v6203_v23 = vadd.f32 %v16192_v61, %v17638_v32  ;;  %v17643_v61 = vld [vmem:[#allocation106_spill] sm:$0xff] }
 0x544   : > { %v6503_v50 = vpop.f32.mrf.mxu1 }
 0x545   : > { %17631 = vst [vmem:[#allocation132_spill] sm:$0xff] %v16409_v56  ;;  %v16415_v37 = vadd.f32 %v6503_v50, %v6168_v24  ;;  %v17636_v56 = vld [vmem:[#allocation102_spill] sm:$0xff]  ;;  %v16431_v50 = vpop.f32.mrf.mxu0 }
 0x546   : > { %v12009_v10 = vpop.f32.mrf.mxu1  ;;  %v6188_v44 = vadd.f32 %v16190_v52, %v17636_v56  ;;  %v17641_v52 = vld [vmem:[#allocation105_spill] sm:$0xff] }
 0x547   : > { %v16419_v46 = vadd.f32 %v12009_v10, %v6183_v55  ;;  %v16437_v10 = vpop.f32.mrf.mxu0  ;;  %v6213_v56 = vadd.f32 %v16200_v25, %v17641_v52  ;;  %v17646_v25 = vld [vmem:[#allocation108_spill] sm:$0xff] }
 0x548   : > { %v6513_v1 = vpop.f32.mrf.mxu1 }
 0x549   : > { %17634 = vst [vmem:[#allocation131_spill] sm:$0xff] %v16419_v46  ;;  %v16425_v6 = vadd.f32 %v6513_v1, %v6178_v28  ;;  %v6198_v28 = vadd.f32 %v16198_v9, %v17640_v2  ;;  %v17645_v9 = vld [vmem:[#allocation107_spill] sm:$0xff] }
 0x54a   : > { %v12012_v45 = vpop.f32.mrf.mxu1 }
 0x54b   : > { %v16429_v24 = vadd.f32 %v12012_v45, %v6193_v63  ;;  %v16447_v45 = vpop.f32.mrf.mxu0 }
 0x54c   : > { %v6523_v58 = vpop.f32.mrf.mxu1 }
 0x54d   : > { %17637 = vst [vmem:[#allocation134_spill] sm:$0xff] %v16429_v24  ;;  %v16435_v55 = vadd.f32 %v6523_v58, %v6188_v44  ;;  %v6208_v44 = vadd.f32 %v16206_v5, %v17643_v61  ;;  %v16453_v32 = vpop.f32.mrf.mxu0  ;;  %v17648_v5 = vld [vmem:[#allocation109_spill] sm:$0xff] }
 0x54e   : > { %v12015_v46 = vpop.f32.mrf.mxu1 }
 0x54f   : > { %17639 = vst [vmem:[#allocation133_spill] sm:$0xff] %v16435_v55  ;;  %v16441_v1 = vadd.f32 %v12015_v46, %v6203_v23  ;;  %v6223_v46 = vadd.f32 %v16208_v0, %v17645_v9  ;;  %v16463_v52 = vpop.f32.mrf.mxu0  ;;  %v17650_v0 = vld [vmem:[#allocation110_spill] sm:$0xff] }
 0x550   : > { %v6533_v43 = vpop.f32.mrf.mxu1 }
 0x551   : > { %v16445_v63 = vadd.f32 %v6533_v43, %v6198_v28  ;;  %v6218_v28 = vadd.f32 %v16214_v19, %v17646_v25  ;;  %v16469_v61 = vpop.f32.mrf.mxu0  ;;  %v17651_v19 = vld [vmem:[#allocation111_spill] sm:$0xff] }
 0x552   : > { %v12018_v24 = vpop.f32.mrf.mxu1 }
 0x553   : > { %17642 = vst [vmem:[#allocation136_spill] sm:$0xff] %v16445_v63  ;;  %v16451_v58 = vadd.f32 %v12018_v24, %v6213_v56  ;;  %v6233_v24 = vadd.f32 %v16216_v18, %v17648_v5  ;;  %v16479_v25 = vpop.f32.mrf.mxu0  ;;  %v17653_v18 = vld [vmem:[#allocation112_spill] sm:$0xff] }
 0x554   : > { %v6543_v55 = vpop.f32.mrf.mxu1 }
 0x555   : > { %17644 = vst [vmem:[#allocation135_spill] sm:$0xff] %v16451_v58  ;;  %v16457_v23 = vadd.f32 %v6543_v55, %v6208_v44  ;;  %v6228_v55 = vadd.f32 %v16222_v12, %v17650_v0  ;;  %v16485_v5 = vpop.f32.mrf.mxu0  ;;  %v17655_v12 = vld [vmem:[#allocation113_spill] sm:$0xff] }
 0x556   : > { %v12021_v2 = vpop.f32.mrf.mxu1 }
 0x557   : > { %v16461_v43 = vadd.f32 %v12021_v2, %v6223_v46  ;;  %v6243_v46 = vadd.f32 %v16224_v20, %v17651_v19  ;;  %v8726_v20 = vld [vmem:[%s16923_s7 + $0x70] sm:$0xff] }
 0x558   : > { %v6553_v63 = vpop.f32.mrf.mxu1  ;;  %12291 = vmatprep.subr.mxu1 %v8726_v20 }
 0x559   : > { %17647 = vst [vmem:[#allocation138_spill] sm:$0xff] %v16461_v43  ;;  %v16467_v56 = vadd.f32 %v6553_v63, %v6218_v28  ;;  %v6238_v63 = vadd.f32 %v16230_v21, %v17653_v18  ;;  %12292 = vmatpush3.msra.mxu1 %v8726_v20 }
 0x55a   : > { %v12024_v58 = vpop.f32.mrf.mxu1 }
 0x55b   : > { %17649 = vst [vmem:[#allocation137_spill] sm:$0xff] %v16467_v56  ;;  %v16473_v44 = vadd.f32 %v12024_v58, %v6233_v24  ;;  %v6253_v58 = vadd.f32 %v16232_v26, %v17655_v12 }
 0x55c   : > { %v6563_v9 = vpop.f32.mrf.mxu1 }
 0x55d   : > { %v16477_v2 = vadd.f32 %v6563_v9, %v6228_v55  ;;  %v16496_v9 = vpop.f32.mrf.mxu0 }
 0x55e   : > { %v12027_v43 = vpop.f32.mrf.mxu1 }
 0x55f   : > { %17652 = vst [vmem:[#allocation140_spill] sm:$0xff] %v16477_v2  ;;  %v16483_v28 = vadd.f32 %v12027_v43, %v6243_v46  ;;  %v17659_v43 = vld [vmem:[#allocation115_spill] sm:$0xff]  ;;  %v16502_v46 = vpop.f32.mrf.mxu0 }
 0x560   : > { %v6573_v56 = vpop.f32.mrf.mxu1  ;;  %v6263_v19 = vadd.f32 %v16240_v17, %v17659_v43 }
 0x561   : > { %17654 = vst [vmem:[#allocation139_spill] sm:$0xff] %v16483_v28  ;;  %v16489_v24 = vadd.f32 %v6573_v56, %v6238_v63  ;;  %v17660_v56 = vld [vmem:[#allocation116_spill] sm:$0xff] }
 0x562   : > { %v12030_v0 = vpop.f32.mrf.mxu1  ;;  %v6258_v18 = vadd.f32 %v16246_v38, %v17660_v56  ;;  %v17664_v38 = vld [vmem:[#allocation119_spill] sm:$0xff] }
 0x563   : > { %17656 = vst [vmem:[#allocation142_spill] sm:$0xff] %v16489_v24  ;;  %v16494_v55 = vadd.f32 %v12030_v0, %v6253_v58  ;;  %v17661_v58 = vld [vmem:[#allocation117_spill] sm:$0xff]  ;;  %v16512_v24 = vpop.f32.mrf.mxu0 }
 0x564   : > { %v16498_v21 = vpop.f32.mrf.mxu1  ;;  %v6273_v0 = vadd.f32 %v16251_v62, %v17661_v58  ;;  %v17666_v62 = vld [vmem:[#allocation120_spill] sm:$0xff] }
 0x565   : > { %17657 = vst [vmem:[#allocation141_spill] sm:$0xff] %v16494_v55  ;;  %17658 = vst [vmem:[#allocation144_spill] sm:$0xff] %v16498_v21  ;;  %v17663_v21 = vld [vmem:[#allocation118_spill] sm:$0xff]  ;;  %v16518_v28 = vpop.f32.mrf.mxu0 }
 0x566   : > { %v12033_v26 = vpop.f32.mrf.mxu1  ;;  %v6268_v17 = vadd.f32 %v16257_v27, %v17663_v21  ;;  %v7011_v21 = vadd.f32 %v16381_v48, %v16279_v16 }
 0x567   : > { %v16506_v63 = vadd.f32 %v12033_v26, %v6263_v19  ;;  %v6283_v19 = vadd.f32 %v16259_v41, %v17664_v38  ;;  %v16528_v58 = vpop.f32.mrf.mxu0 }
 0x568   : > { %v6593_v12 = vpop.f32.mrf.mxu1 }
 0x569   : > { %v16510_v55 = vadd.f32 %v6593_v12, %v6258_v18  ;;  %v6278_v18 = vadd.f32 %v16265_v7, %v17666_v62  ;;  %v16541_v7 = vld [vmem:[%s16920_s4] ss:$0 sm:$0xff]  ;;  %v7012_v62 = vadd.f32 %v16411_v60, %v16297_v53 }
 0x56a   : > { %v12036_v20 = vpop.f32.mrf.mxu1 }
 0x56b   : > { %17662 = vst [vmem:[#allocation143_spill] sm:$0xff] %v16510_v55  ;;  %v16516_v43 = vadd.f32 %v12036_v20, %v6273_v0  ;;  %v16534_v0 = vpop.f32.mrf.mxu0 }
 0x56c   : > { %v6603_v2 = vpop.f32.mrf.mxu1 }
 0x56d   : > { %v16522_v26 = vadd.f32 %v6603_v2, %v6268_v17  ;;  %v7010_v2 = vadd.f32 %v16391_v49, %v16285_v13 }
 0x56e   : > { %v12039_v56 = vpop.f32.mrf.mxu1 }
 0x56f   : > { %17665 = vst [vmem:[#allocation146_spill] sm:$0xff] %v16522_v26  ;;  %v16526_v12 = vadd.f32 %v12039_v56, %v6283_v19  ;;  %v16545_v19 = vpop.f32.mrf.mxu0 }
 0x570   : > { %v6613_v55 = vpop.f32.mrf.mxu1 }
 0x571   : > { %17667 = vst [vmem:[#allocation145_spill] sm:$0xff] %v16526_v12  ;;  %v16530_v27 = vadd.f32 %v6613_v55, %v6278_v18  ;;  %v7013_v55 = vadd.f32 %v16401_v35, %v16291_v15  ;;  %v16550_v13 = vpop.f32.mrf.mxu0 }
 0x572   : > { %v12124_v20 = vpop.f32.mrf.mxu1 }
 0x573   : > { %17668 = vst [vmem:[#allocation148_spill] sm:$0xff] %v16530_v27  ;;  %v7399_v41 = vadd.f32 %v12124_v20, %v7011_v21  ;;  %v16559_v60 = vpop.f32.mrf.mxu0 }
 0x574   : > { %v7139_v17 = vpop.f32.mrf.mxu1 }
 0x575   : > { %v7398_v38 = vadd.f32 %v7139_v17, %v7010_v2  ;;  %v7458_v48 = vadd.f32 %v16541_v7, %v7399_v41  ;;  %v17669_v2 = vld [vmem:[#allocation126_spill] sm:$0xff]  ;;  %v17670_v17 = vld [vmem:[#allocation127_spill] sm:$0xff] }
 0x576   : > { %v12127_v16 = vpop.f32.mrf.mxu1  ;;  %v7015_v15 = vadd.f32 %v16421_v11, %v17669_v2  ;;  %v7014_v27 = vadd.f32 %v16431_v50, %v17670_v17  ;;  %v16565_v2 = vpop.f32.mrf.mxu0  ;;  %v7018_v17 = vadd.f32 %v16463_v52, %v16327_v3 }
 0x577   : > { %v7401_v56 = vadd.f32 %v12127_v16, %v7013_v55  ;;  %v7457_v18 = vadd.f32 %v16541_v7, %v7398_v38  ;;  %v7510_v41 = vmax.f32 %v7458_v48, 0.0  ;;  %v7017_v38 = vadd.f32 %v16437_v10, %v16315_v8 }
 0x578   : > { %v7149_v49 = vpop.f32.mrf.mxu1 }
 0x579   : > { %v7460_v21 = vadd.f32 %v16541_v7, %v7401_v56  ;;  %v7400_v20 = vadd.f32 %v7149_v49, %v7012_v62  ;;  %v7509_v56 = vmax.f32 %v7457_v18, 0.0  ;;  %v7019_v18 = vadd.f32 %v16453_v32, %v16323_v51 }
 0x57a   : > { %v12130_v35 = vpop.f32.mrf.mxu1 }
 0x57b   : > { %v7512_v55 = vmax.f32 %v7460_v21, 0.0  ;;  %v7459_v16 = vadd.f32 %v16541_v7, %v7400_v20  ;;  %v7403_v53 = vadd.f32 %v12130_v35, %v7015_v15  ;;  %v7016_v20 = vadd.f32 %v16447_v45, %v16319_v34 }
 0x57c   : > { %v7159_v12 = vpop.f32.mrf.mxu1 }
 0x57d   : > { %v16563_v62 = vmax.f32 %v7510_v41, %v7512_v55  ;;  %v7511_v49 = vmax.f32 %v7459_v16, 0.0  ;;  %v7402_v11 = vadd.f32 %v7159_v12, %v7014_v27  ;;  %v7462_v48 = vadd.f32 %v16541_v7, %v7403_v53  ;;  %v16574_v12 = vpop.f32.mrf.mxu0 }
 0x57e   : > { %v12133_v26 = vpop.f32.mrf.mxu1  ;;  %v7021_v53 = vadd.f32 %v16469_v61, %v16331_v59 }
 0x57f   : > { %v7561_v50 = vmax.f32 %v7509_v56, %v7511_v49  ;;  %v7405_v21 = vadd.f32 %v12133_v26, %v7017_v38  ;;  %v7461_v35 = vadd.f32 %v16541_v7, %v7402_v11  ;;  %v7514_v41 = vmax.f32 %v7462_v48, 0.0  ;;  %v16579_v45 = vpop.f32.mrf.mxu0 }
 0x580   : > { %v7169_v15 = vpop.f32.mrf.mxu1  ;;  %v7020_v48 = vadd.f32 %v16479_v25, %v16335_v54  ;;  %v7022_v25 = vadd.f32 %v16496_v9, %v16343_v29 }
 0x581   : > { %v7464_v8 = vadd.f32 %v16541_v7, %v7405_v21  ;;  %v7404_v10 = vadd.f32 %v7169_v15, %v7016_v20  ;;  %v7513_v38 = vmax.f32 %v7461_v35, 0.0  ;;  %v16586_v21 = vpop.f32.mrf.mxu0  ;;  %v7023_v35 = vadd.f32 %v16485_v5, %v16339_v4  ;;  %v9884_v4 = vld [vmem:[%s16921_s5 + $0x28] sm:$0xff] }
 0x582   : > { %v12136_v27 = vpop.f32.mrf.mxu1 }
 0x583   : > { %v7516_v26 = vmax.f32 %v7464_v8, 0.0  ;;  %v7463_v55 = vadd.f32 %v16541_v7, %v7404_v10  ;;  %v7407_v34 = vadd.f32 %v12136_v27, %v7019_v18  ;;  %v7587_v8 = vld [vmem:[%s16921_s5] sm:$0xff]  ;;  %v16596_v10 = vpop.f32.mrf.mxu0 }
 0x584   : > { %v7179_v16 = vpop.f32.mrf.mxu1 }
 0x585   : > { %v7564_v56 = vmax.f32 %v7514_v41, %v7516_v26  ;;  %v7515_v51 = vmax.f32 %v7463_v55, 0.0  ;;  %v7406_v32 = vadd.f32 %v7179_v16, %v7018_v17  ;;  %v7466_v3 = vadd.f32 %v16541_v7, %v7407_v34  ;;  %v17671_v26 = vld [vmem:[#allocation125_spill] sm:$0xff] }
 0x586   : > { %v12139_v49 = vpop.f32.mrf.mxu1  ;;  %v7025_v55 = vadd.f32 %v16502_v46, %v16347_v14  ;;  %v17672_v46 = vld [vmem:[#allocation128_spill] sm:$0xff] }
 0x587   : > { %v7563_v11 = vmax.f32 %v7513_v38, %v7515_v51  ;;  %v7409_v52 = vadd.f32 %v12139_v49, %v7021_v53  ;;  %v7465_v15 = vadd.f32 %v16541_v7, %v7406_v32  ;;  %v7518_v18 = vmax.f32 %v7466_v3, 0.0  ;;  %v9883_v53 = vld [vmem:[%s16921_s5 + $0x20] sm:$0xff]  ;;  %v16612_v38 = vpop.f32.mrf.mxu0  ;;  %v9888_v49 = vld [vmem:[%s16921_s5 + $0x38] sm:$0xff] }
 0x588   : > { %v7189_v20 = vpop.f32.mrf.mxu1  ;;  %v7024_v32 = vadd.f32 %v16512_v24, %v17672_v46  ;;  %v9887_v24 = vld [vmem:[%s16921_s5 + $0x30] sm:$0xff] }
 0x589   : > { %v7468_v59 = vadd.f32 %v16541_v7, %v7409_v52  ;;  %v7408_v61 = vadd.f32 %v7189_v20, %v7020_v48  ;;  %12204 = vmatprep.mubr.msk.f32.mxu0 %vm7592_vm4, %v7563_v11  ;;  %v7517_v34 = vmax.f32 %v7465_v15, 0.0  ;;  %v16622_v11 = vpop.f32.mrf.mxu0 }
 0x58a   : > { %v12142_v54 = vpop.f32.mrf.mxu1  ;;  %12205 = vmatmul.mubr.msk.f32.vlgmr.msra.gmra.mxu0 %vm7592_vm4, %v7564_v56 }
 0x58b   : > { %v7520_v27 = vmax.f32 %v7468_v59, 0.0  ;;  %v7467_v17 = vadd.f32 %v16541_v7, %v7408_v61  ;;  %v7411_v41 = vadd.f32 %v12142_v54, %v7023_v35  ;;  %12208 = vmatpush3.msra.mxu0 %v17671_v26  ;;  %12211 = vmatprep.mubr.msk.f32.mxu0 %vm7592_vm4, %v7561_v50  ;;  %v7026_v59 = vadd.f32 %v16528_v58, %v16359_v42  ;;  %v16639_v54 = vpop.f32.mrf.mxu0 }
 0x58c   : > { %v7199_v5 = vpop.f32.mrf.mxu1  ;;  %12209 = vmatprep.subr.mxu0 %v7587_v8 }
 0x58d   : > { %v7566_v29 = vmax.f32 %v7518_v18, %v7520_v27  ;;  %v7519_v9 = vmax.f32 %v7467_v17, 0.0  ;;  %v7410_v16 = vadd.f32 %v7199_v5, %v7022_v25  ;;  %12210 = vmatpush3.msra.mxu0 %v7587_v8  ;;  %v7470_v51 = vadd.f32 %v16541_v7, %v7411_v41  ;;  %v9892_v8 = vld [vmem:[%s16921_s5 + $0x48] sm:$0xff]  ;;  %v16643_v41 = vpop.f32.mrf.mxu0 }
 0x58e   : > { %v12145_v50 = vpop.f32.mrf.mxu1  ;;  %12212 = vmatmul.mubr.msk.f32.vlgmr.msra.gmra.mxu0 %vm7592_vm4, %v16563_v62  ;;  %12214 = vmatprep.subr.mxu0 %v9884_v4  ;;  %v7027_v62 = vadd.f32 %v16518_v28, %v16355_v33  ;;  %v7029_v18 = vadd.f32 %v16534_v0, %v16363_v39 }
 0x58f   : > { %v7565_v56 = vmax.f32 %v7517_v34, %v7519_v9  ;;  %v7413_v14 = vadd.f32 %v12145_v50, %v7025_v55  ;;  %12215 = vmatpush3.msra.mxu0 %v9884_v4  ;;  %v7469_v52 = vadd.f32 %v16541_v7, %v7410_v16  ;;  %v7522_v33 = vmax.f32 %v7470_v51, 0.0  ;;  %v16656_v50 = vpop.f32.mrf.mxu0 }
 0x590   : > { %v7209_v3 = vpop.f32.mrf.mxu1  ;;  %12216 = vmatprep.subr.mxu0 %v9883_v53  ;;  %v7028_v34 = vadd.f32 %v16545_v19, %v16367_v57  ;;  %v7031_v16 = vadd.f32 %v16550_v13, %v16371_v30  ;;  %v7030_v57 = vadd.f32 %v16559_v60, %v16375_v36  ;;  %v9896_v30 = vld [vmem:[%s16921_s5 + $0x58] sm:$0xff] }
 0x591   : > { %v7472_v48 = vadd.f32 %v16541_v7, %v7413_v14  ;;  %v7412_v20 = vadd.f32 %v7209_v3, %v7024_v32  ;;  %12217 = vmatpush3.msra.mxu0 %v9883_v53  ;;  %12218 = vmatprep.mubr.msk.f32.mxu0 %vm7592_vm4, %v7565_v56  ;;  %v7521_v27 = vmax.f32 %v7469_v52, 0.0  ;;  %v9891_v53 = vld [vmem:[%s16921_s5 + $0x40] sm:$0xff]  ;;  %v16665_v13 = vpop.f32.mrf.mxu0 }
 0x592   : > { %v12148_v15 = vpop.f32.mrf.mxu1  ;;  %12219 = vmatmul.mubr.msk.f32.vlgmr.msra.gmra.mxu0 %vm7592_vm4, %v7566_v29  ;;  %12221 = vmatprep.subr.mxu0 %v9888_v49 }
 0x593   : > { %v7524_v28 = vmax.f32 %v7472_v48, 0.0  ;;  %v7471_v61 = vadd.f32 %v16541_v7, %v7412_v20  ;;  %v7415_v35 = vadd.f32 %v12148_v15, %v7027_v62  ;;  %12222 = vmatpush3.msra.mxu0 %v9888_v49  ;;  %v7033_v49 = vadd.f32 %v16565_v2, %v16379_v47 }
 0x594   : > { %v7219_v25 = vpop.f32.mrf.mxu1  ;;  %12223 = vmatprep.subr.mxu0 %v9887_v24  ;;  %v7032_v15 = vadd.f32 %v16574_v12, %v16385_v22  ;;  %v7034_v12 = vadd.f32 %v16586_v21, %v16395_v31 }
 0x595   : > { %v7568_v42 = vmax.f32 %v7522_v33, %v7524_v28  ;;  %v7523_v58 = vmax.f32 %v7471_v61, 0.0  ;;  %v7414_v17 = vadd.f32 %v7219_v25, %v7026_v59  ;;  %12224 = vmatpush3.msra.mxu0 %v9887_v24  ;;  %v7474_v5 = vadd.f32 %v16541_v7, %v7415_v35  ;;  %v16672_v59 = vpop.f32.mrf.mxu0  ;;  %v17673_v61 = vld [vmem:[#allocation129_spill] sm:$0xff] }
 0x596   : > { %v12151_v26 = vpop.f32.mrf.mxu1  ;;  %12228 = vmatprep.subr.mxu0 %v9892_v8  ;;  %v7035_v35 = vadd.f32 %v16579_v45, %v17673_v61  ;;  %v9900_v45 = vld [vmem:[%s16921_s5 + $0x68] sm:$0xff] }
 0x597   : > { %v7567_v4 = vmax.f32 %v7521_v27, %v7523_v58  ;;  %v7417_v55 = vadd.f32 %v12151_v26, %v7029_v18  ;;  %v7473_v39 = vadd.f32 %v16541_v7, %v7414_v17  ;;  %v7526_v19 = vmax.f32 %v7474_v5, 0.0  ;;  %v16682_v25 = vpop.f32.mrf.mxu0  ;;  %v17674_v26 = vld [vmem:[#allocation130_spill] sm:$0xff] }
 0x598   : > { %v7229_v29 = vpop.f32.mrf.mxu1 }
 0x599   : > { %v7476_v0 = vadd.f32 %v16541_v7, %v7417_v55  ;;  %v7416_v9 = vadd.f32 %v7229_v29, %v7028_v34  ;;  %12225 = vmatprep.mubr.msk.f32.mxu0 %vm7592_vm4, %v7567_v4  ;;  %v7525_v3 = vmax.f32 %v7473_v39, 0.0  ;;  %v7037_v4 = vadd.f32 %v16596_v10, %v17674_v26  ;;  %v16693_v31 = vpop.f32.mrf.mxu0 }
 0x59a   : > { %v12154_v56 = vpop.f32.mrf.mxu1  ;;  %12226 = vmatmul.mubr.msk.f32.vlgmr.msra.gmra.mxu0 %vm7592_vm4, %v7568_v42 }
 0x59b   : > { %v7528_v51 = vmax.f32 %v7476_v0, 0.0  ;;  %v7475_v14 = vadd.f32 %v16541_v7, %v7416_v9  ;;  %v7419_v46 = vadd.f32 %v12154_v56, %v7031_v16  ;;  %12229 = vmatpush3.msra.mxu0 %v9892_v8  ;;  %v9895_v8 = vld [vmem:[%s16921_s5 + $0x50] sm:$0xff]  ;;  %v7036_v16 = vadd.f32 %v16612_v38, %v16405_v40 }
 0x59c   : > { %v7239_v32 = vpop.f32.mrf.mxu1  ;;  %12230 = vmatprep.subr.mxu0 %v9891_v53  ;;  %v7038_v40 = vadd.f32 %v16639_v54, %v16415_v37 }
 0x59d   : > { %v7570_v62 = vmax.f32 %v7526_v19, %v7528_v51  ;;  %v7527_v36 = vmax.f32 %v7475_v14, 0.0  ;;  %v7418_v60 = vadd.f32 %v7239_v32, %v7030_v57  ;;  %12231 = vmatpush3.msra.mxu0 %v9891_v53  ;;  %v7478_v20 = vadd.f32 %v16541_v7, %v7419_v46  ;;  %v16698_v53 = vpop.f32.mrf.mxu0  ;;  %v17675_v51 = vld [vmem:[#allocation132_spill] sm:$0xff]  ;;  %v9899_v46 = vld [vmem:[%s16921_s5 + $0x60] sm:$0xff] }
 0x59e   : > { %v12157_v52 = vpop.f32.mrf.mxu1  ;;  %12235 = vmatprep.subr.mxu0 %v9896_v30  ;;  %v7039_v14 = vadd.f32 %v16622_v11, %v17675_v51  ;;  %v9904_v11 = vld [vmem:[%s16921_s5 + $0x78] sm:$0xff] }
 0x59f   : > { %v7569_v48 = vmax.f32 %v7525_v3, %v7527_v36  ;;  %v7421_v24 = vadd.f32 %v12157_v52, %v7033_v49  ;;  %v7477_v47 = vadd.f32 %v16541_v7, %v7418_v60  ;;  %v7530_v18 = vmax.f32 %v7478_v20, 0.0  ;;  %v17676_v60 = vld [vmem:[#allocation131_spill] sm:$0xff] }
 0x5a0   : > { %v7249_v33 = vpop.f32.mrf.mxu1  ;;  %v7041_v52 = vadd.f32 %v16643_v41, %v17676_v60  ;;  %v17681_v60 = vld [vmem:[#allocation138_spill] sm:$0xff] }
 0x5a1   : > { %v7480_v2 = vadd.f32 %v16541_v7, %v7421_v24  ;;  %v7420_v28 = vadd.f32 %v7249_v33, %v7032_v15  ;;  %12232 = vmatprep.mubr.msk.f32.mxu0 %vm7592_vm4, %v7569_v48  ;;  %v7529_v5 = vmax.f32 %v7477_v47, 0.0 }
 0x5a2   : > { %v12160_v22 = vpop.f32.mrf.mxu1  ;;  %12233 = vmatmul.mubr.msk.f32.vlgmr.msra.gmra.mxu0 %vm7592_vm4, %v7570_v62  ;;  %v6931_v62 = vpop.f32.mrf.mxu0 }
 0x5a3   : > { %v7532_v27 = vmax.f32 %v7480_v2, 0.0  ;;  %v7479_v42 = vadd.f32 %v16541_v7, %v7420_v28  ;;  %v7423_v58 = vadd.f32 %v12160_v22, %v7035_v35  ;;  %12236 = vmatpush3.msra.mxu0 %v9896_v30  ;;  %v7040_v28 = vadd.f32 %v16656_v50, %v16425_v6  ;;  %v17677_v22 = vld [vmem:[#allocation134_spill] sm:$0xff]  ;;  %v17678_v6 = vld [vmem:[#allocation133_spill] sm:$0xff] }
 0x5a4   : > { %v7259_v17 = vpop.f32.mrf.mxu1  ;;  %12237 = vmatprep.subr.mxu0 %v9895_v8  ;;  %v12101_v54 = vpop.f32.mrf.mxu0  ;;  %v7042_v50 = vadd.f32 %v16672_v59, %v17678_v6 }
 0x5a5   : > { %v7572_v55 = vmax.f32 %v7530_v18, %v7532_v27  ;;  %v7531_v34 = vmax.f32 %v7479_v42, 0.0  ;;  %v7422_v29 = vadd.f32 %v7259_v17, %v7034_v12  ;;  %12238 = vmatpush3.msra.mxu0 %v9895_v8  ;;  %v7482_v0 = vadd.f32 %v16541_v7, %v7423_v58  ;;  %v9903_v18 = vld [vmem:[%s16921_s5 + $0x70] sm:$0xff] }
 0x5a6   : > { %v12163_v21 = vpop.f32.mrf.mxu1  ;;  %12242 = vmatprep.subr.mxu0 %v9900_v45  ;;  %v7043_v12 = vadd.f32 %v16665_v13, %v17677_v22  ;;  %v6941_v27 = vpop.f32.mrf.mxu0  ;;  %v9908_v13 = vld [vmem:[%s16921_s5 + $0x88] sm:$0xff] }
 0x5a7   : > { %v7571_v39 = vmax.f32 %v7529_v5, %v7531_v34  ;;  %v7425_v9 = vadd.f32 %v12163_v21, %v7037_v4  ;;  %v7481_v56 = vadd.f32 %v16541_v7, %v7422_v29  ;;  %v7534_v38 = vmax.f32 %v7482_v0, 0.0 }
 0x5a8   : > { %v7269_v10 = vpop.f32.mrf.mxu1  ;;  %v12104_v4 = vpop.f32.mrf.mxu0 }
 0x5a9   : > { %v7484_v57 = vadd.f32 %v16541_v7, %v7425_v9  ;;  %v7424_v19 = vadd.f32 %v7269_v10, %v7036_v16  ;;  %12239 = vmatprep.mubr.msk.f32.mxu0 %vm7592_vm4, %v7571_v39  ;;  %v7533_v48 = vmax.f32 %v7481_v56, 0.0  ;;  %v17679_v10 = vld [vmem:[#allocation136_spill] sm:$0xff]  ;;  %v7051_v22 = vadd.f32 %v12104_v4, %v16473_v44 }
 0x5aa   : > { %v12166_v30 = vpop.f32.mrf.mxu1  ;;  %12240 = vmatmul.mubr.msk.f32.vlgmr.msra.gmra.mxu0 %vm7592_vm4, %v7572_v55  ;;  %v7045_v55 = vadd.f32 %v16682_v25, %v16441_v1  ;;  %v7044_v56 = vadd.f32 %v16693_v31, %v17679_v10  ;;  %v7046_v31 = vadd.f32 %v6931_v62, %v16457_v23 }
 0x5ab   : > { %v7536_v32 = vmax.f32 %v7484_v57, 0.0  ;;  %v7483_v49 = vadd.f32 %v16541_v7, %v7424_v19  ;;  %v7427_v3 = vadd.f32 %v12166_v30, %v7039_v14  ;;  %12243 = vmatpush3.msra.mxu0 %v9900_v45  ;;  %v6951_v57 = vpop.f32.mrf.mxu0  ;;  %v17680_v14 = vld [vmem:[#allocation135_spill] sm:$0xff] }
 0x5ac   : > { %v7279_v36 = vpop.f32.mrf.mxu1  ;;  %12244 = vmatprep.subr.mxu0 %v9899_v46  ;;  %v9907_v30 = vld [vmem:[%s16921_s5 + $0x80] sm:$0xff] }
 0x5ad   : > { %v7574_v20 = vmax.f32 %v7534_v38, %v7536_v32  ;;  %v7535_v24 = vmax.f32 %v7483_v49, 0.0  ;;  %v7426_v37 = vadd.f32 %v7279_v36, %v7038_v40  ;;  %12245 = vmatpush3.msra.mxu0 %v9899_v46  ;;  %v7486_v47 = vadd.f32 %v16541_v7, %v7427_v3  ;;  %v12107_v40 = vpop.f32.mrf.mxu0 }
 0x5ae   : > { %v12169_v15 = vpop.f32.mrf.mxu1  ;;  %12249 = vmatprep.subr.mxu0 %v9904_v11  ;;  %v7047_v46 = vadd.f32 %v16698_v53, %v17680_v14  ;;  %v9912_v53 = vld [vmem:[%s16921_s5 + $0x98] sm:$0xff] }
 0x5af   : > { %v7573_v33 = vmax.f32 %v7533_v48, %v7535_v24  ;;  %v7429_v2 = vadd.f32 %v12169_v15, %v7041_v52  ;;  %v7485_v35 = vadd.f32 %v16541_v7, %v7426_v37  ;;  %v7538_v58 = vmax.f32 %v7486_v47, 0.0  ;;  %v6961_v23 = vpop.f32.mrf.mxu0 }
 0x5b0   : > { %v7289_v61 = vpop.f32.mrf.mxu1  ;;  %v7049_v52 = vadd.f32 %v12101_v54, %v17681_v60 }
 0x5b1   : > { %v7488_v41 = vadd.f32 %v16541_v7, %v7429_v2  ;;  %v7428_v8 = vadd.f32 %v7289_v61, %v7040_v28  ;;  %12246 = vmatprep.mubr.msk.f32.mxu0 %vm7592_vm4, %v7573_v33  ;;  %v7537_v34 = vmax.f32 %v7485_v35, 0.0  ;;  %v17682_v2 = vld [vmem:[#allocation137_spill] sm:$0xff]  ;;  %v12110_v61 = vpop.f32.mrf.mxu0 }
 0x5b2   : > { %v12172_v42 = vpop.f32.mrf.mxu1  ;;  %12247 = vmatmul.mubr.msk.f32.vlgmr.msra.gmra.mxu0 %vm7592_vm4, %v7574_v20  ;;  %v7048_v28 = vadd.f32 %v6941_v27, %v17682_v2 }
 0x5b3   : > { %v7540_v45 = vmax.f32 %v7488_v41, 0.0  ;;  %v7487_v17 = vadd.f32 %v16541_v7, %v7428_v8  ;;  %v7431_v26 = vadd.f32 %v12172_v42, %v7043_v12  ;;  %12250 = vmatpush3.msra.mxu0 %v9904_v11  ;;  %v9911_v12 = vld [vmem:[%s16921_s5 + $0x90] sm:$0xff]  ;;  %v17683_v42 = vld [vmem:[#allocation140_spill] sm:$0xff]  ;;  %v6971_v44 = vpop.f32.mrf.mxu0 }
 0x5b4   : > { %v7299_v5 = vpop.f32.mrf.mxu1  ;;  %12251 = vmatprep.subr.mxu0 %v9903_v18  ;;  %v7050_v27 = vadd.f32 %v6951_v57, %v17683_v42  ;;  %v9919_v42 = vld [vmem:[%s16921_s5 + $0xb0] sm:$0xff] }
 0x5b5   : > { %v7576_v29 = vmax.f32 %v7538_v58, %v7540_v45  ;;  %v7539_v21 = vmax.f32 %v7487_v17, 0.0  ;;  %v7430_v59 = vadd.f32 %v7299_v5, %v7042_v50  ;;  %12252 = vmatpush3.msra.mxu0 %v9903_v18  ;;  %v7490_v9 = vadd.f32 %v16541_v7, %v7431_v26  ;;  %v9916_v17 = vld [vmem:[%s16921_s5 + $0xa8] sm:$0xff]  ;;  %v17684_v26 = vld [vmem:[#allocation114_spill] sm:$0xff] }
 0x5b6   : > { %v12175_v39 = vpop.f32.mrf.mxu1  ;;  %12256 = vmatprep.subr.mxu0 %v9908_v13 }
 0x5b7   : > { %v7575_v0 = vmax.f32 %v7537_v34, %v7539_v21  ;;  %v7433_v16 = vadd.f32 %v12175_v39, %v7045_v55  ;;  %v7489_v51 = vadd.f32 %v16541_v7, %v7430_v59  ;;  %v7542_v32 = vmax.f32 %v7490_v9, 0.0  ;;  %v17686_v55 = vld [vmem:[#allocation139_spill] sm:$0xff]  ;;  %v17687_v9 = vld [vmem:[#allocation144_spill] sm:$0xff] }
 0x5b8   : > { %v7309_v19 = vpop.f32.mrf.mxu1  ;;  %v7053_v34 = vadd.f32 %v12107_v40, %v17686_v55  ;;  %v17689_v40 = vld [vmem:[#allocation141_spill] sm:$0xff] }
 0x5b9   : > { %v7492_v1 = vadd.f32 %v16541_v7, %v7433_v16  ;;  %v7432_v25 = vadd.f32 %v7309_v19, %v7044_v56  ;;  %12253 = vmatprep.mubr.msk.f32.mxu0 %vm7592_vm4, %v7575_v0  ;;  %v7541_v48 = vmax.f32 %v7489_v51, 0.0  ;;  %v12113_v0 = vpop.f32.mrf.mxu0  ;;  %v17688_v51 = vld [vmem:[#allocation142_spill] sm:$0xff] }
 0x5ba   : > { %v12178_v38 = vpop.f32.mrf.mxu1  ;;  %12254 = vmatmul.mubr.msk.f32.vlgmr.msra.gmra.mxu0 %vm7592_vm4, %v7576_v29 }
 0x5bb   : > { %v7544_v49 = vmax.f32 %v7492_v1, 0.0  ;;  %v7491_v3 = vadd.f32 %v16541_v7, %v7432_v25  ;;  %v7435_v11 = vadd.f32 %v12178_v38, %v7047_v46  ;;  %12257 = vmatpush3.msra.mxu0 %v9908_v13  ;;  %v17685_v13 = vld [vmem:[#allocation124_spill] sm:$0xff]  ;;  %v7052_v1 = vadd.f32 %v6961_v23, %v17688_v51 }
 0x5bc   : > { %v7319_v36 = vpop.f32.mrf.mxu1  ;;  %12258 = vmatprep.subr.mxu0 %v9907_v30  ;;  %v6248_v4 = vadd.f32 %v17685_v13, %v17684_v26  ;;  %v7055_v38 = vadd.f32 %v12110_v61, %v17689_v40  ;;  %v9924_v13 = vld [vmem:[%s16921_s5 + $0xc8] sm:$0xff] }
 0x5bd   : > { %v7578_v20 = vmax.f32 %v7542_v32, %v7544_v49  ;;  %v7543_v24 = vmax.f32 %v7491_v3, 0.0  ;;  %v7434_v37 = vadd.f32 %v7319_v36, %v7046_v31  ;;  %12259 = vmatpush3.msra.mxu0 %v9907_v30  ;;  %v7494_v33 = vadd.f32 %v16541_v7, %v7435_v11  ;;  %v9915_v31 = vld [vmem:[%s16921_s5 + $0xa0] sm:$0xff]  ;;  %v6981_v32 = vpop.f32.mrf.mxu0  ;;  %v8725_v11 = vld [vmem:[%s16923_s7 + $0x68] sm:$0xff] }
 0x5be   : > { %v12181_v62 = vpop.f32.mrf.mxu1  ;;  %12263 = vmatprep.subr.mxu0 %v9912_v53  ;;  %v6666_v16 = vadd.f32 %v17687_v9, %v6248_v4  ;;  %12293 = vmatprep.subr.mxu1 %v8725_v11 }
 0x5bf   : > { %v7577_v15 = vmax.f32 %v7541_v48, %v7543_v24  ;;  %v7437_v47 = vadd.f32 %v12181_v62, %v7049_v52  ;;  %v7493_v41 = vadd.f32 %v16541_v7, %v7434_v37  ;;  %v7546_v6 = vmax.f32 %v7494_v33, 0.0  ;;  %v9920_v48 = vld [vmem:[%s16921_s5 + $0xb8] sm:$0xff]  ;;  %12294 = vmatpush3.msra.mxu1 %v8725_v11 }
 0x5c0   : > { %v7329_v35 = vpop.f32.mrf.mxu1  ;;  %v7054_v3 = vadd.f32 %v6971_v44, %v6666_v16  ;;  %v7057_v37 = vadd.f32 %v12113_v0, %v16506_v63 }
 0x5c1   : > { %v7496_v54 = vadd.f32 %v16541_v7, %v7437_v47  ;;  %v7436_v8 = vadd.f32 %v7329_v35, %v7048_v28  ;;  %12260 = vmatprep.mubr.msk.f32.mxu0 %vm7592_vm4, %v7577_v15  ;;  %v7545_v29 = vmax.f32 %v7493_v41, 0.0  ;;  %v17690_v35 = vld [vmem:[#allocation143_spill] sm:$0xff] }
 0x5c2   : > { %v12184_v18 = vpop.f32.mrf.mxu1  ;;  %12261 = vmatmul.mubr.msk.f32.vlgmr.msra.gmra.mxu0 %vm7592_vm4, %v7578_v20  ;;  %v12116_v20 = vpop.f32.mrf.mxu0  ;;  %v7056_v41 = vadd.f32 %v6981_v32, %v17690_v35 }
 0x5c3   : > { %v7548_v50 = vmax.f32 %v7496_v54, 0.0  ;;  %v7495_v58 = vadd.f32 %v16541_v7, %v7436_v8  ;;  %v7439_v45 = vadd.f32 %v12184_v18, %v7051_v22  ;;  %12264 = vmatpush3.msra.mxu0 %v9912_v53  ;;  %v7059_v18 = vadd.f32 %v12116_v20, %v16516_v43  ;;  %v8715_v20 = vld [vmem:[%s16923_s7 + $0x18] sm:$0xff] }
 0x5c4   : > { %v7339_v5 = vpop.f32.mrf.mxu1  ;;  %12265 = vmatprep.subr.mxu0 %v9911_v12  ;;  %v6991_v54 = vpop.f32.mrf.mxu0 }
 0x5c5   : > { %v7580_v21 = vmax.f32 %v7546_v6, %v7548_v50  ;;  %v7547_v59 = vmax.f32 %v7495_v58, 0.0  ;;  %v7438_v39 = vadd.f32 %v7339_v5, %v7050_v27  ;;  %12266 = vmatpush3.msra.mxu0 %v9911_v12  ;;  %v7498_v57 = vadd.f32 %v16541_v7, %v7439_v45  ;;  %v8724_v27 = vld [vmem:[%s16923_s7 + $0x60] sm:$0xff]  ;;  %v17691_v58 = vld [vmem:[#allocation146_spill] sm:$0xff]  ;;  %v17692_v5 = vld [vmem:[#allocation145_spill] sm:$0xff] }
 0x5c6   : > { %v12187_v10 = vpop.f32.mrf.mxu1  ;;  %12270 = vmatprep.subr.mxu0 %v9916_v17  ;;  %v12119_v6 = vpop.f32.mrf.mxu0  ;;  %v7058_v45 = vadd.f32 %v6991_v54, %v17691_v58  ;;  %12295 = vmatprep.subr.mxu1 %v8724_v27 }
 0x5c7   : > { %v7579_v56 = vmax.f32 %v7545_v29, %v7547_v59  ;;  %v7441_v19 = vadd.f32 %v12187_v10, %v7053_v34  ;;  %v7497_v14 = vadd.f32 %v16541_v7, %v7438_v39  ;;  %v7550_v53 = vmax.f32 %v7498_v57, 0.0  ;;  %12296 = vmatpush3.msra.mxu1 %v8724_v27  ;;  %v8723_v39 = vld [vmem:[%s16923_s7 + $0x58] sm:$0xff]  ;;  %v17693_v57 = vld [vmem:[#allocation148_spill] sm:$0xff] }
 0x5c8   : > { %v7349_v25 = vpop.f32.mrf.mxu1  ;;  %v7061_v55 = vadd.f32 %v12119_v6, %v17692_v5  ;;  %v7001_v0 = vpop.f32.mrf.mxu0  ;;  %12297 = vmatprep.subr.mxu1 %v8723_v39 }
 0x5c9   : > { %v7500_v46 = vadd.f32 %v16541_v7, %v7441_v19  ;;  %v7440_v30 = vadd.f32 %v7349_v25, %v7052_v1  ;;  %12267 = vmatprep.mubr.msk.f32.mxu0 %vm7592_vm4, %v7579_v56  ;;  %v7549_v23 = vmax.f32 %v7497_v14, 0.0  ;;  %v7060_v19 = vadd.f32 %v7001_v0, %v17693_v57  ;;  %12298 = vmatpush3.msra.mxu1 %v8723_v39 }
 0x5ca   : > { %v12190_v49 = vpop.f32.mrf.mxu1  ;;  %12268 = vmatmul.mubr.msk.f32.vlgmr.msra.gmra.mxu0 %vm7592_vm4, %v7580_v21 }
 0x5cb   : > { %v7552_v36 = vmax.f32 %v7500_v46, 0.0  ;;  %v7499_v60 = vadd.f32 %v16541_v7, %v7440_v30  ;;  %v7443_v52 = vadd.f32 %v12190_v49, %v7055_v38  ;;  %12271 = vmatpush3.msra.mxu0 %v9916_v17  ;;  %v9923_v46 = vld [vmem:[%s16921_s5 + $0xc0] sm:$0xff] }
 0x5cc   : > { %v7359_v24 = vpop.f32.mrf.mxu1  ;;  %12272 = vmatprep.subr.mxu0 %v9915_v31 }
 0x5cd   : > { %v7582_v62 = vmax.f32 %v7550_v53, %v7552_v36  ;;  %v7551_v15 = vmax.f32 %v7499_v60, 0.0  ;;  %v7442_v33 = vadd.f32 %v7359_v24, %v7054_v3  ;;  %12273 = vmatpush3.msra.mxu0 %v9915_v31  ;;  %v7502_v28 = vadd.f32 %v16541_v7, %v7443_v52  ;;  %v8722_v3 = vld [vmem:[%s16923_s7 + $0x50] sm:$0xff]  ;;  %v8720_v53 = vld [vmem:[%s16923_s7 + $0x40] sm:$0xff]  ;;  %v8719_v36 = vld [vmem:[%s16923_s7 + $0x38] sm:$0xff] }
 0x5ce   : > { %v12193_v47 = vpop.f32.mrf.mxu1  ;;  %12277 = vmatprep.subr.mxu0 %v9920_v48  ;;  %12299 = vmatprep.subr.mxu1 %v8722_v3  ;;  %v8718_v60 = vld [vmem:[%s16923_s7 + $0x30] sm:$0xff]  ;;  %v8717_v52 = vld [vmem:[%s16923_s7 + $0x28] sm:$0xff] }
 0x5cf   : > { %v7581_v2 = vmax.f32 %v7549_v23, %v7551_v15  ;;  %v7445_v61 = vadd.f32 %v12193_v47, %v7057_v37  ;;  %v7501_v22 = vadd.f32 %v16541_v7, %v7442_v33  ;;  %v7554_v17 = vmax.f32 %v7502_v28, 0.0  ;;  %12300 = vmatpush3.msra.mxu1 %v8722_v3  ;;  %v8714_v24 = vld [vmem:[%s16923_s7 + $0x10] sm:$0xff]  ;;  %v8713_v37 = vld [vmem:[%s16923_s7 + $0x8] sm:$0xff]  ;;  %v8712_v23 = vld [vmem:[%s16923_s7] sm:$0xff] }
 0x5d0   : > { %v7369_v8 = vpop.f32.mrf.mxu1  ;;  %v8827_v15 = vld [vmem:[%s16925_s9 + $0x48] sm:$0xff]  ;;  %v8826_v33 = vld [vmem:[%s16925_s9 + $0x40] sm:$0xff]  ;;  %v8825_v47 = vld [vmem:[%s16925_s9 + $0x38] sm:$0xff] }
 0x5d1   : > { %v7504_v63 = vadd.f32 %v16541_v7, %v7445_v61  ;;  %v7444_v12 = vadd.f32 %v7369_v8, %v7056_v41  ;;  %12274 = vmatprep.mubr.msk.f32.mxu0 %vm7592_vm4, %v7581_v2  ;;  %v7553_v34 = vmax.f32 %v7501_v22, 0.0  ;;  %v8824_v2 = vld [vmem:[%s16925_s9 + $0x30] sm:$0xff]  ;;  %v8823_v28 = vld [vmem:[%s16925_s9 + $0x28] sm:$0xff]  ;;  %v8822_v61 = vld [vmem:[%s16925_s9 + $0x20] sm:$0xff] }
 0x5d2   : > { %v12196_v50 = vpop.f32.mrf.mxu1  ;;  %12275 = vmatmul.mubr.msk.f32.vlgmr.msra.gmra.mxu0 %vm7592_vm4, %v7582_v62  ;;  %v8828_v62 = vld [vmem:[%s16925_s9 + $0x50] sm:$0xf] }
 0x5d3   : > { %v7556_v44 = vmax.f32 %v7504_v63, 0.0  ;;  %v7503_v26 = vadd.f32 %v16541_v7, %v7444_v12  ;;  %v7447_v43 = vadd.f32 %v12196_v50, %v7059_v18  ;;  %12278 = vmatpush3.msra.mxu0 %v9920_v48  ;;  %v8716_v48 = vld [vmem:[%s16923_s7 + $0x20] sm:$0xff] }
 0x5d4   : > { %v7379_v4 = vpop.f32.mrf.mxu1  ;;  %12279 = vmatprep.subr.mxu0 %v9919_v42 }
 0x5d5   : > { %v7584_v29 = vmax.f32 %v7554_v17, %v7556_v44  ;;  %v7555_v21 = vmax.f32 %v7503_v26, 0.0  ;;  %v7446_v59 = vadd.f32 %v7379_v4, %v7058_v45  ;;  %12280 = vmatpush3.msra.mxu0 %v9919_v42  ;;  %v7506_v10 = vadd.f32 %v16541_v7, %v7447_v43 }
 0x5d6   : > { %v12199_v9 = vpop.f32.mrf.mxu1  ;;  %12284 = vmatprep.subr.mxu0 %v9924_v13 }
 0x5d7   : > { %v7583_v16 = vmax.f32 %v7553_v34, %v7555_v21  ;;  %v7449_v56 = vadd.f32 %v12199_v9, %v7061_v55  ;;  %v7505_v1 = vadd.f32 %v16541_v7, %v7446_v59  ;;  %v7558_v30 = vmax.f32 %v7506_v10, 0.0 }
 0x5d8   : > { %v7389_v51 = vpop.f32.mrf.mxu1 }
 0x5d9   : > { %v7508_v25 = vadd.f32 %v16541_v7, %v7449_v56  ;;  %v7448_v14 = vadd.f32 %v7389_v51, %v7060_v19  ;;  %12281 = vmatprep.mubr.msk.f32.mxu0 %vm7592_vm4, %v7583_v16  ;;  %v7557_v31 = vmax.f32 %v7505_v1, 0.0 }
 0x5da   : > { %12282 = vmatmul.mubr.msk.f32.vlgmr.msra.gmra.mxu0 %vm7592_vm4, %v7584_v29 }
 0x5db   : > { %v7560_v40 = vmax.f32 %v7508_v25, 0.0  ;;  %v7507_v38 = vadd.f32 %v16541_v7, %v7448_v14  ;;  %12285 = vmatpush3.msra.mxu0 %v9924_v13  ;;  %v8721_v7 = vld [vmem:[%s16923_s7 + $0x48] sm:$0xff] }
 0x5dc   : > { %12286 = vmatprep.subr.mxu0 %v9923_v46  ;;  %12301 = vmatprep.subr.mxu1 %v8721_v7 }
 0x5dd   : > { %v7586_v32 = vmax.f32 %v7558_v30, %v7560_v40  ;;  %v7559_v49 = vmax.f32 %v7507_v38, 0.0  ;;  %12287 = vmatpush3.msra.mxu0 %v9923_v46  ;;  %12302 = vmatpush3.msra.mxu1 %v8721_v7 }
 0x5de   : > { %12303 = vmatprep.subr.mxu1 %v8720_v53  ;;  %12324 = vmatprep.subr.msk.mxu0 %vm8843_vm5, %v8828_v62 }
 0x5df   : > { %v7585_v11 = vmax.f32 %v7557_v31, %v7559_v49  ;;  %12304 = vmatpush3.msra.mxu1 %v8720_v53  ;;  %v9927_v53 = vld [vmem:[%s16922_s6] ss:$0 sm:$0xff] }
 0x5e0   : > { %12305 = vmatprep.subr.mxu1 %v8719_v36 }
 0x5e1   : > { %12288 = vmatprep.mubr.msk.f32.mxu0 %vm7592_vm4, %v7585_v11  ;;  %12306 = vmatpush3.msra.mxu1 %v8719_v36 }
 0x5e2   : > { %12289 = vmatmul.mubr.msk.f32.vlgmr.msra.gmra.mxu0 %vm7592_vm4, %v7586_v32  ;;  %12307 = vmatprep.subr.mxu1 %v8718_v60 }
 0x5e3   : > { %12308 = vmatpush3.msra.mxu1 %v8718_v60  ;;  %12325 = vmatpush3.msk.msra.mxu0 %vm8843_vm5, %v8828_v62  ;;  %v8819_v62 = vld [vmem:[%s16925_s9 + $0x8] sm:$0xff] }
 0x5e4   : > { %12309 = vmatprep.subr.mxu1 %v8717_v52  ;;  %12326 = vmatprep.subr.mxu0 %v8827_v15 }
 0x5e5   : > { %12310 = vmatpush3.msra.mxu1 %v8717_v52  ;;  %12327 = vmatpush3.msra.mxu0 %v8827_v15  ;;  %v8818_v15 = vld [vmem:[%s16925_s9] sm:$0xff] }
 0x5e6   : > { %12311 = vmatprep.subr.mxu1 %v8716_v48  ;;  %12328 = vmatprep.subr.mxu0 %v8826_v33 }
 0x5e7   : > { %12312 = vmatpush3.msra.mxu1 %v8716_v48  ;;  %12329 = vmatpush3.msra.mxu0 %v8826_v33  ;;  %v9928_v33 = vld [vmem:[%s16924_s8] ss:$0 sm:$0xff] }
 0x5e8   : > { %12313 = vmatprep.subr.mxu1 %v8715_v20  ;;  %12330 = vmatprep.subr.mxu0 %v8825_v47 }
 0x5e9   : > { %12314 = vmatpush3.msra.mxu1 %v8715_v20  ;;  %12331 = vmatpush3.msra.mxu0 %v8825_v47 }
 0x5ea   : > { %12315 = vmatprep.subr.mxu1 %v8714_v24  ;;  %12332 = vmatprep.subr.mxu0 %v8824_v2 }
 0x5eb   : > { %12316 = vmatpush3.msra.mxu1 %v8714_v24  ;;  %12333 = vmatpush3.msra.mxu0 %v8824_v2 }
 0x5ec   : > { %12317 = vmatprep.subr.mxu1 %v8713_v37  ;;  %12334 = vmatprep.subr.mxu0 %v8823_v28 }
 0x5ed   : > { %12318 = vmatpush3.msra.mxu1 %v8713_v37  ;;  %12335 = vmatpush3.msra.mxu0 %v8823_v28  ;;  %v8821_v37 = vld [vmem:[%s16925_s9 + $0x18] sm:$0xff] }
 0x5ee   : > { %12319 = vmatprep.subr.mxu1 %v8712_v23  ;;  %12336 = vmatprep.subr.mxu0 %v8822_v61 }
 0x5ef   : > { %12320 = vmatpush3.msra.mxu1 %v8712_v23  ;;  %12337 = vmatpush3.msra.mxu0 %v8822_v61  ;;  %v8820_v23 = vld [vmem:[%s16925_s9 + $0x10] sm:$0xff] }
 0x5f0   : > { %12338 = vmatprep.subr.mxu0 %v8821_v37 }
 0x5f1   : > { %12339 = vmatpush3.msra.mxu0 %v8821_v37 }
 0x5f2   : > { %12340 = vmatprep.subr.mxu0 %v8820_v23 }
 0x5f3   : > { %12341 = vmatpush3.msra.mxu0 %v8820_v23 }
 0x5f4   : > { %12342 = vmatprep.subr.mxu0 %v8819_v62 }
 0x5f5   : > { %12343 = vmatpush3.msra.mxu0 %v8819_v62 }
 0x5f6   : > { %12344 = vmatprep.subr.mxu0 %v8818_v15 }
 0x5f7   : > { %12345 = vmatpush3.msra.mxu0 %v8818_v15 }
 0x64a   : > { %v12206_v35 = vpop.f32.mrf.mxu0 }
 0x64c   : > { %v7665_v41 = vpop.f32.mrf.mxu0 }
 0x64e   : > { %v12213_v54 = vpop.f32.mrf.mxu0 }
 0x64f   : > { %v7752_v43 = vadd.f32 %v12213_v54, %v12206_v35 }
 0x650   : > { %v7746_v8 = vpop.f32.mrf.mxu0 }
 0x651   : > { %v7747_v4 = vadd.f32 %v7746_v8, %v7665_v41  ;;  %v9931_v8 = vld [vmem:[%s16926_s10] ss:$0 sm:$0xff] }
 0x652   : > { %v12220_v22 = vpop.f32.mrf.mxu0 }
 0x653   : > { %v7840_v5 = vadd.f32 %v12220_v22, %v7752_v43 }
 0x654   : > { %v7830_v63 = vpop.f32.mrf.mxu0 }
 0x655   : > { %v7839_v34 = vadd.f32 %v7830_v63, %v7747_v4 }
 0x65a   : > { %v12227_v12 = vpop.f32.mrf.mxu0 }
 0x65b   : > { %v7926_v29 = vadd.f32 %v12227_v12, %v7840_v5 }
 0x65c   : > { %v7916_v18 = vpop.f32.mrf.mxu0 }
 0x65d   : > { %v7925_v21 = vadd.f32 %v7916_v18, %v7839_v34 }
 0x662   : > { %v12234_v42 = vpop.f32.mrf.mxu0 }
 0x663   : > { %v8012_v59 = vadd.f32 %v12234_v42, %v7926_v29 }
 0x664   : > { %v8002_v27 = vpop.f32.mrf.mxu0 }
 0x665   : > { %v8011_v0 = vadd.f32 %v8002_v27, %v7925_v21 }
 0x66a   : > { %v12241_v6 = vpop.f32.mrf.mxu0 }
 0x66b   : > { %v8098_v9 = vadd.f32 %v12241_v6, %v8012_v59 }
 0x66c   : > { %v8088_v50 = vpop.f32.mrf.mxu0 }
 0x66d   : > { %v8097_v10 = vadd.f32 %v8088_v50, %v8011_v0 }
 0x672   : > { %v12248_v58 = vpop.f32.mrf.mxu0 }
 0x673   : > { %v8184_v56 = vadd.f32 %v12248_v58, %v8098_v9 }
 0x674   : > { %v8174_v45 = vpop.f32.mrf.mxu0 }
 0x675   : > { %v8183_v57 = vadd.f32 %v8174_v45, %v8097_v10 }
 0x67a   : > { %v12255_v17 = vpop.f32.mrf.mxu0 }
 0x67b   : > { %v8270_v19 = vadd.f32 %v12255_v17, %v8184_v56 }
 0x67c   : > { %v8260_v44 = vpop.f32.mrf.mxu0 }
 0x67d   : > { %v8269_v1 = vadd.f32 %v8260_v44, %v8183_v57 }
 0x682   : > { %v12262_v26 = vpop.f32.mrf.mxu0 }
 0x683   : > { %v8356_v25 = vadd.f32 %v12262_v26, %v8270_v19 }
 0x684   : > { %v8346_v13 = vpop.f32.mrf.mxu0 }
 0x685   : > { %v8355_v46 = vadd.f32 %v8346_v13, %v8269_v1 }
 0x68a   : > { %v12269_v55 = vpop.f32.mrf.mxu0 }
 0x68b   : > { %v8442_v30 = vadd.f32 %v12269_v55, %v8356_v25 }
 0x68c   : > { %v8432_v39 = vpop.f32.mrf.mxu0 }
 0x68d   : > { %v8441_v40 = vadd.f32 %v8432_v39, %v8355_v46 }
 0x692   : > { %v12276_v16 = vpop.f32.mrf.mxu0 }
 0x693   : > { %v8528_v38 = vadd.f32 %v12276_v16, %v8442_v30 }
 0x694   : > { %v8518_v51 = vpop.f32.mrf.mxu0 }
 0x695   : > { %v8527_v32 = vadd.f32 %v8518_v51, %v8441_v40 }
 0x69a   : > { %v12283_v14 = vpop.f32.mrf.mxu0 }
 0x69b   : > { %v8614_v49 = vadd.f32 %v12283_v14, %v8528_v38 }
 0x69c   : > { %v8604_v31 = vpop.f32.mrf.mxu0 }
 0x69d   : > { %v8613_v11 = vadd.f32 %v8604_v31, %v8527_v32 }
 0x6a2   : > { %v12290_v3 = vpop.f32.mrf.mxu0 }
 0x6a3   : > { %v8700_v7 = vadd.f32 %v12290_v3, %v8614_v49 }
 0x6a4   : > { %v8690_v36 = vpop.f32.mrf.mxu0 }
 0x6a5   : > { %v8699_v60 = vadd.f32 %v8690_v36, %v8613_v11  ;;  %v8709_v52 = vadd.f32 %v9927_v53, %v8700_v7 }
 0x6a7   : > { %v8708_v48 = vadd.f32 %v9927_v53, %v8699_v60  ;;  %v8711_v24 = vmax.f32 %v8709_v52, 0.0 }
 0x6a9   : > { %v8710_v20 = vmax.f32 %v8708_v48, 0.0 }
 0x6ab   : > { %12321 = vmatprep.mubr.msk.f32.mxu1 %vm8734_vm6, %v8710_v20 }
 0x6ac   : > { %12322 = vmatmul.mubr.msk.f32.vlgmr.msra.gmra.mxu1 %vm8734_vm6, %v8711_v24 }
 0x76c   : > { %v12323_v47 = vpop.f32.mrf.mxu1 }
 0x76d   : > { %v8813_v2 = vadd.f32 %v12323_v47, %v9928_v33 }
 0x76e   : > { %v8807_v28 = vpop.f32.mrf.mxu1 }
 0x76f   : > { %v8808_v61 = vadd.f32 %v9928_v33, %v8807_v28  ;;  %v8817_v41 = vmax.f32 %v8813_v2, 0.0 }
 0x771   : > { %v8816_v35 = vmax.f32 %v8808_v61, 0.0 }
 0x773   : > { %12346 = vmatprep.mubr.msk.f32.mxu0 %vm8836_vm7, %v8816_v35 }
 0x774   : > { %12347 = vmatmul.mubr.msk.f32.vlgmr.msra.gmra.mxu0 %vm8836_vm7, %v8817_v41 }
 0x834   : > { %v12348_v54 = vpop.f32.mrf.mxu0 }
 0x835   : > { %v8919_v12 = vadd.f32 %v12348_v54, %v9931_v8 }
 0x836   : > { %v8913_v22 = vpop.f32.mrf.mxu0 }
 0x837   : > { %v8914_v63 = vadd.f32 %v9931_v8, %v8913_v22  ;;  %8923 = vst [vmem:[%s931_s16 + $0x8] sm:$0xff] %v8919_v12 }
 0x839   : > { %8922 = vst [vmem:[%s931_s16] sm:$0xff] %v8914_v63 }
 0x83a PF: > { %p18_p9 = scmp.ge.s32.totalorder %s12655_s21, 4   ;;  %s17694_s17 = smov %s12572_s18 }
 0x83b   : > { %s17695_s18 = smov %s12664_s24  ;;  %s17696_s19 = smov %s12655_s21 }
 0x83c   :  { %20 = sbr.rel (!%p18_p9) target bundleno = 2 (0x2), region = 157 }

</bundles_post_ra>
